<compile_context>
chip_gen: v7x
topology: tpu7x:2x2x1
jax: 0.10.0
libtpu: 0.0.40
codegen_flags: <defaults>
</compile_context>

<pallas_src>
import functools

import jax
import jax.numpy as jnp
from jax import lax
from jax.experimental import pallas as pl
from jax.experimental.pallas import tpu as pltpu


BN_EPS = 1e-5
FC1_TILE = 256
FC1_TILES = 4          # 1024 output features / 256-wide weight tiles


# ------------------------------ Pallas kernel ---------------------------------


def _bn_relu(raw, g, b, eps):
    # ReLU followed by training-mode batch norm: per-column stats over ALL rows
    # of `raw` (rows = full batch x spatial), so this must never be row-tiled.
    y = jnp.maximum(raw, 0.0)
    mean = jnp.mean(y, axis=0, keepdims=True)
    var = jnp.mean(jnp.square(y - mean), axis=0, keepdims=True)
    return (y - mean) * lax.rsqrt(var + eps) * g + b


def _eshared_kernel(patches3_ref, w3_ref, g3_ref, b3_ref,
                    w4_ref, g4_ref, b4_ref,
                    w1_ref, g1_ref, b1_ref,
                    w2_ref, g2_ref, b2_ref,
                    o_ref,
                    p4_ref, fc1in_ref, fc1out_ref,
                    *, eps, batch):
    j = pl.program_id(0)
    B = batch

    @pl.when(j == 0)
    def _convs():
        # ---- conv3: single matmul over pre-im2col'd patches, ReLU + BN -------
        y3 = jnp.dot(patches3_ref[...], w3_ref[...],
                     preferred_element_type=jnp.float32)          # [64*B, 128]
        y3 = _bn_relu(y3, g3_ref[...], b3_ref[...], eps)
        # y3 rows are ordered (pi, m, pj, n, b) with conv3 output pixel
        # (i, j) = (2m + pi, 2n + pj); this makes the conv4 patch extraction
        # below consist purely of contiguous static slices.

        # ---- conv4 im2col built in-kernel (stride 2, pad 1, 3x3) -------------
        p4_ref[...] = jnp.zeros_like(p4_ref)
        for dh in range(3):
            pi, am = [(1, 0), (0, 1), (1, 1)][dh]
            for dw in range(3):
                pj, an = [(1, 0), (0, 1), (1, 1)][dw]
                k = dh * 3 + dw
                v0 = 1 - an               # first valid output column (pad at v<v0)
                nv = 4 - v0
                for u in range(4):
                    m = u + am - 1
                    if m < 0:
                        continue          # reads the zero-pad row: leave zeros
                    src = (((pi * 4 + m) * 2 + pj) * 4) * B
                    dst = (u * 4 + v0) * B
                    p4_ref[dst:dst + nv * B, k * 128:(k + 1) * 128] = (
                        y3[src:src + nv * B, :])

        # ---- conv4 matmul, ReLU + BN ----------------------------------------
        y4 = jnp.dot(p4_ref[...].astype(jnp.bfloat16), w4_ref[...],
                     preferred_element_type=jnp.float32)          # [16*B, 256], rows (u, v, b)
        y4 = _bn_relu(y4, g4_ref[...], b4_ref[...], eps)

        # ---- fc1 input: per-sample (h, w, c) flatten (fc1 weight rows match) --
        for i in range(16):
            fc1in_ref[:, i * 256:(i + 1) * 256] = y4[i * B:(i + 1) * B, :]

    # ---- fc1 column tile j: weight block streamed per grid step --------------
    h1 = jnp.dot(fc1in_ref[...].astype(jnp.bfloat16), w1_ref[0],
                 preferred_element_type=jnp.float32)              # [B, 256]
    fc1out_ref[j] = _bn_relu(h1, g1_ref[...], b1_ref[...], eps)

    # TODO(synk): dropout2 is an inference-mode identity; the training-mode
    # scaled-Bernoulli mask is not replicated.

    # ---- fc2 + ReLU + BN once every fc1 tile is available --------------------
    @pl.when(j == pl.num_programs(0) - 1)
    def _fc2():
        acc = jnp.zeros((B, 1024), jnp.float32)
        for t in range(FC1_TILES):
            acc += jnp.dot(fc1out_ref[t].astype(jnp.bfloat16),
                           w2_ref[t * FC1_TILE:(t + 1) * FC1_TILE, :],
                           preferred_element_type=jnp.float32)
        o_ref[...] = _bn_relu(acc, g2_ref[...], b2_ref[...], eps)


# --------------------------------- wrapper ------------------------------------


def eshared_forward(x_nchw, mp):
    B = x_nchw.shape[0]
    # conv3 im2col on the tiny network input (the only XLA-side layout work),
    # with rows permuted to (pi, m, pj, n, b) so conv4's in-kernel patch
    # extraction uses only contiguous slices.  Column order is (kh, kw, cin).
    x = jnp.transpose(x_nchw, (0, 2, 3, 1))                        # NHWC [B,16,16,64]
    xp = jnp.pad(x, ((0, 0), (1, 1), (1, 1), (0, 0)))
    cols = [xp[:, dh:dh + 15:2, dw:dw + 15:2, :]
            for dh in range(3) for dw in range(3)]
    p = jnp.concatenate(cols, axis=-1)                             # [B,8,8,576]
    p = p.reshape(B, 4, 2, 4, 2, 576).transpose(2, 1, 4, 3, 0, 5)  # [pi,m,pj,n,B,576]
    patches3 = p.reshape(64 * B, 576).astype(jnp.bfloat16)

    kernel = functools.partial(_eshared_kernel, eps=BN_EPS, batch=B)
    const = lambda shape: pl.BlockSpec(shape, lambda j, _s=shape: (0,) * len(_s))
    flops = 2 * (64 * B * 576 * 128 + 16 * B * 1152 * 256
                 + B * 4096 * 1024 + B * 1024 * 1024)
    bytes_accessed = (patches3.size * 2 + mp["w3m"].size * 2 + mp["w4m"].size * 2
                      + mp["w1m"].size * 2 + mp["w2m"].size * 2
                      + B * 1024 * 4 + 6 * 1024 * 4)

    return pl.pallas_call(
        kernel,
        out_shape=jax.ShapeDtypeStruct((B, 1024), jnp.float32),
        grid=(FC1_TILES,),
        in_specs=[
            const((64 * B, 576)),                 # conv3 patches (bf16, resident)
            const((576, 128)),                    # conv3 weight
            const((1, 128)), const((1, 128)),     # gamma3 / beta3
            const((1152, 256)),                   # conv4 weight
            const((1, 256)), const((1, 256)),     # gamma4 / beta4
            pl.BlockSpec((1, 4096, FC1_TILE), lambda j: (j, 0, 0)),  # fc1 weight tile (contiguous 2 MiB)
            pl.BlockSpec((1, FC1_TILE), lambda j: (0, j)),           # gfc1 tile
            pl.BlockSpec((1, FC1_TILE), lambda j: (0, j)),           # bfc1 tile
            const((1024, 1024)),                  # fc2 weight (resident)
            const((1, 1024)), const((1, 1024)),   # gfc2 / bfc2
        ],
        out_specs=pl.BlockSpec((B, 1024), lambda j: (0, 0)),
        scratch_shapes=[
            pltpu.VMEM((16 * B, 1152), jnp.float32),            # conv4 im2col patches
            pltpu.VMEM((B, 4096), jnp.float32),                 # fc1 input (flattened conv4 out)
            pltpu.VMEM((FC1_TILES, B, FC1_TILE), jnp.float32),  # fc1 output tiles
        ],
        compiler_params=pltpu.CompilerParams(dimension_semantics=("arbitrary",)),
        cost_estimate=pl.CostEstimate(flops=flops, transcendentals=0,
                                      bytes_accessed=bytes_accessed),
    )(patches3, mp["w3m"], mp["g3"], mp["b3"],
      mp["w4m"], mp["g4"], mp["b4"],
      mp["w1m"], mp["g1"], mp["b1"],
      mp["w2m"], mp["g2"], mp["b2"])


def prepare_params(p):
    """One-time (outside the hot path) weight re-layout + bf16 cast."""
    def conv_w(w_oihw):  # [Cout, Cin, 3, 3] -> [(kh, kw, cin), Cout] bf16
        cout = w_oihw.shape[0]
        return jnp.transpose(w_oihw, (2, 3, 1, 0)).reshape(-1, cout).astype(jnp.bfloat16)

    row2 = lambda v: v.reshape(1, -1).astype(jnp.float32)

    # PyTorch flattens NCHW (columns ordered (c, h, w)); our kernel's flatten is
    # (h, w, c).  Permute fc1's input dim accordingly, pre-transpose to [K, N],
    # and split into per-256-column-tile contiguous blocks [4, K, 256].
    nfc1, kfc1 = p["wfc1"].shape
    w1 = p["wfc1"].reshape(nfc1, 256, 4, 4)
    w1 = jnp.transpose(w1, (2, 3, 1, 0)).reshape(kfc1, nfc1)       # [(h,w,c), N]
    w1 = w1.reshape(kfc1, FC1_TILES, FC1_TILE).transpose(1, 0, 2).astype(jnp.bfloat16)

    return {
        "w3m": conv_w(p["w3"]), "g3": row2(p["g3"]), "b3": row2(p["b3"]),
        "w4m": conv_w(p["w4"]), "g4": row2(p["g4"]), "b4": row2(p["b4"]),
        "w1m": w1, "g1": row2(p["gfc1"]), "b1": row2(p["bfc1"]),
        "w2m": jnp.transpose(p["wfc2"]).astype(jnp.bfloat16),
        "g2": row2(p["gfc2"]), "b2": row2(p["bfc2"]),
    }


# --------------------------- pure-JAX reference --------------------------------
# Mirrors the kernel's numerics (bf16-rounded matmul inputs, f32 accumulation,
# f32 training-mode BN) so the assertion checks the Pallas implementation rather
# than the deliberate bf16 weight-storage choice.


def reference_forward(x, p, eps=BN_EPS):
    hi = lax.Precision.HIGHEST
    bf = lambda t: t.astype(jnp.bfloat16).astype(jnp.float32)

    def conv(x, w):
        return lax.conv_general_dilated(
            bf(x), bf(w), window_strides=(2, 2), padding=((1, 1), (1, 1)),
            dimension_numbers=("NCHW", "OIHW", "NCHW"), precision=hi)

    def bn2d(x, g, b):
        m = x.mean(axis=(0, 2, 3), keepdims=True)
        v = jnp.square(x - m).mean(axis=(0, 2, 3), keepdims=True)
        return (x - m) / jnp.sqrt(v + eps) * g.reshape(1, -1, 1, 1) + b.reshape(1, -1, 1, 1)

    def bn1d(x, g, b):
        m = x.mean(axis=0, keepdims=True)
        v = jnp.square(x - m).mean(axis=0, keepdims=True)
        return (x - m) / jnp.sqrt(v + eps) * g + b

    y = bn2d(jax.nn.relu(conv(x, p["w3"])), p["g3"], p["b3"])
    y = bn2d(jax.nn.relu(conv(y, p["w4"])), p["g4"], p["b4"])
    y = y.reshape(y.shape[0], -1)
    y = bn1d(jax.nn.relu(jnp.dot(bf(y), bf(p["wfc1"]).T, precision=hi)), p["gfc1"], p["bfc1"])
    y = bn1d(jax.nn.relu(jnp.dot(bf(y), bf(p["wfc2"]).T, precision=hi)), p["gfc2"], p["bfc2"])
    return y


# ---------------------------------- main ---------------------------------------


def init_params(key):
    ks = jax.random.split(key, 8)
    f32 = jnp.float32
    return {
        "w3": 0.05 * jax.random.normal(ks[0], (128, 64, 3, 3), f32),
        "g3": 1.0 + 0.1 * jax.random.normal(ks[1], (128,), f32),
        "b3": 0.1 * jax.random.normal(ks[2], (128,), f32),
        "w4": 0.05 * jax.random.normal(ks[3], (256, 128, 3, 3), f32),
        "g4": 1.0 + 0.1 * jax.random.normal(ks[4], (256,), f32),
        "b4": 0.1 * jax.random.normal(ks[5], (256,), f32),
        "wfc1": 0.02 * jax.random.normal(ks[6], (1024, 4 * 4 * 256), f32),
        "gfc1": jnp.ones((1024,), f32),
        "bfc1": jnp.zeros((1024,), f32),
        "wfc2": 0.02 * jax.random.normal(ks[7], (1024, 1024), f32),
        "gfc2": jnp.ones((1024,), f32),
        "bfc2": jnp.zeros((1024,), f32),
    }


if __name__ == "__main__":
    key = jax.random.PRNGKey(0)
    kx, kp = jax.random.split(key)
    params = init_params(kp)
    mparams = prepare_params(params)   # one-time re-layout + bf16 cast

    # Input: batch=2, 64 channels, 16x16 spatial (NCHW), as fc1's 4*4*256 implies.
    x = jax.random.normal(kx, (2, 64, 16, 16), jnp.float32)

    fwd = jax.jit(eshared_forward)
    out = jax.block_until_ready(fwd(x, mparams))
    assert out.shape == (2, 1024) and out.dtype == jnp.float32

    ref = jax.block_until_ready(reference_forward(x, params))
    max_err = float(jnp.max(jnp.abs(out - ref)))
    # Loose bound: batch-of-2 BN amplifies tiny accumulation-order differences.
    assert max_err < 0.2, f"mismatch vs reference: {max_err}"

    print("KERNEL_OK")
</pallas_src>

<mosaic_0001>
module attributes {stable_mosaic.version = 11 : i64} {
  func.func @_eshared_kernel(%arg0: i32, %arg1: memref<128x576xbf16, #tpu.memory_space<vmem>>, %arg2: memref<576x128xbf16, #tpu.memory_space<vmem>>, %arg3: memref<1x128xf32, #tpu.memory_space<vmem>>, %arg4: memref<1x128xf32, #tpu.memory_space<vmem>>, %arg5: memref<1152x256xbf16, #tpu.memory_space<vmem>>, %arg6: memref<1x256xf32, #tpu.memory_space<vmem>>, %arg7: memref<1x256xf32, #tpu.memory_space<vmem>>, %arg8: memref<1x4096x256xbf16, #tpu.memory_space<vmem>>, %arg9: memref<1x256xf32, #tpu.memory_space<vmem>>, %arg10: memref<1x256xf32, #tpu.memory_space<vmem>>, %arg11: memref<1024x1024xbf16, #tpu.memory_space<vmem>>, %arg12: memref<1x1024xf32, #tpu.memory_space<vmem>>, %arg13: memref<1x1024xf32, #tpu.memory_space<vmem>>, %arg14: memref<2x1024xf32, #tpu.memory_space<vmem>>, %arg15: memref<32x1152xf32, #tpu.memory_space<vmem>>, %arg16: memref<2x4096xf32, #tpu.memory_space<vmem>>, %arg17: memref<4x2x256xf32, #tpu.memory_space<vmem>>) attributes {dimension_semantics = [#tpu.dimension_semantics<arbitrary>], iteration_bounds = array<i64: 4>, scalar_prefetch = 0 : i64, scratch_operands = 3 : i64, tpu.core_type = #tpu.core_type<tc>, window_params = [{pipeline_mode = #tpu.pipeline_mode<synchronous>, transform_indices = @transform_0, window_bounds = array<i64: 128, 576>}, {pipeline_mode = #tpu.pipeline_mode<synchronous>, transform_indices = @transform_1, window_bounds = array<i64: 576, 128>}, {pipeline_mode = #tpu.pipeline_mode<synchronous>, transform_indices = @transform_2, window_bounds = array<i64: 1, 128>}, {pipeline_mode = #tpu.pipeline_mode<synchronous>, transform_indices = @transform_3, window_bounds = array<i64: 1, 128>}, {pipeline_mode = #tpu.pipeline_mode<synchronous>, transform_indices = @transform_4, window_bounds = array<i64: 1152, 256>}, {pipeline_mode = #tpu.pipeline_mode<synchronous>, transform_indices = @transform_5, window_bounds = array<i64: 1, 256>}, {pipeline_mode = #tpu.pipeline_mode<synchronous>, transform_indices = @transform_6, window_bounds = array<i64: 1, 256>}, {transform_indices = @transform_7, window_bounds = array<i64: 1, 4096, 256>}, {transform_indices = @transform_8, window_bounds = array<i64: 1, 256>}, {transform_indices = @transform_9, window_bounds = array<i64: 1, 256>}, {pipeline_mode = #tpu.pipeline_mode<synchronous>, transform_indices = @transform_10, window_bounds = array<i64: 1024, 1024>}, {pipeline_mode = #tpu.pipeline_mode<synchronous>, transform_indices = @transform_11, window_bounds = array<i64: 1, 1024>}, {pipeline_mode = #tpu.pipeline_mode<synchronous>, transform_indices = @transform_12, window_bounds = array<i64: 1, 1024>}, {pipeline_mode = #tpu.pipeline_mode<synchronous>, transform_indices = @transform_13, window_bounds = array<i64: 2, 1024>}]} {
    %c0_i32 = arith.constant 0 : i32
    %0 = arith.cmpi eq, %arg0, %c0_i32 : i32
    %1 = arith.extui %0 : i1 to i32
    %c0_i32_0 = arith.constant 0 : i32
    %2 = arith.cmpi ne, %1, %c0_i32_0 : i32
    scf.if %2 {
      %c0_18 = arith.constant 0 : index
      %c0_19 = arith.constant 0 : index
      %41 = vector.load %arg1[%c0_18, %c0_19] : memref<128x576xbf16, #tpu.memory_space<vmem>>, vector<128x576xbf16>
      %c0_20 = arith.constant 0 : index
      %c0_21 = arith.constant 0 : index
      %42 = vector.load %arg2[%c0_20, %c0_21] : memref<576x128xbf16, #tpu.memory_space<vmem>>, vector<576x128xbf16>
      %cst_22 = arith.constant dense<0.000000e+00> : vector<128x128xf32>
      %43 = tpu.matmul %41, %42, %cst_22 {dimension_numbers = #tpu.dot_dimension_numbers<[1], [0], [0], [1], [0, 0, 1, 1], [], []>} : vector<128x576xbf16>, vector<576x128xbf16>, vector<128x128xf32> -> vector<128x128xf32>
      %c0_23 = arith.constant 0 : index
      %c0_24 = arith.constant 0 : index
      %44 = vector.load %arg3[%c0_23, %c0_24] : memref<1x128xf32, #tpu.memory_space<vmem>>, vector<1x128xf32>
      %c0_25 = arith.constant 0 : index
      %c0_26 = arith.constant 0 : index
      %45 = vector.load %arg4[%c0_25, %c0_26] : memref<1x128xf32, #tpu.memory_space<vmem>>, vector<1x128xf32>
      %cst_27 = arith.constant 0.000000e+00 : f32
      %46 = vector.broadcast %cst_27 : f32 to vector<128x128xf32>
      %47 = arith.maximumf %43, %46 : vector<128x128xf32>
      %cst_28 = arith.constant dense<0.000000e+00> : vector<128xf32>
      %48 = vector.multi_reduction <add>, %47, %cst_28 [0] : vector<128x128xf32> to vector<128xf32>
      %49 = vector.shape_cast %48 : vector<128xf32> to vector<1x128xf32>
      %cst_29 = arith.constant 1.280000e+02 : f32
      %50 = vector.broadcast %cst_29 : f32 to vector<1x128xf32>
      %51 = arith.divf %49, %50 : vector<1x128xf32>
      %52 = vector.broadcast %51 : vector<1x128xf32> to vector<128x128xf32>
      %53 = arith.subf %47, %52 : vector<128x128xf32>
      %54 = arith.mulf %53, %53 : vector<128x128xf32>
      %cst_30 = arith.constant dense<0.000000e+00> : vector<128xf32>
      %55 = vector.multi_reduction <add>, %54, %cst_30 [0] : vector<128x128xf32> to vector<128xf32>
      %56 = vector.shape_cast %55 : vector<128xf32> to vector<1x128xf32>
      %cst_31 = arith.constant 1.280000e+02 : f32
      %57 = vector.broadcast %cst_31 : f32 to vector<1x128xf32>
      %58 = arith.divf %56, %57 : vector<1x128xf32>
      %59 = vector.broadcast %51 : vector<1x128xf32> to vector<128x128xf32>
      %60 = arith.subf %47, %59 : vector<128x128xf32>
      %cst_32 = arith.constant 9.99999974E-6 : f32
      %61 = vector.broadcast %cst_32 : f32 to vector<1x128xf32>
      %62 = arith.addf %58, %61 : vector<1x128xf32>
      %63 = math.rsqrt %62 : vector<1x128xf32>
      %64 = vector.broadcast %63 : vector<1x128xf32> to vector<128x128xf32>
      %65 = arith.mulf %60, %64 : vector<128x128xf32>
      %66 = vector.broadcast %44 : vector<1x128xf32> to vector<128x128xf32>
      %67 = arith.mulf %65, %66 : vector<128x128xf32>
      %68 = vector.broadcast %45 : vector<1x128xf32> to vector<128x128xf32>
      %69 = arith.addf %67, %68 : vector<128x128xf32>
      %cst_33 = arith.constant 0.000000e+00 : f32
      %70 = vector.broadcast %cst_33 : f32 to vector<32x1152xf32>
      %c0_34 = arith.constant 0 : index
      %c0_35 = arith.constant 0 : index
      %71 = vector.load %arg15[%c0_34, %c0_35] : memref<32x1152xf32, #tpu.memory_space<vmem>>, vector<32x1152xf32>
      tpu.vector_store %arg15[%c0_34, %c0_35], %70 {strides = array<i32>} : memref<32x1152xf32, #tpu.memory_space<vmem>>, vector<32x1152xf32>,
      %72 = vector.extract_strided_slice %69 {offsets = [72, 0], sizes = [6, 128], strides = [1, 1]} : vector<128x128xf32> to vector<6x128xf32>
      %c10 = arith.constant 10 : index
      %c0_36 = arith.constant 0 : index
      %73 = vector.load %arg15[%c10, %c0_36] : memref<32x1152xf32, #tpu.memory_space<vmem>>, vector<6x128xf32>
      tpu.vector_store %arg15[%c10, %c0_36], %72 {strides = array<i32>} : memref<32x1152xf32, #tpu.memory_space<vmem>>, vector<6x128xf32>,
      %74 = vector.extract_strided_slice %69 {offsets = [88, 0], sizes = [6, 128], strides = [1, 1]} : vector<128x128xf32> to vector<6x128xf32>
      %c18 = arith.constant 18 : index
      %c0_37 = arith.constant 0 : index
      %75 = vector.load %arg15[%c18, %c0_37] : memref<32x1152xf32, #tpu.memory_space<vmem>>, vector<6x128xf32>
      tpu.vector_store %arg15[%c18, %c0_37], %74 {strides = array<i32>} : memref<32x1152xf32, #tpu.memory_space<vmem>>, vector<6x128xf32>,
      %76 = vector.extract_strided_slice %69 {offsets = [104, 0], sizes = [6, 128], strides = [1, 1]} : vector<128x128xf32> to vector<6x128xf32>
      %c26 = arith.constant 26 : index
      %c0_38 = arith.constant 0 : index
      %77 = vector.load %arg15[%c26, %c0_38] : memref<32x1152xf32, #tpu.memory_space<vmem>>, vector<6x128xf32>
      tpu.vector_store %arg15[%c26, %c0_38], %76 {strides = array<i32>} : memref<32x1152xf32, #tpu.memory_space<vmem>>, vector<6x128xf32>,
      %78 = vector.extract_strided_slice %69 {offsets = [64, 0], sizes = [8, 128], strides = [1, 1]} : vector<128x128xf32> to vector<8x128xf32>
      %c8 = arith.constant 8 : index
      %c128 = arith.constant 128 : index
      %79 = vector.load %arg15[%c8, %c128] : memref<32x1152xf32, #tpu.memory_space<vmem>>, vector<8x128xf32>
      tpu.vector_store %arg15[%c8, %c128], %78 {strides = array<i32>} : memref<32x1152xf32, #tpu.memory_space<vmem>>, vector<8x128xf32>,
      %80 = vector.extract_strided_slice %69 {offsets = [80, 0], sizes = [8, 128], strides = [1, 1]} : vector<128x128xf32> to vector<8x128xf32>
      %c16 = arith.constant 16 : index
      %c128_39 = arith.constant 128 : index
      %81 = vector.load %arg15[%c16, %c128_39] : memref<32x1152xf32, #tpu.memory_space<vmem>>, vector<8x128xf32>
      tpu.vector_store %arg15[%c16, %c128_39], %80 {strides = array<i32>} : memref<32x1152xf32, #tpu.memory_space<vmem>>, vector<8x128xf32>,
      %82 = vector.extract_strided_slice %69 {offsets = [96, 0], sizes = [8, 128], strides = [1, 1]} : vector<128x128xf32> to vector<8x128xf32>
      %c24 = arith.constant 24 : index
      %c128_40 = arith.constant 128 : index
      %83 = vector.load %arg15[%c24, %c128_40] : memref<32x1152xf32, #tpu.memory_space<vmem>>, vector<8x128xf32>
      tpu.vector_store %arg15[%c24, %c128_40], %82 {strides = array<i32>} : memref<32x1152xf32, #tpu.memory_space<vmem>>, vector<8x128xf32>,
      %84 = vector.extract_strided_slice %69 {offsets = [72, 0], sizes = [8, 128], strides = [1, 1]} : vector<128x128xf32> to vector<8x128xf32>
      %c8_41 = arith.constant 8 : index
      %c256 = arith.constant 256 : index
      %85 = vector.load %arg15[%c8_41, %c256] : memref<32x1152xf32, #tpu.memory_space<vmem>>, vector<8x128xf32>
      tpu.vector_store %arg15[%c8_41, %c256], %84 {strides = array<i32>} : memref<32x1152xf32, #tpu.memory_space<vmem>>, vector<8x128xf32>,
      %86 = vector.extract_strided_slice %69 {offsets = [88, 0], sizes = [8, 128], strides = [1, 1]} : vector<128x128xf32> to vector<8x128xf32>
      %c16_42 = arith.constant 16 : index
      %c256_43 = arith.constant 256 : index
      %87 = vector.load %arg15[%c16_42, %c256_43] : memref<32x1152xf32, #tpu.memory_space<vmem>>, vector<8x128xf32>
      tpu.vector_store %arg15[%c16_42, %c256_43], %86 {strides = array<i32>} : memref<32x1152xf32, #tpu.memory_space<vmem>>, vector<8x128xf32>,
      %88 = vector.extract_strided_slice %69 {offsets = [104, 0], sizes = [8, 128], strides = [1, 1]} : vector<128x128xf32> to vector<8x128xf32>
      %c24_44 = arith.constant 24 : index
      %c256_45 = arith.constant 256 : index
      %89 = vector.load %arg15[%c24_44, %c256_45] : memref<32x1152xf32, #tpu.memory_space<vmem>>, vector<8x128xf32>
      tpu.vector_store %arg15[%c24_44, %c256_45], %88 {strides = array<i32>} : memref<32x1152xf32, #tpu.memory_space<vmem>>, vector<8x128xf32>,
      %90 = vector.extract_strided_slice %69 {offsets = [8, 0], sizes = [6, 128], strides = [1, 1]} : vector<128x128xf32> to vector<6x128xf32>
      %c2 = arith.constant 2 : index
      %c384 = arith.constant 384 : index
      %91 = vector.load %arg15[%c2, %c384] : memref<32x1152xf32, #tpu.memory_space<vmem>>, vector<6x128xf32>
      tpu.vector_store %arg15[%c2, %c384], %90 {strides = array<i32>} : memref<32x1152xf32, #tpu.memory_space<vmem>>, vector<6x128xf32>,
      %92 = vector.extract_strided_slice %69 {offsets = [24, 0], sizes = [6, 128], strides = [1, 1]} : vector<128x128xf32> to vector<6x128xf32>
      %c10_46 = arith.constant 10 : index
      %c384_47 = arith.constant 384 : index
      %93 = vector.load %arg15[%c10_46, %c384_47] : memref<32x1152xf32, #tpu.memory_space<vmem>>, vector<6x128xf32>
      tpu.vector_store %arg15[%c10_46, %c384_47], %92 {strides = array<i32>} : memref<32x1152xf32, #tpu.memory_space<vmem>>, vector<6x128xf32>,
      %94 = vector.extract_strided_slice %69 {offsets = [40, 0], sizes = [6, 128], strides = [1, 1]} : vector<128x128xf32> to vector<6x128xf32>
      %c18_48 = arith.constant 18 : index
      %c384_49 = arith.constant 384 : index
      %95 = vector.load %arg15[%c18_48, %c384_49] : memref<32x1152xf32, #tpu.memory_space<vmem>>, vector<6x128xf32>
      tpu.vector_store %arg15[%c18_48, %c384_49], %94 {strides = array<i32>} : memref<32x1152xf32, #tpu.memory_space<vmem>>, vector<6x128xf32>,
      %96 = vector.extract_strided_slice %69 {offsets = [56, 0], sizes = [6, 128], strides = [1, 1]} : vector<128x128xf32> to vector<6x128xf32>
      %c26_50 = arith.constant 26 : index
      %c384_51 = arith.constant 384 : index
      %97 = vector.load %arg15[%c26_50, %c384_51] : memref<32x1152xf32, #tpu.memory_space<vmem>>, vector<6x128xf32>
      tpu.vector_store %arg15[%c26_50, %c384_51], %96 {strides = array<i32>} : memref<32x1152xf32, #tpu.memory_space<vmem>>, vector<6x128xf32>,
      %98 = vector.extract_strided_slice %69 {offsets = [0, 0], sizes = [8, 128], strides = [1, 1]} : vector<128x128xf32> to vector<8x128xf32>
      %c0_52 = arith.constant 0 : index
      %c512 = arith.constant 512 : index
      %99 = vector.load %arg15[%c0_52, %c512] : memref<32x1152xf32, #tpu.memory_space<vmem>>, vector<8x128xf32>
      tpu.vector_store %arg15[%c0_52, %c512], %98 {strides = array<i32>} : memref<32x1152xf32, #tpu.memory_space<vmem>>, vector<8x128xf32>,
      %100 = vector.extract_strided_slice %69 {offsets = [16, 0], sizes = [8, 128], strides = [1, 1]} : vector<128x128xf32> to vector<8x128xf32>
      %c8_53 = arith.constant 8 : index
      %c512_54 = arith.constant 512 : index
      %101 = vector.load %arg15[%c8_53, %c512_54] : memref<32x1152xf32, #tpu.memory_space<vmem>>, vector<8x128xf32>
      tpu.vector_store %arg15[%c8_53, %c512_54], %100 {strides = array<i32>} : memref<32x1152xf32, #tpu.memory_space<vmem>>, vector<8x128xf32>,
      %102 = vector.extract_strided_slice %69 {offsets = [32, 0], sizes = [8, 128], strides = [1, 1]} : vector<128x128xf32> to vector<8x128xf32>
      %c16_55 = arith.constant 16 : index
      %c512_56 = arith.constant 512 : index
      %103 = vector.load %arg15[%c16_55, %c512_56] : memref<32x1152xf32, #tpu.memory_space<vmem>>, vector<8x128xf32>
      tpu.vector_store %arg15[%c16_55, %c512_56], %102 {strides = array<i32>} : memref<32x1152xf32, #tpu.memory_space<vmem>>, vector<8x128xf32>,
      %104 = vector.extract_strided_slice %69 {offsets = [48, 0], sizes = [8, 128], strides = [1, 1]} : vector<128x128xf32> to vector<8x128xf32>
      %c24_57 = arith.constant 24 : index
      %c512_58 = arith.constant 512 : index
      %105 = vector.load %arg15[%c24_57, %c512_58] : memref<32x1152xf32, #tpu.memory_space<vmem>>, vector<8x128xf32>
      tpu.vector_store %arg15[%c24_57, %c512_58], %104 {strides = array<i32>} : memref<32x1152xf32, #tpu.memory_space<vmem>>, vector<8x128xf32>,
      %106 = vector.extract_strided_slice %69 {offsets = [8, 0], sizes = [8, 128], strides = [1, 1]} : vector<128x128xf32> to vector<8x128xf32>
      %c0_59 = arith.constant 0 : index
      %c640 = arith.constant 640 : index
      %107 = vector.load %arg15[%c0_59, %c640] : memref<32x1152xf32, #tpu.memory_space<vmem>>, vector<8x128xf32>
      tpu.vector_store %arg15[%c0_59, %c640], %106 {strides = array<i32>} : memref<32x1152xf32, #tpu.memory_space<vmem>>, vector<8x128xf32>,
      %108 = vector.extract_strided_slice %69 {offsets = [24, 0], sizes = [8, 128], strides = [1, 1]} : vector<128x128xf32> to vector<8x128xf32>
      %c8_60 = arith.constant 8 : index
      %c640_61 = arith.constant 640 : index
      %109 = vector.load %arg15[%c8_60, %c640_61] : memref<32x1152xf32, #tpu.memory_space<vmem>>, vector<8x128xf32>
      tpu.vector_store %arg15[%c8_60, %c640_61], %108 {strides = array<i32>} : memref<32x1152xf32, #tpu.memory_space<vmem>>, vector<8x128xf32>,
      %110 = vector.extract_strided_slice %69 {offsets = [40, 0], sizes = [8, 128], strides = [1, 1]} : vector<128x128xf32> to vector<8x128xf32>
      %c16_62 = arith.constant 16 : index
      %c640_63 = arith.constant 640 : index
      %111 = vector.load %arg15[%c16_62, %c640_63] : memref<32x1152xf32, #tpu.memory_space<vmem>>, vector<8x128xf32>
      tpu.vector_store %arg15[%c16_62, %c640_63], %110 {strides = array<i32>} : memref<32x1152xf32, #tpu.memory_space<vmem>>, vector<8x128xf32>,
      %112 = vector.extract_strided_slice %69 {offsets = [56, 0], sizes = [8, 128], strides = [1, 1]} : vector<128x128xf32> to vector<8x128xf32>
      %c24_64 = arith.constant 24 : index
      %c640_65 = arith.constant 640 : index
      %113 = vector.load %arg15[%c24_64, %c640_65] : memref<32x1152xf32, #tpu.memory_space<vmem>>, vector<8x128xf32>
      tpu.vector_store %arg15[%c24_64, %c640_65], %112 {strides = array<i32>} : memref<32x1152xf32, #tpu.memory_space<vmem>>, vector<8x128xf32>,
      %114 = vector.extract_strided_slice %69 {offsets = [72, 0], sizes = [6, 128], strides = [1, 1]} : vector<128x128xf32> to vector<6x128xf32>
      %c2_66 = arith.constant 2 : index
      %c768 = arith.constant 768 : index
      %115 = vector.load %arg15[%c2_66, %c768] : memref<32x1152xf32, #tpu.memory_space<vmem>>, vector<6x128xf32>
      tpu.vector_store %arg15[%c2_66, %c768], %114 {strides = array<i32>} : memref<32x1152xf32, #tpu.memory_space<vmem>>, vector<6x128xf32>,
      %116 = vector.extract_strided_slice %69 {offsets = [88, 0], sizes = [6, 128], strides = [1, 1]} : vector<128x128xf32> to vector<6x128xf32>
      %c10_67 = arith.constant 10 : index
      %c768_68 = arith.constant 768 : index
      %117 = vector.load %arg15[%c10_67, %c768_68] : memref<32x1152xf32, #tpu.memory_space<vmem>>, vector<6x128xf32>
      tpu.vector_store %arg15[%c10_67, %c768_68], %116 {strides = array<i32>} : memref<32x1152xf32, #tpu.memory_space<vmem>>, vector<6x128xf32>,
      %118 = vector.extract_strided_slice %69 {offsets = [104, 0], sizes = [6, 128], strides = [1, 1]} : vector<128x128xf32> to vector<6x128xf32>
      %c18_69 = arith.constant 18 : index
      %c768_70 = arith.constant 768 : index
      %119 = vector.load %arg15[%c18_69, %c768_70] : memref<32x1152xf32, #tpu.memory_space<vmem>>, vector<6x128xf32>
      tpu.vector_store %arg15[%c18_69, %c768_70], %118 {strides = array<i32>} : memref<32x1152xf32, #tpu.memory_space<vmem>>, vector<6x128xf32>,
      %120 = vector.extract_strided_slice %69 {offsets = [120, 0], sizes = [6, 128], strides = [1, 1]} : vector<128x128xf32> to vector<6x128xf32>
      %c26_71 = arith.constant 26 : index
      %c768_72 = arith.constant 768 : index
      %121 = vector.load %arg15[%c26_71, %c768_72] : memref<32x1152xf32, #tpu.memory_space<vmem>>, vector<6x128xf32>
      tpu.vector_store %arg15[%c26_71, %c768_72], %120 {strides = array<i32>} : memref<32x1152xf32, #tpu.memory_space<vmem>>, vector<6x128xf32>,
      %122 = vector.extract_strided_slice %69 {offsets = [64, 0], sizes = [8, 128], strides = [1, 1]} : vector<128x128xf32> to vector<8x128xf32>
      %c0_73 = arith.constant 0 : index
      %c896 = arith.constant 896 : index
      %123 = vector.load %arg15[%c0_73, %c896] : memref<32x1152xf32, #tpu.memory_space<vmem>>, vector<8x128xf32>
      tpu.vector_store %arg15[%c0_73, %c896], %122 {strides = array<i32>} : memref<32x1152xf32, #tpu.memory_space<vmem>>, vector<8x128xf32>,
      %124 = vector.extract_strided_slice %69 {offsets = [80, 0], sizes = [8, 128], strides = [1, 1]} : vector<128x128xf32> to vector<8x128xf32>
      %c8_74 = arith.constant 8 : index
      %c896_75 = arith.constant 896 : index
      %125 = vector.load %arg15[%c8_74, %c896_75] : memref<32x1152xf32, #tpu.memory_space<vmem>>, vector<8x128xf32>
      tpu.vector_store %arg15[%c8_74, %c896_75], %124 {strides = array<i32>} : memref<32x1152xf32, #tpu.memory_space<vmem>>, vector<8x128xf32>,
      %126 = vector.extract_strided_slice %69 {offsets = [96, 0], sizes = [8, 128], strides = [1, 1]} : vector<128x128xf32> to vector<8x128xf32>
      %c16_76 = arith.constant 16 : index
      %c896_77 = arith.constant 896 : index
      %127 = vector.load %arg15[%c16_76, %c896_77] : memref<32x1152xf32, #tpu.memory_space<vmem>>, vector<8x128xf32>
      tpu.vector_store %arg15[%c16_76, %c896_77], %126 {strides = array<i32>} : memref<32x1152xf32, #tpu.memory_space<vmem>>, vector<8x128xf32>,
      %128 = vector.extract_strided_slice %69 {offsets = [112, 0], sizes = [8, 128], strides = [1, 1]} : vector<128x128xf32> to vector<8x128xf32>
      %c24_78 = arith.constant 24 : index
      %c896_79 = arith.constant 896 : index
      %129 = vector.load %arg15[%c24_78, %c896_79] : memref<32x1152xf32, #tpu.memory_space<vmem>>, vector<8x128xf32>
      tpu.vector_store %arg15[%c24_78, %c896_79], %128 {strides = array<i32>} : memref<32x1152xf32, #tpu.memory_space<vmem>>, vector<8x128xf32>,
      %130 = vector.extract_strided_slice %69 {offsets = [72, 0], sizes = [8, 128], strides = [1, 1]} : vector<128x128xf32> to vector<8x128xf32>
      %c0_80 = arith.constant 0 : index
      %c1024 = arith.constant 1024 : index
      %131 = vector.load %arg15[%c0_80, %c1024] : memref<32x1152xf32, #tpu.memory_space<vmem>>, vector<8x128xf32>
      tpu.vector_store %arg15[%c0_80, %c1024], %130 {strides = array<i32>} : memref<32x1152xf32, #tpu.memory_space<vmem>>, vector<8x128xf32>,
      %132 = vector.extract_strided_slice %69 {offsets = [88, 0], sizes = [8, 128], strides = [1, 1]} : vector<128x128xf32> to vector<8x128xf32>
      %c8_81 = arith.constant 8 : index
      %c1024_82 = arith.constant 1024 : index
      %133 = vector.load %arg15[%c8_81, %c1024_82] : memref<32x1152xf32, #tpu.memory_space<vmem>>, vector<8x128xf32>
      tpu.vector_store %arg15[%c8_81, %c1024_82], %132 {strides = array<i32>} : memref<32x1152xf32, #tpu.memory_space<vmem>>, vector<8x128xf32>,
      %134 = vector.extract_strided_slice %69 {offsets = [104, 0], sizes = [8, 128], strides = [1, 1]} : vector<128x128xf32> to vector<8x128xf32>
      %c16_83 = arith.constant 16 : index
      %c1024_84 = arith.constant 1024 : index
      %135 = vector.load %arg15[%c16_83, %c1024_84] : memref<32x1152xf32, #tpu.memory_space<vmem>>, vector<8x128xf32>
      tpu.vector_store %arg15[%c16_83, %c1024_84], %134 {strides = array<i32>} : memref<32x1152xf32, #tpu.memory_space<vmem>>, vector<8x128xf32>,
      %136 = vector.extract_strided_slice %69 {offsets = [120, 0], sizes = [8, 128], strides = [1, 1]} : vector<128x128xf32> to vector<8x128xf32>
      %c24_85 = arith.constant 24 : index
      %c1024_86 = arith.constant 1024 : index
      %137 = vector.load %arg15[%c24_85, %c1024_86] : memref<32x1152xf32, #tpu.memory_space<vmem>>, vector<8x128xf32>
      tpu.vector_store %arg15[%c24_85, %c1024_86], %136 {strides = array<i32>} : memref<32x1152xf32, #tpu.memory_space<vmem>>, vector<8x128xf32>,
      %c0_87 = arith.constant 0 : index
      %c0_88 = arith.constant 0 : index
      %138 = vector.load %arg15[%c0_87, %c0_88] : memref<32x1152xf32, #tpu.memory_space<vmem>>, vector<32x1152xf32>
      %139 = arith.truncf %138 : vector<32x1152xf32> to vector<32x1152xbf16>
      %c0_89 = arith.constant 0 : index
      %c0_90 = arith.constant 0 : index
      %140 = vector.load %arg5[%c0_89, %c0_90] : memref<1152x256xbf16, #tpu.memory_space<vmem>>, vector<1152x256xbf16>
      %cst_91 = arith.constant dense<0.000000e+00> : vector<32x256xf32>
      %141 = tpu.matmul %139, %140, %cst_91 {dimension_numbers = #tpu.dot_dimension_numbers<[1], [0], [0], [1], [0, 0, 1, 1], [], []>} : vector<32x1152xbf16>, vector<1152x256xbf16>, vector<32x256xf32> -> vector<32x256xf32>
      %c0_92 = arith.constant 0 : index
      %c0_93 = arith.constant 0 : index
      %142 = vector.load %arg6[%c0_92, %c0_93] : memref<1x256xf32, #tpu.memory_space<vmem>>, vector<1x256xf32>
      %c0_94 = arith.constant 0 : index
      %c0_95 = arith.constant 0 : index
      %143 = vector.load %arg7[%c0_94, %c0_95] : memref<1x256xf32, #tpu.memory_space<vmem>>, vector<1x256xf32>
      %cst_96 = arith.constant 0.000000e+00 : f32
      %144 = vector.broadcast %cst_96 : f32 to vector<32x256xf32>
      %145 = arith.maximumf %141, %144 : vector<32x256xf32>
      %cst_97 = arith.constant dense<0.000000e+00> : vector<256xf32>
      %146 = vector.multi_reduction <add>, %145, %cst_97 [0] : vector<32x256xf32> to vector<256xf32>
      %147 = vector.shape_cast %146 : vector<256xf32> to vector<1x256xf32>
      %cst_98 = arith.constant 3.200000e+01 : f32
      %148 = vector.broadcast %cst_98 : f32 to vector<1x256xf32>
      %149 = arith.divf %147, %148 : vector<1x256xf32>
      %150 = vector.broadcast %149 : vector<1x256xf32> to vector<32x256xf32>
      %151 = arith.subf %145, %150 : vector<32x256xf32>
      %152 = arith.mulf %151, %151 : vector<32x256xf32>
      %cst_99 = arith.constant dense<0.000000e+00> : vector<256xf32>
      %153 = vector.multi_reduction <add>, %152, %cst_99 [0] : vector<32x256xf32> to vector<256xf32>
      %154 = vector.shape_cast %153 : vector<256xf32> to vector<1x256xf32>
      %cst_100 = arith.constant 3.200000e+01 : f32
      %155 = vector.broadcast %cst_100 : f32 to vector<1x256xf32>
      %156 = arith.divf %154, %155 : vector<1x256xf32>
      %157 = vector.broadcast %149 : vector<1x256xf32> to vector<32x256xf32>
      %158 = arith.subf %145, %157 : vector<32x256xf32>
      %cst_101 = arith.constant 9.99999974E-6 : f32
      %159 = vector.broadcast %cst_101 : f32 to vector<1x256xf32>
      %160 = arith.addf %156, %159 : vector<1x256xf32>
      %161 = math.rsqrt %160 : vector<1x256xf32>
      %162 = vector.broadcast %161 : vector<1x256xf32> to vector<32x256xf32>
      %163 = arith.mulf %158, %162 : vector<32x256xf32>
      %164 = vector.broadcast %142 : vector<1x256xf32> to vector<32x256xf32>
      %165 = arith.mulf %163, %164 : vector<32x256xf32>
      %166 = vector.broadcast %143 : vector<1x256xf32> to vector<32x256xf32>
      %167 = arith.addf %165, %166 : vector<32x256xf32>
      %168 = vector.extract_strided_slice %167 {offsets = [0, 0], sizes = [2, 256], strides = [1, 1]} : vector<32x256xf32> to vector<2x256xf32>
      %c0_102 = arith.constant 0 : index
      %c0_103 = arith.constant 0 : index
      %169 = vector.load %arg16[%c0_102, %c0_103] : memref<2x4096xf32, #tpu.memory_space<vmem>>, vector<2x256xf32>
      tpu.vector_store %arg16[%c0_102, %c0_103], %168 {strides = array<i32>} : memref<2x4096xf32, #tpu.memory_space<vmem>>, vector<2x256xf32>,
      %170 = vector.extract_strided_slice %167 {offsets = [2, 0], sizes = [2, 256], strides = [1, 1]} : vector<32x256xf32> to vector<2x256xf32>
      %c0_104 = arith.constant 0 : index
      %c256_105 = arith.constant 256 : index
      %171 = vector.load %arg16[%c0_104, %c256_105] : memref<2x4096xf32, #tpu.memory_space<vmem>>, vector<2x256xf32>
      tpu.vector_store %arg16[%c0_104, %c256_105], %170 {strides = array<i32>} : memref<2x4096xf32, #tpu.memory_space<vmem>>, vector<2x256xf32>,
      %172 = vector.extract_strided_slice %167 {offsets = [4, 0], sizes = [2, 256], strides = [1, 1]} : vector<32x256xf32> to vector<2x256xf32>
      %c0_106 = arith.constant 0 : index
      %c512_107 = arith.constant 512 : index
      %173 = vector.load %arg16[%c0_106, %c512_107] : memref<2x4096xf32, #tpu.memory_space<vmem>>, vector<2x256xf32>
      tpu.vector_store %arg16[%c0_106, %c512_107], %172 {strides = array<i32>} : memref<2x4096xf32, #tpu.memory_space<vmem>>, vector<2x256xf32>,
      %174 = vector.extract_strided_slice %167 {offsets = [6, 0], sizes = [2, 256], strides = [1, 1]} : vector<32x256xf32> to vector<2x256xf32>
      %c0_108 = arith.constant 0 : index
      %c768_109 = arith.constant 768 : index
      %175 = vector.load %arg16[%c0_108, %c768_109] : memref<2x4096xf32, #tpu.memory_space<vmem>>, vector<2x256xf32>
      tpu.vector_store %arg16[%c0_108, %c768_109], %174 {strides = array<i32>} : memref<2x4096xf32, #tpu.memory_space<vmem>>, vector<2x256xf32>,
      %176 = vector.extract_strided_slice %167 {offsets = [8, 0], sizes = [2, 256], strides = [1, 1]} : vector<32x256xf32> to vector<2x256xf32>
      %c0_110 = arith.constant 0 : index
      %c1024_111 = arith.constant 1024 : index
      %177 = vector.load %arg16[%c0_110, %c1024_111] : memref<2x4096xf32, #tpu.memory_space<vmem>>, vector<2x256xf32>
      tpu.vector_store %arg16[%c0_110, %c1024_111], %176 {strides = array<i32>} : memref<2x4096xf32, #tpu.memory_space<vmem>>, vector<2x256xf32>,
      %178 = vector.extract_strided_slice %167 {offsets = [10, 0], sizes = [2, 256], strides = [1, 1]} : vector<32x256xf32> to vector<2x256xf32>
      %c0_112 = arith.constant 0 : index
      %c1280 = arith.constant 1280 : index
      %179 = vector.load %arg16[%c0_112, %c1280] : memref<2x4096xf32, #tpu.memory_space<vmem>>, vector<2x256xf32>
      tpu.vector_store %arg16[%c0_112, %c1280], %178 {strides = array<i32>} : memref<2x4096xf32, #tpu.memory_space<vmem>>, vector<2x256xf32>,
      %180 = vector.extract_strided_slice %167 {offsets = [12, 0], sizes = [2, 256], strides = [1, 1]} : vector<32x256xf32> to vector<2x256xf32>
      %c0_113 = arith.constant 0 : index
      %c1536 = arith.constant 1536 : index
      %181 = vector.load %arg16[%c0_113, %c1536] : memref<2x4096xf32, #tpu.memory_space<vmem>>, vector<2x256xf32>
      tpu.vector_store %arg16[%c0_113, %c1536], %180 {strides = array<i32>} : memref<2x4096xf32, #tpu.memory_space<vmem>>, vector<2x256xf32>,
      %182 = vector.extract_strided_slice %167 {offsets = [14, 0], sizes = [2, 256], strides = [1, 1]} : vector<32x256xf32> to vector<2x256xf32>
      %c0_114 = arith.constant 0 : index
      %c1792 = arith.constant 1792 : index
      %183 = vector.load %arg16[%c0_114, %c1792] : memref<2x4096xf32, #tpu.memory_space<vmem>>, vector<2x256xf32>
      tpu.vector_store %arg16[%c0_114, %c1792], %182 {strides = array<i32>} : memref<2x4096xf32, #tpu.memory_space<vmem>>, vector<2x256xf32>,
      %184 = vector.extract_strided_slice %167 {offsets = [16, 0], sizes = [2, 256], strides = [1, 1]} : vector<32x256xf32> to vector<2x256xf32>
      %c0_115 = arith.constant 0 : index
      %c2048 = arith.constant 2048 : index
      %185 = vector.load %arg16[%c0_115, %c2048] : memref<2x4096xf32, #tpu.memory_space<vmem>>, vector<2x256xf32>
      tpu.vector_store %arg16[%c0_115, %c2048], %184 {strides = array<i32>} : memref<2x4096xf32, #tpu.memory_space<vmem>>, vector<2x256xf32>,
      %186 = vector.extract_strided_slice %167 {offsets = [18, 0], sizes = [2, 256], strides = [1, 1]} : vector<32x256xf32> to vector<2x256xf32>
      %c0_116 = arith.constant 0 : index
      %c2304 = arith.constant 2304 : index
      %187 = vector.load %arg16[%c0_116, %c2304] : memref<2x4096xf32, #tpu.memory_space<vmem>>, vector<2x256xf32>
      tpu.vector_store %arg16[%c0_116, %c2304], %186 {strides = array<i32>} : memref<2x4096xf32, #tpu.memory_space<vmem>>, vector<2x256xf32>,
      %188 = vector.extract_strided_slice %167 {offsets = [20, 0], sizes = [2, 256], strides = [1, 1]} : vector<32x256xf32> to vector<2x256xf32>
      %c0_117 = arith.constant 0 : index
      %c2560 = arith.constant 2560 : index
      %189 = vector.load %arg16[%c0_117, %c2560] : memref<2x4096xf32, #tpu.memory_space<vmem>>, vector<2x256xf32>
      tpu.vector_store %arg16[%c0_117, %c2560], %188 {strides = array<i32>} : memref<2x4096xf32, #tpu.memory_space<vmem>>, vector<2x256xf32>,
      %190 = vector.extract_strided_slice %167 {offsets = [22, 0], sizes = [2, 256], strides = [1, 1]} : vector<32x256xf32> to vector<2x256xf32>
      %c0_118 = arith.constant 0 : index
      %c2816 = arith.constant 2816 : index
      %191 = vector.load %arg16[%c0_118, %c2816] : memref<2x4096xf32, #tpu.memory_space<vmem>>, vector<2x256xf32>
      tpu.vector_store %arg16[%c0_118, %c2816], %190 {strides = array<i32>} : memref<2x4096xf32, #tpu.memory_space<vmem>>, vector<2x256xf32>,
      %192 = vector.extract_strided_slice %167 {offsets = [24, 0], sizes = [2, 256], strides = [1, 1]} : vector<32x256xf32> to vector<2x256xf32>
      %c0_119 = arith.constant 0 : index
      %c3072 = arith.constant 3072 : index
      %193 = vector.load %arg16[%c0_119, %c3072] : memref<2x4096xf32, #tpu.memory_space<vmem>>, vector<2x256xf32>
      tpu.vector_store %arg16[%c0_119, %c3072], %192 {strides = array<i32>} : memref<2x4096xf32, #tpu.memory_space<vmem>>, vector<2x256xf32>,
      %194 = vector.extract_strided_slice %167 {offsets = [26, 0], sizes = [2, 256], strides = [1, 1]} : vector<32x256xf32> to vector<2x256xf32>
      %c0_120 = arith.constant 0 : index
      %c3328 = arith.constant 3328 : index
      %195 = vector.load %arg16[%c0_120, %c3328] : memref<2x4096xf32, #tpu.memory_space<vmem>>, vector<2x256xf32>
      tpu.vector_store %arg16[%c0_120, %c3328], %194 {strides = array<i32>} : memref<2x4096xf32, #tpu.memory_space<vmem>>, vector<2x256xf32>,
      %196 = vector.extract_strided_slice %167 {offsets = [28, 0], sizes = [2, 256], strides = [1, 1]} : vector<32x256xf32> to vector<2x256xf32>
      %c0_121 = arith.constant 0 : index
      %c3584 = arith.constant 3584 : index
      %197 = vector.load %arg16[%c0_121, %c3584] : memref<2x4096xf32, #tpu.memory_space<vmem>>, vector<2x256xf32>
      tpu.vector_store %arg16[%c0_121, %c3584], %196 {strides = array<i32>} : memref<2x4096xf32, #tpu.memory_space<vmem>>, vector<2x256xf32>,
      %198 = vector.extract_strided_slice %167 {offsets = [30, 0], sizes = [2, 256], strides = [1, 1]} : vector<32x256xf32> to vector<2x256xf32>
      %c0_122 = arith.constant 0 : index
      %c3840 = arith.constant 3840 : index
      %199 = vector.load %arg16[%c0_122, %c3840] : memref<2x4096xf32, #tpu.memory_space<vmem>>, vector<2x256xf32>
      tpu.vector_store %arg16[%c0_122, %c3840], %198 {strides = array<i32>} : memref<2x4096xf32, #tpu.memory_space<vmem>>, vector<2x256xf32>,
    } else {
    }
    %c0 = arith.constant 0 : index
    %c0_1 = arith.constant 0 : index
    %3 = vector.load %arg16[%c0, %c0_1] : memref<2x4096xf32, #tpu.memory_space<vmem>>, vector<2x4096xf32>
    %4 = arith.truncf %3 : vector<2x4096xf32> to vector<2x4096xbf16>
    %c0_2 = arith.constant 0 : index
    %c0_3 = arith.constant 0 : index
    %c0_4 = arith.constant 0 : index
    %5 = vector.load %arg8[%c0_2, %c0_3, %c0_4] : memref<1x4096x256xbf16, #tpu.memory_space<vmem>>, vector<1x4096x256xbf16>
    %6 = vector.shape_cast %5 : vector<1x4096x256xbf16> to vector<4096x256xbf16>
    %cst = arith.constant dense<0.000000e+00> : vector<2x256xf32>
    %7 = tpu.matmul %4, %6, %cst {dimension_numbers = #tpu.dot_dimension_numbers<[1], [0], [0], [1], [0, 0, 1, 1], [], []>} : vector<2x4096xbf16>, vector<4096x256xbf16>, vector<2x256xf32> -> vector<2x256xf32>
    %c0_5 = arith.constant 0 : index
    %c0_6 = arith.constant 0 : index
    %8 = vector.load %arg9[%c0_5, %c0_6] : memref<1x256xf32, #tpu.memory_space<vmem>>, vector<1x256xf32>
    %c0_7 = arith.constant 0 : index
    %c0_8 = arith.constant 0 : index
    %9 = vector.load %arg10[%c0_7, %c0_8] : memref<1x256xf32, #tpu.memory_space<vmem>>, vector<1x256xf32>
    %cst_9 = arith.constant 0.000000e+00 : f32
    %10 = vector.broadcast %cst_9 : f32 to vector<2x256xf32>
    %11 = arith.maximumf %7, %10 : vector<2x256xf32>
    %cst_10 = arith.constant dense<0.000000e+00> : vector<256xf32>
    %12 = vector.multi_reduction <add>, %11, %cst_10 [0] : vector<2x256xf32> to vector<256xf32>
    %13 = vector.shape_cast %12 : vector<256xf32> to vector<1x256xf32>
    %cst_11 = arith.constant 2.000000e+00 : f32
    %14 = vector.broadcast %cst_11 : f32 to vector<1x256xf32>
    %15 = arith.divf %13, %14 : vector<1x256xf32>
    %16 = vector.broadcast %15 : vector<1x256xf32> to vector<2x256xf32>
    %17 = arith.subf %11, %16 : vector<2x256xf32>
    %18 = arith.mulf %17, %17 : vector<2x256xf32>
    %cst_12 = arith.constant dense<0.000000e+00> : vector<256xf32>
    %19 = vector.multi_reduction <add>, %18, %cst_12 [0] : vector<2x256xf32> to vector<256xf32>
    %20 = vector.shape_cast %19 : vector<256xf32> to vector<1x256xf32>
    %cst_13 = arith.constant 2.000000e+00 : f32
    %21 = vector.broadcast %cst_13 : f32 to vector<1x256xf32>
    %22 = arith.divf %20, %21 : vector<1x256xf32>
    %23 = vector.broadcast %15 : vector<1x256xf32> to vector<2x256xf32>
    %24 = arith.subf %11, %23 : vector<2x256xf32>
    %cst_14 = arith.constant 9.99999974E-6 : f32
    %25 = vector.broadcast %cst_14 : f32 to vector<1x256xf32>
    %26 = arith.addf %22, %25 : vector<1x256xf32>
    %27 = math.rsqrt %26 : vector<1x256xf32>
    %28 = vector.broadcast %27 : vector<1x256xf32> to vector<2x256xf32>
    %29 = arith.mulf %24, %28 : vector<2x256xf32>
    %30 = vector.broadcast %8 : vector<1x256xf32> to vector<2x256xf32>
    %31 = arith.mulf %29, %30 : vector<2x256xf32>
    %32 = vector.broadcast %9 : vector<1x256xf32> to vector<2x256xf32>
    %33 = arith.addf %31, %32 : vector<2x256xf32>
    %34 = arith.index_cast %arg0 : i32 to index
    %c0_15 = arith.constant 0 : index
    %c0_16 = arith.constant 0 : index
    %35 = vector.load %arg17[%34, %c0_15, %c0_16] : memref<4x2x256xf32, #tpu.memory_space<vmem>>, vector<1x2x256xf32>
    %36 = vector.shape_cast %35 : vector<1x2x256xf32> to vector<2x256xf32>
    %37 = vector.shape_cast %33 : vector<2x256xf32> to vector<1x2x256xf32>
    tpu.vector_store %arg17[%34, %c0_15, %c0_16], %37 {strides = array<i32>} : memref<4x2x256xf32, #tpu.memory_space<vmem>>, vector<1x2x256xf32>,
    %c3_i32 = arith.constant 3 : i32
    %38 = arith.cmpi eq, %arg0, %c3_i32 : i32
    %39 = arith.extui %38 : i1 to i32
    %c0_i32_17 = arith.constant 0 : i32
    %40 = arith.cmpi ne, %39, %c0_i32_17 : i32
    scf.if %40 {
      %cst_18 = arith.constant 0.000000e+00 : f32
      %41 = vector.broadcast %cst_18 : f32 to vector<2x1024xf32>
      %c0_19 = arith.constant 0 : index
      %c0_20 = arith.constant 0 : index
      %c0_21 = arith.constant 0 : index
      %42 = vector.load %arg17[%c0_19, %c0_20, %c0_21] : memref<4x2x256xf32, #tpu.memory_space<vmem>>, vector<1x2x256xf32>
      %43 = vector.shape_cast %42 : vector<1x2x256xf32> to vector<2x256xf32>
      %44 = arith.truncf %43 : vector<2x256xf32> to vector<2x256xbf16>
      %c0_22 = arith.constant 0 : index
      %c0_23 = arith.constant 0 : index
      %45 = vector.load %arg11[%c0_22, %c0_23] : memref<1024x1024xbf16, #tpu.memory_space<vmem>>, vector<256x1024xbf16>
      %cst_24 = arith.constant dense<0.000000e+00> : vector<2x1024xf32>
      %46 = tpu.matmul %44, %45, %cst_24 {dimension_numbers = #tpu.dot_dimension_numbers<[1], [0], [0], [1], [0, 0, 1, 1], [], []>} : vector<2x256xbf16>, vector<256x1024xbf16>, vector<2x1024xf32> -> vector<2x1024xf32>
      %47 = arith.addf %41, %46 : vector<2x1024xf32>
      %c1 = arith.constant 1 : index
      %c0_25 = arith.constant 0 : index
      %c0_26 = arith.constant 0 : index
      %48 = vector.load %arg17[%c1, %c0_25, %c0_26] : memref<4x2x256xf32, #tpu.memory_space<vmem>>, vector<1x2x256xf32>
      %49 = vector.shape_cast %48 : vector<1x2x256xf32> to vector<2x256xf32>
      %50 = arith.truncf %49 : vector<2x256xf32> to vector<2x256xbf16>
      %c256 = arith.constant 256 : index
      %c0_27 = arith.constant 0 : index
      %51 = vector.load %arg11[%c256, %c0_27] : memref<1024x1024xbf16, #tpu.memory_space<vmem>>, vector<256x1024xbf16>
      %cst_28 = arith.constant dense<0.000000e+00> : vector<2x1024xf32>
      %52 = tpu.matmul %50, %51, %cst_28 {dimension_numbers = #tpu.dot_dimension_numbers<[1], [0], [0], [1], [0, 0, 1, 1], [], []>} : vector<2x256xbf16>, vector<256x1024xbf16>, vector<2x1024xf32> -> vector<2x1024xf32>
      %53 = arith.addf %47, %52 : vector<2x1024xf32>
      %c2 = arith.constant 2 : index
      %c0_29 = arith.constant 0 : index
      %c0_30 = arith.constant 0 : index
      %54 = vector.load %arg17[%c2, %c0_29, %c0_30] : memref<4x2x256xf32, #tpu.memory_space<vmem>>, vector<1x2x256xf32>
      %55 = vector.shape_cast %54 : vector<1x2x256xf32> to vector<2x256xf32>
      %56 = arith.truncf %55 : vector<2x256xf32> to vector<2x256xbf16>
      %c512 = arith.constant 512 : index
      %c0_31 = arith.constant 0 : index
      %57 = vector.load %arg11[%c512, %c0_31] : memref<1024x1024xbf16, #tpu.memory_space<vmem>>, vector<256x1024xbf16>
      %cst_32 = arith.constant dense<0.000000e+00> : vector<2x1024xf32>
      %58 = tpu.matmul %56, %57, %cst_32 {dimension_numbers = #tpu.dot_dimension_numbers<[1], [0], [0], [1], [0, 0, 1, 1], [], []>} : vector<2x256xbf16>, vector<256x1024xbf16>, vector<2x1024xf32> -> vector<2x1024xf32>
      %59 = arith.addf %53, %58 : vector<2x1024xf32>
      %c3 = arith.constant 3 : index
      %c0_33 = arith.constant 0 : index
      %c0_34 = arith.constant 0 : index
      %60 = vector.load %arg17[%c3, %c0_33, %c0_34] : memref<4x2x256xf32, #tpu.memory_space<vmem>>, vector<1x2x256xf32>
      %61 = vector.shape_cast %60 : vector<1x2x256xf32> to vector<2x256xf32>
      %62 = arith.truncf %61 : vector<2x256xf32> to vector<2x256xbf16>
      %c768 = arith.constant 768 : index
      %c0_35 = arith.constant 0 : index
      %63 = vector.load %arg11[%c768, %c0_35] : memref<1024x1024xbf16, #tpu.memory_space<vmem>>, vector<256x1024xbf16>
      %cst_36 = arith.constant dense<0.000000e+00> : vector<2x1024xf32>
      %64 = tpu.matmul %62, %63, %cst_36 {dimension_numbers = #tpu.dot_dimension_numbers<[1], [0], [0], [1], [0, 0, 1, 1], [], []>} : vector<2x256xbf16>, vector<256x1024xbf16>, vector<2x1024xf32> -> vector<2x1024xf32>
      %65 = arith.addf %59, %64 : vector<2x1024xf32>
      %c0_37 = arith.constant 0 : index
      %c0_38 = arith.constant 0 : index
      %66 = vector.load %arg12[%c0_37, %c0_38] : memref<1x1024xf32, #tpu.memory_space<vmem>>, vector<1x1024xf32>
      %c0_39 = arith.constant 0 : index
      %c0_40 = arith.constant 0 : index
      %67 = vector.load %arg13[%c0_39, %c0_40] : memref<1x1024xf32, #tpu.memory_space<vmem>>, vector<1x1024xf32>
      %cst_41 = arith.constant 0.000000e+00 : f32
      %68 = vector.broadcast %cst_41 : f32 to vector<2x1024xf32>
      %69 = arith.maximumf %65, %68 : vector<2x1024xf32>
      %cst_42 = arith.constant dense<0.000000e+00> : vector<1024xf32>
      %70 = vector.multi_reduction <add>, %69, %cst_42 [0] : vector<2x1024xf32> to vector<1024xf32>
      %71 = vector.shape_cast %70 : vector<1024xf32> to vector<1x1024xf32>
      %cst_43 = arith.constant 2.000000e+00 : f32
      %72 = vector.broadcast %cst_43 : f32 to vector<1x1024xf32>
      %73 = arith.divf %71, %72 : vector<1x1024xf32>
      %74 = vector.broadcast %73 : vector<1x1024xf32> to vector<2x1024xf32>
      %75 = arith.subf %69, %74 : vector<2x1024xf32>
      %76 = arith.mulf %75, %75 : vector<2x1024xf32>
      %cst_44 = arith.constant dense<0.000000e+00> : vector<1024xf32>
      %77 = vector.multi_reduction <add>, %76, %cst_44 [0] : vector<2x1024xf32> to vector<1024xf32>
      %78 = vector.shape_cast %77 : vector<1024xf32> to vector<1x1024xf32>
      %cst_45 = arith.constant 2.000000e+00 : f32
      %79 = vector.broadcast %cst_45 : f32 to vector<1x1024xf32>
      %80 = arith.divf %78, %79 : vector<1x1024xf32>
      %81 = vector.broadcast %73 : vector<1x1024xf32> to vector<2x1024xf32>
      %82 = arith.subf %69, %81 : vector<2x1024xf32>
      %cst_46 = arith.constant 9.99999974E-6 : f32
      %83 = vector.broadcast %cst_46 : f32 to vector<1x1024xf32>
      %84 = arith.addf %80, %83 : vector<1x1024xf32>
      %85 = math.rsqrt %84 : vector<1x1024xf32>
      %86 = vector.broadcast %85 : vector<1x1024xf32> to vector<2x1024xf32>
      %87 = arith.mulf %82, %86 : vector<2x1024xf32>
      %88 = vector.broadcast %66 : vector<1x1024xf32> to vector<2x1024xf32>
      %89 = arith.mulf %87, %88 : vector<2x1024xf32>
      %90 = vector.broadcast %67 : vector<1x1024xf32> to vector<2x1024xf32>
      %91 = arith.addf %89, %90 : vector<2x1024xf32>
      %c0_47 = arith.constant 0 : index
      %c0_48 = arith.constant 0 : index
      %92 = vector.load %arg14[%c0_47, %c0_48] : memref<2x1024xf32, #tpu.memory_space<vmem>>, vector<2x1024xf32>
      tpu.vector_store %arg14[%c0_47, %c0_48], %91 {strides = array<i32>} : memref<2x1024xf32, #tpu.memory_space<vmem>>, vector<2x1024xf32>,
    } else {
    }
    return
  }
  func.func @transform_0(%arg0: i32) -> (i32, i32) {
    %c0_i32 = arith.constant 0 : i32
    %c0_i32_0 = arith.constant 0 : i32
    %c0_i32_1 = arith.constant 0 : i32
    return %c0_i32, %c0_i32_0 : i32, i32
  }
  func.func @transform_1(%arg0: i32) -> (i32, i32) {
    %c0_i32 = arith.constant 0 : i32
    %c0_i32_0 = arith.constant 0 : i32
    %c0_i32_1 = arith.constant 0 : i32
    return %c0_i32, %c0_i32_0 : i32, i32
  }
  func.func @transform_2(%arg0: i32) -> (i32, i32) {
    %c0_i32 = arith.constant 0 : i32
    %c0_i32_0 = arith.constant 0 : i32
    %c0_i32_1 = arith.constant 0 : i32
    return %c0_i32, %c0_i32_0 : i32, i32
  }
  func.func @transform_3(%arg0: i32) -> (i32, i32) {
    %c0_i32 = arith.constant 0 : i32
    %c0_i32_0 = arith.constant 0 : i32
    %c0_i32_1 = arith.constant 0 : i32
    return %c0_i32, %c0_i32_0 : i32, i32
  }
  func.func @transform_4(%arg0: i32) -> (i32, i32) {
    %c0_i32 = arith.constant 0 : i32
    %c0_i32_0 = arith.constant 0 : i32
    %c0_i32_1 = arith.constant 0 : i32
    return %c0_i32, %c0_i32_0 : i32, i32
  }
  func.func @transform_5(%arg0: i32) -> (i32, i32) {
    %c0_i32 = arith.constant 0 : i32
    %c0_i32_0 = arith.constant 0 : i32
    %c0_i32_1 = arith.constant 0 : i32
    return %c0_i32, %c0_i32_0 : i32, i32
  }
  func.func @transform_6(%arg0: i32) -> (i32, i32) {
    %c0_i32 = arith.constant 0 : i32
    %c0_i32_0 = arith.constant 0 : i32
    %c0_i32_1 = arith.constant 0 : i32
    return %c0_i32, %c0_i32_0 : i32, i32
  }
  func.func @transform_7(%arg0: i32) -> (i32, i32, i32) {
    %c0_i32 = arith.constant 0 : i32
    %c0_i32_0 = arith.constant 0 : i32
    %c0_i32_1 = arith.constant 0 : i32
    return %arg0, %c0_i32, %c0_i32_0 : i32, i32, i32
  }
  func.func @transform_8(%arg0: i32) -> (i32, i32) {
    %c0_i32 = arith.constant 0 : i32
    %c0_i32_0 = arith.constant 0 : i32
    return %c0_i32, %arg0 : i32, i32
  }
  func.func @transform_9(%arg0: i32) -> (i32, i32) {
    %c0_i32 = arith.constant 0 : i32
    %c0_i32_0 = arith.constant 0 : i32
    return %c0_i32, %arg0 : i32, i32
  }
  func.func @transform_10(%arg0: i32) -> (i32, i32) {
    %c0_i32 = arith.constant 0 : i32
    %c0_i32_0 = arith.constant 0 : i32
    %c0_i32_1 = arith.constant 0 : i32
    return %c0_i32, %c0_i32_0 : i32, i32
  }
  func.func @transform_11(%arg0: i32) -> (i32, i32) {
    %c0_i32 = arith.constant 0 : i32
    %c0_i32_0 = arith.constant 0 : i32
    %c0_i32_1 = arith.constant 0 : i32
    return %c0_i32, %c0_i32_0 : i32, i32
  }
  func.func @transform_12(%arg0: i32) -> (i32, i32) {
    %c0_i32 = arith.constant 0 : i32
    %c0_i32_0 = arith.constant 0 : i32
    %c0_i32_1 = arith.constant 0 : i32
    return %c0_i32, %c0_i32_0 : i32, i32
  }
  func.func @transform_13(%arg0: i32) -> (i32, i32) {
    %c0_i32 = arith.constant 0 : i32
    %c0_i32_0 = arith.constant 0 : i32
    %c0_i32_1 = arith.constant 0 : i32
    return %c0_i32, %c0_i32_0 : i32, i32
  }
}

</mosaic_0001>

<bundles_post_ra>
// kernel: eshared_forward.1
= control target key start
LH: loop header
LB: loop body
LE: loop exit
PB: predicated region body
PF: predicated region fallthrough
CT: control target
= control target key end

     0   :  { %s16489_s0 = inlined_call_operand.vmem [shape: bf16[128,576], index: 0, kind: input, shape index: {}]   ;;  %s16490_s1 = inlined_call_operand.hbm [shape: bf16[576,128], index: 1, kind: input, shape index: {}]   ;;  %s16491_s2 = inlined_call_operand.hbm [shape: f32[1,128], index: 2, kind: input, shape index: {}]   ;;  %s16492_s3 = inlined_call_operand.hbm [shape: f32[1,128], index: 3, kind: input, shape index: {}]   ;;  %s16493_s4 = inlined_call_operand.hbm [shape: bf16[1152,256], index: 4, kind: input, shape index: {}]   ;;  %s16494_s5 = inlined_call_operand.hbm [shape: f32[1,256], index: 5, kind: input, shape index: {}]   ;;  %s16495_s6 = inlined_call_operand.hbm [shape: f32[1,256], index: 6, kind: input, shape index: {}]   ;;  %s16496_s7 = inlined_call_operand.hbm [shape: bf16[4,4096,256], index: 7, kind: input, shape index: {}]   ;;  %s16497_s8 = inlined_call_operand.hbm [shape: f32[1,1024], index: 8, kind: input, shape index: {}]   ;;  %s16498_s9 = inlined_call_operand.hbm [shape: f32[1,1024], index: 9, kind: input, shape index: {}]   ;;  %s16499_s10 = inlined_call_operand.hbm [shape: bf16[1024,1024], index: 10, kind: input, shape index: {}]   ;;  %s16500_s11 = inlined_call_operand.hbm [shape: f32[1,1024], index: 11, kind: input, shape index: {}]   ;;  %s16501_s12 = inlined_call_operand.hbm [shape: f32[1,1024], index: 12, kind: input, shape index: {}]   ;;  %s16502_s13 = inlined_call_operand.hbm [shape: f32[2,1024], index: 13, kind: output, shape index: {}]  }
   0x1   :  { %16526 = sst [smem:[#allocation33_spill]] %s16489_s0 }
   0x2   :  { %16527 = sst [smem:[#allocation34_spill]] %s16490_s1 }
   0x3   :  { %16528 = sst [smem:[#allocation35_spill]] %s16491_s2 }
   0x4   :  { %16529 = sst [smem:[#allocation36_spill]] %s16492_s3 }
   0x5   :  { %16530 = sst [smem:[#allocation37_spill]] %s16493_s4 }
   0x6   :  { %16531 = sst [smem:[#allocation38_spill]] %s16494_s5 }
   0x7   :  { %16532 = sst [smem:[#allocation39_spill]] %s16496_s7 }
   0x8   :  { %16533 = sst [smem:[#allocation40_spill]] %s16498_s9 }
   0x9   :  { %16534 = sst [smem:[#allocation41_spill]] %s16501_s12 }
   0xa   :  { %16535 = sst [smem:[#allocation42_spill]] %s16502_s13 }
   0xb   :  { %18 = vsyncpa [#allocation6], 0 }
   0xc   :  { %19 = vsyncpa [#allocation9], 0 }
   0xd   :  { %20 = vsyncpa [#allocation12], 0 }
   0xe   :  { %21 = vsyncpa [#allocation15], 0 }
   0xf   :  { %22 = vsyncpa [#allocation7], 0  ;;  %s14909_s25 = smov 0   ;;  %s14911_s26 = smov 0  }
  0x10   :  { %s14913_s27 = smov 0   ;;  %s14915_s28 = smov 0  }
  0x11 LB: > { %s14816_s29 = smov [#allocation5]   ;;  %s14930_s14 = sadd.s32 4294967295, %s14814_s28   ;;  %s14814_s28 = sphi %s14915_s28, %s16586_s28   ;;  %s14810_s27 = sphi %s14913_s27, %s16585_s27   ;;  %s14806_s26 = sphi %s14911_s26, %s16584_s26   ;;  %s14802_s25 = sphi %s14909_s25, %s16583_s25  }
  0x12   : > { %s357_s30 = sshll.u32 %s14816_s29, 4  ;;  %p11499_p0 = scmp.ge.s32.totalorder %s14814_s28, 1  ;;  %s14936_s30 = int_to_ptr.vmem [resolvable:$true] %s357_s30 }
  0x13   : > { %p16511_p1 = scmp.eq.s32.totalorder %s14930_s14, 0  ;;  %p342_p2 = scmp.lt.s32.totalorder %s14814_s28, 5 }
  0x14   : > { %s14817_s16 = smov [#allocation8]   ;;  %s14818_s19 = smov [#allocation11]  }
  0x15   : > { %p14938_p4 = pnand %p11499_p0, %p342_p2  ;;  %s371_s17 = sshll.u32 %s14817_s16, 4  ;;  %s14950_s17 = int_to_ptr.vmem [resolvable:$true] %s371_s17 }
  0x16   : > { %s392_s20 = sshll.u32 %s14818_s19, 4  ;;  %s16539_s1 = sld [smem:[#allocation34_spill]]  ;;  %s14952_s20 = int_to_ptr.vmem [resolvable:$true] %s392_s20 }
  0x17   : > { %s16536_s15 = scalar_select %p14938_p4, 1, 0 }
  0x18   : > { %p13159_p5 = pneg %p14938_p4 }
  0x19   : > { %16537 = sst [smem:[#allocation32_spill]] %s16536_s15 }
  0x1a   : > { %p14946_p6 = pnand %p13159_p5, %p16511_p1 }
  0x1c   : > { %s16538_s18 = scalar_select %p14946_p6, 1, 0 }
  0x1d   : > { %s14380_s23 = scalar_lea.hbm %s16539_s1, 4608  ;;  %p14962_p8 = pneg %p14946_p6 }
  0x1e   : > { %p14381_p7 = scmp.ne.s32.totalorder %s16539_s1, %s14380_s23  ;;  %p14387_p11 = scmp.lt.u32.totalorder %s14380_s23, %s16539_s1 }
  0x1f   : > { %s16540_s16 = scalar_select %p14962_p8, 1, 0 }
  0x20   : > { %p14383_p9 = pnand %p14962_p8, %p14381_p7 }
  0x22   : > { %p14384_p10 = pneg %p14383_p9 }
  0x24   : > { %p14389_p12 = pnand %p14387_p11, %p14384_p10 }
  0x26   : > { %14392 = shalt.err (!%p14389_p12)
}
  0x27   : > { %s14393_s21 = scalar_lea.vmem %s14936_s30, 4608  ;;  %p14401_p5 = scmp.lt.s32.totalorder %s14936_s30, %s14936_s30 }
  0x28   : > { %p14394_p13 = scmp.ne.s32.totalorder %s14936_s30, %s14393_s21  ;;  %p14402_p3 = scmp.lt.s32.totalorder %s14393_s21, %s14393_s21 }
  0x2a   : > { %p14396_p0 = pnand %p14394_p13, %p14962_p8  ;;  %p14403_p7 = por %p14402_p3, %p14401_p5 }
  0x2c   : > { %p14397_p2 = pneg %p14396_p0 }
  0x2e   : > { %p14404_p9 = pnand %p14403_p7, %p14397_p2 }
  0x30   : > { %14407 = shalt.err (!%p14404_p9)
}
  0x31   : > { %s14819_s22 = smov 64   ;;  %s14820_s13 = smov 4  }
  0x32   : > { %13162 = dma.hbm_to_vmem [thread:$0]  (!%p14946_p6), %s16539_s1, 4608, %s14936_s30, [#allocation6], %s14819_s22, %s14819_s22, %s14820_s13  }
  0x33   : > { %s16541_s2 = sld [smem:[#allocation35_spill]] }
  0x39   : > { %s14408_s0 = scalar_lea.hbm %s16541_s2, 16 }
  0x3a   : > { %p14409_p3 = scmp.ne.s32.totalorder %s16541_s2, %s14408_s0  ;;  %p14415_p12 = scmp.lt.u32.totalorder %s14408_s0, %s16541_s2 }
  0x3c   : > { %p14411_p10 = pnand %p14409_p3, %p14962_p8 }
  0x3e   : > { %p14412_p11 = pneg %p14411_p10 }
  0x40   : > { %p14417_p13 = pnand %p14415_p12, %p14412_p11 }
  0x42   : > { %14420 = shalt.err (!%p14417_p13)
}
  0x43   : > { %s14421_s30 = scalar_lea.vmem %s14950_s17, 16  ;;  %s14428_s9 = scalar_lea.vmem %s14950_s17, 32 }
  0x44   : > { %p14422_p0 = scmp.ne.s32.totalorder %s14950_s17, %s14421_s30  ;;  %p14429_p7 = scmp.lt.s32.totalorder %s14950_s17, %s14950_s17 }
  0x45   : > { %p14430_p9 = scmp.lt.s32.totalorder %s14428_s9, %s14421_s30 }
  0x46   : > { %p14424_p2 = pnand %p14422_p0, %p14962_p8 }
  0x47   : > { %p14431_p3 = por %p14430_p9, %p14429_p7 }
  0x48   : > { %p14425_p5 = pneg %p14424_p2 }
  0x4a   : > { %p14432_p10 = pnand %p14431_p3, %p14425_p5 }
  0x4c   : > { %14435 = shalt.err (!%p14432_p10)
}
  0x4d   : > { %13165 = dma.hbm_to_vmem [thread:$0]  (!%p14946_p6), %s16541_s2, 16, %s14950_s17, [#allocation9]  }
  0x4e   : > { %s16542_s4 = sld [smem:[#allocation37_spill]] }
  0x54   : > { %s14436_s13 = scalar_lea.hbm %s16542_s4, 18432 }
  0x55   : > { %p14437_p11 = scmp.ne.s32.totalorder %s16542_s4, %s14436_s13  ;;  %p14443_p0 = scmp.lt.u32.totalorder %s14436_s13, %s16542_s4 }
  0x57   : > { %p14439_p12 = pnand %p14437_p11, %p14962_p8 }
  0x59   : > { %p14440_p13 = pneg %p14439_p12 }
  0x5b   : > { %p14445_p2 = pnand %p14443_p0, %p14440_p13 }
  0x5d   : > { %14448 = shalt.err (!%p14445_p2)
}
  0x5e   : > { %s14449_s17 = scalar_lea.vmem %s14952_s20, 18432  ;;  %p14457_p3 = scmp.lt.s32.totalorder %s14952_s20, %s14952_s20 }
  0x5f   : > { %p14450_p5 = scmp.ne.s32.totalorder %s14952_s20, %s14449_s17  ;;  %p14458_p10 = scmp.lt.s32.totalorder %s14449_s17, %s14449_s17 }
  0x61   : > { %p14452_p7 = pnand %p14450_p5, %p14962_p8  ;;  %p14459_p11 = por %p14458_p10, %p14457_p3 }
  0x63   : > { %p14453_p9 = pneg %p14452_p7 }
  0x65   : > { %p14460_p12 = pnand %p14459_p11, %p14453_p9 }
  0x67   : > { %14463 = shalt.err (!%p14460_p12)
}
  0x68   : > { %s16509_s21 = smov 128   ;;  %s16510_s30 = smov 8  }
  0x69   : > { %13171 = dma.hbm_to_vmem [thread:$0]  (!%p14946_p6), %s16542_s4, 18432, %s14952_s20, [#allocation12], %s16509_s21, %s16509_s21, %s16510_s30  }
  0x6a   : > { %s15034_s12 = sadd.s32 1, %s14814_s28   ;;  %s182_s22 = sadd.s32 1, %s14810_s27 }
  0x6b   : > { %s179_s15 = ssub.s32 %s14814_s28, %s15034_s12  ;;  %p189_p0 = scmp.ne.s32.totalorder %s14810_s27, %s14806_s26 }
  0x6c   : > { %p180_p13 = scmp.eq.s32.totalorder %s179_s15, 0  ;;  %p190_p2 = scmp.eq.s32.totalorder %s14814_s28, 0 }
  0x6d   : > { %p195_p5 = scmp.ne.s32.totalorder %s14806_s26, %s14802_s25  ;;  %p13206_p3 = scmp.lt.s32.totalorder %s14814_s28, 4 }
  0x6e   : > { %s15045_s13 = scalar_select %p180_p13, %s14810_s27, %s182_s22  }
  0x6f   : > { %p191_p7 = por %p190_p2, %p189_p0  ;;  %p15049_p9 = por %p16511_p1, %p195_p5 }
  0x70   : > { %s463_s24 = sand.u32 1, %s14814_s28   ;;  %s16508_s20 = sand.u32 1, %s14810_s27  }
  0x71   : > { %s16543_s23 = scalar_select %p15049_p9, 1, 0 }
  0x72   : > { %s11510_s29 = sshll.u32 %s16508_s20, 12  ;;  %s12807_s19 = sshll.u32 %s14814_s28, 16 }
  0x73   : > { %s16544_s7 = sld [smem:[#allocation39_spill]]  ;;  %s467_s25 = scalar_lea.vmem [#allocation16], %s11510_s29 }
  0x74   : > { %s474_s15 = sshll.u32 %s467_s25, 4  ;;  %p15064_p10 = pnand %p13206_p3, %p191_p7  ;;  %s15068_s15 = int_to_ptr.vmem [resolvable:$true] %s474_s15 }
  0x75   : > { %s14823_s20 = smov [#allocation10]   ;;  %s15072_s30 = scalar_lea.sflag [#allocation6], %s463_s24 }
  0x76   : > { %s16545_s22 = scalar_select %p15064_p10, 1, 0 }
  0x77   : > { %s15070_s21 = sshll.u32 %s14823_s20, 4  ;;  %p15078_p12 = pneg %p15064_p10  ;;  %s383_s21 = int_to_ptr.vmem [resolvable:$true] %s15070_s21 }
  0x79   : > { %s15062_s0 = scalar_lea.hbm %s16544_s7, %s12807_s19  ;;  %s14469_s25 = scalar_lea.hbm %s16544_s7, 262144 }
  0x7a   : > { %s14464_s19 = scalar_lea.hbm %s15062_s0, 65536  ;;  %p14470_p2 = scmp.lt.u32.totalorder %s15062_s0, %s16544_s7 }
  0x7b   : > { %p14465_p11 = scmp.ne.s32.totalorder %s15062_s0, %s14464_s19  ;;  %p14471_p5 = scmp.lt.u32.totalorder %s14469_s25, %s14464_s19 }
  0x7c   : > { %s16546_s17 = scalar_select %p15078_p12, 1, 0 }
  0x7d   : > { %p14467_p13 = pnand %p15078_p12, %p14465_p11  ;;  %p14472_p7 = por %p14471_p5, %p14470_p2 }
  0x7e   : > { %p14473_p3 = scmp.lt.u32.totalorder %s14464_s19, %s15062_s0 }
  0x7f   : > { %p14468_p0 = pneg %p14467_p13 }
  0x80   : > { %p14474_p1 = por %p14473_p3, %p14472_p7 }
  0x82   : > { %p14475_p9 = pnand %p14474_p1, %p14468_p0 }
  0x84   : > { %14478 = shalt.err (!%p14475_p9)
}
  0x85   : > { %s14479_s24 = scalar_lea.vmem %s15068_s15, 65536  ;;  %s14824_s29 = smov [#allocation16]  }
  0x86   : > { %p14480_p11 = scmp.ne.s32.totalorder %s15068_s15, %s14479_s24  ;;  %s14484_s9 = sshll.u32 %s14824_s29, 4  ;;  %s14485_s9 = int_to_ptr.vmem [resolvable:$false] %s14484_s9 }
  0x87   : > { %s14486_s1 = scalar_lea.vmem %s14485_s9, 131072  ;;  %p14487_p6 = scmp.lt.s32.totalorder %s15068_s15, %s14485_s9 }
  0x88   : > { %p14482_p13 = pnand %p14480_p11, %p15078_p12  ;;  %p14488_p8 = scmp.lt.s32.totalorder %s14486_s1, %s14479_s24 }
  0x8a   : > { %p14483_p4 = pneg %p14482_p13  ;;  %p14489_p2 = por %p14488_p8, %p14487_p6 }
  0x8c   : > { %p14490_p5 = pnand %p14489_p2, %p14483_p4 }
  0x8e   : > { %14493 = shalt.err (!%p14490_p5)
}
  0x8f   : > { %s16547_s19 = smov 8   ;;  %s16548_s25 = smov 128  }
  0x90   : > { %13190 = dma.hbm_to_vmem [thread:$0]  (!%p15064_p10), %s15062_s0, 65536, %s15068_s15, %s15072_s30, %s16548_s25, %s16548_s25, %s16547_s19  }
  0x91   : > { %s16549_s3 = sld [smem:[#allocation36_spill]]  ;;  %p16550_p4 = scmp.ne.s32.totalorder %s16540_s16, 0 }
  0x97   : > { %s14494_s9 = scalar_lea.hbm %s16549_s3, 16 }
  0x98   : > { %p14495_p1 = scmp.ne.s32.totalorder %s16549_s3, %s14494_s9  ;;  %p14501_p9 = scmp.lt.u32.totalorder %s14494_s9, %s16549_s3 }
  0x9a   : > { %p14497_p6 = pnand %p14495_p1, %p16550_p4 }
  0x9c   : > { %p14498_p8 = pneg %p14497_p6 }
  0x9e   : > { %p14503_p0 = pnand %p14501_p9, %p14498_p8 }
  0xa0   : > { %14506 = shalt.err (!%p14503_p0)
}
  0xa1   : > { %s14507_s7 = scalar_lea.vmem %s383_s21, 16  ;;  %s14514_s0 = scalar_lea.vmem %s383_s21, 32 }
  0xa2   : > { %p14508_p7 = scmp.ne.s32.totalorder %s383_s21, %s14507_s7  ;;  %p14515_p13 = scmp.lt.s32.totalorder %s383_s21, %s383_s21 }
  0xa3   : > { %p14516_p2 = scmp.lt.s32.totalorder %s14514_s0, %s14507_s7 }
  0xa4   : > { %p14510_p3 = pnand %p14508_p7, %p16550_p4 }
  0xa5   : > { %p14517_p5 = por %p14516_p2, %p14515_p13 }
  0xa6   : > { %p14511_p11 = pneg %p14510_p3 }
  0xa8   : > { %p14518_p10 = pnand %p14517_p5, %p14511_p11 }
  0xaa   : > { %14521 = shalt.err (!%p14518_p10)
}
  0xab   : > { %p16551_p1 = scmp.ne.s32.totalorder %s16538_s18, 0  ;;  %s14825_s2 = smov [#allocation13]  }
  0xac   : > { %s406_s4 = sshll.u32 %s14825_s2, 4  ;;  %s14826_s25 = smov [#allocation14]   ;;  %s407_s4 = int_to_ptr.vmem [resolvable:$true] %s406_s4 }
  0xad   : > { %13168 = dma.hbm_to_vmem [thread:$0]  (!%p16551_p1), %s16549_s3, 16, %s383_s21, [#allocation9]  }
  0xae   : > { %s417_s20 = sshll.u32 %s14826_s25, 4  ;;  %s16552_s5 = sld [smem:[#allocation38_spill]]  ;;  %s418_s20 = int_to_ptr.vmem [resolvable:$true] %s417_s20 }
  0xb4   : > { %s14522_s24 = scalar_lea.hbm %s16552_s5, 32 }
  0xb5   : > { %p14523_p10 = scmp.ne.s32.totalorder %s16552_s5, %s14522_s24  ;;  %p14529_p9 = scmp.lt.u32.totalorder %s14522_s24, %s16552_s5 }
  0xb7   : > { %p14525_p6 = pnand %p14523_p10, %p16550_p4 }
  0xb9   : > { %p14526_p8 = pneg %p14525_p6 }
  0xbb   : > { %p14531_p0 = pnand %p14529_p9, %p14526_p8 }
  0xbd   : > { %14534 = shalt.err (!%p14531_p0)
}
  0xbe   : > { %s14535_s21 = scalar_lea.vmem %s407_s4, 32  ;;  %p14543_p13 = scmp.lt.s32.totalorder %s407_s4, %s407_s4 }
  0xbf   : > { %p14536_p7 = scmp.ne.s32.totalorder %s407_s4, %s14535_s21  ;;  %p14544_p2 = scmp.lt.s32.totalorder %s14535_s21, %s14535_s21 }
  0xc1   : > { %p14538_p3 = pnand %p14536_p7, %p16550_p4  ;;  %p14545_p5 = por %p14544_p2, %p14543_p13 }
  0xc3   : > { %p14539_p11 = pneg %p14538_p3 }
  0xc5   : > { %p14546_p12 = pnand %p14545_p5, %p14539_p11 }
  0xc7   : > { %14549 = shalt.err (!%p14546_p12)
}
  0xc8   : > { %13174 = dma.hbm_to_vmem [thread:$0]  (!%p16551_p1), %s16552_s5, 32, %s407_s4, [#allocation12]  }
  0xc9   : > { %s16553_s25 = sand.u32 1, %s14810_s27   ;;  %s14550_s7 = scalar_lea.hbm %s16495_s6, 32 }
  0xca   : > { %s15144_s29 = sshll.u32 %s16553_s25, 1  ;;  %p14551_p12 = scmp.ne.s32.totalorder %s16495_s6, %s14550_s7 }
  0xcb   : > { %p14557_p8 = scmp.lt.u32.totalorder %s14550_s7, %s16495_s6 }
  0xcc   : > { %p14553_p10 = pnand %p14551_p12, %p16550_p4 }
  0xce   : > { %p14554_p6 = pneg %p14553_p10 }
  0xd0   : > { %p14559_p9 = pnand %p14557_p8, %p14554_p6 }
  0xd2   : > { %14562 = shalt.err (!%p14559_p9)
}
  0xd3   : > { %s14563_s4 = scalar_lea.vmem %s418_s20, 32  ;;  %p14571_p11 = scmp.lt.s32.totalorder %s418_s20, %s418_s20 }
  0xd4   : > { %p14564_p0 = scmp.ne.s32.totalorder %s418_s20, %s14563_s4  ;;  %p14572_p13 = scmp.lt.s32.totalorder %s14563_s4, %s14563_s4 }
  0xd6   : > { %p14566_p7 = pnand %p14564_p0, %p16550_p4  ;;  %p14573_p2 = por %p14572_p13, %p14571_p11 }
  0xd8   : > { %p14567_p3 = pneg %p14566_p7 }
  0xda   : > { %p14574_p5 = pnand %p14573_p2, %p14567_p3 }
  0xdc   : > { %14577 = shalt.err (!%p14574_p5)
}
  0xdd   : > { %13177 = dma.hbm_to_vmem [thread:$0]  (!%p16551_p1), %s16495_s6, 32, %s418_s20, [#allocation15]  }
  0xde   : > { %s16524_s25 = sshll.u32 %s14814_s28, 5  ;;  %s488_s1 = scalar_lea.vmem [#allocation17], %s15144_s29 }
  0xdf   : > { %s15170_s7 = scalar_lea.hbm %s16497_s8, %s16524_s25  ;;  %s496_s0 = sshll.u32 %s488_s1, 4  ;;  %s497_s0 = int_to_ptr.vmem [resolvable:$true] %s496_s0 }
  0xe0   : > { %s14578_s15 = scalar_lea.hbm %s15170_s7, 32  ;;  %p16554_p10 = scmp.ne.s32.totalorder %s16546_s17, 0 }
  0xe1   : > { %p14579_p12 = scmp.ne.s32.totalorder %s15170_s7, %s14578_s15  ;;  %s14583_s4 = scalar_lea.hbm %s16497_s8, 128 }
  0xe2   : > { %p14584_p9 = scmp.lt.u32.totalorder %s15170_s7, %s16497_s8  ;;  %p14585_p0 = scmp.lt.u32.totalorder %s14583_s4, %s14578_s15 }
  0xe3   : > { %p14581_p6 = pnand %p14579_p12, %p16554_p10  ;;  %p14587_p3 = scmp.lt.u32.totalorder %s14578_s15, %s15170_s7 }
  0xe4   : > { %p14586_p7 = por %p14585_p0, %p14584_p9 }
  0xe5   : > { %p14582_p8 = pneg %p14581_p6 }
  0xe6   : > { %p14588_p11 = por %p14587_p3, %p14586_p7 }
  0xe8   : > { %p14589_p13 = pnand %p14588_p11, %p14582_p8 }
  0xea   : > { %14592 = shalt.err (!%p14589_p13)
}
  0xeb   : > { %s14593_s9 = scalar_lea.vmem %s497_s0, 32  ;;  %s14827_s24 = smov [#allocation17]  }
  0xec   : > { %p14594_p2 = scmp.ne.s32.totalorder %s497_s0, %s14593_s9  ;;  %s14598_s1 = sshll.u32 %s14827_s24, 4  ;;  %s14599_s1 = int_to_ptr.vmem [resolvable:$false] %s14598_s1 }
  0xed   : > { %s14600_s20 = scalar_lea.vmem %s14599_s1, 64  ;;  %p14601_p6 = scmp.lt.s32.totalorder %s497_s0, %s14599_s1 }
  0xee   : > { %p14596_p5 = pnand %p14594_p2, %p16554_p10  ;;  %p14602_p1 = scmp.lt.s32.totalorder %s14600_s20, %s14593_s9 }
  0xf0   : > { %p14597_p12 = pneg %p14596_p5  ;;  %p14603_p4 = por %p14602_p1, %p14601_p6 }
  0xf2   : > { %p14604_p0 = pnand %p14603_p4, %p14597_p12 }
  0xf4   : > { %14607 = shalt.err (!%p14604_p0)
}
  0xf5   : > { %p16555_p9 = scmp.ne.s32.totalorder %s16545_s22, 0  ;;  %s14828_s15 = smov [#allocation19]  }
  0xf6   : > { %s427_s21 = sshll.u32 %s14828_s15, 4  ;;  %s14608_s2 = scalar_lea.hbm %s16499_s10, 65536  ;;  %s428_s21 = int_to_ptr.vmem [resolvable:$true] %s427_s21 }
  0xf7   : > { %13193 = dma.hbm_to_vmem [thread:$0]  (!%p16555_p9), %s15170_s7, 32, %s497_s0, %s15072_s30  }
  0xf8   : > { %p14609_p8 = scmp.ne.s32.totalorder %s16499_s10, %s14608_s2  ;;  %p16556_p1 = scmp.ne.s32.totalorder %s16540_s16, 0 }
  0xf9   : > { %p14615_p3 = scmp.lt.u32.totalorder %s14608_s2, %s16499_s10 }
  0xfa   : > { %p14611_p4 = pnand %p14609_p8, %p16556_p1 }
  0xfc   : > { %p14612_p7 = pneg %p14611_p4 }
  0xfe   : > { %p14617_p11 = pnand %p14615_p3, %p14612_p7 }
 0x100   : > { %14620 = shalt.err (!%p14617_p11)
}
 0x101   : > { %s14621_s7 = scalar_lea.vmem %s428_s21, 65536  ;;  %p14629_p12 = scmp.lt.s32.totalorder %s428_s21, %s428_s21 }
 0x102   : > { %p14622_p13 = scmp.ne.s32.totalorder %s428_s21, %s14621_s7  ;;  %p14630_p6 = scmp.lt.s32.totalorder %s14621_s7, %s14621_s7 }
 0x104   : > { %p14624_p2 = pnand %p14622_p13, %p16556_p1  ;;  %p14631_p0 = por %p14630_p6, %p14629_p12 }
 0x106   : > { %p14625_p5 = pneg %p14624_p2 }
 0x108   : > { %p14632_p9 = pnand %p14631_p0, %p14625_p5 }
 0x10a   : > { %14635 = shalt.err (!%p14632_p9)
}
 0x10b   : > { %s14829_s25 = smov 512   ;;  %s14830_s0 = smov 32  }
 0x10c   : > { %p16557_p8 = scmp.ne.s32.totalorder %s16538_s18, 0  ;;  %s14831_s4 = smov [#allocation20]  }
 0x10d   : > { %s441_s19 = sshll.u32 %s14831_s4, 4  ;;  %s14832_s2 = smov [#allocation21]   ;;  %s442_s19 = int_to_ptr.vmem [resolvable:$true] %s441_s19 }
 0x10e   : > { %13180 = dma.hbm_to_vmem [thread:$0]  (!%p16557_p8), %s16499_s10, 65536, %s428_s21, [#allocation9], %s14829_s25, %s14829_s25, %s14830_s0  }
 0x10f   : > { %s452_s24 = sshll.u32 %s14832_s2, 4  ;;  %s14636_s7 = scalar_lea.hbm %s16500_s11, 128  ;;  %s15209_s24 = int_to_ptr.vmem [resolvable:$true] %s452_s24 }
 0x110   : > { %p14637_p9 = scmp.ne.s32.totalorder %s16500_s11, %s14636_s7  ;;  %p14643_p3 = scmp.lt.u32.totalorder %s14636_s7, %s16500_s11 }
 0x112   : > { %p14639_p4 = pnand %p14637_p9, %p16556_p1 }
 0x114   : > { %p14640_p7 = pneg %p14639_p4 }
 0x116   : > { %p14645_p11 = pnand %p14643_p3, %p14640_p7 }
 0x118   : > { %14648 = shalt.err (!%p14645_p11)
}
 0x119   : > { %s14649_s25 = scalar_lea.vmem %s442_s19, 128  ;;  %p14657_p12 = scmp.lt.s32.totalorder %s442_s19, %s442_s19 }
 0x11a   : > { %p14650_p13 = scmp.ne.s32.totalorder %s442_s19, %s14649_s25  ;;  %p14658_p6 = scmp.lt.s32.totalorder %s14649_s25, %s14649_s25 }
 0x11c   : > { %p14652_p2 = pnand %p14650_p13, %p16556_p1  ;;  %p14659_p0 = por %p14658_p6, %p14657_p12 }
 0x11e   : > { %p14653_p5 = pneg %p14652_p2 }
 0x120   : > { %p14660_p10 = pnand %p14659_p0, %p14653_p5 }
 0x122   : > { %14663 = shalt.err (!%p14660_p10)
}
 0x123   : > { %13183 = dma.hbm_to_vmem [thread:$0]  (!%p16557_p8), %s16500_s11, 128, %s442_s19, [#allocation12]  }
 0x124   : > { %s16558_s4 = sld [smem:[#allocation41_spill]] }
 0x12a   : > { %s14664_s2 = scalar_lea.hbm %s16558_s4, 128 }
 0x12b   : > { %p14665_p9 = scmp.ne.s32.totalorder %s16558_s4, %s14664_s2  ;;  %p14671_p10 = scmp.lt.u32.totalorder %s14664_s2, %s16558_s4 }
 0x12d   : > { %p14667_p4 = pnand %p14665_p9, %p16556_p1 }
 0x12f   : > { %p14668_p7 = pneg %p14667_p4 }
 0x131   : > { %p14673_p3 = pnand %p14671_p10, %p14668_p7 }
 0x133   : > { %14676 = shalt.err (!%p14673_p3)
}
 0x134   : > { %s14677_s19 = scalar_lea.vmem %s15209_s24, 128  ;;  %p14685_p5 = scmp.lt.s32.totalorder %s15209_s24, %s15209_s24 }
 0x135   : > { %p14678_p11 = scmp.ne.s32.totalorder %s15209_s24, %s14677_s19  ;;  %p14686_p12 = scmp.lt.s32.totalorder %s14677_s19, %s14677_s19 }
 0x137   : > { %p14680_p13 = pnand %p14678_p11, %p16556_p1  ;;  %p14687_p6 = por %p14686_p12, %p14685_p5 }
 0x139   : > { %p14681_p2 = pneg %p14680_p13 }
 0x13b   : > { %p14688_p0 = pnand %p14687_p6, %p14681_p2 }
 0x13d   : > { %14691 = shalt.err (!%p14688_p0)
}
 0x13e   : > { %13186 = dma.hbm_to_vmem [thread:$0]  (!%p16557_p8), %s16558_s4, 128, %s15209_s24, [#allocation15]  }
 0x13f   : > { %s16559_s3 = sshll.u32 %s14814_s28, 5  ;;  %s16560_s0 = sld [smem:[#allocation40_spill]] }
 0x140   : > { %s507_s2 = scalar_lea.vmem [#allocation18], %s15144_s29  ;;  %p16561_p9 = scmp.ne.s32.totalorder %s16546_s17, 0 }
 0x141   : > { %s515_s18 = sshll.u32 %s507_s2, 4  ;;  %s516_s18 = int_to_ptr.vmem [resolvable:$true] %s515_s18 }
 0x145   : > { %s15257_s15 = scalar_lea.hbm %s16560_s0, %s16559_s3  ;;  %s14697_s28 = scalar_lea.hbm %s16560_s0, 128 }
 0x146   : > { %s14692_s9 = scalar_lea.hbm %s15257_s15, 32  ;;  %p14698_p8 = scmp.lt.u32.totalorder %s15257_s15, %s16560_s0 }
 0x147   : > { %p14693_p1 = scmp.ne.s32.totalorder %s15257_s15, %s14692_s9  ;;  %p14699_p10 = scmp.lt.u32.totalorder %s14697_s28, %s14692_s9 }
 0x148   : > { %p14701_p11 = scmp.lt.u32.totalorder %s14692_s9, %s15257_s15 }
 0x149   : > { %p14695_p4 = pnand %p14693_p1, %p16561_p9  ;;  %p14700_p3 = por %p14699_p10, %p14698_p8 }
 0x14b   : > { %p14696_p7 = pneg %p14695_p4  ;;  %p14702_p13 = por %p14701_p11, %p14700_p3 }
 0x14d   : > { %p14703_p2 = pnand %p14702_p13, %p14696_p7 }
 0x14f   : > { %14706 = shalt.err (!%p14703_p2)
}
 0x150   : > { %s14707_s29 = scalar_lea.vmem %s516_s18, 32  ;;  %s14833_s19 = smov [#allocation18]  }
 0x151   : > { %p14708_p5 = scmp.ne.s32.totalorder %s516_s18, %s14707_s29  ;;  %s14712_s21 = sshll.u32 %s14833_s19, 4  ;;  %s14713_s21 = int_to_ptr.vmem [resolvable:$false] %s14712_s21 }
 0x152   : > { %s14714_s25 = scalar_lea.vmem %s14713_s21, 64  ;;  %p14715_p0 = scmp.lt.s32.totalorder %s516_s18, %s14713_s21 }
 0x153   : > { %p14710_p12 = pnand %p14708_p5, %p16561_p9  ;;  %p14716_p1 = scmp.lt.s32.totalorder %s14714_s25, %s14707_s29 }
 0x155   : > { %p14711_p6 = pneg %p14710_p12  ;;  %p14717_p4 = por %p14716_p1, %p14715_p0 }
 0x157   : > { %p14718_p8 = pnand %p14717_p4, %p14711_p6 }
 0x159   : > { %14721 = shalt.err (!%p14718_p8)
}
 0x15a   : > { %p16562_p10 = scmp.ne.s32.totalorder %s16545_s22, 0  ;;  %s16563_s3 = sld [smem:[#allocation32_spill]] }
 0x15c   : > { %13196 = dma.hbm_to_vmem [thread:$0]  (!%p16562_p10), %s15257_s15, 32, %s516_s18, %s15072_s30  }
 0x160   : > { %p16564_p7 = scmp.ne.s32.totalorder %s16563_s3, 0 }
 0x161   : > { %p16565_p9 = scmp.eq.s32.totalorder (!%p16564_p7), %s14930_s14, 0 }
 0x162   : > { %524 = sbr.rel (%p16564_p7) target bundleno = 2950 (0xb86), region = 72 }
 0x169   : > { %14765 = dma.done.wait (%p16565_p9), [#allocation6], 4608   ;;  %p16566_p3 = pmov %p16565_p9 }
 0x16b   : > { %14767 = vsyncadd (%p16566_p3), [#allocation6], 4294962688  ;;  %p16567_p11 = pmov %p16566_p3 }
 0x16c   : > { %p16568_p13 = pmov %p16566_p3 }
 0x16d   : > { %14769 = dma.done.wait (%p16567_p11), [#allocation9], 32  }
 0x16e   : > { %14771 = vsyncadd (%p16568_p13), [#allocation9], 4294967264  ;;  %p16569_p2 = pmov %p16566_p3 }
 0x170   : > { %14773 = dma.done.wait (%p16569_p2), [#allocation12], 18464   ;;  %p16570_p5 = pmov %p16569_p2 }
 0x171   : > { %p16571_p12 = pmov %p16569_p2 }
 0x172   : > { %14775 = vsyncadd (%p16570_p5), [#allocation12], 4294948832 }
 0x173   : > { %14777 = dma.done.wait (%p16571_p12), [#allocation15], 32   ;;  %p16572_p6 = pmov %p16569_p2 }
 0x174   : > { %s550_s30 = sand.u32 1, %s14930_s14   ;;  %s552_s22 = sand.u32 1, %s14806_s26  }
 0x175   : > { %14779 = vsyncadd (%p16572_p6), [#allocation15], 4294967264  ;;  %s11526_s17 = sshll.u32 %s552_s22, 12  ;;  %s551_s16 = scalar_lea.sflag [#allocation6], %s550_s30 }
 0x176   : > { %s15298_s5 = scalar_lea.vmem [#allocation16], %s11526_s17  ;;  %p16573_p0 = scmp.ne.s32.totalorder %s16543_s23, 0 }
 0x178   : > { %14781 = dma.done.wait (%p16573_p0), %s551_s16, 65600  }
 0x179   : > { %14783 = vsyncadd (%p16573_p0), %s551_s16, 4294901696  ;;  %s15304_s15 = sshll.u32 %s552_s22, 1  ;;  %p16574_p1 = pmov %p16569_p2 }
 0x17a   : > { %s563_s2 = scalar_lea.vmem [#allocation17], %s15304_s15  ;;  %s572_s18 = scalar_lea.vmem [#allocation18], %s15304_s15 }
 0x17b   : > { %14785 = dma.done.wait (%p16574_p1), [#allocation9], 65536   ;;  %p16575_p4 = pmov %p16574_p1 }
 0x17c   : > { %p16576_p8 = pmov %p16574_p1 }
 0x17d   : > { %14787 = vsyncadd (%p16575_p4), [#allocation9], 4294901760 }
 0x17e   : > { %14789 = dma.done.wait (%p16576_p8), [#allocation12], 128   ;;  %p16577_p10 = pmov %p16574_p1 }
 0x17f   : > { %p16578_p7 = pmov %p16574_p1 }
 0x180   : > { %14791 = vsyncadd (%p16577_p10), [#allocation12], 4294967168 }
 0x181   : > { %14793 = dma.done.wait (%p16578_p7), [#allocation15], 128   ;;  %p16579_p9 = pmov %p16574_p1 }
 0x182   : > { %p16580_p3 = scmp.ne.s32.totalorder %s14930_s14, 0 }
 0x183   : > { %14795 = vsyncadd (%p16579_p9), [#allocation15], 4294967168  ;;  %v13270_v0 = vld [vmem:[#allocation5 + $0x40] sm:$0xff] (!%p16580_p3)   ;;  %v13272_v2 = vld [vmem:[#allocation5 + $0x48] sm:$0xff] (!%p16580_p3)   ;;  %s16581_s1 = sld [smem:[#allocation33_spill]] (!%p16580_p3)  ;;  %vm1175_vm0 = vcmask (!%p16580_p3), 523264  }
 0x184   : > { %638 = sbr.rel (%p16580_p3) target bundleno = 1361 (0x551), region = 124  ;;  %v13271_v1 = vld [vmem:[#allocation5] sm:$0xff] (!%p16580_p3)   ;;  %12811 = vmatprep.subr.bf16.mxu0 (!%p16580_p3), %v13270_v0  ;;  %v13273_v3 = vld [vmem:[#allocation5 + $0x8] sm:$0xff] (!%p16580_p3)   ;;  %v13274_v4 = vld [vmem:[#allocation5 + $0x50] sm:$0xff] (!%p16580_p3)  }
 0x185   : > { %12812 = vmatpush3.bf16.msra.mxu0 (!%p16580_p3), %v13271_v1  ;;  %v13275_v5 = vld [vmem:[#allocation5 + $0x10] sm:$0xff] (!%p16580_p3)   ;;  %v13276_v6 = vld [vmem:[#allocation5 + $0x58] sm:$0xff] (!%p16580_p3)   ;;  %v13278_v8 = vld [vmem:[#allocation5 + $0x60] sm:$0xff] (!%p16580_p3)  }
 0x186   : > { %12813 = vmatprep.subr.bf16.mxu0 (!%p16580_p3), %v13272_v2  ;;  %v13277_v7 = vld [vmem:[#allocation5 + $0x18] sm:$0xff] (!%p16580_p3)   ;;  %v13279_v9 = vld [vmem:[#allocation5 + $0x20] sm:$0xff] (!%p16580_p3)   ;;  %v13280_v10 = vld [vmem:[#allocation5 + $0x68] sm:$0xff] (!%p16580_p3)  }
 0x187   : > { %v13281_v12 = vld [vmem:[#allocation5 + $0x28] sm:$0xff] (!%p16580_p3)   ;;  %v13282_v13 = vld [vmem:[#allocation5 + $0x70] sm:$0xff] (!%p16580_p3)   ;;  %v13284_v15 = vld [vmem:[#allocation5 + $0x78] sm:$0xff] (!%p16580_p3)  }
 0x188   : > { %v13283_v14 = vld [vmem:[#allocation5 + $0x30] sm:$0xff] (!%p16580_p3)   ;;  %v13285_v16 = vld [vmem:[#allocation5 + $0x38] sm:$0xff] (!%p16580_p3)   ;;  %v13289_v17 = vld [vmem:[#allocation5 + $0xc0] sm:$0xff] (!%p16580_p3)  }
 0x189   : > { %12814 = vmatpush3.bf16.msra.mxu0 (!%p16580_p3), %v13273_v3  ;;  %v13288_v11 = vld [vmem:[%s16581_s1 + $0x4] ss:$20 sps:$4 sm:$0xff] (!%p16580_p3)   ;;  %v13286_v18 = vld [vmem:[%s16581_s1] ss:$20 sps:$4 sm:$0xff] (!%p16580_p3)   ;;  %v13293_v24 = vld [vmem:[%s16581_s1 + $0x28] ss:$20 sps:$4 sm:$0xff] (!%p16580_p3)  }
 0x18a   : > { %12815 = vmatprep.subr.bf16.mxu0 (!%p16580_p3), %v13274_v4  ;;  %1232 = vmatprep.mubr.bf16.mxu0 (!%p16580_p3), %v13288_v11  ;;  %v13290_v19 = vld [vmem:[#allocation5 + $0x80] sm:$0xff] (!%p16580_p3)   ;;  %v13291_v20 = vld [vmem:[%s16581_s1 + $0x2c] ss:$20 sps:$4 sm:$0xff] (!%p16580_p3)   ;;  %v13294_v21 = vld [vmem:[#allocation5 + $0xc8] sm:$0xff] (!%p16580_p3)  }
 0x18b   : > { %v13295_v22 = vld [vmem:[#allocation5 + $0x88] sm:$0xff]   ;;  %v13299_v23 = vld [vmem:[#allocation5 + $0xd0] sm:$0xff]   ;;  %v13296_v25 = vld [vmem:[%s16581_s1 + $0x54] ss:$20 sps:$4 sm:$0xff]  }
 0x18c   : > { %v13300_v26 = vld [vmem:[#allocation5 + $0x90] sm:$0xff]   ;;  %v13304_v27 = vld [vmem:[#allocation5 + $0xd8] sm:$0xff]   ;;  %v13309_v29 = vld [vmem:[#allocation5 + $0xe0] sm:$0xff]  }
 0x18d   : > { %12816 = vmatpush3.bf16.msra.mxu0 %v13275_v5  ;;  %v13305_v28 = vld [vmem:[#allocation5 + $0x98] sm:$0xff]   ;;  %v13298_v30 = vld [vmem:[%s16581_s1 + $0x50] ss:$20 sps:$4 sm:$0xff]   ;;  %v13314_v33 = vld [vmem:[#allocation5 + $0xe8] sm:$0xff]  }
 0x18e   : > { %12817 = vmatprep.subr.bf16.mxu0 %v13276_v6  ;;  %v13301_v31 = vld [vmem:[%s16581_s1 + $0x7c] ss:$20 sps:$4 sm:$0xff]   ;;  %v13319_v35 = vld [vmem:[#allocation5 + $0xf0] sm:$0xff]   ;;  %v13303_v36 = vld [vmem:[%s16581_s1 + $0x78] ss:$20 sps:$4 sm:$0xff]  }
 0x18f   : > { %v13310_v32 = vld [vmem:[#allocation5 + $0xa0] sm:$0xff]   ;;  %v13315_v34 = vld [vmem:[#allocation5 + $0xa8] sm:$0xff]   ;;  %v13320_v38 = vld [vmem:[#allocation5 + $0xb0] sm:$0xff]  }
 0x190   : > { %v13306_v37 = vld [vmem:[%s16581_s1 + $0xa4] ss:$20 sps:$4 sm:$0xff]   ;;  %v13324_v39 = vld [vmem:[#allocation5 + $0xf8] sm:$0xff]   ;;  %v13329_v41 = vld [vmem:[#allocation5 + $0x100] sm:$0xff]  }
 0x191   : > { %12818 = vmatpush3.bf16.msra.mxu0 %v13277_v7  ;;  %v13325_v40 = vld [vmem:[#allocation5 + $0xb8] sm:$0xff]   ;;  %v13308_v42 = vld [vmem:[%s16581_s1 + $0xa0] ss:$20 sps:$4 sm:$0xff]   ;;  %v13318_v46 = vld [vmem:[%s16581_s1 + $0xf0] ss:$20 sps:$4 sm:$0xff]  }
 0x192   : > { %12819 = vmatprep.subr.bf16.mxu0 %v13278_v8  ;;  %v13311_v43 = vld [vmem:[%s16581_s1 + $0xcc] ss:$20 sps:$4 sm:$0xff]   ;;  %v13313_v44 = vld [vmem:[%s16581_s1 + $0xc8] ss:$20 sps:$4 sm:$0xff]   ;;  %v13332_v54 = vld [vmem:[%s16581_s1 + $0x30] ss:$20 sps:$4 sm:$0xff]  }
 0x193   : > { %v13316_v45 = vld [vmem:[%s16581_s1 + $0xf4] ss:$20 sps:$4 sm:$0xff]   ;;  %v13321_v47 = vld [vmem:[%s16581_s1 + $0x11c] ss:$20 sps:$4 sm:$0xff]   ;;  %v13323_v48 = vld [vmem:[%s16581_s1 + $0x118] ss:$20 sps:$4 sm:$0xff]  }
 0x194   : > { %v13328_v49 = vld [vmem:[%s16581_s1 + $0xc] ss:$20 sps:$4 sm:$0xff]   ;;  %v13326_v50 = vld [vmem:[%s16581_s1 + $0x8] ss:$20 sps:$4 sm:$0xff]   ;;  %v13337_v58 = vld [vmem:[%s16581_s1 + $0x84] ss:$20 sps:$4 sm:$0xff]  }
 0x195   : > { %12820 = vmatpush3.bf16.msra.mxu0 %v13279_v9  ;;  %v13330_v51 = vld [vmem:[%s16581_s1 + $0x34] ss:$20 sps:$4 sm:$0xff]   ;;  %v13336_v52 = vld [vmem:[#allocation5 + $0x108] sm:$0xff]   ;;  %v13343_v53 = vld [vmem:[#allocation5 + $0x110] sm:$0xff]  }
 0x196   : > { %12821 = vmatprep.subr.bf16.mxu0 %v13280_v10  ;;  %v13333_v55 = vld [vmem:[%s16581_s1 + $0x5c] ss:$20 sps:$4 sm:$0xff]   ;;  %v13350_v56 = vld [vmem:[#allocation5 + $0x118] sm:$0xff]   ;;  %v13339_v59 = vld [vmem:[%s16581_s1 + $0x80] ss:$20 sps:$4 sm:$0xff]  }
 0x197   : > { %v13335_v57 = vld [vmem:[%s16581_s1 + $0x58] ss:$20 sps:$4 sm:$0xff]   ;;  %v13342_v61 = vld [vmem:[%s16581_s1 + $0xa8] ss:$20 sps:$4 sm:$0xff]   ;;  %v13346_v63 = vld [vmem:[%s16581_s1 + $0xd0] ss:$20 sps:$4 sm:$0xff]  }
 0x198   : > { %v13340_v60 = vld [vmem:[%s16581_s1 + $0xac] ss:$20 sps:$4 sm:$0xff]   ;;  %v13344_v62 = vld [vmem:[%s16581_s1 + $0xd4] ss:$20 sps:$4 sm:$0xff]   ;;  %v13347_v0 = vld [vmem:[%s16581_s1 + $0xfc] ss:$20 sps:$4 sm:$0xff]  }
 0x199   : > { %12822 = vmatpush3.bf16.msra.mxu0 %v13281_v12  ;;  %v13349_v1 = vld [vmem:[%s16581_s1 + $0xf8] ss:$20 sps:$4 sm:$0xff]   ;;  %v13353_v3 = vld [vmem:[%s16581_s1 + $0x120] ss:$20 sps:$4 sm:$0xff]   ;;  %v13354_v4 = vld [vmem:[%s16581_s1 + $0x10] ss:$20 sps:$4 sm:$0xff]  }
 0x19a   : > { %12823 = vmatprep.subr.bf16.mxu0 %v13282_v13  ;;  %v13351_v2 = vld [vmem:[%s16581_s1 + $0x124] ss:$20 sps:$4 sm:$0xff]   ;;  %v13356_v6 = vld [vmem:[%s16581_s1 + $0x60] ss:$20 sps:$4 sm:$0xff]   ;;  %v13357_v7 = vld [vmem:[%s16581_s1 + $0x88] ss:$20 sps:$4 sm:$0xff]  }
 0x19b   : > { %v13355_v5 = vld [vmem:[%s16581_s1 + $0x38] ss:$20 sps:$4 sm:$0xff]   ;;  %v13358_v8 = vld [vmem:[%s16581_s1 + $0xb0] ss:$20 sps:$4 sm:$0xff]   ;;  %v13360_v10 = vld [vmem:[%s16581_s1 + $0x100] ss:$20 sps:$4 sm:$0xff]  }
 0x19c   : > { %v13359_v9 = vld [vmem:[%s16581_s1 + $0xd8] ss:$20 sps:$4 sm:$0xff]   ;;  %v13361_v11 = vld [vmem:[%s16581_s1 + $0x128] ss:$20 sps:$4 sm:$0xff]  }
 0x19d   : > { %12824 = vmatpush3.bf16.msra.mxu0 %v13283_v14 }
 0x19e   : > { %12825 = vmatprep.subr.bf16.mxu0 %v13284_v15 }
 0x1a1   : > { %12826 = vmatpush3.bf16.msra.mxu0 %v13285_v16 }
 0x1a2   : > { %12875 = vmatprep.subr.bf16.mxu0 %v13289_v17 }
 0x1a4   : > { %1233 = vmatmul.mubr.bf16.vlgmr.msra.gmra.mrb[0].mxu0 %v13286_v18 }
 0x1a5   : > { %12876 = vmatpush3.bf16.msra.mxu0 %v13290_v19  ;;  %1240 = vmatprep.mubr.bf16.mxu0 %v13291_v20 }
 0x1a6   : > { %12877 = vmatprep.subr.bf16.mxu0 %v13294_v21 }
 0x1a9   : > { %12878 = vmatpush3.bf16.msra.mxu0 %v13295_v22 }
 0x1aa   : > { %12879 = vmatprep.subr.bf16.mxu0 %v13299_v23 }
 0x1ac   : > { %1241 = vmatmul.mubr.bf16.gmra.mrb[4].mxu0 %v13293_v24 }
 0x1ad   : > { %1248 = vmatprep.mubr.bf16.mxu0 %v13296_v25  ;;  %12880 = vmatpush3.bf16.msra.mxu0 %v13300_v26 }
 0x1ae   : > { %12881 = vmatprep.subr.bf16.mxu0 %v13304_v27 }
 0x1b1   : > { %12882 = vmatpush3.bf16.msra.mxu0 %v13305_v28 }
 0x1b2   : > { %12883 = vmatprep.subr.bf16.mxu0 %v13309_v29 }
 0x1b4   : > { %1249 = vmatmul.mubr.bf16.gmra.mrb[8].mxu0 %v13298_v30 }
 0x1b5   : > { %1256 = vmatprep.mubr.bf16.mxu0 %v13301_v31  ;;  %12884 = vmatpush3.bf16.msra.mxu0 %v13310_v32 }
 0x1b6   : > { %12885 = vmatprep.subr.bf16.mxu0 %v13314_v33 }
 0x1b9   : > { %12886 = vmatpush3.bf16.msra.mxu0 %v13315_v34 }
 0x1ba   : > { %12887 = vmatprep.subr.bf16.mxu0 %v13319_v35 }
 0x1bc   : > { %1257 = vmatmul.mubr.bf16.gmra.mrb[12].mxu0 %v13303_v36 }
 0x1bd   : > { %1264 = vmatprep.mubr.bf16.mxu0 %v13306_v37  ;;  %12888 = vmatpush3.bf16.msra.mxu0 %v13320_v38 }
 0x1be   : > { %12889 = vmatprep.subr.bf16.mxu0 %v13324_v39 }
 0x1c1   : > { %12890 = vmatpush3.bf16.msra.mxu0 %v13325_v40 }
 0x1c2   : > { %12951 = vmatprep.subr.bf16.mxu0 %v13329_v41 }
 0x1c4   : > { %1265 = vmatmul.mubr.bf16.gmra.mrb[16].mxu0 %v13308_v42 }
 0x1c5   : > { %1272 = vmatprep.mubr.bf16.mxu0 %v13311_v43 }
 0x1cc   : > { %1273 = vmatmul.mubr.bf16.gmra.mrb[20].mxu0 %v13313_v44 }
 0x1cd   : > { %1280 = vmatprep.mubr.bf16.mxu0 %v13316_v45 }
 0x1d4   : > { %1281 = vmatmul.mubr.bf16.gmra.mrb[24].mxu0 %v13318_v46 }
 0x1d5   : > { %1288 = vmatprep.mubr.bf16.mxu0 %v13321_v47 }
 0x1dc   : > { %1289 = vmatmul.mubr.bf16.gmra.mrb[28].mxu0 %v13323_v48 }
 0x1dd   : > { %1329 = vmatprep.mubr.bf16.mxu0 %v13328_v49 }
 0x1e4   : > { %1330 = vmatmul.mubr.bf16.vlgmr.msra.gmra.mrb[32].mxu0 %v13326_v50 }
 0x1e5   : > { %12952 = vmatpush3.bf16.msra.mxu0 %v13329_v41  ;;  %1337 = vmatprep.mubr.bf16.mxu0 %v13330_v51 }
 0x1e6   : > { %12953 = vmatprep.subr.bf16.mxu0 %v13336_v52 }
 0x1e9   : > { %12954 = vmatpush3.bf16.msra.mxu0 %v13336_v52 }
 0x1ea   : > { %12955 = vmatprep.subr.bf16.mxu0 %v13343_v53 }
 0x1ec   : > { %1338 = vmatmul.mubr.bf16.gmra.mrb[36].mxu0 %v13332_v54 }
 0x1ed   : > { %1345 = vmatprep.mubr.bf16.mxu0 %v13333_v55  ;;  %12956 = vmatpush3.bf16.msra.mxu0 %v13343_v53 }
 0x1ee   : > { %12957 = vmatprep.subr.bf16.mxu0 %v13350_v56 }
 0x1f1   : > { %12958 = vmatpush3.bf16.msra.mxu0 %v13350_v56 }
 0x1f4   : > { %1346 = vmatmul.mubr.bf16.gmra.mrb[40].mxu0 %v13335_v57 }
 0x1f5   : > { %1353 = vmatprep.mubr.bf16.mxu0 %v13337_v58 }
 0x1fc   : > { %1354 = vmatmul.mubr.bf16.gmra.mrb[44].mxu0 %v13339_v59 }
 0x1fd   : > { %1361 = vmatprep.mubr.bf16.mxu0 %v13340_v60 }
 0x204   : > { %1362 = vmatmul.mubr.bf16.gmra.mrb[48].mxu0 %v13342_v61 }
 0x205   : > { %1369 = vmatprep.mubr.bf16.mxu0 %v13344_v62 }
 0x20c   : > { %1370 = vmatmul.mubr.bf16.gmra.mrb[52].mxu0 %v13346_v63 }
 0x20d   : > { %1377 = vmatprep.mubr.bf16.mxu0 %v13347_v0 }
 0x214   : > { %1378 = vmatmul.mubr.bf16.gmra.mrb[56].mxu0 %v13349_v1 }
 0x215   : > { %1385 = vmatprep.mubr.bf16.mxu0 %v13351_v2 }
 0x21c   : > { %1386 = vmatmul.mubr.bf16.gmra.mrb[60].mxu0 %v13353_v3 }
 0x21d   : > { %12959 = vmatprep.mubr.msk.bf16.mxu0 %vm1175_vm0, %v13354_v4 }
 0x224   : > { %12960 = vmatmul.mubr.msk.bf16.vlgmr.msra.gmra.mrb[64].mxu0 %vm1175_vm0, %v13355_v5 }
 0x225   : > { %12963 = vmatprep.mubr.msk.bf16.mxu0 %vm1175_vm0, %v13356_v6 }
 0x22c   : > { %12964 = vmatmul.mubr.msk.bf16.gmra.mrb[68].mxu0 %vm1175_vm0, %v13357_v7 }
 0x22d   : > { %12967 = vmatprep.mubr.msk.bf16.mxu0 %vm1175_vm0, %v13358_v8 }
 0x234   : > { %12968 = vmatmul.mubr.msk.bf16.gmra.mrb[72].mxu0 %vm1175_vm0, %v13359_v9 }
 0x235   : > { %12971 = vmatprep.mubr.msk.bf16.mxu0 %vm1175_vm0, %v13360_v10 }
 0x23c   : > { %12972 = vmatmul.mubr.msk.bf16.gmra.mrb[76].mxu0 %vm1175_vm0, %v13361_v11  ;;  %v13364_v11 = vld [vmem:[#allocation11 + $0x4] ss:$8 sps:$4 sm:$0xff]  }
 0x23d   : > { %2659 = vmatprep.subr.bf16.mxu0 %v13364_v11 }
 0x277   : > { %v12827_v12 = vpop.f32.mrb[0].mxu0 }
 0x278   : > { %v12828_v13 = vpop.f32.mrb[1].mxu0 }
 0x279   : > { %v12829_v14 = vadd.f32 %v12828_v13, %v12827_v12  ;;  %v12830_v15 = vpop.f32.mrb[2].mxu0  ;;  %v13365_v12 = vld [vmem:[#allocation11 + $0x104] ss:$8 sps:$4 sm:$0xff]   ;;  %v13362_v13 = vld [vmem:[#allocation11] ss:$8 sps:$4 sm:$0xff]  }
 0x27a   : > { %v12831_v16 = vpop.f32.mrb[3].mxu0  ;;  %2712 = vmatprep.subr.bf16.mxu1 %v13365_v12  ;;  %2660 = vmatpush1.bf16.msra.mxu0 %v13362_v13  ;;  %v13406_v12 = vld [vmem:[#allocation11 + $0x74] ss:$8 sps:$4 sm:$0xff]  }
 0x27b   : > { %v12832_v17 = vadd.f32 %v12831_v16, %v12830_v15  ;;  %v13367_v15 = vld [vmem:[#allocation11 + $0x100] ss:$8 sps:$4 sm:$0xff]   ;;  %v13407_v13 = vld [vmem:[#allocation11 + $0x174] ss:$8 sps:$4 sm:$0xff]  }
 0x27c   : > { %2713 = vmatpush1.bf16.msra.mxu1 %v13367_v15 }
 0x27f   : > { %v12833_v18 = vpop.f32.mrb[4].mxu0 }
 0x280   : > { %v12834_v19 = vpop.f32.mrb[5].mxu0 }
 0x281   : > { %v12835_v20 = vadd.f32 %v12834_v19, %v12833_v18  ;;  %v12836_v21 = vpop.f32.mrb[6].mxu0  ;;  %v13371_v18 = vld [vmem:[#allocation11 + $0x114] ss:$8 sps:$4 sm:$0xff]  }
 0x282   : > { %v12837_v22 = vpop.f32.mrb[7].mxu0  ;;  %2714 = vmatprep.subr.bf16.mxu1 %v13371_v18 }
 0x283   : > { %v12838_v23 = vadd.f32 %v12837_v22, %v12836_v21  ;;  %v13368_v21 = vld [vmem:[#allocation11 + $0x10] ss:$8 sps:$4 sm:$0xff]  }
 0x284   : > { %v13373_v22 = vld [vmem:[#allocation11 + $0x110] ss:$8 sps:$4 sm:$0xff]  }
 0x285   : > { %2715 = vmatpush1.bf16.msra.mxu1 %v13373_v22  ;;  %v13412_v22 = vld [vmem:[#allocation11 + $0x84] ss:$8 sps:$4 sm:$0xff]  }
 0x287   : > { %v12839_v24 = vpop.f32.mrb[8].mxu0 }
 0x288   : > { %v12840_v25 = vpop.f32.mrb[9].mxu0 }
 0x289   : > { %v15450_v26 = vadd.f32 %v12840_v25, %v12839_v24  ;;  %v12842_v27 = vpop.f32.mrb[10].mxu0 }
 0x28a   : > { %v12843_v28 = vpop.f32.mrb[11].mxu0 }
 0x28b   : > { %v15452_v29 = vadd.f32 %v12843_v28, %v12842_v27  ;;  %v13376_v28 = vld [vmem:[#allocation11 + $0x24] ss:$8 sps:$4 sm:$0xff]  }
 0x28f   : > { %v12845_v30 = vpop.f32.mrb[12].mxu0 }
 0x290   : > { %v12846_v31 = vpop.f32.mrb[13].mxu0 }
 0x291   : > { %v15454_v32 = vadd.f32 %v12846_v31, %v12845_v30  ;;  %v12848_v33 = vpop.f32.mrb[14].mxu0  ;;  %v13377_v30 = vld [vmem:[#allocation11 + $0x124] ss:$8 sps:$4 sm:$0xff]   ;;  %v13374_v31 = vld [vmem:[#allocation11 + $0x20] ss:$8 sps:$4 sm:$0xff]  }
 0x292   : > { %v12849_v34 = vpop.f32.mrb[15].mxu0  ;;  %2716 = vmatprep.subr.bf16.mxu1 %v13377_v30  ;;  %v13418_v30 = vld [vmem:[#allocation11 + $0x94] ss:$8 sps:$4 sm:$0xff]  }
 0x293   : > { %v15456_v35 = vadd.f32 %v12849_v34, %v12848_v33  ;;  %v13379_v33 = vld [vmem:[#allocation11 + $0x120] ss:$8 sps:$4 sm:$0xff]  }
 0x294   : > { %2717 = vmatpush1.bf16.msra.mxu1 %v13379_v33 }
 0x297   : > { %v12851_v36 = vpop.f32.mrb[16].mxu0 }
 0x298   : > { %v12852_v37 = vpop.f32.mrb[17].mxu0 }
 0x299   : > { %v15458_v38 = vadd.f32 %v12852_v37, %v12851_v36  ;;  %v12854_v39 = vpop.f32.mrb[18].mxu0  ;;  %v13382_v37 = vld [vmem:[#allocation11 + $0x34] ss:$8 sps:$4 sm:$0xff]  }
 0x29a   : > { %v12855_v40 = vpop.f32.mrb[19].mxu0 }
 0x29b   : > { %v15460_v41 = vadd.f32 %v12855_v40, %v12854_v39  ;;  %v13383_v39 = vld [vmem:[#allocation11 + $0x134] ss:$8 sps:$4 sm:$0xff]  }
 0x29c   : > { %2718 = vmatprep.subr.bf16.mxu1 %v13383_v39 }
 0x29f   : > { %v12857_v42 = vpop.f32.mrb[20].mxu0 }
 0x2a0   : > { %v12858_v43 = vpop.f32.mrb[21].mxu0 }
 0x2a1   : > { %v15462_v44 = vadd.f32 %v12858_v43, %v12857_v42  ;;  %v12860_v45 = vpop.f32.mrb[22].mxu0  ;;  %v13380_v42 = vld [vmem:[#allocation11 + $0x30] ss:$8 sps:$4 sm:$0xff]  }
 0x2a2   : > { %v12861_v46 = vpop.f32.mrb[23].mxu0  ;;  %v13385_v43 = vld [vmem:[#allocation11 + $0x130] ss:$8 sps:$4 sm:$0xff]  }
 0x2a3   : > { %v15464_v47 = vadd.f32 %v12861_v46, %v12860_v45  ;;  %2719 = vmatpush1.bf16.msra.mxu1 %v13385_v43  ;;  %v13424_v43 = vld [vmem:[#allocation11 + $0xa4] ss:$8 sps:$4 sm:$0xff]  }
 0x2a7   : > { %v12863_v48 = vpop.f32.mrb[24].mxu0 }
 0x2a8   : > { %v12864_v49 = vpop.f32.mrb[25].mxu0 }
 0x2a9   : > { %v15466_v50 = vadd.f32 %v12864_v49, %v12863_v48  ;;  %v12866_v51 = vpop.f32.mrb[26].mxu0  ;;  %v13388_v49 = vld [vmem:[#allocation11 + $0x44] ss:$8 sps:$4 sm:$0xff]  }
 0x2aa   : > { %v12867_v52 = vpop.f32.mrb[27].mxu0 }
 0x2ab   : > { %v15468_v53 = vadd.f32 %v12867_v52, %v12866_v51  ;;  %v13389_v51 = vld [vmem:[#allocation11 + $0x144] ss:$8 sps:$4 sm:$0xff]   ;;  %v13386_v52 = vld [vmem:[#allocation11 + $0x40] ss:$8 sps:$4 sm:$0xff]  }
 0x2ac   : > { %2720 = vmatprep.subr.bf16.mxu1 %v13389_v51  ;;  %v13430_v51 = vld [vmem:[#allocation11 + $0xb4] ss:$8 sps:$4 sm:$0xff]  }
 0x2af   : > { %v12869_v54 = vpop.f32.mrb[28].mxu0 }
 0x2b0   : > { %v12870_v55 = vpop.f32.mrb[29].mxu0 }
 0x2b1   : > { %v15470_v56 = vadd.f32 %v12870_v55, %v12869_v54  ;;  %v12872_v57 = vpop.f32.mrb[30].mxu0  ;;  %v13391_v54 = vld [vmem:[#allocation11 + $0x140] ss:$8 sps:$4 sm:$0xff]  }
 0x2b2   : > { %v12873_v58 = vpop.f32.mrb[31].mxu0  ;;  %2721 = vmatpush1.bf16.msra.mxu1 %v13391_v54 }
 0x2b3   : > { %v15472_v59 = vadd.f32 %v12873_v58, %v12872_v57  ;;  %v13394_v58 = vld [vmem:[#allocation11 + $0x54] ss:$8 sps:$4 sm:$0xff]  }
 0x2b7   : > { %v12891_v60 = vpop.f32.mrb[32].mxu0 }
 0x2b8   : > { %v12892_v61 = vpop.f32.mrb[33].mxu0 }
 0x2b9   : > { %v12893_v62 = vadd.f32 %v12892_v61, %v12891_v60  ;;  %v12894_v63 = vpop.f32.mrb[34].mxu0  ;;  %v13395_v60 = vld [vmem:[#allocation11 + $0x154] ss:$8 sps:$4 sm:$0xff]  }
 0x2ba   : > { %v12895_v0 = vpop.f32.mrb[35].mxu0  ;;  %2722 = vmatprep.subr.bf16.mxu1 %v13395_v60 }
 0x2bb   : > { %v12896_v1 = vadd.f32 %v12895_v0, %v12894_v63  ;;  %v15474_v2 = vadd.f32 %v12893_v62, %v12829_v14  ;;  %v13392_v62 = vld [vmem:[#allocation11 + $0x50] ss:$8 sps:$4 sm:$0xff]  }
 0x2bc   : > { %v13397_v63 = vld [vmem:[#allocation11 + $0x150] ss:$8 sps:$4 sm:$0xff]  }
 0x2bd   : > { %v15476_v3 = vadd.f32 %v12896_v1, %v12832_v17  ;;  %v13370_v17 = vld [vmem:[#allocation11 + $0x14] ss:$8 sps:$4 sm:$0xff]   ;;  %2723 = vmatpush1.bf16.msra.mxu1 %v13397_v63  ;;  %v13436_v63 = vld [vmem:[#allocation11 + $0xc4] ss:$8 sps:$4 sm:$0xff]  }
 0x2be   : > { %2661 = vmatprep.subr.bf16.mxu0 %v13370_v17  ;;  %v13409_v17 = vld [vmem:[#allocation11 + $0x170] ss:$8 sps:$4 sm:$0xff]  }
 0x2bf   : > { %v12897_v4 = vpop.f32.mrb[36].mxu0  ;;  %2662 = vmatpush1.bf16.msra.mxu0 %v13368_v21 }
 0x2c0   : > { %v12898_v5 = vpop.f32.mrb[37].mxu0  ;;  %2663 = vmatprep.subr.bf16.mxu0 %v13376_v28 }
 0x2c1   : > { %v12899_v6 = vadd.f32 %v12898_v5, %v12897_v4  ;;  %v12900_v7 = vpop.f32.mrb[38].mxu0  ;;  %v13400_v5 = vld [vmem:[#allocation11 + $0x64] ss:$8 sps:$4 sm:$0xff]  }
 0x2c2   : > { %v12901_v8 = vpop.f32.mrb[39].mxu0 }
 0x2c3   : > { %v12902_v9 = vadd.f32 %v12901_v8, %v12900_v7  ;;  %v15478_v10 = vadd.f32 %v12899_v6, %v12835_v20  ;;  %2664 = vmatpush1.bf16.msra.mxu0 %v13374_v31  ;;  %v13401_v6 = vld [vmem:[#allocation11 + $0x164] ss:$8 sps:$4 sm:$0xff]   ;;  %v13398_v7 = vld [vmem:[#allocation11 + $0x60] ss:$8 sps:$4 sm:$0xff]   ;;  %v13419_v31 = vld [vmem:[#allocation11 + $0x194] ss:$8 sps:$4 sm:$0xff]  }
 0x2c4   : > { %2665 = vmatprep.subr.bf16.mxu0 %v13382_v37  ;;  %v13403_v8 = vld [vmem:[#allocation11 + $0x160] ss:$8 sps:$4 sm:$0xff]   ;;  %2724 = vmatprep.subr.bf16.mxu1 %v13401_v6  ;;  %v13421_v37 = vld [vmem:[#allocation11 + $0x190] ss:$8 sps:$4 sm:$0xff]   ;;  %v13442_v6 = vld [vmem:[#allocation11 + $0xd4] ss:$8 sps:$4 sm:$0xff]  }
 0x2c5   : > { %v15480_v16 = vadd.f32 %v12902_v9, %v12838_v23  ;;  %2725 = vmatpush1.bf16.msra.mxu1 %v13403_v8 }
 0x2c6   : > { %2726 = vmatprep.subr.bf16.mxu1 %v13407_v13 }
 0x2c7   : > { %v12903_v14 = vpop.f32.mrb[40].mxu0  ;;  %2666 = vmatpush1.bf16.msra.mxu0 %v13380_v42 }
 0x2c8   : > { %v12904_v19 = vpop.f32.mrb[41].mxu0  ;;  %2667 = vmatprep.subr.bf16.mxu0 %v13388_v49 }
 0x2c9   : > { %v12905_v24 = vadd.f32 %v12904_v19, %v12903_v14  ;;  %v12906_v25 = vpop.f32.mrb[42].mxu0  ;;  %v13404_v14 = vld [vmem:[#allocation11 + $0x70] ss:$8 sps:$4 sm:$0xff]   ;;  %2727 = vmatpush1.bf16.msra.mxu1 %v13409_v17 }
 0x2ca   : > { %v12907_v20 = vpop.f32.mrb[43].mxu0 }
 0x2cb   : > { %v12908_v27 = vadd.f32 %v12907_v20, %v12906_v25  ;;  %v15483_v23 = vadd.f32 %v12905_v24, %v15450_v26  ;;  %2668 = vmatpush1.bf16.msra.mxu0 %v13386_v52  ;;  %v13413_v24 = vld [vmem:[#allocation11 + $0x184] ss:$8 sps:$4 sm:$0xff]   ;;  %v13410_v25 = vld [vmem:[#allocation11 + $0x80] ss:$8 sps:$4 sm:$0xff]   ;;  %v13431_v52 = vld [vmem:[#allocation11 + $0x1b4] ss:$8 sps:$4 sm:$0xff]  }
 0x2cc   : > { %2669 = vmatprep.subr.bf16.mxu0 %v13394_v58  ;;  %v13415_v20 = vld [vmem:[#allocation11 + $0x180] ss:$8 sps:$4 sm:$0xff]   ;;  %2728 = vmatprep.subr.bf16.mxu1 %v13413_v24  ;;  %v13433_v58 = vld [vmem:[#allocation11 + $0x1b0] ss:$8 sps:$4 sm:$0xff]   ;;  %v13454_v24 = vld [vmem:[#allocation11 + $0xf4] ss:$8 sps:$4 sm:$0xff]  }
 0x2cd   : > { %v15486_v34 = vadd.f32 %v12908_v27, %v15452_v29  ;;  %2729 = vmatpush1.bf16.msra.mxu1 %v13415_v20 }
 0x2ce   : > { %2730 = vmatprep.subr.bf16.mxu1 %v13419_v31 }
 0x2cf   : > { %v12909_v36 = vpop.f32.mrb[44].mxu0  ;;  %2670 = vmatpush1.bf16.msra.mxu0 %v13392_v62 }
 0x2d0   : > { %v12910_v40 = vpop.f32.mrb[45].mxu0  ;;  %2671 = vmatprep.subr.bf16.mxu0 %v13400_v5 }
 0x2d1   : > { %v12911_v45 = vadd.f32 %v12910_v40, %v12909_v36  ;;  %v12912_v26 = vpop.f32.mrb[46].mxu0  ;;  %v13416_v36 = vld [vmem:[#allocation11 + $0x90] ss:$8 sps:$4 sm:$0xff]   ;;  %2731 = vmatpush1.bf16.msra.mxu1 %v13421_v37 }
 0x2d2   : > { %v12913_v46 = vpop.f32.mrb[47].mxu0 }
 0x2d3   : > { %v12914_v48 = vadd.f32 %v12913_v46, %v12912_v26  ;;  %v15489_v29 = vadd.f32 %v12911_v45, %v15454_v32  ;;  %2672 = vmatpush1.bf16.msra.mxu0 %v13398_v7  ;;  %v13425_v45 = vld [vmem:[#allocation11 + $0x1a4] ss:$8 sps:$4 sm:$0xff]   ;;  %v13422_v26 = vld [vmem:[#allocation11 + $0xa0] ss:$8 sps:$4 sm:$0xff]   ;;  %v13443_v7 = vld [vmem:[#allocation11 + $0x1d4] ss:$8 sps:$4 sm:$0xff]  }
 0x2d4   : > { %2673 = vmatprep.subr.bf16.mxu0 %v13406_v12  ;;  %v13427_v46 = vld [vmem:[#allocation11 + $0x1a0] ss:$8 sps:$4 sm:$0xff]   ;;  %2732 = vmatprep.subr.bf16.mxu1 %v13425_v45 }
 0x2d5   : > { %v15492_v55 = vadd.f32 %v12914_v48, %v15456_v35  ;;  %2733 = vmatpush1.bf16.msra.mxu1 %v13427_v46 }
 0x2d6   : > { %2734 = vmatprep.subr.bf16.mxu1 %v13431_v52 }
 0x2d7   : > { %v12915_v57 = vpop.f32.mrb[48].mxu0  ;;  %2674 = vmatpush1.bf16.msra.mxu0 %v13404_v14 }
 0x2d8   : > { %v12916_v61 = vpop.f32.mrb[49].mxu0  ;;  %2675 = vmatprep.subr.bf16.mxu0 %v13412_v22 }
 0x2d9   : > { %v12917_v0 = vadd.f32 %v12916_v61, %v12915_v57  ;;  %v12918_v32 = vpop.f32.mrb[50].mxu0  ;;  %v13428_v57 = vld [vmem:[#allocation11 + $0xb0] ss:$8 sps:$4 sm:$0xff]   ;;  %2735 = vmatpush1.bf16.msra.mxu1 %v13433_v58 }
 0x2da   : > { %v12919_v1 = vpop.f32.mrb[51].mxu0 }
 0x2db   : > { %v12920_v4 = vadd.f32 %v12919_v1, %v12918_v32  ;;  %v15495_v35 = vadd.f32 %v12917_v0, %v15458_v38  ;;  %2676 = vmatpush1.bf16.msra.mxu0 %v13410_v25  ;;  %v13437_v0 = vld [vmem:[#allocation11 + $0x1c4] ss:$8 sps:$4 sm:$0xff]   ;;  %v13434_v32 = vld [vmem:[#allocation11 + $0xc0] ss:$8 sps:$4 sm:$0xff]   ;;  %v13455_v25 = vld [vmem:[#allocation11 + $0x1f4] ss:$8 sps:$4 sm:$0xff]  }
 0x2dc   : > { %2677 = vmatprep.subr.bf16.mxu0 %v13418_v30  ;;  %v13439_v1 = vld [vmem:[#allocation11 + $0x1c0] ss:$8 sps:$4 sm:$0xff]   ;;  %2736 = vmatprep.subr.bf16.mxu1 %v13437_v0  ;;  %v13457_v30 = vld [vmem:[#allocation11 + $0x1f0] ss:$8 sps:$4 sm:$0xff]  }
 0x2dd   : > { %v15498_v9 = vadd.f32 %v12920_v4, %v15460_v41  ;;  %2737 = vmatpush1.bf16.msra.mxu1 %v13439_v1 }
 0x2de   : > { %2738 = vmatprep.subr.bf16.mxu1 %v13443_v7 }
 0x2df   : > { %v12921_v11 = vpop.f32.mrb[52].mxu0  ;;  %2678 = vmatpush1.bf16.msra.mxu0 %v13416_v36 }
 0x2e0   : > { %v12922_v15 = vpop.f32.mrb[53].mxu0  ;;  %2679 = vmatprep.subr.bf16.mxu0 %v13424_v43 }
 0x2e1   : > { %v12923_v18 = vadd.f32 %v12922_v15, %v12921_v11  ;;  %v12924_v38 = vpop.f32.mrb[54].mxu0 }
 0x2e2   : > { %v12925_v19 = vpop.f32.mrb[55].mxu0 }
 0x2e3   : > { %v12926_v21 = vadd.f32 %v12925_v19, %v12924_v38  ;;  %v15501_v41 = vadd.f32 %v12923_v18, %v15462_v44  ;;  %2680 = vmatpush1.bf16.msra.mxu0 %v13422_v26  ;;  %v13446_v18 = vld [vmem:[#allocation11 + $0xe0] ss:$8 sps:$4 sm:$0xff]   ;;  %v13448_v38 = vld [vmem:[#allocation11 + $0xe4] ss:$8 sps:$4 sm:$0xff]  }
 0x2e4   : > { %2681 = vmatprep.subr.bf16.mxu0 %v13430_v51  ;;  %v13449_v19 = vld [vmem:[#allocation11 + $0x1e4] ss:$8 sps:$4 sm:$0xff]  }
 0x2e5   : > { %v15504_v27 = vadd.f32 %v12926_v21, %v15464_v47  ;;  %v13451_v21 = vld [vmem:[#allocation11 + $0x1e0] ss:$8 sps:$4 sm:$0xff]  }
 0x2e7   : > { %v12927_v28 = vpop.f32.mrb[56].mxu0  ;;  %2682 = vmatpush1.bf16.msra.mxu0 %v13428_v57 }
 0x2e8   : > { %v12928_v33 = vpop.f32.mrb[57].mxu0  ;;  %2683 = vmatprep.subr.bf16.mxu0 %v13436_v63 }
 0x2e9   : > { %v12929_v39 = vadd.f32 %v12928_v33, %v12927_v28  ;;  %v12930_v44 = vpop.f32.mrb[58].mxu0 }
 0x2ea   : > { %v12931_v40 = vpop.f32.mrb[59].mxu0 }
 0x2eb   : > { %v12932_v42 = vadd.f32 %v12931_v40, %v12930_v44  ;;  %v15507_v47 = vadd.f32 %v12929_v39, %v15466_v50  ;;  %2684 = vmatpush1.bf16.msra.mxu0 %v13434_v32 }
 0x2ec   : > { %2685 = vmatprep.subr.bf16.mxu0 %v13442_v6 }
 0x2ed   : > { %v15510_v48 = vadd.f32 %v12932_v42, %v15468_v53 }
 0x2ef   : > { %v12933_v49 = vpop.f32.mrb[60].mxu0 }
 0x2f0   : > { %v12934_v54 = vpop.f32.mrb[61].mxu0 }
 0x2f1   : > { %v12935_v60 = vadd.f32 %v12934_v54, %v12933_v49  ;;  %v12936_v50 = vpop.f32.mrb[62].mxu0  ;;  %v13460_v49 = vld [vmem:[#allocation11 + $0x204] ss:$8 sps:$4 sm:$0xff]  }
 0x2f2   : > { %v12937_v61 = vpop.f32.mrb[63].mxu0 }
 0x2f3   : > { %v12938_v62 = vadd.f32 %v12937_v61, %v12936_v50  ;;  %v15513_v53 = vadd.f32 %v12935_v60, %v15470_v56  ;;  %v14834_v56 = vmov 0.0  }
 0x2f4   : > { %1654 = vst [vmem:[#allocation2 + $0x30] sm:$0xff] %v14834_v56  ;;  %1657 = vst [vmem:[#allocation2 + $0x48] sm:$0xff] %v14834_v56 }
 0x2f5   : > { %v15516_v4 = vadd.f32 %v12938_v62, %v15472_v59  ;;  %1663 = vst [vmem:[#allocation2 + $0x78] sm:$0xff] %v14834_v56  ;;  %1666 = vst [vmem:[#allocation2 + $0x90] sm:$0xff] %v14834_v56  ;;  %v13440_v59 = vld [vmem:[#allocation11 + $0xd0] ss:$8 sps:$4 sm:$0xff]  }
 0x2f6   : > { %1672 = vst [vmem:[#allocation2 + $0xc0] sm:$0xff] %v14834_v56  ;;  %1675 = vst [vmem:[#allocation2 + $0xd8] sm:$0xff] %v14834_v56  ;;  %2686 = vmatpush1.bf16.msra.mxu0 %v13440_v59 }
 0x2f7   : > { %v12961_v5 = vpop.f32.mrb[64].mxu0  ;;  %1678 = vst [vmem:[#allocation2 + $0xf0] sm:$0xff] %v14834_v56  ;;  %1681 = vst [vmem:[#allocation2 + $0x108] sm:$0xff] %v14834_v56  ;;  %2687 = vmatprep.subr.bf16.mxu0 %v13448_v38 }
 0x2f8   : > { %v15519_v8 = vadd.f32 %v12961_v5, %v15478_v10  ;;  %v1428_v11 = vpop.f32.mrb[65].mxu0  ;;  %1651 = vst [vmem:[#allocation2 + $0x18] sm:$0xff] %v14834_v56  ;;  %1660 = vst [vmem:[#allocation2 + $0x60] sm:$0xff] %v14834_v56  ;;  %v13445_v10 = vld [vmem:[#allocation11 + $0x1d0] ss:$8 sps:$4 sm:$0xff]  }
 0x2f9   : > { %1669 = vst [vmem:[#allocation2 + $0xa8] sm:$0xff] %v14834_v56  ;;  %v15533_v12 = vadd.f32 %v1428_v11, %v15474_v2  ;;  %v12962_v13 = vpop.f32.mrb[66].mxu0  ;;  %2739 = vmatpush1.bf16.msra.mxu1 %v13445_v10 }
 0x2fa   : > { %v15536_v15 = vadd.f32 %v12962_v13, %v15480_v16  ;;  %v1431_v14 = vpop.f32.mrb[67].mxu0  ;;  %2740 = vmatprep.subr.bf16.mxu1 %v13449_v19  ;;  %2688 = vmatpush1.bf16.msra.mxu0 %v13446_v18  ;;  %v13452_v16 = vld [vmem:[#allocation11 + $0xf0] ss:$8 sps:$4 sm:$0xff]   ;;  %v1495_v20 = vmax.f32 %v15519_v8, 0.0 }
 0x2fb   : > { %v15539_v17 = vadd.f32 %v1431_v14, %v15476_v3  ;;  %v1493_v22 = vmax.f32 %v15533_v12, 0.0  ;;  %2689 = vmatprep.subr.bf16.mxu0 %v13454_v24 }
 0x2fc   : > { %v1496_v36 = vmax.f32 %v15536_v15, 0.0 }
 0x2fd   : > { %v1494_v2 = vmax.f32 %v15539_v17, 0.0  ;;  %2741 = vmatpush1.bf16.msra.mxu1 %v13451_v21 }
 0x2fe   : > { %2742 = vmatprep.subr.bf16.mxu1 %v13455_v25  ;;  %2690 = vmatpush1.bf16.msra.mxu0 %v13452_v16 }
 0x2ff   : > { %v1509_v3 = vadd.f32 %v1494_v2, %v1493_v22  ;;  %v12965_v28 = vpop.f32.mrb[68].mxu0 }
 0x300   : > { %v15549_v31 = vadd.f32 %v12965_v28, %v15489_v29  ;;  %v1444_v33 = vpop.f32.mrb[69].mxu0 }
 0x301   : > { %v1510_v37 = vadd.f32 %v1509_v3, %v1495_v20  ;;  %v1445_v39 = vadd.f32 %v1444_v33, %v15483_v23  ;;  %v12966_v44 = vpop.f32.mrb[70].mxu0  ;;  %2743 = vmatpush1.bf16.msra.mxu1 %v13457_v30 }
 0x302   : > { %v15556_v40 = vadd.f32 %v12966_v44, %v15492_v55  ;;  %v1447_v42 = vpop.f32.mrb[71].mxu0  ;;  %v1499_v51 = vmax.f32 %v15549_v31, 0.0  ;;  %2765 = vmatprep.subr.bf16.mxu1 %v13460_v49 }
 0x303   : > { %v1497_v43 = vmax.f32 %v1445_v39, 0.0  ;;  %v1511_v45 = vadd.f32 %v1510_v37, %v1496_v36  ;;  %v1448_v29 = vadd.f32 %v1447_v42, %v15486_v34 }
 0x304   : > { %v1500_v55 = vmax.f32 %v15556_v40, 0.0 }
 0x305   : > { %v1512_v26 = vadd.f32 %v1511_v45, %v1497_v43  ;;  %v1498_v46 = vmax.f32 %v1448_v29, 0.0 }
 0x307   : > { %v1513_v52 = vadd.f32 %v1512_v26, %v1498_v46  ;;  %v12969_v54 = vpop.f32.mrb[72].mxu0 }
 0x308   : > { %v1469_v23 = vadd.f32 %v12969_v54, %v15501_v41  ;;  %v1460_v57 = vpop.f32.mrb[73].mxu0 }
 0x309   : > { %v1514_v58 = vadd.f32 %v1513_v52, %v1499_v51  ;;  %v1461_v60 = vadd.f32 %v1460_v57, %v15495_v35  ;;  %v12970_v50 = vpop.f32.mrb[74].mxu0 }
 0x30a   : > { %v1472_v34 = vadd.f32 %v12970_v50, %v15504_v27  ;;  %v1463_v61 = vpop.f32.mrb[75].mxu0  ;;  %v1503_v5 = vmax.f32 %v1469_v23, 0.0 }
 0x30b   : > { %v1501_v62 = vmax.f32 %v1461_v60, 0.0  ;;  %v1515_v63 = vadd.f32 %v1514_v58, %v1500_v55  ;;  %v1464_v0 = vadd.f32 %v1463_v61, %v15498_v9 }
 0x30c   : > { %v1504_v59 = vmax.f32 %v1472_v34, 0.0 }
 0x30d   : > { %v1516_v32 = vadd.f32 %v1515_v63, %v1501_v62  ;;  %v1502_v1 = vmax.f32 %v1464_v0, 0.0 }
 0x30f   : > { %v1517_v6 = vadd.f32 %v1516_v32, %v1502_v1  ;;  %v12973_v41 = vpop.f32.mrb[76].mxu0 }
 0x310   : > { %v1485_v7 = vadd.f32 %v12973_v41, %v15513_v53  ;;  %v1476_v11 = vpop.f32.mrb[77].mxu0 }
 0x311   : > { %v1518_v10 = vadd.f32 %v1517_v6, %v1503_v5  ;;  %v1477_v35 = vadd.f32 %v1476_v11, %v15507_v47  ;;  %v12974_v13 = vpop.f32.mrb[78].mxu0 }
 0x312   : > { %v1488_v27 = vadd.f32 %v12974_v13, %v15516_v4  ;;  %v1479_v15 = vpop.f32.mrb[79].mxu0  ;;  %v1507_v21 = vmax.f32 %v1485_v7, 0.0 }
 0x313   : > { %v1505_v14 = vmax.f32 %v1477_v35, 0.0  ;;  %v1519_v18 = vadd.f32 %v1518_v10, %v1504_v59  ;;  %v1480_v9 = vadd.f32 %v1479_v15, %v15510_v48 }
 0x314   : > { %v1508_v16 = vmax.f32 %v1488_v27, 0.0 }
 0x315   : > { %v1520_v38 = vadd.f32 %v1519_v18, %v1505_v14  ;;  %v1506_v19 = vmax.f32 %v1480_v9, 0.0 }
 0x317   : > { %v1521_v24 = vadd.f32 %v1520_v38, %v1506_v19 }
 0x319   : > { %v1522_v25 = vadd.f32 %v1521_v24, %v1507_v21 }
 0x31b   : > { %v1523_v53 = vadd.f32 %v1522_v25, %v1508_v16 }
 0x31d   : > { %v1524_v3 = vrot.slane %v1523_v53, 4 }
 0x31f   : > { %v1525_v28 = vadd.f32 %v1524_v3, %v1523_v53 }
 0x321   : > { %v1526_v30 = vrot.slane %v1525_v28, 2 }
 0x323   : > { %v1527_v31 = vadd.f32 %v1526_v30, %v1525_v28 }
 0x325   : > { %v1528_v47 = vrot.slane %v1527_v31, 1 }
 0x327   : > { %v1529_v33 = vadd.f32 %v1528_v47, %v1527_v31  ;;  %v11617_v47 = vld [vmem:[#allocation8] ss:$0 sm:$0xff] }
 0x329   : > { %v1531_v37 = vmul.f32 0.0078125, %v1529_v33 }
 0x32b   : > { %v1532_v4 = vsub.f32 %v1493_v22, %v1531_v37  ;;  %v1533_v48 = vsub.f32 %v1494_v2, %v1531_v37  ;;  %v1534_v39 = vsub.f32 %v1495_v20, %v1531_v37  ;;  %v1535_v44 = vsub.f32 %v1496_v36, %v1531_v37 }
 0x32c   : > { %v1536_v40 = vsub.f32 %v1497_v43, %v1531_v37  ;;  %v1537_v42 = vsub.f32 %v1498_v46, %v1531_v37  ;;  %v1538_v45 = vsub.f32 %v1499_v51, %v1531_v37  ;;  %v1539_v29 = vsub.f32 %v1500_v55, %v1531_v37 }
 0x32d   : > { %v1540_v26 = vsub.f32 %v1501_v62, %v1531_v37  ;;  %v1541_v49 = vsub.f32 %v1502_v1, %v1531_v37  ;;  %v1542_v52 = vsub.f32 %v1503_v5, %v1531_v37  ;;  %v1543_v54 = vsub.f32 %v1504_v59, %v1531_v37 }
 0x32e   : > { %v1544_v23 = vsub.f32 %v1505_v14, %v1531_v37  ;;  %v1545_v57 = vsub.f32 %v1506_v19, %v1531_v37  ;;  %v1546_v58 = vsub.f32 %v1507_v21, %v1531_v37  ;;  %v1547_v12 = vsub.f32 %v1508_v16, %v1531_v37 }
 0x32f   : > { %v1548_v22 = vmul.f32 %v1532_v4, %v1532_v4  ;;  %v1549_v60 = vmul.f32 %v1533_v48, %v1533_v48  ;;  %v1550_v17 = vmul.f32 %v1534_v39, %v1534_v39  ;;  %v1551_v50 = vmul.f32 %v1535_v44, %v1535_v44 }
 0x330   : > { %v1552_v20 = vmul.f32 %v1536_v40, %v1536_v40  ;;  %v1553_v43 = vmul.f32 %v1537_v42, %v1537_v42  ;;  %v1554_v51 = vmul.f32 %v1538_v45, %v1538_v45  ;;  %v1555_v34 = vmul.f32 %v1539_v29, %v1539_v29 }
 0x331   : > { %v1564_v2 = vadd.f32 %v1549_v60, %v1548_v22  ;;  %v1556_v62 = vmul.f32 %v1540_v26, %v1540_v26  ;;  %v1557_v0 = vmul.f32 %v1541_v49, %v1541_v49  ;;  %v1558_v1 = vmul.f32 %v1542_v52, %v1542_v52 }
 0x332   : > { %v1559_v6 = vmul.f32 %v1543_v54, %v1543_v54  ;;  %v1560_v7 = vmul.f32 %v1544_v23, %v1544_v23  ;;  %v1561_v59 = vmul.f32 %v1545_v57, %v1545_v57  ;;  %v1562_v35 = vmul.f32 %v1546_v58, %v1546_v58 }
 0x333   : > { %v1565_v8 = vadd.f32 %v1564_v2, %v1550_v17  ;;  %v1563_v27 = vmul.f32 %v1547_v12, %v1547_v12 }
 0x335   : > { %v1566_v36 = vadd.f32 %v1565_v8, %v1551_v50 }
 0x337   : > { %v1567_v46 = vadd.f32 %v1566_v36, %v1552_v20 }
 0x339   : > { %v1568_v55 = vadd.f32 %v1567_v46, %v1553_v43 }
 0x33b   : > { %v1569_v61 = vadd.f32 %v1568_v55, %v1554_v51  ;;  %v11618_v51 = vld [vmem:[#allocation10] ss:$0 sm:$0xff] }
 0x33d   : > { %v1570_v63 = vadd.f32 %v1569_v61, %v1555_v34 }
 0x33f   : > { %v1571_v32 = vadd.f32 %v1570_v63, %v1556_v62 }
 0x341   : > { %v1572_v5 = vadd.f32 %v1571_v32, %v1557_v0 }
 0x343   : > { %v1573_v41 = vadd.f32 %v1572_v5, %v1558_v1 }
 0x345   : > { %v1574_v11 = vadd.f32 %v1573_v41, %v1559_v6 }
 0x347   : > { %v1575_v10 = vadd.f32 %v1574_v11, %v1560_v7 }
 0x349   : > { %v1576_v13 = vadd.f32 %v1575_v10, %v1561_v59 }
 0x34b   : > { %v1577_v15 = vadd.f32 %v1576_v13, %v1562_v35 }
 0x34d   : > { %v1578_v14 = vadd.f32 %v1577_v15, %v1563_v27 }
 0x34f   : > { %v1579_v18 = vrot.slane %v1578_v14, 4 }
 0x351   : > { %v1580_v9 = vadd.f32 %v1579_v18, %v1578_v14 }
 0x353   : > { %v1581_v38 = vrot.slane %v1580_v9, 2 }
 0x355   : > { %v1582_v19 = vadd.f32 %v1581_v38, %v1580_v9 }
 0x357   : > { %v1583_v21 = vrot.slane %v1582_v19, 1 }
 0x359   : > { %v1584_v24 = vadd.f32 %v1583_v21, %v1582_v19 }
 0x35b   : > { %v1585_v16 = vmul.f32 0.0078125, %v1584_v24 }
 0x35d   : > { %v1586_v25 = vadd.f32 1e-05, %v1585_v16 }
 0x35f   : > { %13578 = vrsqrt.f32 %v1586_v25 }
 0x369   : > { %v13579_v53 = vpop.eup %13578 }
 0x36a   : > { %v1588_v3 = vmul.f32 %v13579_v53, %v1532_v4  ;;  %v1589_v28 = vmul.f32 %v13579_v53, %v1533_v48  ;;  %v1590_v30 = vmul.f32 %v13579_v53, %v1534_v39  ;;  %v1591_v31 = vmul.f32 %v13579_v53, %v1535_v44 }
 0x36b   : > { %v1592_v33 = vmul.f32 %v13579_v53, %v1536_v40  ;;  %v1593_v37 = vmul.f32 %v13579_v53, %v1537_v42  ;;  %v1594_v22 = vmul.f32 %v13579_v53, %v1538_v45  ;;  %v1595_v60 = vmul.f32 %v13579_v53, %v1539_v29 }
 0x36c   : > { %v1596_v17 = vmul.f32 %v13579_v53, %v1540_v26  ;;  %v1597_v2 = vmul.f32 %v13579_v53, %v1541_v49  ;;  %v1598_v50 = vmul.f32 %v13579_v53, %v1542_v52  ;;  %v1599_v8 = vmul.f32 %v13579_v53, %v1543_v54 }
 0x36d   : > { %v1600_v20 = vmul.f32 %v13579_v53, %v1544_v23  ;;  %v1601_v36 = vmul.f32 %v13579_v53, %v1545_v57  ;;  %v1602_v43 = vmul.f32 %v13579_v53, %v1546_v58  ;;  %v1603_v46 = vmul.f32 %v13579_v53, %v1547_v12 }
 0x36e   : > { %v1610_v55 = vmul.f32 %v11617_v47, %v1588_v3  ;;  %v1612_v34 = vmul.f32 %v11617_v47, %v1590_v30  ;;  %v1613_v4 = vmul.f32 %v11617_v47, %v1591_v31  ;;  %v1614_v48 = vmul.f32 %v11617_v47, %v1592_v33 }
 0x36f   : > { %v1615_v39 = vmul.f32 %v11617_v47, %v1593_v37  ;;  %v1616_v44 = vmul.f32 %v11617_v47, %v1594_v22  ;;  %v1617_v61 = vmul.f32 %v11617_v47, %v1595_v60  ;;  %v1618_v40 = vmul.f32 %v11617_v47, %v1596_v17 }
 0x370   : > { %v1619_v42 = vmul.f32 %v11617_v47, %v1597_v2  ;;  %v1620_v45 = vmul.f32 %v11617_v47, %v1598_v50  ;;  %v1621_v29 = vmul.f32 %v11617_v47, %v1599_v8  ;;  %v1622_v26 = vmul.f32 %v11617_v47, %v1600_v20  ;;  %v13458_v50 = vld [vmem:[#allocation11 + $0x200] ss:$8 sps:$4 sm:$0xff]  }
 0x371   : > { %v1623_v49 = vmul.f32 %v11617_v47, %v1601_v36  ;;  %v1624_v52 = vmul.f32 %v11617_v47, %v1602_v43  ;;  %v1625_v54 = vmul.f32 %v11617_v47, %v1603_v46  ;;  %v15575_v23 = vadd.f32 %v11618_v51, %v1610_v55  ;;  %v13463_v43 = vld [vmem:[#allocation11 + $0x214] ss:$8 sps:$4 sm:$0xff]   ;;  %v13461_v55 = vld [vmem:[#allocation11 + $0x210] ss:$8 sps:$4 sm:$0xff]  }
 0x372   : > { %v15577_v57 = vadd.f32 %v11618_v51, %v1612_v34  ;;  %v15579_v58 = vadd.f32 %v11618_v51, %v1614_v48  ;;  %v15581_v12 = vadd.f32 %v11618_v51, %v1615_v39  ;;  %v15583_v62 = vadd.f32 %v11618_v51, %v1616_v44  ;;  %v13466_v34 = vld [vmem:[#allocation11 + $0x224] ss:$8 sps:$4 sm:$0xff]   ;;  %v13469_v48 = vld [vmem:[#allocation11 + $0x234] ss:$8 sps:$4 sm:$0xff]   ;;  %v13467_v39 = vld [vmem:[#allocation11 + $0x230] ss:$8 sps:$4 sm:$0xff]  }
 0x373   : > { %v15585_v63 = vadd.f32 %v11618_v51, %v1617_v61  ;;  %v15587_v0 = vadd.f32 %v11618_v51, %v1618_v40  ;;  %v1641_v32 = vadd.f32 %v11618_v51, %v1619_v42  ;;  %v15589_v1 = vadd.f32 %v11618_v51, %v1620_v45  ;;  %v13470_v44 = vld [vmem:[#allocation11 + $0x240] ss:$8 sps:$4 sm:$0xff]   ;;  %v13475_v61 = vld [vmem:[#allocation11 + $0x254] ss:$8 sps:$4 sm:$0xff]   ;;  %v13473_v40 = vld [vmem:[#allocation11 + $0x250] ss:$8 sps:$4 sm:$0xff]  }
 0x374   : > { %v15591_v5 = vadd.f32 %v11618_v51, %v1621_v29  ;;  %v15593_v6 = vadd.f32 %v11618_v51, %v1622_v26  ;;  %v15595_v41 = vadd.f32 %v11618_v51, %v1623_v49  ;;  %v15597_v7 = vadd.f32 %v11618_v51, %v1624_v52  ;;  %v13478_v42 = vld [vmem:[#allocation11 + $0x264] ss:$8 sps:$4 sm:$0xff]   ;;  %v13476_v45 = vld [vmem:[#allocation11 + $0x260] ss:$8 sps:$4 sm:$0xff]   ;;  %v13481_v29 = vld [vmem:[#allocation11 + $0x274] ss:$8 sps:$4 sm:$0xff]  }
 0x375   : > { %v1647_v11 = vadd.f32 %v11618_v51, %v1625_v54  ;;  %v1685_v59 = vrot.slane %v1641_v32, 6  ;;  %v1711_v10 = vrot.slane %v15581_v12, 6  ;;  %v1715_v35 = vrot.slane %v15585_v63, 6  ;;  %1737 = vst [vmem:[#allocation2 + $0x40] sm:$0xff] %v1641_v32  ;;  %v13479_v26 = vld [vmem:[#allocation11 + $0x270] ss:$8 sps:$4 sm:$0xff]  }
 0x376   : > { %v1689_v13 = vrot.slane %v15591_v5, 6  ;;  %v1693_v27 = vrot.slane %v15595_v41, 6  ;;  %1738 = vst [vmem:[#allocation2 + $0x88] sm:$0xff] %v15591_v5  ;;  %1739 = vst [vmem:[#allocation2 + $0xd0] sm:$0xff] %v15595_v41  ;;  %v1778_v15 = vpack.c.bf16 %v15587_v0, %v14834_v56  ;;  %v1611_v14 = vmul.f32 %v11617_v47, %v1589_v28  ;;  %v13484_v49 = vld [vmem:[#allocation11 + $0x284] ss:$8 sps:$4 sm:$0xff]  }
 0x377   : > { %1687 = vst [vmem:[#allocation2 + $0x48] sm:$0xfc] %v1685_v59  ;;  %1717 = vst [vmem:[#allocation2 + $0xf0] sm:$0xfc] %v1715_v35  ;;  %v1730_v18 = vrot.slane %v1647_v11, 6  ;;  %v1635_v9 = vadd.f32 %v11618_v51, %v1613_v4  ;;  %v1787_v38 = vpack.c.bf16 %v15593_v6, %v15589_v1  ;;  %v1788_v21 = vpack.c.bf16 %v15595_v41, %v15591_v5 }
 0x378   : > { %1726 = vst [vmem:[#allocation2 + $0x30] sm:$0xfc] %v1685_v59  ;;  %1740 = vst [vmem:[#allocation2 + $0x118] sm:$0xff] %v1647_v11  ;;  %2691 = vmatprep.mubr.bf16.mxu0 %v1778_v15  ;;  %v1633_v19 = vadd.f32 %v11618_v51, %v1611_v14  ;;  %v1781_v24 = vpack.c.bf16 %v15577_v57, %v15575_v23  ;;  %v1791_v16 = vpack.c.bf16 %v15585_v63, %v15581_v12  ;;  %v13464_v4 = vld [vmem:[#allocation11 + $0x220] ss:$8 sps:$4 sm:$0xff]  }
 0x379   : > { %1713 = vst [vmem:[#allocation2 + $0xa8] sm:$0xfc] %v1711_v10  ;;  %1691 = vst [vmem:[#allocation2 + $0x90] sm:$0xfc] %v1689_v13  ;;  %v1707_v25 = vrot.slane %v1635_v9, 6  ;;  %v1790_v53 = vpack.c.bf16 %v15583_v62, %v15579_v58  ;;  %v1784_v3 = vpack.c.bf16 %v15589_v1, %v15587_v0  ;;  %v1793_v28 = vpack.c.bf16 %v15597_v7, %v15593_v6 }
 0x37a   : > { %1695 = vst [vmem:[#allocation2 + $0xd8] sm:$0xfc] %v1693_v27  ;;  %1727 = vst [vmem:[#allocation2 + $0x78] sm:$0xfc] %v1689_v13  ;;  %v1703_v30 = vrot.slane %v1633_v19, 6  ;;  %v1782_v31 = vpack.c.bf16 %v1635_v9, %v1633_v19  ;;  %v1779_v36 = vpack.c.bf16 %v1641_v32, %v14834_v56 }
 0x37b   : > { %1728 = vst [vmem:[#allocation2 + $0xc0] sm:$0xfc] %v1693_v27  ;;  %1732 = vst [vmem:[#allocation2 + $0x108] sm:$0xfc] %v1730_v18  ;;  %v13482_v52 = vld [vmem:[#allocation11 + $0x280] ss:$8 sps:$4 sm:$0xff]  }
 0x37c   : > { %1709 = vst [vmem:[#allocation2 + $0x60] sm:$0xfc] %v1707_v25  ;;  %1705 = vst [vmem:[#allocation2 + $0x18] sm:$0xfc] %v1703_v30  ;;  %v13487_v54 = vld [vmem:[#allocation11 + $0x294] ss:$8 sps:$4 sm:$0xff]  }
 0x37d   : > { %v13485_v32 = vld [vmem:[#allocation11 + $0x290] ss:$8 sps:$4 sm:$0xff]   ;;  %v13490_v5 = vld [vmem:[#allocation11 + $0x2a4] ss:$8 sps:$4 sm:$0xff]   ;;  %v13488_v41 = vld [vmem:[#allocation11 + $0x2a0] ss:$8 sps:$4 sm:$0xff]  }
 0x37e   : > { %v1750_v47 = vld [vmem:[#allocation2 + $0x48] sm:$0xff]  ;;  %v1771_v17 = vld [vmem:[#allocation2 + $0xf0] sm:$0xff]  ;;  %v13496_v10 = vld [vmem:[#allocation11 + $0x2c4] ss:$8 sps:$4 sm:$0xff]  }
 0x37f   : > { %v1777_v33 = vpack.c.bf16 %v1750_v47, %v14834_v56  ;;  %v13472_v56 = vld [vmem:[#allocation11 + $0x244] ss:$8 sps:$4 sm:$0xff]   ;;  %v13493_v11 = vld [vmem:[#allocation11 + $0x2b4] ss:$8 sps:$4 sm:$0xff]   ;;  %v13491_v59 = vld [vmem:[#allocation11 + $0x2b0] ss:$8 sps:$4 sm:$0xff]  }
 0x380   : > { %v1762_v60 = vld [vmem:[#allocation2 + $0xa8] sm:$0xff]  ;;  %v1759_v8 = vld [vmem:[#allocation2 + $0x90] sm:$0xff]  ;;  %v13502_v15 = vld [vmem:[#allocation11 + $0x2e4] ss:$8 sps:$4 sm:$0xff]  }
 0x381   : > { %2692 = vmatmul.mubr.bf16.vlgmr.msra.gmra.mrb[80].mxu0 %v1777_v33  ;;  %v1768_v20 = vld [vmem:[#allocation2 + $0xd8] sm:$0xff]  ;;  %v1789_v46 = vpack.c.bf16 %v1771_v17, %v1762_v60  ;;  %v13499_v13 = vld [vmem:[#allocation11 + $0x2d4] ss:$8 sps:$4 sm:$0xff]   ;;  %v13497_v27 = vld [vmem:[#allocation11 + $0x2d0] ss:$8 sps:$4 sm:$0xff]  }
 0x382   : > { %2701 = vmatprep.mubr.bf16.mxu0 %v1787_v38  ;;  %v1786_v51 = vpack.c.bf16 %v1768_v20, %v1759_v8  ;;  %v13494_v35 = vld [vmem:[#allocation11 + $0x2c0] ss:$8 sps:$4 sm:$0xff]   ;;  %v13505_v18 = vld [vmem:[#allocation11 + $0x2f4] ss:$8 sps:$4 sm:$0xff]   ;;  %v13503_v9 = vld [vmem:[#allocation11 + $0x2f0] ss:$8 sps:$4 sm:$0xff]  }
 0x383   : > { %v1753_v37 = vld [vmem:[#allocation2 + $0x60] sm:$0xff]  ;;  %v1744_v22 = vld [vmem:[#allocation2 + $0x18] sm:$0xff]  ;;  %v13517_v47 = vld [vmem:[#allocation11 + $0x334] ss:$8 sps:$4 sm:$0xff]  }
 0x384   : > { %v1780_v2 = vpack.c.bf16 %v1753_v37, %v1744_v22  ;;  %v13500_v14 = vld [vmem:[#allocation11 + $0x2e0] ss:$8 sps:$4 sm:$0xff]   ;;  %v13508_v38 = vld [vmem:[#allocation11 + $0x304] ss:$8 sps:$4 sm:$0xff]   ;;  %v13509_v25 = vld [vmem:[#allocation11 + $0x310] ss:$8 sps:$4 sm:$0xff]  }
 0x385   : > { %v13506_v19 = vld [vmem:[#allocation11 + $0x300] ss:$8 sps:$4 sm:$0xff]   ;;  %v13514_v30 = vld [vmem:[#allocation11 + $0x324] ss:$8 sps:$4 sm:$0xff]   ;;  %v13515_v23 = vld [vmem:[#allocation11 + $0x330] ss:$8 sps:$4 sm:$0xff]  }
 0x386   : > { %2744 = vmatprep.mubr.bf16.mxu1 %v1780_v2  ;;  %v13520_v57 = vld [vmem:[#allocation11 + $0x344] ss:$8 sps:$4 sm:$0xff]   ;;  %v13518_v12 = vld [vmem:[#allocation11 + $0x340] ss:$8 sps:$4 sm:$0xff]   ;;  %v13523_v63 = vld [vmem:[#allocation11 + $0x354] ss:$8 sps:$4 sm:$0xff]  }
 0x387   : > { %2745 = vmatmul.mubr.bf16.vlgmr.msra.gmra.mrb[0].mxu1 %v1779_v36  ;;  %v13524_v33 = vld [vmem:[#allocation11 + $0x360] ss:$8 sps:$4 sm:$0xff]   ;;  %v13529_v58 = vld [vmem:[#allocation11 + $0x374] ss:$8 sps:$4 sm:$0xff]   ;;  %v13527_v62 = vld [vmem:[#allocation11 + $0x370] ss:$8 sps:$4 sm:$0xff]  }
 0x388   : > { %2766 = vmatpush1.bf16.msra.mxu1 %v13458_v50  ;;  %2754 = vmatprep.mubr.bf16.mxu1 %v1789_v46  ;;  %v13532_v0 = vld [vmem:[#allocation11 + $0x384] ss:$8 sps:$4 sm:$0xff]   ;;  %v13530_v1 = vld [vmem:[#allocation11 + $0x380] ss:$8 sps:$4 sm:$0xff]   ;;  %v13541_v60 = vld [vmem:[#allocation11 + $0x3b4] ss:$8 sps:$4 sm:$0xff]  }
 0x389   : > { %2767 = vmatprep.subr.bf16.mxu1 %v13463_v43  ;;  %2702 = vmatmul.mubr.bf16.gmra.mrb[84].mxu0 %v1786_v51  ;;  %v13538_v37 = vld [vmem:[#allocation11 + $0x3a4] ss:$8 sps:$4 sm:$0xff]   ;;  %v13536_v22 = vld [vmem:[#allocation11 + $0x3a0] ss:$8 sps:$4 sm:$0xff]   ;;  %v13539_v17 = vld [vmem:[#allocation11 + $0x3b0] ss:$8 sps:$4 sm:$0xff]  }
 0x38a   : > { %v13544_v2 = vld [vmem:[#allocation11 + $0x3c4] ss:$8 sps:$4 sm:$0xff]   ;;  %v13542_v50 = vld [vmem:[#allocation11 + $0x3c0] ss:$8 sps:$4 sm:$0xff]   ;;  %v13547_v8 = vld [vmem:[#allocation11 + $0x3d4] ss:$8 sps:$4 sm:$0xff]  }
 0x38b   : > { %v13545_v20 = vld [vmem:[#allocation11 + $0x3d0] ss:$8 sps:$4 sm:$0xff]   ;;  %v13550_v36 = vld [vmem:[#allocation11 + $0x3e4] ss:$8 sps:$4 sm:$0xff]   ;;  %v13548_v43 = vld [vmem:[#allocation11 + $0x3e0] ss:$8 sps:$4 sm:$0xff]  }
 0x38c   : > { %2768 = vmatpush1.bf16.msra.mxu1 %v13461_v55  ;;  %v13553_v46 = vld [vmem:[#allocation11 + $0x3f4] ss:$8 sps:$4 sm:$0xff]   ;;  %v13551_v51 = vld [vmem:[#allocation11 + $0x3f0] ss:$8 sps:$4 sm:$0xff]   ;;  %v13556_v55 = vld [vmem:[#allocation11 + $0x404] ss:$8 sps:$4 sm:$0xff]  }
 0x38d   : > { %2769 = vmatprep.subr.bf16.mxu1 %v13466_v34  ;;  %v1747_v34 = vld [vmem:[#allocation2 + $0x30] sm:$0xff] }
 0x38e   : > { %v13566_v6 = vld [vmem:[#allocation11 + $0x440] ss:$8 sps:$4 sm:$0xff]   ;;  %v13571_v7 = vld [vmem:[#allocation11 + $0x454] ss:$8 sps:$4 sm:$0xff]  }
 0x38f   : > { %2755 = vmatmul.mubr.bf16.gmra.mrb[4].mxu1 %v1788_v21  ;;  %v13511_v21 = vld [vmem:[#allocation11 + $0x314] ss:$8 sps:$4 sm:$0xff]  }
 0x390   : > { %2770 = vmatpush1.bf16.msra.mxu1 %v13464_v4  ;;  %2797 = vmatprep.mubr.bf16.mxu1 %v1782_v31  ;;  %v13512_v31 = vld [vmem:[#allocation11 + $0x320] ss:$8 sps:$4 sm:$0xff]  }
 0x391   : > { %2771 = vmatprep.subr.bf16.mxu1 %v13469_v48  ;;  %v1756_v4 = vld [vmem:[#allocation2 + $0x78] sm:$0xff] }
 0x392   : > { %v13554_v48 = vld [vmem:[#allocation11 + $0x400] ss:$8 sps:$4 sm:$0xff]  }
 0x394   : > { %2772 = vmatpush1.bf16.msra.mxu1 %v13467_v39  ;;  %v1783_v39 = vpack.c.bf16 %v1756_v4, %v1747_v34 }
 0x395   : > { %2773 = vmatprep.subr.bf16.mxu1 %v13472_v56  ;;  %v13559_v56 = vld [vmem:[#allocation11 + $0x414] ss:$8 sps:$4 sm:$0xff]  }
 0x398   : > { %2774 = vmatpush1.bf16.msra.mxu1 %v13470_v44  ;;  %v13557_v44 = vld [vmem:[#allocation11 + $0x410] ss:$8 sps:$4 sm:$0xff]  }
 0x399   : > { %2775 = vmatprep.subr.bf16.mxu1 %v13475_v61  ;;  %v13562_v61 = vld [vmem:[#allocation11 + $0x424] ss:$8 sps:$4 sm:$0xff]  }
 0x39c   : > { %2776 = vmatpush1.bf16.msra.mxu1 %v13473_v40  ;;  %v1765_v40 = vld [vmem:[#allocation2 + $0xc0] sm:$0xff] }
 0x39d   : > { %2777 = vmatprep.subr.bf16.mxu1 %v13478_v42  ;;  %v1774_v42 = vld [vmem:[#allocation2 + $0x108] sm:$0xff] }
 0x3a0   : > { %2778 = vmatpush1.bf16.msra.mxu1 %v13476_v45  ;;  %v13560_v45 = vld [vmem:[#allocation11 + $0x420] ss:$8 sps:$4 sm:$0xff]  }
 0x3a1   : > { %2779 = vmatprep.subr.bf16.mxu1 %v13481_v29  ;;  %v1792_v29 = vpack.c.bf16 %v1774_v42, %v1765_v40 }
 0x3a4   : > { %2780 = vmatpush1.bf16.msra.mxu1 %v13479_v26  ;;  %v13565_v26 = vld [vmem:[#allocation11 + $0x434] ss:$8 sps:$4 sm:$0xff]  }
 0x3a5   : > { %2781 = vmatprep.subr.bf16.mxu1 %v13484_v49  ;;  %v13563_v49 = vld [vmem:[#allocation11 + $0x430] ss:$8 sps:$4 sm:$0xff]  }
 0x3a8   : > { %2782 = vmatpush1.bf16.msra.mxu1 %v13482_v52  ;;  %v14835_v52 = vmov 0  }
 0x3a9   : > { %2783 = vmatprep.subr.bf16.mxu1 %v13487_v54  ;;  %v13568_v54 = vld [vmem:[#allocation11 + $0x444] ss:$8 sps:$4 sm:$0xff]  }
 0x3ac   : > { %2784 = vmatpush1.bf16.msra.mxu1 %v13485_v32  ;;  %v13574_v32 = vld [vmem:[#allocation11 + $0x464] ss:$8 sps:$4 sm:$0xff]  }
 0x3ad   : > { %2785 = vmatprep.subr.bf16.mxu1 %v13490_v5  ;;  %v13572_v5 = vld [vmem:[#allocation11 + $0x460] ss:$8 sps:$4 sm:$0xff]  }
 0x3b0   : > { %2786 = vmatpush1.bf16.msra.mxu1 %v13488_v41  ;;  %v13577_v41 = vld [vmem:[#allocation11 + $0x474] ss:$8 sps:$4 sm:$0xff]  }
 0x3b1   : > { %2787 = vmatprep.subr.bf16.mxu1 %v13493_v11  ;;  %v13575_v11 = vld [vmem:[#allocation11 + $0x470] ss:$8 sps:$4 sm:$0xff]  }
 0x3b4   : > { %2788 = vmatpush1.bf16.msra.mxu1 %v13491_v59  ;;  %v1749_v59 = vld [vmem:[#allocation2 + $0x40] sm:$0xff] }
 0x3b5   : > { %2789 = vmatprep.subr.bf16.mxu1 %v13496_v10  ;;  %v1758_v10 = vld [vmem:[#allocation2 + $0x88] sm:$0xff] }
 0x3b8   : > { %2790 = vmatpush1.bf16.msra.mxu1 %v13494_v35  ;;  %v1785_v35 = vpack.c.bf16 %v1758_v10, %v1749_v59 }
 0x3b9   : > { %2791 = vmatprep.subr.bf16.mxu1 %v13499_v13  ;;  %v1767_v13 = vld [vmem:[#allocation2 + $0xd0] sm:$0xff] }
 0x3bc   : > { %2792 = vmatpush1.bf16.msra.mxu1 %v13497_v27  ;;  %v1776_v27 = vld [vmem:[#allocation2 + $0x118] sm:$0xff] }
 0x3bd   : > { %2793 = vmatprep.subr.bf16.mxu1 %v13502_v15  ;;  %v1794_v15 = vpack.c.bf16 %v1776_v27, %v1767_v13 }
 0x3c0   : > { %2794 = vmatpush1.bf16.msra.mxu1 %v13500_v14 }
 0x3c1   : > { %2795 = vmatprep.subr.bf16.mxu1 %v13505_v18 }
 0x3c4   : > { %2796 = vmatpush1.bf16.msra.mxu1 %v13503_v9 }
 0x3c5   : > { %2818 = vmatprep.subr.bf16.mxu1 %v13508_v38 }
 0x3c7   : > { %2798 = vmatmul.mubr.bf16.vlgmr.msra.gmra.mrb[0].mxu1 %v1781_v24  ;;  %v13521_v24 = vld [vmem:[#allocation11 + $0x350] ss:$8 sps:$4 sm:$0xff]  }
 0x3c8   : > { %2807 = vmatprep.mubr.bf16.mxu1 %v1791_v16  ;;  %2819 = vmatpush1.bf16.msra.mxu1 %v13506_v19  ;;  %v13526_v16 = vld [vmem:[#allocation11 + $0x364] ss:$8 sps:$4 sm:$0xff]  }
 0x3c9   : > { %2820 = vmatprep.subr.bf16.mxu1 %v13511_v21 }
 0x3cc   : > { %2821 = vmatpush1.bf16.msra.mxu1 %v13509_v25 }
 0x3cd   : > { %2822 = vmatprep.subr.bf16.mxu1 %v13514_v30 }
 0x3cf   : > { %2808 = vmatmul.mubr.bf16.gmra.mrb[4].mxu1 %v1790_v53  ;;  %v13535_v53 = vld [vmem:[#allocation11 + $0x394] ss:$8 sps:$4 sm:$0xff]  }
 0x3d0   : > { %2823 = vmatpush1.bf16.msra.mxu1 %v13512_v31  ;;  %2850 = vmatprep.mubr.bf16.mxu1 %v1784_v3  ;;  %v13533_v3 = vld [vmem:[#allocation11 + $0x390] ss:$8 sps:$4 sm:$0xff]  }
 0x3d1   : > { %2824 = vmatprep.subr.bf16.mxu1 %v13517_v47 }
 0x3d4   : > { %2825 = vmatpush1.bf16.msra.mxu1 %v13515_v23 }
 0x3d5   : > { %2826 = vmatprep.subr.bf16.mxu1 %v13520_v57 }
 0x3d8   : > { %2827 = vmatpush1.bf16.msra.mxu1 %v13518_v12 }
 0x3d9   : > { %2828 = vmatprep.subr.bf16.mxu1 %v13523_v63 }
 0x3dc   : > { %2829 = vmatpush1.bf16.msra.mxu1 %v13521_v24 }
 0x3dd   : > { %2830 = vmatprep.subr.bf16.mxu1 %v13526_v16 }
 0x3e0   : > { %2831 = vmatpush1.bf16.msra.mxu1 %v13524_v33 }
 0x3e1   : > { %2832 = vmatprep.subr.bf16.mxu1 %v13529_v58 }
 0x3e4   : > { %2833 = vmatpush1.bf16.msra.mxu1 %v13527_v62 }
 0x3e5   : > { %2834 = vmatprep.subr.bf16.mxu1 %v13532_v0 }
 0x3e8   : > { %2835 = vmatpush1.bf16.msra.mxu1 %v13530_v1 }
 0x3e9   : > { %2836 = vmatprep.subr.bf16.mxu1 %v13535_v53 }
 0x3ec   : > { %2837 = vmatpush1.bf16.msra.mxu1 %v13533_v3 }
 0x3ed   : > { %2838 = vmatprep.subr.bf16.mxu1 %v13538_v37 }
 0x3f0   : > { %2839 = vmatpush1.bf16.msra.mxu1 %v13536_v22 }
 0x3f1   : > { %2840 = vmatprep.subr.bf16.mxu1 %v13541_v60 }
 0x3f4   : > { %2841 = vmatpush1.bf16.msra.mxu1 %v13539_v17 }
 0x3f5   : > { %2842 = vmatprep.subr.bf16.mxu1 %v13544_v2 }
 0x3f8   : > { %2843 = vmatpush1.bf16.msra.mxu1 %v13542_v50 }
 0x3f9   : > { %2844 = vmatprep.subr.bf16.mxu1 %v13547_v8 }
 0x3fc   : > { %2845 = vmatpush1.bf16.msra.mxu1 %v13545_v20 }
 0x3fd   : > { %2846 = vmatprep.subr.bf16.mxu1 %v13550_v36 }
 0x400   : > { %2847 = vmatpush1.bf16.msra.mxu1 %v13548_v43 }
 0x401   : > { %2848 = vmatprep.subr.bf16.mxu1 %v13553_v46 }
 0x404   : > { %2849 = vmatpush1.bf16.msra.mxu1 %v13551_v51 }
 0x405   : > { %2871 = vmatprep.subr.bf16.mxu1 %v13556_v55 }
 0x407   : > { %2851 = vmatmul.mubr.bf16.vlgmr.msra.gmra.mrb[0].mxu1 %v1783_v39 }
 0x408   : > { %2860 = vmatprep.mubr.bf16.mxu1 %v1793_v28  ;;  %2872 = vmatpush1.bf16.msra.mxu1 %v13554_v48  ;;  %v13569_v28 = vld [vmem:[#allocation11 + $0x450] ss:$8 sps:$4 sm:$0xff]  }
 0x409   : > { %2873 = vmatprep.subr.bf16.mxu1 %v13559_v56 }
 0x40c   : > { %2874 = vmatpush1.bf16.msra.mxu1 %v13557_v44 }
 0x40d   : > { %2875 = vmatprep.subr.bf16.mxu1 %v13562_v61 }
 0x40f   : > { %2861 = vmatmul.mubr.bf16.gmra.mrb[4].mxu1 %v1792_v29 }
 0x410   : > { %2876 = vmatpush1.bf16.msra.mxu1 %v13560_v45  ;;  %2903 = vmatprep.mubr.bf16.mxu1 %v14835_v52 }
 0x411   : > { %2877 = vmatprep.subr.bf16.mxu1 %v13565_v26 }
 0x414   : > { %2878 = vmatpush1.bf16.msra.mxu1 %v13563_v49 }
 0x415   : > { %2879 = vmatprep.subr.bf16.mxu1 %v13568_v54 }
 0x418   : > { %2880 = vmatpush1.bf16.msra.mxu1 %v13566_v6 }
 0x419   : > { %2881 = vmatprep.subr.bf16.mxu1 %v13571_v7 }
 0x41c   : > { %2882 = vmatpush1.bf16.msra.mxu1 %v13569_v28 }
 0x41d   : > { %2883 = vmatprep.subr.bf16.mxu1 %v13574_v32 }
 0x420   : > { %2884 = vmatpush1.bf16.msra.mxu1 %v13572_v5 }
 0x421   : > { %2885 = vmatprep.subr.bf16.mxu1 %v13577_v41 }
 0x424   : > { %2886 = vmatpush1.bf16.msra.mxu1 %v13575_v11 }
 0x427   : > { %2904 = vmatmul.mubr.bf16.vlgmr.msra.gmra.mrb[0].mxu1 %v1785_v35 }
 0x428   : > { %2913 = vmatprep.mubr.bf16.mxu1 %v14835_v52 }
 0x42f   : > { %2914 = vmatmul.mubr.bf16.gmra.mrb[4].mxu1 %v1794_v15 }
 0x454   : > { %v2693_v14 = vpop.f32.mrb[80].mxu0 }
 0x455   : > { %v2695_v18 = vpop.f32.mrb[81].mxu0 }
 0x456   : > { %v2697_v9 = vpop.f32.mrb[82].mxu0 }
 0x457   : > { %v2699_v38 = vpop.f32.mrb[83].mxu0 }
 0x45c   : > { %v2703_v19 = vpop.f32.mrb[84].mxu0 }
 0x45d   : > { %v2705_v21 = vpop.f32.mrb[85].mxu0 }
 0x45e   : > { %v2707_v25 = vpop.f32.mrb[86].mxu0 }
 0x45f   : > { %v2709_v30 = vpop.f32.mrb[87].mxu0 }
 0x4fa   : > { %v2905_v31 = vpop.f32.mrb[0].mxu1 }
 0x4fb   : > { %v12975_v47 = vadd.f32 %v2905_v31, %v2693_v14  ;;  %v2907_v23 = vpop.f32.mrb[1].mxu1 }
 0x4fc   : > { %v12976_v57 = vadd.f32 %v2907_v23, %v2695_v18  ;;  %v2909_v12 = vpop.f32.mrb[2].mxu1 }
 0x4fd   : > { %v12977_v63 = vadd.f32 %v2909_v12, %v2697_v9  ;;  %v2911_v24 = vpop.f32.mrb[3].mxu1  ;;  %v2926_v33 = vmax.f32 %v12975_v47, 0.0 }
 0x4fe   : > { %v12978_v16 = vadd.f32 %v2911_v24, %v2699_v38  ;;  %v2927_v62 = vmax.f32 %v12976_v57, 0.0 }
 0x4ff   : > { %v2928_v58 = vmax.f32 %v12977_v63, 0.0 }
 0x500   : > { %v2929_v0 = vmax.f32 %v12978_v16, 0.0 }
 0x501   : > { %v2934_v1 = vadd.f32 %v2928_v58, %v2926_v33 }
 0x502   : > { %v2943_v53 = vadd.f32 %v2929_v0, %v2927_v62  ;;  %v2915_v3 = vpop.f32.mrb[4].mxu1 }
 0x503   : > { %v12979_v37 = vadd.f32 %v2915_v3, %v2703_v19  ;;  %v2917_v22 = vpop.f32.mrb[5].mxu1 }
 0x504   : > { %v12980_v60 = vadd.f32 %v2917_v22, %v2705_v21  ;;  %v2919_v17 = vpop.f32.mrb[6].mxu1 }
 0x505   : > { %v2930_v2 = vmax.f32 %v12979_v37, 0.0  ;;  %v12981_v50 = vadd.f32 %v2919_v17, %v2707_v25  ;;  %v2921_v8 = vpop.f32.mrb[7].mxu1  ;;  %v3004_v37 = vlaneseq }
 0x506   : > { %v2931_v20 = vmax.f32 %v12980_v60, 0.0  ;;  %v12982_v36 = vadd.f32 %v2921_v8, %v2709_v30 }
 0x507   : > { %v2935_v43 = vadd.f32 %v2934_v1, %v2930_v2  ;;  %v2932_v46 = vmax.f32 %v12981_v50, 0.0  ;;  %v14836_v50 = vmov 1983009808  }
 0x508   : > { %v2944_v51 = vadd.f32 %v2943_v53, %v2931_v20  ;;  %v2933_v55 = vmax.f32 %v12982_v36, 0.0  ;;  %v3045_v8 = vunpack.c.l.s4 %v14836_v50  ;;  %v2924_v36 = vld [vmem:[#allocation13] sm:$0x3] }
 0x509   : > { %v2936_v34 = vadd.f32 %v2935_v43, %v2932_v46 }
 0x50a   : > { %v2945_v4 = vadd.f32 %v2944_v51, %v2933_v55  ;;  %v3046_v43 = vunpack.c.0.s8 %v3045_v8  ;;  %v2925_v51 = vld [vmem:[#allocation14] sm:$0x3] }
 0x50b   : > { %v2937_v48 = vrot.slane %v2936_v34, 4 }
 0x50c   : > { %v2946_v39 = vrot.slane %v2945_v4, 4 }
 0x50d   : > { %v2938_v56 = vadd.f32 %v2937_v48, %v2936_v34 }
 0x50e   : > { %v2947_v44 = vadd.f32 %v2946_v39, %v2945_v4 }
 0x50f   : > { %v2939_v61 = vrot.slane %v2938_v56, 2 }
 0x510   : > { %v2948_v40 = vrot.slane %v2947_v44, 2 }
 0x511   : > { %v2940_v42 = vadd.f32 %v2939_v61, %v2938_v56 }
 0x512   : > { %v2949_v45 = vadd.f32 %v2948_v40, %v2947_v44 }
 0x513   : > { %v2941_v29 = vrot.slane %v2940_v42, 1 }
 0x514   : > { %v2950_v26 = vrot.slane %v2949_v45, 1 }
 0x515   : > { %v2942_v49 = vadd.f32 %v2941_v29, %v2940_v42 }
 0x516   : > { %v2951_v52 = vadd.f32 %v2950_v26, %v2949_v45 }
 0x517   : > { %v2953_v54 = vmul.f32 0.03125, %v2942_v49 }
 0x518   : > { %v2954_v6 = vmul.f32 0.03125, %v2951_v52 }
 0x519   : > { %v2955_v7 = vsub.f32 %v2926_v33, %v2953_v54  ;;  %v2957_v28 = vsub.f32 %v2928_v58, %v2953_v54  ;;  %v2959_v32 = vsub.f32 %v2930_v2, %v2953_v54  ;;  %v2961_v5 = vsub.f32 %v2932_v46, %v2953_v54 }
 0x51a   : > { %v2956_v41 = vsub.f32 %v2927_v62, %v2954_v6  ;;  %v2958_v11 = vsub.f32 %v2929_v0, %v2954_v6  ;;  %v2960_v59 = vsub.f32 %v2931_v20, %v2954_v6  ;;  %v2962_v10 = vsub.f32 %v2933_v55, %v2954_v6 }
 0x51b   : > { %v2963_v35 = vmul.f32 %v2955_v7, %v2955_v7  ;;  %v2965_v13 = vmul.f32 %v2957_v28, %v2957_v28  ;;  %v2967_v14 = vmul.f32 %v2959_v32, %v2959_v32  ;;  %v2969_v19 = vmul.f32 %v2961_v5, %v2961_v5 }
 0x51c   : > { %v2964_v27 = vmul.f32 %v2956_v41, %v2956_v41  ;;  %v2966_v15 = vmul.f32 %v2958_v11, %v2958_v11  ;;  %v2968_v9 = vmul.f32 %v2960_v59, %v2960_v59  ;;  %v2970_v25 = vmul.f32 %v2962_v10, %v2962_v10 }
 0x51d   : > { %v2971_v18 = vadd.f32 %v2965_v13, %v2963_v35  ;;  %v3005_v2 = vshrl.u32 %v3004_v37, 7 }
 0x51e   : > { %v2980_v38 = vadd.f32 %v2966_v15, %v2964_v27 }
 0x51f   : > { %v2972_v21 = vadd.f32 %v2971_v18, %v2967_v14  ;;  %v3006_v20 = vsub.s32 0, %v3005_v2  ;;  %v3010_v46 = vsub.s32 1, %v3005_v2  ;;  %v3049_v48 = vsub.s32 %v3046_v43, %v3005_v2 }
 0x520   : > { %v2981_v30 = vadd.f32 %v2980_v38, %v2968_v9 }
 0x521   : > { %v2973_v31 = vadd.f32 %v2972_v21, %v2969_v19  ;;  %v3007_v55 = vrot.slane %v2924_v36, %v3006_v20  ;;  %v3026_v4 = vrot.slane %v2925_v51, %v3006_v20  ;;  %v3011_v39 = vrot.slane %v2924_v36, %v3010_v46 }
 0x522   : > { %v2982_v47 = vadd.f32 %v2981_v30, %v2970_v25  ;;  %v3030_v56 = vrot.slane %v2925_v51, %v3010_v46 }
 0x523   : > { %v2974_v23 = vrot.slane %v2973_v31, 4 }
 0x524   : > { %v2983_v57 = vrot.slane %v2982_v47, 4 }
 0x525   : > { %v2975_v12 = vadd.f32 %v2974_v23, %v2973_v31 }
 0x526   : > { %v2984_v63 = vadd.f32 %v2983_v57, %v2982_v47 }
 0x527   : > { %v2976_v24 = vrot.slane %v2975_v12, 2 }
 0x528   : > { %v2985_v16 = vrot.slane %v2984_v63, 2 }
 0x529   : > { %v2977_v33 = vadd.f32 %v2976_v24, %v2975_v12 }
 0x52a   : > { %v2986_v58 = vadd.f32 %v2985_v16, %v2984_v63 }
 0x52b   : > { %v2978_v62 = vrot.slane %v2977_v33, 1 }
 0x52c   : > { %v2987_v0 = vrot.slane %v2986_v58, 1 }
 0x52d   : > { %v2979_v1 = vadd.f32 %v2978_v62, %v2977_v33 }
 0x52e   : > { %v2988_v53 = vadd.f32 %v2987_v0, %v2986_v58 }
 0x52f   : > { %v2989_v3 = vmul.f32 0.03125, %v2979_v1 }
 0x530   : > { %v2990_v22 = vmul.f32 0.03125, %v2988_v53 }
 0x531   : > { %v2991_v60 = vadd.f32 1e-05, %v2989_v3 }
 0x532   : > { %v2992_v17 = vadd.f32 1e-05, %v2990_v22 }
 0x533   : > { %13580 = vrsqrt.f32 %v2991_v60 }
 0x534   : > { %13582 = vrsqrt.f32 %v2992_v17 }
 0x53d   : > { %v13581_v34 = vpop.eup %13580 }
 0x53e   : > { %v13583_v44 = vpop.eup %13582  ;;  %v2995_v61 = vmul.f32 %v13581_v34, %v2955_v7  ;;  %v2997_v40 = vmul.f32 %v13581_v34, %v2957_v28  ;;  %v2999_v42 = vmul.f32 %v13581_v34, %v2959_v32  ;;  %v3001_v45 = vmul.f32 %v13581_v34, %v2961_v5 }
 0x53f   : > { %v2996_v29 = vmul.f32 %v13583_v44, %v2956_v41  ;;  %v2998_v26 = vmul.f32 %v13583_v44, %v2958_v11  ;;  %v3000_v49 = vmul.f32 %v13583_v44, %v2960_v59  ;;  %v3002_v52 = vmul.f32 %v13583_v44, %v2962_v10 }
 0x540   : > { %v3014_v54 = vmul.f32 %v3007_v55, %v2995_v61  ;;  %v3016_v6 = vmul.f32 %v3007_v55, %v2997_v40  ;;  %v3018_v35 = vmul.f32 %v3007_v55, %v2999_v42  ;;  %v3020_v13 = vmul.f32 %v3007_v55, %v3001_v45 }
 0x541   : > { %v3015_v27 = vmul.f32 %v3011_v39, %v2996_v29  ;;  %v3017_v15 = vmul.f32 %v3011_v39, %v2998_v26  ;;  %v3019_v14 = vmul.f32 %v3011_v39, %v3000_v49  ;;  %v3021_v18 = vmul.f32 %v3011_v39, %v3002_v52 }
 0x542   : > { %v3033_v9 = vadd.f32 %v3026_v4, %v3014_v54  ;;  %v3035_v38 = vadd.f32 %v3026_v4, %v3016_v6  ;;  %v3037_v19 = vadd.f32 %v3026_v4, %v3018_v35  ;;  %v3039_v21 = vadd.f32 %v3026_v4, %v3020_v13 }
 0x543   : > { %v3034_v7 = vadd.f32 %v3030_v56, %v3015_v27  ;;  %v3036_v28 = vadd.f32 %v3030_v56, %v3017_v15  ;;  %v3038_v32 = vadd.f32 %v3030_v56, %v3019_v14  ;;  %v3040_v5 = vadd.f32 %v3030_v56, %v3021_v18 }
 0x545   : > { %v3043_v41 = vcombine.low %v3033_v9, %v3034_v7  ;;  %v3056_v11 = vcombine.high %v3033_v9, %v3034_v7  ;;  %v3071_v59 = vcombine.low %v3035_v38, %v3036_v28  ;;  %v3084_v10 = vcombine.high %v3035_v38, %v3036_v28 }
 0x546   : > { %v3099_v25 = vcombine.low %v3037_v19, %v3038_v32  ;;  %v3112_v30 = vcombine.high %v3037_v19, %v3038_v32  ;;  %v3127_v31 = vcombine.low %v3039_v21, %v3040_v5  ;;  %v3140_v47 = vcombine.high %v3039_v21, %v3040_v5 }
 0x547   : > { %v3050_v23 = vrot.slane %v3043_v41, %v3049_v48  ;;  %11763 = vst.sshfl [vmem:[#allocation3] sm:$0x33 pattern:$0x76325410] %v3043_v41  ;;  %v3063_v57 = vrot.slane %v3056_v11, %v3049_v48  ;;  %v3078_v12 = vrot.slane %v3071_v59, %v3049_v48  ;;  %v3091_v63 = vrot.slane %v3084_v10, %v3049_v48 }
 0x548   : > { %11764 = vst.sshfl [vmem:[#allocation3 + $0x8] sm:$0x33 pattern:$0x76325410] %v3056_v11  ;;  %v3106_v24 = vrot.slane %v3099_v25, %v3049_v48  ;;  %v3119_v16 = vrot.slane %v3112_v30, %v3049_v48  ;;  %v3134_v33 = vrot.slane %v3127_v31, %v3049_v48  ;;  %v3147_v58 = vrot.slane %v3140_v47, %v3049_v48 }
 0x549   : > { %11765 = vst.sshfl [vmem:[#allocation3 + $0x10] sm:$0x33 pattern:$0x76325410] %v3071_v59  ;;  %v3053_v62 = vcombine.high %v3050_v23, %v3050_v23  ;;  %v3066_v0 = vcombine.high %v3063_v57, %v3063_v57  ;;  %v3081_v1 = vcombine.high %v3078_v12, %v3078_v12  ;;  %v3094_v53 = vcombine.high %v3091_v63, %v3091_v63 }
 0x54a   : > { %11766 = vst.sshfl [vmem:[#allocation3 + $0x18] sm:$0x33 pattern:$0x76325410] %v3084_v10  ;;  %v3109_v3 = vcombine.high %v3106_v24, %v3106_v24  ;;  %v3122_v37 = vcombine.high %v3119_v16, %v3119_v16  ;;  %v3137_v22 = vcombine.high %v3134_v33, %v3134_v33  ;;  %v3150_v60 = vcombine.high %v3147_v58, %v3147_v58 }
 0x54b   : > { %11767 = vst.sshfl [vmem:[#allocation3 + $0x20] sm:$0x33 pattern:$0x76325410] %v3099_v25  ;;  %3055 = vst [vmem:[#allocation3 + $0x4] sm:$0xf] %v3053_v62 }
 0x54c   : > { %11768 = vst.sshfl [vmem:[#allocation3 + $0x28] sm:$0x33 pattern:$0x76325410] %v3112_v30  ;;  %3068 = vst [vmem:[#allocation3 + $0xc] sm:$0xf] %v3066_v0 }
 0x54d   : > { %11769 = vst.sshfl [vmem:[#allocation3 + $0x30] sm:$0x33 pattern:$0x76325410] %v3127_v31  ;;  %3083 = vst [vmem:[#allocation3 + $0x14] sm:$0xf] %v3081_v1 }
 0x54e   : > { %11770 = vst.sshfl [vmem:[#allocation3 + $0x38] sm:$0x33 pattern:$0x76325410] %v3140_v47  ;;  %3096 = vst [vmem:[#allocation3 + $0x1c] sm:$0xf] %v3094_v53 }
 0x54f   : > { %3111 = vst [vmem:[#allocation3 + $0x24] sm:$0xf] %v3109_v3  ;;  %3124 = vst [vmem:[#allocation3 + $0x2c] sm:$0xf] %v3122_v37 }
 0x550   : > { %3139 = vst [vmem:[#allocation3 + $0x34] sm:$0xf] %v3137_v22  ;;  %3152 = vst [vmem:[#allocation3 + $0x3c] sm:$0xf] %v3150_v60 }
 0x551 PF: > { %v13584_v17 = vld [vmem:[%s15298_s5 + $0x4] ss:$8 sps:$4 sm:$0xff]   ;;  %v13588_v50 = vld [vmem:[%s15298_s5] ss:$8 sps:$4 sm:$0xff]   ;;  %v13590_v20 = vld [vmem:[%s15298_s5 + $0x14] ss:$8 sps:$4 sm:$0xff]   ;;  %v3173_v32 = vlaneseq }
 0x552   : > { %v13586_v2 = vld [vmem:[%s15298_s5 + $0x804] ss:$8 sps:$4 sm:$0xff]   ;;  %6441 = vmatprep.subr.bf16.mxu1 %v13584_v17  ;;  %v13589_v8 = vld [vmem:[%s15298_s5 + $0x800] ss:$8 sps:$4 sm:$0xff]   ;;  %v13592_v36 = vld [vmem:[%s15298_s5 + $0x814] ss:$8 sps:$4 sm:$0xff]  }
 0x553   : > { %6769 = vmatprep.subr.bf16.mxu0 %v13586_v2  ;;  %6442 = vmatpush1.bf16.msra.mxu1 %v13588_v50  ;;  %v13594_v43 = vld [vmem:[%s15298_s5 + $0x10] ss:$8 sps:$4 sm:$0xff]   ;;  %v13596_v51 = vld [vmem:[%s15298_s5 + $0x24] ss:$8 sps:$4 sm:$0xff]   ;;  %v13600_v34 = vld [vmem:[%s15298_s5 + $0x20] ss:$8 sps:$4 sm:$0xff]  }
 0x554   : > { %6770 = vmatpush1.bf16.msra.mxu0 %v13589_v8  ;;  %6443 = vmatprep.subr.bf16.mxu1 %v13590_v20  ;;  %v13595_v46 = vld [vmem:[%s15298_s5 + $0x810] ss:$8 sps:$4 sm:$0xff]   ;;  %v13598_v55 = vld [vmem:[%s15298_s5 + $0x824] ss:$8 sps:$4 sm:$0xff]   ;;  %v13601_v4 = vld [vmem:[%s15298_s5 + $0x820] ss:$8 sps:$4 sm:$0xff]  }
 0x555   : > { %6771 = vmatprep.subr.bf16.mxu0 %v13592_v36  ;;  %v13602_v48 = vld [vmem:[%s15298_s5 + $0x34] ss:$8 sps:$4 sm:$0xff]   ;;  %v13606_v56 = vld [vmem:[%s15298_s5 + $0x30] ss:$8 sps:$4 sm:$0xff]   ;;  %v13608_v61 = vld [vmem:[%s15298_s5 + $0x44] ss:$8 sps:$4 sm:$0xff]  }
 0x556   : > { %v13604_v39 = vld [vmem:[%s15298_s5 + $0x834] ss:$8 sps:$4 sm:$0xff]   ;;  %v13607_v44 = vld [vmem:[%s15298_s5 + $0x830] ss:$8 sps:$4 sm:$0xff]   ;;  %v13610_v40 = vld [vmem:[%s15298_s5 + $0x844] ss:$8 sps:$4 sm:$0xff]  }
 0x557   : > { %6444 = vmatpush1.bf16.msra.mxu1 %v13594_v43  ;;  %v13612_v42 = vld [vmem:[%s15298_s5 + $0x40] ss:$8 sps:$4 sm:$0xff]   ;;  %v13614_v29 = vld [vmem:[%s15298_s5 + $0x54] ss:$8 sps:$4 sm:$0xff]   ;;  %v13618_v49 = vld [vmem:[%s15298_s5 + $0x50] ss:$8 sps:$4 sm:$0xff]  }
 0x558   : > { %6772 = vmatpush1.bf16.msra.mxu0 %v13595_v46  ;;  %6445 = vmatprep.subr.bf16.mxu1 %v13596_v51  ;;  %v13613_v45 = vld [vmem:[%s15298_s5 + $0x840] ss:$8 sps:$4 sm:$0xff]   ;;  %v13616_v26 = vld [vmem:[%s15298_s5 + $0x854] ss:$8 sps:$4 sm:$0xff]   ;;  %v13619_v52 = vld [vmem:[%s15298_s5 + $0x850] ss:$8 sps:$4 sm:$0xff]  }
 0x559   : > { %6773 = vmatprep.subr.bf16.mxu0 %v13598_v55  ;;  %v13620_v54 = vld [vmem:[%s15298_s5 + $0x64] ss:$8 sps:$4 sm:$0xff]   ;;  %v13624_v35 = vld [vmem:[%s15298_s5 + $0x60] ss:$8 sps:$4 sm:$0xff]   ;;  %v13626_v27 = vld [vmem:[%s15298_s5 + $0x74] ss:$8 sps:$4 sm:$0xff]  }
 0x55a   : > { %v13622_v6 = vld [vmem:[%s15298_s5 + $0x864] ss:$8 sps:$4 sm:$0xff]   ;;  %v13625_v13 = vld [vmem:[%s15298_s5 + $0x860] ss:$8 sps:$4 sm:$0xff]   ;;  %v13628_v15 = vld [vmem:[%s15298_s5 + $0x874] ss:$8 sps:$4 sm:$0xff]  }
 0x55b   : > { %6446 = vmatpush1.bf16.msra.mxu1 %v13600_v34  ;;  %v13630_v14 = vld [vmem:[%s15298_s5 + $0x70] ss:$8 sps:$4 sm:$0xff]   ;;  %v13632_v9 = vld [vmem:[%s15298_s5 + $0x84] ss:$8 sps:$4 sm:$0xff]   ;;  %v13636_v19 = vld [vmem:[%s15298_s5 + $0x80] ss:$8 sps:$4 sm:$0xff]  }
 0x55c   : > { %6774 = vmatpush1.bf16.msra.mxu0 %v13601_v4  ;;  %6447 = vmatprep.subr.bf16.mxu1 %v13602_v48  ;;  %v13631_v18 = vld [vmem:[%s15298_s5 + $0x870] ss:$8 sps:$4 sm:$0xff]   ;;  %v13634_v38 = vld [vmem:[%s15298_s5 + $0x884] ss:$8 sps:$4 sm:$0xff]   ;;  %v13637_v21 = vld [vmem:[%s15298_s5 + $0x880] ss:$8 sps:$4 sm:$0xff]  }
 0x55d   : > { %6775 = vmatprep.subr.bf16.mxu0 %v13604_v39  ;;  %v14837_v7 = vmov 1983009808   ;;  %v13638_v5 = vld [vmem:[%s15298_s5 + $0x94] ss:$8 sps:$4 sm:$0xff]   ;;  %v13642_v11 = vld [vmem:[%s15298_s5 + $0x90] ss:$8 sps:$4 sm:$0xff]  }
 0x55e   : > { %v3171_v28 = vunpack.c.l.s4 %v14837_v7  ;;  %v13640_v41 = vld [vmem:[%s15298_s5 + $0x894] ss:$8 sps:$4 sm:$0xff]   ;;  %v15677_v10 = vshrl.u32 %v3173_v32, 7  ;;  %v13643_v25 = vld [vmem:[%s15298_s5 + $0x890] ss:$8 sps:$4 sm:$0xff]   ;;  %v3153_v24 = vld [vmem:[#allocation3] sm:$0xff] }
 0x55f   : > { %6448 = vmatpush1.bf16.msra.mxu1 %v13606_v56  ;;  %v13644_v30 = vld [vmem:[%s15298_s5 + $0xa4] ss:$8 sps:$4 sm:$0xff]   ;;  %v13648_v47 = vld [vmem:[%s15298_s5 + $0xa0] ss:$8 sps:$4 sm:$0xff]   ;;  %v13650_v12 = vld [vmem:[%s15298_s5 + $0xb4] ss:$8 sps:$4 sm:$0xff]   ;;  %v3169_v51 = vcombine.high %v3153_v24, %v3153_v24 }
 0x560   : > { %6776 = vmatpush1.bf16.msra.mxu0 %v13607_v44  ;;  %6449 = vmatprep.subr.bf16.mxu1 %v13608_v61  ;;  %v3172_v59 = vunpack.c.0.s8 %v3171_v28  ;;  %v13646_v31 = vld [vmem:[%s15298_s5 + $0x8a4] ss:$8 sps:$4 sm:$0xff]   ;;  %v13649_v23 = vld [vmem:[%s15298_s5 + $0x8a0] ss:$8 sps:$4 sm:$0xff]   ;;  %v13652_v63 = vld [vmem:[%s15298_s5 + $0x8b4] ss:$8 sps:$4 sm:$0xff]  }
 0x561   : > { %6777 = vmatprep.subr.bf16.mxu0 %v13610_v40  ;;  %v13654_v16 = vld [vmem:[%s15298_s5 + $0xb0] ss:$8 sps:$4 sm:$0xff]   ;;  %v3157_v62 = vld [vmem:[#allocation3 + $0x20] sm:$0xff]  ;;  %v13662_v2 = vld [vmem:[%s15298_s5 + $0xd4] ss:$8 sps:$4 sm:$0xff]   ;;  %vm7101_vm1 = vcmask 1041408  }
 0x562   : > { %v15685_v57 = vsub.s32 %v3172_v59, %v15677_v10  ;;  %v13655_v58 = vld [vmem:[%s15298_s5 + $0x8b0] ss:$8 sps:$4 sm:$0xff]   ;;  %v13656_v0 = vld [vmem:[%s15298_s5 + $0xc4] ss:$8 sps:$4 sm:$0xff]   ;;  %v13660_v60 = vld [vmem:[%s15298_s5 + $0xc0] ss:$8 sps:$4 sm:$0xff]   ;;  %v3237_v55 = vcombine.high %v3157_v62, %v3157_v62 }
 0x563   : > { %6450 = vmatpush1.bf16.msra.mxu1 %v13612_v42  ;;  %v13658_v1 = vld [vmem:[%s15298_s5 + $0x8c4] ss:$8 sps:$4 sm:$0xff]   ;;  %v13661_v17 = vld [vmem:[%s15298_s5 + $0x8c0] ss:$8 sps:$4 sm:$0xff]   ;;  %v13664_v50 = vld [vmem:[%s15298_s5 + $0x8d4] ss:$8 sps:$4 sm:$0xff]  }
 0x564   : > { %6778 = vmatpush1.bf16.msra.mxu0 %v13613_v45  ;;  %6451 = vmatprep.subr.bf16.mxu1 %v13614_v29  ;;  %v15691_v33 = vrot.slane %v3153_v24, %v15685_v57  ;;  %v3244_v3 = vrot.slane %v3157_v62, %v15685_v57  ;;  %v13666_v20 = vld [vmem:[%s15298_s5 + $0xd0] ss:$8 sps:$4 sm:$0xff]   ;;  %v13668_v43 = vld [vmem:[%s15298_s5 + $0xe4] ss:$8 sps:$4 sm:$0xff]   ;;  %v13672_v34 = vld [vmem:[%s15298_s5 + $0xe0] ss:$8 sps:$4 sm:$0xff]   ;;  %v15712_v56 = vrot.slane %v3169_v51, %v15685_v57 }
 0x565   : > { %6779 = vmatprep.subr.bf16.mxu0 %v13616_v26  ;;  %v13667_v36 = vld [vmem:[%s15298_s5 + $0x8d0] ss:$8 sps:$4 sm:$0xff]   ;;  %v13670_v46 = vld [vmem:[%s15298_s5 + $0x8e4] ss:$8 sps:$4 sm:$0xff]   ;;  %v13673_v4 = vld [vmem:[%s15298_s5 + $0x8e0] ss:$8 sps:$4 sm:$0xff]   ;;  %v15715_v44 = vrot.slane %v3237_v55, %v15685_v57 }
 0x566   : > { %v3184_v53 = vcombine.high %v15691_v33, %v15691_v33  ;;  %v3252_v22 = vcombine.high %v3244_v3, %v3244_v3  ;;  %v13674_v48 = vld [vmem:[%s15298_s5 + $0xf4] ss:$8 sps:$4 sm:$0xff]   ;;  %v13678_v61 = vld [vmem:[%s15298_s5 + $0xf0] ss:$8 sps:$4 sm:$0xff]   ;;  %v13683_v42 = vld [vmem:[%s15298_s5 + $0x104] ss:$8 sps:$4 sm:$0xff]   ;;  %v3185_v29 = vcombine.high %v15712_v56, %v15712_v56 }
 0x567   : > { %6452 = vmatpush1.bf16.msra.mxu1 %v13618_v49  ;;  %v13676_v39 = vld [vmem:[%s15298_s5 + $0x8f4] ss:$8 sps:$4 sm:$0xff]   ;;  %v13679_v40 = vld [vmem:[%s15298_s5 + $0x8f0] ss:$8 sps:$4 sm:$0xff]   ;;  %v13687_v45 = vld [vmem:[%s15298_s5 + $0x904] ss:$8 sps:$4 sm:$0xff]   ;;  %v3253_v26 = vcombine.high %v15715_v44, %v15715_v44  ;;  %v3337_v49 = vpack.c.bf16 %v15691_v33, %v15691_v33 }
 0x568   : > { %6780 = vmatpush1.bf16.msra.mxu0 %v13619_v52  ;;  %6453 = vmatprep.subr.bf16.mxu1 %v13620_v54  ;;  %v3338_v37 = vpack.c.bf16 %v3184_v53, %v3184_v53  ;;  %v3354_v8 = vpack.c.bf16 %v3252_v22, %v3252_v22  ;;  %v3353_v52 = vpack.c.bf16 %v3244_v3, %v3244_v3  ;;  %v13681_v54 = vld [vmem:[%s15298_s5 + $0x100] ss:$8 sps:$4 sm:$0xff]   ;;  %v13702_v7 = vld [vmem:[%s15298_s5 + $0x134] ss:$8 sps:$4 sm:$0xff]   ;;  %v13700_v32 = vld [vmem:[%s15298_s5 + $0x130] ss:$8 sps:$4 sm:$0xff]  }
 0x569   : > { %6781 = vmatprep.subr.bf16.mxu0 %v13622_v6  ;;  %v13685_v6 = vld [vmem:[%s15298_s5 + $0x900] ss:$8 sps:$4 sm:$0xff]   ;;  %v13705_v28 = vld [vmem:[%s15298_s5 + $0x934] ss:$8 sps:$4 sm:$0xff]   ;;  %v13724_v62 = vld [vmem:[%s15298_s5 + $0x170] ss:$8 sps:$4 sm:$0xff]  }
 0x56a   : > { %6473 = vmatprep.mubr.bf16.mxu1 %v3338_v37  ;;  %6801 = vmatprep.mubr.bf16.mxu0 %v3354_v8  ;;  %v13706_v59 = vld [vmem:[%s15298_s5 + $0x140] ss:$8 sps:$4 sm:$0xff]   ;;  %v13726_v33 = vld [vmem:[%s15298_s5 + $0x174] ss:$8 sps:$4 sm:$0xff]   ;;  %v13735_v53 = vld [vmem:[%s15298_s5 + $0x984] ss:$8 sps:$4 sm:$0xff]  }
 0x56b   : > { %6454 = vmatpush1.bf16.msra.mxu1 %v13624_v35  ;;  %v13690_v35 = vld [vmem:[%s15298_s5 + $0x114] ss:$8 sps:$4 sm:$0xff]   ;;  %v13718_v24 = vld [vmem:[%s15298_s5 + $0x160] ss:$8 sps:$4 sm:$0xff]   ;;  %v13747_v8 = vld [vmem:[%s15298_s5 + $0x9a4] ss:$8 sps:$4 sm:$0xff]  }
 0x56c   : > { %6782 = vmatpush1.bf16.msra.mxu0 %v13625_v13  ;;  %6455 = vmatprep.subr.bf16.mxu1 %v13626_v27  ;;  %v13693_v13 = vld [vmem:[%s15298_s5 + $0x914] ss:$8 sps:$4 sm:$0xff]   ;;  %v3340_v27 = vpack.c.bf16 %v3185_v29, %v3185_v29  ;;  %v13730_v3 = vld [vmem:[%s15298_s5 + $0x180] ss:$8 sps:$4 sm:$0xff]   ;;  %v13748_v51 = vld [vmem:[%s15298_s5 + $0x1b0] ss:$8 sps:$4 sm:$0xff]  }
 0x56d   : > { %6783 = vmatprep.subr.bf16.mxu0 %v13628_v15  ;;  %v3356_v15 = vpack.c.bf16 %v3253_v26, %v3253_v26  ;;  %v13733_v37 = vld [vmem:[%s15298_s5 + $0x980] ss:$8 sps:$4 sm:$0xff]   ;;  %v13738_v22 = vld [vmem:[%s15298_s5 + $0x194] ss:$8 sps:$4 sm:$0xff]   ;;  %v13751_v55 = vld [vmem:[%s15298_s5 + $0x9b0] ss:$8 sps:$4 sm:$0xff]  }
 0x56e   : > { %v13768_v29 = vld [vmem:[%s15298_s5 + $0x1e4] ss:$8 sps:$4 sm:$0xff]   ;;  %p12286_p11 = scmp.ne.s32.totalorder %s14930_s14, 3 }
 0x56f   : > { %6456 = vmatpush1.bf16.msra.mxu1 %v13630_v14  ;;  %v13688_v14 = vld [vmem:[%s15298_s5 + $0x110] ss:$8 sps:$4 sm:$0xff]   ;;  %v13771_v26 = vld [vmem:[%s15298_s5 + $0x9e4] ss:$8 sps:$4 sm:$0xff]  }
 0x570   : > { %6784 = vmatpush1.bf16.msra.mxu0 %v13631_v18  ;;  %6457 = vmatprep.subr.bf16.mxu1 %v13632_v9  ;;  %v13691_v18 = vld [vmem:[%s15298_s5 + $0x910] ss:$8 sps:$4 sm:$0xff]   ;;  %v13696_v9 = vld [vmem:[%s15298_s5 + $0x124] ss:$8 sps:$4 sm:$0xff]  }
 0x571   : > { %6785 = vmatprep.subr.bf16.mxu0 %v13634_v38  ;;  %v13699_v38 = vld [vmem:[%s15298_s5 + $0x924] ss:$8 sps:$4 sm:$0xff]  }
 0x573   : > { %6458 = vmatpush1.bf16.msra.mxu1 %v13636_v19  ;;  %v13694_v19 = vld [vmem:[%s15298_s5 + $0x120] ss:$8 sps:$4 sm:$0xff]  }
 0x574   : > { %6786 = vmatpush1.bf16.msra.mxu0 %v13637_v21  ;;  %6459 = vmatprep.subr.bf16.mxu1 %v13638_v5  ;;  %v13697_v21 = vld [vmem:[%s15298_s5 + $0x920] ss:$8 sps:$4 sm:$0xff]   ;;  %v13703_v5 = vld [vmem:[%s15298_s5 + $0x930] ss:$8 sps:$4 sm:$0xff]  }
 0x575   : > { %6787 = vmatprep.subr.bf16.mxu0 %v13640_v41  ;;  %v13708_v41 = vld [vmem:[%s15298_s5 + $0x144] ss:$8 sps:$4 sm:$0xff]  }
 0x577   : > { %6460 = vmatpush1.bf16.msra.mxu1 %v13642_v11  ;;  %v13711_v11 = vld [vmem:[%s15298_s5 + $0x944] ss:$8 sps:$4 sm:$0xff]  }
 0x578   : > { %6788 = vmatpush1.bf16.msra.mxu0 %v13643_v25  ;;  %6461 = vmatprep.subr.bf16.mxu1 %v13644_v30  ;;  %v13709_v25 = vld [vmem:[%s15298_s5 + $0x940] ss:$8 sps:$4 sm:$0xff]   ;;  %v13714_v30 = vld [vmem:[%s15298_s5 + $0x154] ss:$8 sps:$4 sm:$0xff]  }
 0x579   : > { %6789 = vmatprep.subr.bf16.mxu0 %v13646_v31  ;;  %v13717_v31 = vld [vmem:[%s15298_s5 + $0x954] ss:$8 sps:$4 sm:$0xff]  }
 0x57b   : > { %6462 = vmatpush1.bf16.msra.mxu1 %v13648_v47  ;;  %v13712_v47 = vld [vmem:[%s15298_s5 + $0x150] ss:$8 sps:$4 sm:$0xff]  }
 0x57c   : > { %6790 = vmatpush1.bf16.msra.mxu0 %v13649_v23  ;;  %6463 = vmatprep.subr.bf16.mxu1 %v13650_v12  ;;  %v13715_v23 = vld [vmem:[%s15298_s5 + $0x950] ss:$8 sps:$4 sm:$0xff]   ;;  %v13720_v12 = vld [vmem:[%s15298_s5 + $0x164] ss:$8 sps:$4 sm:$0xff]  }
 0x57d   : > { %6791 = vmatprep.subr.bf16.mxu0 %v13652_v63  ;;  %v13723_v63 = vld [vmem:[%s15298_s5 + $0x964] ss:$8 sps:$4 sm:$0xff]  }
 0x57f   : > { %6464 = vmatpush1.bf16.msra.mxu1 %v13654_v16  ;;  %v13721_v16 = vld [vmem:[%s15298_s5 + $0x960] ss:$8 sps:$4 sm:$0xff]  }
 0x580   : > { %6792 = vmatpush1.bf16.msra.mxu0 %v13655_v58  ;;  %6465 = vmatprep.subr.bf16.mxu1 %v13656_v0  ;;  %v13729_v58 = vld [vmem:[%s15298_s5 + $0x974] ss:$8 sps:$4 sm:$0xff]   ;;  %v13727_v0 = vld [vmem:[%s15298_s5 + $0x970] ss:$8 sps:$4 sm:$0xff]  }
 0x581   : > { %6793 = vmatprep.subr.bf16.mxu0 %v13658_v1  ;;  %v13732_v1 = vld [vmem:[%s15298_s5 + $0x184] ss:$8 sps:$4 sm:$0xff]  }
 0x583   : > { %6466 = vmatpush1.bf16.msra.mxu1 %v13660_v60  ;;  %v13741_v60 = vld [vmem:[%s15298_s5 + $0x994] ss:$8 sps:$4 sm:$0xff]  }
 0x584   : > { %6794 = vmatpush1.bf16.msra.mxu0 %v13661_v17  ;;  %6467 = vmatprep.subr.bf16.mxu1 %v13662_v2  ;;  %v13736_v17 = vld [vmem:[%s15298_s5 + $0x190] ss:$8 sps:$4 sm:$0xff]  }
 0x585   : > { %6795 = vmatprep.subr.bf16.mxu0 %v13664_v50  ;;  %v13739_v2 = vld [vmem:[%s15298_s5 + $0x990] ss:$8 sps:$4 sm:$0xff]   ;;  %v13744_v50 = vld [vmem:[%s15298_s5 + $0x1a4] ss:$8 sps:$4 sm:$0xff]  }
 0x587   : > { %6468 = vmatpush1.bf16.msra.mxu1 %v13666_v20  ;;  %v13742_v20 = vld [vmem:[%s15298_s5 + $0x1a0] ss:$8 sps:$4 sm:$0xff]  }
 0x588   : > { %6796 = vmatpush1.bf16.msra.mxu0 %v13667_v36  ;;  %6469 = vmatprep.subr.bf16.mxu1 %v13668_v43  ;;  %v13745_v36 = vld [vmem:[%s15298_s5 + $0x9a0] ss:$8 sps:$4 sm:$0xff]   ;;  %v13750_v43 = vld [vmem:[%s15298_s5 + $0x1b4] ss:$8 sps:$4 sm:$0xff]  }
 0x589   : > { %6797 = vmatprep.subr.bf16.mxu0 %v13670_v46  ;;  %v13753_v46 = vld [vmem:[%s15298_s5 + $0x9b4] ss:$8 sps:$4 sm:$0xff]  }
 0x58b   : > { %6470 = vmatpush1.bf16.msra.mxu1 %v13672_v34  ;;  %v13756_v34 = vld [vmem:[%s15298_s5 + $0x1c4] ss:$8 sps:$4 sm:$0xff]  }
 0x58c   : > { %6798 = vmatpush1.bf16.msra.mxu0 %v13673_v4  ;;  %6471 = vmatprep.subr.bf16.mxu1 %v13674_v48  ;;  %v13759_v4 = vld [vmem:[%s15298_s5 + $0x9c4] ss:$8 sps:$4 sm:$0xff]   ;;  %v13754_v48 = vld [vmem:[%s15298_s5 + $0x1c0] ss:$8 sps:$4 sm:$0xff]  }
 0x58d   : > { %6799 = vmatprep.subr.bf16.mxu0 %v13676_v39  ;;  %v13757_v39 = vld [vmem:[%s15298_s5 + $0x9c0] ss:$8 sps:$4 sm:$0xff]  }
 0x58f   : > { %6472 = vmatpush1.bf16.msra.mxu1 %v13678_v61  ;;  %v13762_v61 = vld [vmem:[%s15298_s5 + $0x1d4] ss:$8 sps:$4 sm:$0xff]  }
 0x590   : > { %6800 = vmatpush1.bf16.msra.mxu0 %v13679_v40  ;;  %6482 = vmatprep.subr.bf16.mxu1 %v13683_v42  ;;  %v13765_v40 = vld [vmem:[%s15298_s5 + $0x9d4] ss:$8 sps:$4 sm:$0xff]   ;;  %v13760_v42 = vld [vmem:[%s15298_s5 + $0x1d0] ss:$8 sps:$4 sm:$0xff]  }
 0x591   : > { %6810 = vmatprep.subr.bf16.mxu0 %v13687_v45  ;;  %v13763_v45 = vld [vmem:[%s15298_s5 + $0x9d0] ss:$8 sps:$4 sm:$0xff]  }
 0x592   : > { %6474 = vmatmul.mubr.bf16.vlgmr.msra.gmra.mrb[0].mxu1 %v3337_v49  ;;  %v13766_v49 = vld [vmem:[%s15298_s5 + $0x1e0] ss:$8 sps:$4 sm:$0xff]  }
 0x593   : > { %6802 = vmatmul.mubr.bf16.vlgmr.msra.gmra.mrb[0].mxu0 %v3353_v52  ;;  %6483 = vmatpush1.bf16.msra.mxu1 %v13681_v54  ;;  %v13769_v52 = vld [vmem:[%s15298_s5 + $0x9e0] ss:$8 sps:$4 sm:$0xff]   ;;  %v13774_v54 = vld [vmem:[%s15298_s5 + $0x1f4] ss:$8 sps:$4 sm:$0xff]  }
 0x594   : > { %6811 = vmatpush1.bf16.msra.mxu0 %v13685_v6  ;;  %6484 = vmatprep.subr.bf16.mxu1 %v13690_v35  ;;  %v13777_v6 = vld [vmem:[%s15298_s5 + $0x9f4] ss:$8 sps:$4 sm:$0xff]   ;;  %v13772_v35 = vld [vmem:[%s15298_s5 + $0x1f0] ss:$8 sps:$4 sm:$0xff]  }
 0x595   : > { %6812 = vmatprep.subr.bf16.mxu0 %v13693_v13  ;;  %6514 = vmatprep.mubr.bf16.mxu1 %v3340_v27  ;;  %v13775_v13 = vld [vmem:[%s15298_s5 + $0x9f0] ss:$8 sps:$4 sm:$0xff]   ;;  %v13780_v27 = vld [vmem:[%s15298_s5 + $0x204] ss:$8 sps:$4 sm:$0xff]  }
 0x596   : > { %6842 = vmatprep.mubr.bf16.mxu0 %v3356_v15  ;;  %v13783_v15 = vld [vmem:[%s15298_s5 + $0xa04] ss:$8 sps:$4 sm:$0xff]  }
 0x597   : > { %6485 = vmatpush1.bf16.msra.mxu1 %v13688_v14  ;;  %v13778_v14 = vld [vmem:[%s15298_s5 + $0x200] ss:$8 sps:$4 sm:$0xff]  }
 0x598   : > { %6813 = vmatpush1.bf16.msra.mxu0 %v13691_v18  ;;  %6486 = vmatprep.subr.bf16.mxu1 %v13696_v9  ;;  %v3339_v18 = vpack.c.bf16 %v15712_v56, %v15712_v56  ;;  %v3355_v9 = vpack.c.bf16 %v15715_v44, %v15715_v44  ;;  %v15805_v56 = vld [vmem:[#allocation3 + $0x28] sm:$0xff] }
 0x599   : > { %6814 = vmatprep.subr.bf16.mxu0 %v13699_v38  ;;  %v13781_v38 = vld [vmem:[%s15298_s5 + $0xa00] ss:$8 sps:$4 sm:$0xff]   ;;  %v13784_v44 = vld [vmem:[%s15298_s5 + $0x210] ss:$8 sps:$4 sm:$0xff]  }
 0x59b   : > { %6487 = vmatpush1.bf16.msra.mxu1 %v13694_v19  ;;  %v13786_v19 = vld [vmem:[%s15298_s5 + $0x214] ss:$8 sps:$4 sm:$0xff]  }
 0x59c   : > { %6815 = vmatpush1.bf16.msra.mxu0 %v13697_v21  ;;  %6488 = vmatprep.subr.bf16.mxu1 %v13702_v7  ;;  %v15798_v21 = vld [vmem:[#allocation3 + $0x8] sm:$0xff] }
 0x59d   : > { %6816 = vmatprep.subr.bf16.mxu0 %v13705_v28  ;;  %v13789_v7 = vld [vmem:[%s15298_s5 + $0xa14] ss:$8 sps:$4 sm:$0xff]   ;;  %v15803_v28 = vrot.slane %v15798_v21, %v15685_v57 }
 0x59f   : > { %6489 = vmatpush1.bf16.msra.mxu1 %v13700_v32  ;;  %v13787_v32 = vld [vmem:[%s15298_s5 + $0xa10] ss:$8 sps:$4 sm:$0xff]  }
 0x5a0   : > { %6817 = vmatpush1.bf16.msra.mxu0 %v13703_v5  ;;  %6490 = vmatprep.subr.bf16.mxu1 %v13708_v41  ;;  %v3201_v5 = vcombine.high %v15803_v28, %v15803_v28  ;;  %v15813_v41 = vrot.slane %v15805_v56, %v15685_v57 }
 0x5a1   : > { %6818 = vmatprep.subr.bf16.mxu0 %v13711_v11  ;;  %v13792_v11 = vld [vmem:[%s15298_s5 + $0x224] ss:$8 sps:$4 sm:$0xff]  }
 0x5a3   : > { %6491 = vmatpush1.bf16.msra.mxu1 %v13706_v59  ;;  %v13795_v59 = vld [vmem:[%s15298_s5 + $0xa24] ss:$8 sps:$4 sm:$0xff]  }
 0x5a4   : > { %6819 = vmatpush1.bf16.msra.mxu0 %v13709_v25  ;;  %6492 = vmatprep.subr.bf16.mxu1 %v13714_v30  ;;  %v3342_v25 = vpack.c.bf16 %v3201_v5, %v3201_v5  ;;  %v3269_v30 = vcombine.high %v15813_v41, %v15813_v41  ;;  %v13870_v5 = vld [vmem:[%s15298_s5 + $0x2f4] ss:$8 sps:$4 sm:$0xff]  }
 0x5a5   : > { %6820 = vmatprep.subr.bf16.mxu0 %v13717_v31  ;;  %v13790_v31 = vld [vmem:[%s15298_s5 + $0x220] ss:$8 sps:$4 sm:$0xff]  }
 0x5a7   : > { %6493 = vmatpush1.bf16.msra.mxu1 %v13712_v47  ;;  %v13793_v47 = vld [vmem:[%s15298_s5 + $0xa20] ss:$8 sps:$4 sm:$0xff]  }
 0x5a8   : > { %6821 = vmatpush1.bf16.msra.mxu0 %v13715_v23  ;;  %6494 = vmatprep.subr.bf16.mxu1 %v13720_v12  ;;  %v3358_v23 = vpack.c.bf16 %v3269_v30, %v3269_v30  ;;  %v13798_v12 = vld [vmem:[%s15298_s5 + $0x234] ss:$8 sps:$4 sm:$0xff]   ;;  %v13876_v30 = vld [vmem:[%s15298_s5 + $0x304] ss:$8 sps:$4 sm:$0xff]  }
 0x5a9   : > { %6822 = vmatprep.subr.bf16.mxu0 %v13723_v63  ;;  %v13801_v63 = vld [vmem:[%s15298_s5 + $0xa34] ss:$8 sps:$4 sm:$0xff]  }
 0x5ab   : > { %6495 = vmatpush1.bf16.msra.mxu1 %v13718_v24  ;;  %v13796_v24 = vld [vmem:[%s15298_s5 + $0x230] ss:$8 sps:$4 sm:$0xff]  }
 0x5ac   : > { %6823 = vmatpush1.bf16.msra.mxu0 %v13721_v16  ;;  %6496 = vmatprep.subr.bf16.mxu1 %v13726_v33  ;;  %v13799_v16 = vld [vmem:[%s15298_s5 + $0xa30] ss:$8 sps:$4 sm:$0xff]   ;;  %v13804_v33 = vld [vmem:[%s15298_s5 + $0x244] ss:$8 sps:$4 sm:$0xff]  }
 0x5ad   : > { %6824 = vmatprep.subr.bf16.mxu0 %v13729_v58  ;;  %v13807_v58 = vld [vmem:[%s15298_s5 + $0xa44] ss:$8 sps:$4 sm:$0xff]  }
 0x5af   : > { %6497 = vmatpush1.bf16.msra.mxu1 %v13724_v62  ;;  %v13802_v62 = vld [vmem:[%s15298_s5 + $0x240] ss:$8 sps:$4 sm:$0xff]  }
 0x5b0   : > { %6825 = vmatpush1.bf16.msra.mxu0 %v13727_v0  ;;  %6498 = vmatprep.subr.bf16.mxu1 %v13732_v1  ;;  %v13805_v0 = vld [vmem:[%s15298_s5 + $0xa40] ss:$8 sps:$4 sm:$0xff]   ;;  %v13810_v1 = vld [vmem:[%s15298_s5 + $0x254] ss:$8 sps:$4 sm:$0xff]  }
 0x5b1   : > { %6826 = vmatprep.subr.bf16.mxu0 %v13735_v53  ;;  %v13813_v53 = vld [vmem:[%s15298_s5 + $0xa54] ss:$8 sps:$4 sm:$0xff]  }
 0x5b3   : > { %6499 = vmatpush1.bf16.msra.mxu1 %v13730_v3  ;;  %v13808_v3 = vld [vmem:[%s15298_s5 + $0x250] ss:$8 sps:$4 sm:$0xff]  }
 0x5b4   : > { %6827 = vmatpush1.bf16.msra.mxu0 %v13733_v37  ;;  %6500 = vmatprep.subr.bf16.mxu1 %v13738_v22  ;;  %v13811_v37 = vld [vmem:[%s15298_s5 + $0xa50] ss:$8 sps:$4 sm:$0xff]   ;;  %v13816_v22 = vld [vmem:[%s15298_s5 + $0x264] ss:$8 sps:$4 sm:$0xff]  }
 0x5b5   : > { %6828 = vmatprep.subr.bf16.mxu0 %v13741_v60  ;;  %v13819_v60 = vld [vmem:[%s15298_s5 + $0xa64] ss:$8 sps:$4 sm:$0xff]  }
 0x5b7   : > { %6501 = vmatpush1.bf16.msra.mxu1 %v13736_v17  ;;  %v13814_v17 = vld [vmem:[%s15298_s5 + $0x260] ss:$8 sps:$4 sm:$0xff]  }
 0x5b8   : > { %6829 = vmatpush1.bf16.msra.mxu0 %v13739_v2  ;;  %6502 = vmatprep.subr.bf16.mxu1 %v13744_v50  ;;  %v13817_v2 = vld [vmem:[%s15298_s5 + $0xa60] ss:$8 sps:$4 sm:$0xff]   ;;  %v13822_v50 = vld [vmem:[%s15298_s5 + $0x274] ss:$8 sps:$4 sm:$0xff]  }
 0x5b9   : > { %6830 = vmatprep.subr.bf16.mxu0 %v13747_v8  ;;  %v13825_v8 = vld [vmem:[%s15298_s5 + $0xa74] ss:$8 sps:$4 sm:$0xff]  }
 0x5bb   : > { %6503 = vmatpush1.bf16.msra.mxu1 %v13742_v20  ;;  %v13820_v20 = vld [vmem:[%s15298_s5 + $0x270] ss:$8 sps:$4 sm:$0xff]  }
 0x5bc   : > { %6831 = vmatpush1.bf16.msra.mxu0 %v13745_v36  ;;  %6504 = vmatprep.subr.bf16.mxu1 %v13750_v43  ;;  %v13823_v36 = vld [vmem:[%s15298_s5 + $0xa70] ss:$8 sps:$4 sm:$0xff]   ;;  %v13828_v43 = vld [vmem:[%s15298_s5 + $0x284] ss:$8 sps:$4 sm:$0xff]  }
 0x5bd   : > { %6832 = vmatprep.subr.bf16.mxu0 %v13753_v46  ;;  %v13831_v46 = vld [vmem:[%s15298_s5 + $0xa84] ss:$8 sps:$4 sm:$0xff]  }
 0x5bf   : > { %6505 = vmatpush1.bf16.msra.mxu1 %v13748_v51  ;;  %v13826_v51 = vld [vmem:[%s15298_s5 + $0x280] ss:$8 sps:$4 sm:$0xff]  }
 0x5c0   : > { %6833 = vmatpush1.bf16.msra.mxu0 %v13751_v55  ;;  %6506 = vmatprep.subr.bf16.mxu1 %v13756_v34  ;;  %v13829_v55 = vld [vmem:[%s15298_s5 + $0xa80] ss:$8 sps:$4 sm:$0xff]   ;;  %v13834_v34 = vld [vmem:[%s15298_s5 + $0x294] ss:$8 sps:$4 sm:$0xff]  }
 0x5c1   : > { %6834 = vmatprep.subr.bf16.mxu0 %v13759_v4  ;;  %v13837_v4 = vld [vmem:[%s15298_s5 + $0xa94] ss:$8 sps:$4 sm:$0xff]  }
 0x5c3   : > { %6507 = vmatpush1.bf16.msra.mxu1 %v13754_v48  ;;  %v13832_v48 = vld [vmem:[%s15298_s5 + $0x290] ss:$8 sps:$4 sm:$0xff]  }
 0x5c4   : > { %6835 = vmatpush1.bf16.msra.mxu0 %v13757_v39  ;;  %6508 = vmatprep.subr.bf16.mxu1 %v13762_v61  ;;  %v13835_v39 = vld [vmem:[%s15298_s5 + $0xa90] ss:$8 sps:$4 sm:$0xff]   ;;  %v13840_v61 = vld [vmem:[%s15298_s5 + $0x2a4] ss:$8 sps:$4 sm:$0xff]  }
 0x5c5   : > { %6836 = vmatprep.subr.bf16.mxu0 %v13765_v40  ;;  %v13843_v40 = vld [vmem:[%s15298_s5 + $0xaa4] ss:$8 sps:$4 sm:$0xff]  }
 0x5c7   : > { %6509 = vmatpush1.bf16.msra.mxu1 %v13760_v42  ;;  %v13838_v42 = vld [vmem:[%s15298_s5 + $0x2a0] ss:$8 sps:$4 sm:$0xff]  }
 0x5c8   : > { %6837 = vmatpush1.bf16.msra.mxu0 %v13763_v45  ;;  %6510 = vmatprep.subr.bf16.mxu1 %v13768_v29  ;;  %v13841_v45 = vld [vmem:[%s15298_s5 + $0xaa0] ss:$8 sps:$4 sm:$0xff]   ;;  %v13846_v29 = vld [vmem:[%s15298_s5 + $0x2b4] ss:$8 sps:$4 sm:$0xff]  }
 0x5c9   : > { %6838 = vmatprep.subr.bf16.mxu0 %v13771_v26  ;;  %v13849_v26 = vld [vmem:[%s15298_s5 + $0xab4] ss:$8 sps:$4 sm:$0xff]  }
 0x5cb   : > { %6511 = vmatpush1.bf16.msra.mxu1 %v13766_v49  ;;  %v13844_v49 = vld [vmem:[%s15298_s5 + $0x2b0] ss:$8 sps:$4 sm:$0xff]  }
 0x5cc   : > { %6839 = vmatpush1.bf16.msra.mxu0 %v13769_v52  ;;  %6512 = vmatprep.subr.bf16.mxu1 %v13774_v54  ;;  %v13847_v52 = vld [vmem:[%s15298_s5 + $0xab0] ss:$8 sps:$4 sm:$0xff]   ;;  %v13852_v54 = vld [vmem:[%s15298_s5 + $0x2c4] ss:$8 sps:$4 sm:$0xff]  }
 0x5cd   : > { %6840 = vmatprep.subr.bf16.mxu0 %v13777_v6  ;;  %v13855_v6 = vld [vmem:[%s15298_s5 + $0xac4] ss:$8 sps:$4 sm:$0xff]  }
 0x5cf   : > { %6513 = vmatpush1.bf16.msra.mxu1 %v13772_v35  ;;  %v13850_v35 = vld [vmem:[%s15298_s5 + $0x2c0] ss:$8 sps:$4 sm:$0xff]  }
 0x5d0   : > { %6841 = vmatpush1.bf16.msra.mxu0 %v13775_v13  ;;  %6523 = vmatprep.subr.bf16.mxu1 %v13780_v27  ;;  %v13853_v13 = vld [vmem:[%s15298_s5 + $0xac0] ss:$8 sps:$4 sm:$0xff]   ;;  %v13858_v27 = vld [vmem:[%s15298_s5 + $0x2d4] ss:$8 sps:$4 sm:$0xff]  }
 0x5d1   : > { %6851 = vmatprep.subr.bf16.mxu0 %v13783_v15  ;;  %v13861_v15 = vld [vmem:[%s15298_s5 + $0xad4] ss:$8 sps:$4 sm:$0xff]  }
 0x5d2   : > { %6515 = vmatmul.mubr.bf16.vlgmr.msra.gmra.mrb[0].mxu1 %v3339_v18  ;;  %v13859_v18 = vld [vmem:[%s15298_s5 + $0xad0] ss:$8 sps:$4 sm:$0xff]  }
 0x5d3   : > { %6843 = vmatmul.mubr.bf16.vlgmr.msra.gmra.mrb[0].mxu0 %v3355_v9  ;;  %6524 = vmatpush1.bf16.msra.mxu1 %v13778_v14  ;;  %v13856_v14 = vld [vmem:[%s15298_s5 + $0x2d0] ss:$8 sps:$4 sm:$0xff]   ;;  %v13864_v9 = vld [vmem:[%s15298_s5 + $0x2e4] ss:$8 sps:$4 sm:$0xff]  }
 0x5d4   : > { %6852 = vmatpush1.bf16.msra.mxu0 %v13781_v38  ;;  %6525 = vmatprep.subr.bf16.mxu1 %v13786_v19  ;;  %v13867_v38 = vld [vmem:[%s15298_s5 + $0xae4] ss:$8 sps:$4 sm:$0xff]   ;;  %v3186_v19 = vcombine.high %v15798_v21, %v15798_v21 }
 0x5d5   : > { %6853 = vmatprep.subr.bf16.mxu0 %v13789_v7  ;;  %6555 = vmatprep.mubr.bf16.mxu1 %v3342_v25  ;;  %v3254_v7 = vcombine.high %v15805_v56, %v15805_v56  ;;  %v13868_v25 = vld [vmem:[%s15298_s5 + $0x2f0] ss:$8 sps:$4 sm:$0xff]  }
 0x5d6   : > { %6883 = vmatprep.mubr.bf16.mxu0 %v3358_v23  ;;  %v13871_v56 = vld [vmem:[%s15298_s5 + $0xaf0] ss:$8 sps:$4 sm:$0xff]  }
 0x5d7   : > { %6526 = vmatpush1.bf16.msra.mxu1 %v13784_v44  ;;  %v13862_v44 = vld [vmem:[%s15298_s5 + $0x2e0] ss:$8 sps:$4 sm:$0xff]   ;;  %v15879_v21 = vrot.slane %v3254_v7, %v15685_v57  ;;  %v13943_v7 = vld [vmem:[%s15298_s5 + $0xbb0] ss:$8 sps:$4 sm:$0xff]  }
 0x5d8   : > { %6854 = vmatpush1.bf16.msra.mxu0 %v13787_v32  ;;  %6527 = vmatprep.subr.bf16.mxu1 %v13792_v11  ;;  %v13865_v32 = vld [vmem:[%s15298_s5 + $0xae0] ss:$8 sps:$4 sm:$0xff]   ;;  %v13873_v11 = vld [vmem:[%s15298_s5 + $0xaf4] ss:$8 sps:$4 sm:$0xff]  }
 0x5d9   : > { %6855 = vmatprep.subr.bf16.mxu0 %v13795_v59  ;;  %v15876_v59 = vrot.slane %v3186_v19, %v15685_v57  ;;  %v3270_v23 = vcombine.high %v15879_v21, %v15879_v21  ;;  %v13940_v19 = vld [vmem:[%s15298_s5 + $0x3b0] ss:$8 sps:$4 sm:$0xff]  }
 0x5db   : > { %6528 = vmatpush1.bf16.msra.mxu1 %v13790_v31  ;;  %v13879_v31 = vld [vmem:[%s15298_s5 + $0xb04] ss:$8 sps:$4 sm:$0xff]  }
 0x5dc   : > { %6856 = vmatpush1.bf16.msra.mxu0 %v13793_v47  ;;  %6529 = vmatprep.subr.bf16.mxu1 %v13798_v12  ;;  %v3202_v47 = vcombine.high %v15876_v59, %v15876_v59  ;;  %v13874_v12 = vld [vmem:[%s15298_s5 + $0x300] ss:$8 sps:$4 sm:$0xff]  }
 0x5dd   : > { %6857 = vmatprep.subr.bf16.mxu0 %v13801_v63  ;;  %v13877_v63 = vld [vmem:[%s15298_s5 + $0xb00] ss:$8 sps:$4 sm:$0xff]  }
 0x5df   : > { %6530 = vmatpush1.bf16.msra.mxu1 %v13796_v24  ;;  %v3341_v24 = vpack.c.bf16 %v15803_v28, %v15803_v28  ;;  %v13883_v28 = vld [vmem:[%s15298_s5 + $0xb10] ss:$8 sps:$4 sm:$0xff]  }
 0x5e0   : > { %6858 = vmatpush1.bf16.msra.mxu0 %v13799_v16  ;;  %6531 = vmatprep.subr.bf16.mxu1 %v13804_v33  ;;  %v3357_v16 = vpack.c.bf16 %v15813_v41, %v15813_v41  ;;  %v13882_v33 = vld [vmem:[%s15298_s5 + $0x314] ss:$8 sps:$4 sm:$0xff]   ;;  %v13888_v41 = vld [vmem:[%s15298_s5 + $0x324] ss:$8 sps:$4 sm:$0xff]  }
 0x5e1   : > { %6859 = vmatprep.subr.bf16.mxu0 %v13807_v58  ;;  %v13885_v58 = vld [vmem:[%s15298_s5 + $0xb14] ss:$8 sps:$4 sm:$0xff]  }
 0x5e3   : > { %6532 = vmatpush1.bf16.msra.mxu1 %v13802_v62  ;;  %v3344_v62 = vpack.c.bf16 %v3202_v47, %v3202_v47  ;;  %v13960_v47 = vld [vmem:[%s15298_s5 + $0x3e4] ss:$8 sps:$4 sm:$0xff]  }
 0x5e4   : > { %6860 = vmatpush1.bf16.msra.mxu0 %v13805_v0  ;;  %6533 = vmatprep.subr.bf16.mxu1 %v13810_v1  ;;  %v3360_v0 = vpack.c.bf16 %v3270_v23, %v3270_v23  ;;  %v13880_v1 = vld [vmem:[%s15298_s5 + $0x310] ss:$8 sps:$4 sm:$0xff]   ;;  %v13963_v23 = vld [vmem:[%s15298_s5 + $0xbe4] ss:$8 sps:$4 sm:$0xff]  }
 0x5e5   : > { %6861 = vmatprep.subr.bf16.mxu0 %v13813_v53  ;;  %v13891_v53 = vld [vmem:[%s15298_s5 + $0xb24] ss:$8 sps:$4 sm:$0xff]  }
 0x5e7   : > { %6534 = vmatpush1.bf16.msra.mxu1 %v13808_v3  ;;  %v13886_v3 = vld [vmem:[%s15298_s5 + $0x320] ss:$8 sps:$4 sm:$0xff]  }
 0x5e8   : > { %6862 = vmatpush1.bf16.msra.mxu0 %v13811_v37  ;;  %6535 = vmatprep.subr.bf16.mxu1 %v13816_v22  ;;  %v13889_v37 = vld [vmem:[%s15298_s5 + $0xb20] ss:$8 sps:$4 sm:$0xff]   ;;  %v13894_v22 = vld [vmem:[%s15298_s5 + $0x334] ss:$8 sps:$4 sm:$0xff]  }
 0x5e9   : > { %6863 = vmatprep.subr.bf16.mxu0 %v13819_v60  ;;  %v13897_v60 = vld [vmem:[%s15298_s5 + $0xb34] ss:$8 sps:$4 sm:$0xff]  }
 0x5eb   : > { %6536 = vmatpush1.bf16.msra.mxu1 %v13814_v17  ;;  %v13892_v17 = vld [vmem:[%s15298_s5 + $0x330] ss:$8 sps:$4 sm:$0xff]  }
 0x5ec   : > { %6864 = vmatpush1.bf16.msra.mxu0 %v13817_v2  ;;  %6537 = vmatprep.subr.bf16.mxu1 %v13822_v50  ;;  %v13895_v2 = vld [vmem:[%s15298_s5 + $0xb30] ss:$8 sps:$4 sm:$0xff]   ;;  %v13900_v50 = vld [vmem:[%s15298_s5 + $0x344] ss:$8 sps:$4 sm:$0xff]  }
 0x5ed   : > { %6865 = vmatprep.subr.bf16.mxu0 %v13825_v8  ;;  %v13903_v8 = vld [vmem:[%s15298_s5 + $0xb44] ss:$8 sps:$4 sm:$0xff]  }
 0x5ef   : > { %6538 = vmatpush1.bf16.msra.mxu1 %v13820_v20  ;;  %v13898_v20 = vld [vmem:[%s15298_s5 + $0x340] ss:$8 sps:$4 sm:$0xff]  }
 0x5f0   : > { %6866 = vmatpush1.bf16.msra.mxu0 %v13823_v36  ;;  %6539 = vmatprep.subr.bf16.mxu1 %v13828_v43  ;;  %v13901_v36 = vld [vmem:[%s15298_s5 + $0xb40] ss:$8 sps:$4 sm:$0xff]   ;;  %v13906_v43 = vld [vmem:[%s15298_s5 + $0x354] ss:$8 sps:$4 sm:$0xff]  }
 0x5f1   : > { %6867 = vmatprep.subr.bf16.mxu0 %v13831_v46  ;;  %v13909_v46 = vld [vmem:[%s15298_s5 + $0xb54] ss:$8 sps:$4 sm:$0xff]  }
 0x5f3   : > { %6540 = vmatpush1.bf16.msra.mxu1 %v13826_v51  ;;  %v13904_v51 = vld [vmem:[%s15298_s5 + $0x350] ss:$8 sps:$4 sm:$0xff]  }
 0x5f4   : > { %6868 = vmatpush1.bf16.msra.mxu0 %v13829_v55  ;;  %6541 = vmatprep.subr.bf16.mxu1 %v13834_v34  ;;  %v13907_v55 = vld [vmem:[%s15298_s5 + $0xb50] ss:$8 sps:$4 sm:$0xff]   ;;  %v13912_v34 = vld [vmem:[%s15298_s5 + $0x364] ss:$8 sps:$4 sm:$0xff]  }
 0x5f5   : > { %6869 = vmatprep.subr.bf16.mxu0 %v13837_v4  ;;  %v13915_v4 = vld [vmem:[%s15298_s5 + $0xb64] ss:$8 sps:$4 sm:$0xff]  }
 0x5f7   : > { %6542 = vmatpush1.bf16.msra.mxu1 %v13832_v48  ;;  %v13910_v48 = vld [vmem:[%s15298_s5 + $0x360] ss:$8 sps:$4 sm:$0xff]  }
 0x5f8   : > { %6870 = vmatpush1.bf16.msra.mxu0 %v13835_v39  ;;  %6543 = vmatprep.subr.bf16.mxu1 %v13840_v61  ;;  %v13913_v39 = vld [vmem:[%s15298_s5 + $0xb60] ss:$8 sps:$4 sm:$0xff]   ;;  %v13918_v61 = vld [vmem:[%s15298_s5 + $0x374] ss:$8 sps:$4 sm:$0xff]  }
 0x5f9   : > { %6871 = vmatprep.subr.bf16.mxu0 %v13843_v40  ;;  %v13921_v40 = vld [vmem:[%s15298_s5 + $0xb74] ss:$8 sps:$4 sm:$0xff]  }
 0x5fb   : > { %6544 = vmatpush1.bf16.msra.mxu1 %v13838_v42  ;;  %v13916_v42 = vld [vmem:[%s15298_s5 + $0x370] ss:$8 sps:$4 sm:$0xff]  }
 0x5fc   : > { %6872 = vmatpush1.bf16.msra.mxu0 %v13841_v45  ;;  %6545 = vmatprep.subr.bf16.mxu1 %v13846_v29  ;;  %v13919_v45 = vld [vmem:[%s15298_s5 + $0xb70] ss:$8 sps:$4 sm:$0xff]   ;;  %v13924_v29 = vld [vmem:[%s15298_s5 + $0x384] ss:$8 sps:$4 sm:$0xff]  }
 0x5fd   : > { %6873 = vmatprep.subr.bf16.mxu0 %v13849_v26  ;;  %v13927_v26 = vld [vmem:[%s15298_s5 + $0xb84] ss:$8 sps:$4 sm:$0xff]  }
 0x5ff   : > { %6546 = vmatpush1.bf16.msra.mxu1 %v13844_v49  ;;  %v13922_v49 = vld [vmem:[%s15298_s5 + $0x380] ss:$8 sps:$4 sm:$0xff]  }
 0x600   : > { %6874 = vmatpush1.bf16.msra.mxu0 %v13847_v52  ;;  %6547 = vmatprep.subr.bf16.mxu1 %v13852_v54  ;;  %v13925_v52 = vld [vmem:[%s15298_s5 + $0xb80] ss:$8 sps:$4 sm:$0xff]   ;;  %v13930_v54 = vld [vmem:[%s15298_s5 + $0x394] ss:$8 sps:$4 sm:$0xff]  }
 0x601   : > { %6875 = vmatprep.subr.bf16.mxu0 %v13855_v6  ;;  %v13933_v6 = vld [vmem:[%s15298_s5 + $0xb94] ss:$8 sps:$4 sm:$0xff]  }
 0x603   : > { %6548 = vmatpush1.bf16.msra.mxu1 %v13850_v35  ;;  %v13928_v35 = vld [vmem:[%s15298_s5 + $0x390] ss:$8 sps:$4 sm:$0xff]  }
 0x604   : > { %6876 = vmatpush1.bf16.msra.mxu0 %v13853_v13  ;;  %6549 = vmatprep.subr.bf16.mxu1 %v13858_v27  ;;  %v13931_v13 = vld [vmem:[%s15298_s5 + $0xb90] ss:$8 sps:$4 sm:$0xff]   ;;  %v13936_v27 = vld [vmem:[%s15298_s5 + $0x3a4] ss:$8 sps:$4 sm:$0xff]  }
 0x605   : > { %6877 = vmatprep.subr.bf16.mxu0 %v13861_v15  ;;  %v13939_v15 = vld [vmem:[%s15298_s5 + $0xba4] ss:$8 sps:$4 sm:$0xff]  }
 0x607   : > { %6550 = vmatpush1.bf16.msra.mxu1 %v13856_v14  ;;  %v13934_v14 = vld [vmem:[%s15298_s5 + $0x3a0] ss:$8 sps:$4 sm:$0xff]  }
 0x608   : > { %6878 = vmatpush1.bf16.msra.mxu0 %v13859_v18  ;;  %6551 = vmatprep.subr.bf16.mxu1 %v13864_v9  ;;  %v13937_v18 = vld [vmem:[%s15298_s5 + $0xba0] ss:$8 sps:$4 sm:$0xff]   ;;  %v13942_v9 = vld [vmem:[%s15298_s5 + $0x3b4] ss:$8 sps:$4 sm:$0xff]  }
 0x609   : > { %6879 = vmatprep.subr.bf16.mxu0 %v13867_v38  ;;  %v13945_v38 = vld [vmem:[%s15298_s5 + $0xbb4] ss:$8 sps:$4 sm:$0xff]  }
 0x60b   : > { %6552 = vmatpush1.bf16.msra.mxu1 %v13862_v44  ;;  %v13948_v44 = vld [vmem:[%s15298_s5 + $0x3c4] ss:$8 sps:$4 sm:$0xff]  }
 0x60c   : > { %6880 = vmatpush1.bf16.msra.mxu0 %v13865_v32  ;;  %6553 = vmatprep.subr.bf16.mxu1 %v13870_v5  ;;  %v13951_v32 = vld [vmem:[%s15298_s5 + $0xbc4] ss:$8 sps:$4 sm:$0xff]   ;;  %v13946_v5 = vld [vmem:[%s15298_s5 + $0x3c0] ss:$8 sps:$4 sm:$0xff]  }
 0x60d   : > { %6881 = vmatprep.subr.bf16.mxu0 %v13873_v11  ;;  %v13949_v11 = vld [vmem:[%s15298_s5 + $0xbc0] ss:$8 sps:$4 sm:$0xff]  }
 0x60f   : > { %6554 = vmatpush1.bf16.msra.mxu1 %v13868_v25  ;;  %v13954_v25 = vld [vmem:[%s15298_s5 + $0x3d4] ss:$8 sps:$4 sm:$0xff]  }
 0x610   : > { %6882 = vmatpush1.bf16.msra.mxu0 %v13871_v56  ;;  %6564 = vmatprep.subr.bf16.mxu1 %v13876_v30  ;;  %v13957_v56 = vld [vmem:[%s15298_s5 + $0xbd4] ss:$8 sps:$4 sm:$0xff]   ;;  %v13952_v30 = vld [vmem:[%s15298_s5 + $0x3d0] ss:$8 sps:$4 sm:$0xff]  }
 0x611   : > { %6892 = vmatprep.subr.bf16.mxu0 %v13879_v31  ;;  %v13955_v31 = vld [vmem:[%s15298_s5 + $0xbd0] ss:$8 sps:$4 sm:$0xff]  }
 0x612   : > { %6556 = vmatmul.mubr.bf16.vlgmr.msra.gmra.mrb[0].mxu1 %v3341_v24  ;;  %v13958_v24 = vld [vmem:[%s15298_s5 + $0x3e0] ss:$8 sps:$4 sm:$0xff]  }
 0x613   : > { %6884 = vmatmul.mubr.bf16.vlgmr.msra.gmra.mrb[0].mxu0 %v3357_v16  ;;  %6565 = vmatpush1.bf16.msra.mxu1 %v13874_v12  ;;  %v15949_v12 = vld [vmem:[#allocation3 + $0x10] sm:$0xff]  ;;  %v13961_v16 = vld [vmem:[%s15298_s5 + $0xbe0] ss:$8 sps:$4 sm:$0xff]  }
 0x614   : > { %6893 = vmatpush1.bf16.msra.mxu0 %v13877_v63  ;;  %6566 = vmatprep.subr.bf16.mxu1 %v13882_v33  ;;  %v15951_v63 = vld [vmem:[#allocation3 + $0x30] sm:$0xff] }
 0x615   : > { %6894 = vmatprep.subr.bf16.mxu0 %v13885_v58  ;;  %6596 = vmatprep.mubr.bf16.mxu1 %v3344_v62  ;;  %v13966_v33 = vld [vmem:[%s15298_s5 + $0x3f4] ss:$8 sps:$4 sm:$0xff]   ;;  %v15959_v62 = vrot.slane %v15949_v12, %v15685_v57 }
 0x616   : > { %6924 = vmatprep.mubr.bf16.mxu0 %v3360_v0  ;;  %v13969_v58 = vld [vmem:[%s15298_s5 + $0xbf4] ss:$8 sps:$4 sm:$0xff]   ;;  %v15963_v0 = vrot.slane %v15951_v63, %v15685_v57 }
 0x617   : > { %6567 = vmatpush1.bf16.msra.mxu1 %v13880_v1  ;;  %v13964_v1 = vld [vmem:[%s15298_s5 + $0x3f0] ss:$8 sps:$4 sm:$0xff]  }
 0x618   : > { %6895 = vmatpush1.bf16.msra.mxu0 %v13883_v28  ;;  %6568 = vmatprep.subr.bf16.mxu1 %v13888_v41  ;;  %v13967_v28 = vld [vmem:[%s15298_s5 + $0xbf0] ss:$8 sps:$4 sm:$0xff]   ;;  %v13973_v41 = vld [vmem:[%s15298_s5 + $0x404] ss:$8 sps:$4 sm:$0xff]  }
 0x619   : > { %6896 = vmatprep.subr.bf16.mxu0 %v13891_v53  ;;  %v13977_v53 = vld [vmem:[%s15298_s5 + $0xc04] ss:$8 sps:$4 sm:$0xff]  }
 0x61b   : > { %6569 = vmatpush1.bf16.msra.mxu1 %v13886_v3  ;;  %v3218_v3 = vcombine.high %v15959_v62, %v15959_v62 }
 0x61c   : > { %6897 = vmatpush1.bf16.msra.mxu0 %v13889_v37  ;;  %6570 = vmatprep.subr.bf16.mxu1 %v13894_v22  ;;  %v3286_v37 = vcombine.high %v15963_v0, %v15963_v0  ;;  %v3343_v22 = vpack.c.bf16 %v15876_v59, %v15876_v59  ;;  %v13978_v59 = vld [vmem:[%s15298_s5 + $0x410] ss:$8 sps:$4 sm:$0xff]  }
 0x61d   : > { %6898 = vmatprep.subr.bf16.mxu0 %v13897_v60  ;;  %v3359_v60 = vpack.c.bf16 %v15879_v21, %v15879_v21  ;;  %v13981_v21 = vld [vmem:[%s15298_s5 + $0xc10] ss:$8 sps:$4 sm:$0xff]  }
 0x61f   : > { %6571 = vmatpush1.bf16.msra.mxu1 %v13892_v17  ;;  %v13971_v17 = vld [vmem:[%s15298_s5 + $0x400] ss:$8 sps:$4 sm:$0xff]  }
 0x620   : > { %6899 = vmatpush1.bf16.msra.mxu0 %v13895_v2  ;;  %6572 = vmatprep.subr.bf16.mxu1 %v13900_v50  ;;  %v13975_v2 = vld [vmem:[%s15298_s5 + $0xc00] ss:$8 sps:$4 sm:$0xff]   ;;  %v13980_v50 = vld [vmem:[%s15298_s5 + $0x414] ss:$8 sps:$4 sm:$0xff]  }
 0x621   : > { %6900 = vmatprep.subr.bf16.mxu0 %v13903_v8  ;;  %v13983_v8 = vld [vmem:[%s15298_s5 + $0xc14] ss:$8 sps:$4 sm:$0xff]  }
 0x623   : > { %6573 = vmatpush1.bf16.msra.mxu1 %v13898_v20  ;;  %v3346_v20 = vpack.c.bf16 %v3218_v3, %v3218_v3  ;;  %v14050_v3 = vld [vmem:[%s15298_s5 + $0x4d0] ss:$8 sps:$4 sm:$0xff]  }
 0x624   : > { %6901 = vmatpush1.bf16.msra.mxu0 %v13901_v36  ;;  %6574 = vmatprep.subr.bf16.mxu1 %v13906_v43  ;;  %v3362_v36 = vpack.c.bf16 %v3286_v37, %v3286_v37  ;;  %v13986_v43 = vld [vmem:[%s15298_s5 + $0x424] ss:$8 sps:$4 sm:$0xff]   ;;  %v14053_v37 = vld [vmem:[%s15298_s5 + $0xcd0] ss:$8 sps:$4 sm:$0xff]  }
 0x625   : > { %6902 = vmatprep.subr.bf16.mxu0 %v13909_v46  ;;  %v13989_v46 = vld [vmem:[%s15298_s5 + $0xc24] ss:$8 sps:$4 sm:$0xff]  }
 0x627   : > { %6575 = vmatpush1.bf16.msra.mxu1 %v13904_v51  ;;  %v13984_v51 = vld [vmem:[%s15298_s5 + $0x420] ss:$8 sps:$4 sm:$0xff]  }
 0x628   : > { %6903 = vmatpush1.bf16.msra.mxu0 %v13907_v55  ;;  %6576 = vmatprep.subr.bf16.mxu1 %v13912_v34  ;;  %v13987_v55 = vld [vmem:[%s15298_s5 + $0xc20] ss:$8 sps:$4 sm:$0xff]   ;;  %v13992_v34 = vld [vmem:[%s15298_s5 + $0x434] ss:$8 sps:$4 sm:$0xff]  }
 0x629   : > { %6904 = vmatprep.subr.bf16.mxu0 %v13915_v4  ;;  %v13995_v4 = vld [vmem:[%s15298_s5 + $0xc34] ss:$8 sps:$4 sm:$0xff]  }
 0x62b   : > { %6577 = vmatpush1.bf16.msra.mxu1 %v13910_v48  ;;  %v13990_v48 = vld [vmem:[%s15298_s5 + $0x430] ss:$8 sps:$4 sm:$0xff]  }
 0x62c   : > { %6905 = vmatpush1.bf16.msra.mxu0 %v13913_v39  ;;  %6578 = vmatprep.subr.bf16.mxu1 %v13918_v61  ;;  %v13993_v39 = vld [vmem:[%s15298_s5 + $0xc30] ss:$8 sps:$4 sm:$0xff]   ;;  %v13998_v61 = vld [vmem:[%s15298_s5 + $0x444] ss:$8 sps:$4 sm:$0xff]  }
 0x62d   : > { %6906 = vmatprep.subr.bf16.mxu0 %v13921_v40  ;;  %v14001_v40 = vld [vmem:[%s15298_s5 + $0xc44] ss:$8 sps:$4 sm:$0xff]  }
 0x62f   : > { %6579 = vmatpush1.bf16.msra.mxu1 %v13916_v42  ;;  %v13996_v42 = vld [vmem:[%s15298_s5 + $0x440] ss:$8 sps:$4 sm:$0xff]  }
 0x630   : > { %6907 = vmatpush1.bf16.msra.mxu0 %v13919_v45  ;;  %6580 = vmatprep.subr.bf16.mxu1 %v13924_v29  ;;  %v13999_v45 = vld [vmem:[%s15298_s5 + $0xc40] ss:$8 sps:$4 sm:$0xff]   ;;  %v14004_v29 = vld [vmem:[%s15298_s5 + $0x454] ss:$8 sps:$4 sm:$0xff]  }
 0x631   : > { %6908 = vmatprep.subr.bf16.mxu0 %v13927_v26  ;;  %v14007_v26 = vld [vmem:[%s15298_s5 + $0xc54] ss:$8 sps:$4 sm:$0xff]  }
 0x633   : > { %6581 = vmatpush1.bf16.msra.mxu1 %v13922_v49  ;;  %v14002_v49 = vld [vmem:[%s15298_s5 + $0x450] ss:$8 sps:$4 sm:$0xff]  }
 0x634   : > { %6909 = vmatpush1.bf16.msra.mxu0 %v13925_v52  ;;  %6582 = vmatprep.subr.bf16.mxu1 %v13930_v54  ;;  %v14005_v52 = vld [vmem:[%s15298_s5 + $0xc50] ss:$8 sps:$4 sm:$0xff]   ;;  %v14010_v54 = vld [vmem:[%s15298_s5 + $0x464] ss:$8 sps:$4 sm:$0xff]  }
 0x635   : > { %6910 = vmatprep.subr.bf16.mxu0 %v13933_v6  ;;  %v14013_v6 = vld [vmem:[%s15298_s5 + $0xc64] ss:$8 sps:$4 sm:$0xff]  }
 0x637   : > { %6583 = vmatpush1.bf16.msra.mxu1 %v13928_v35  ;;  %v14008_v35 = vld [vmem:[%s15298_s5 + $0x460] ss:$8 sps:$4 sm:$0xff]  }
 0x638   : > { %6911 = vmatpush1.bf16.msra.mxu0 %v13931_v13  ;;  %6584 = vmatprep.subr.bf16.mxu1 %v13936_v27  ;;  %v14011_v13 = vld [vmem:[%s15298_s5 + $0xc60] ss:$8 sps:$4 sm:$0xff]   ;;  %v14016_v27 = vld [vmem:[%s15298_s5 + $0x474] ss:$8 sps:$4 sm:$0xff]  }
 0x639   : > { %6912 = vmatprep.subr.bf16.mxu0 %v13939_v15  ;;  %v14019_v15 = vld [vmem:[%s15298_s5 + $0xc74] ss:$8 sps:$4 sm:$0xff]  }
 0x63b   : > { %6585 = vmatpush1.bf16.msra.mxu1 %v13934_v14  ;;  %v14014_v14 = vld [vmem:[%s15298_s5 + $0x470] ss:$8 sps:$4 sm:$0xff]  }
 0x63c   : > { %6913 = vmatpush1.bf16.msra.mxu0 %v13937_v18  ;;  %6586 = vmatprep.subr.bf16.mxu1 %v13942_v9  ;;  %v14017_v18 = vld [vmem:[%s15298_s5 + $0xc70] ss:$8 sps:$4 sm:$0xff]   ;;  %v14022_v9 = vld [vmem:[%s15298_s5 + $0x484] ss:$8 sps:$4 sm:$0xff]  }
 0x63d   : > { %6914 = vmatprep.subr.bf16.mxu0 %v13945_v38  ;;  %v14025_v38 = vld [vmem:[%s15298_s5 + $0xc84] ss:$8 sps:$4 sm:$0xff]  }
 0x63f   : > { %6587 = vmatpush1.bf16.msra.mxu1 %v13940_v19  ;;  %v14020_v19 = vld [vmem:[%s15298_s5 + $0x480] ss:$8 sps:$4 sm:$0xff]  }
 0x640   : > { %6915 = vmatpush1.bf16.msra.mxu0 %v13943_v7  ;;  %6588 = vmatprep.subr.bf16.mxu1 %v13948_v44  ;;  %v14023_v7 = vld [vmem:[%s15298_s5 + $0xc80] ss:$8 sps:$4 sm:$0xff]   ;;  %v14028_v44 = vld [vmem:[%s15298_s5 + $0x494] ss:$8 sps:$4 sm:$0xff]  }
 0x641   : > { %6916 = vmatprep.subr.bf16.mxu0 %v13951_v32  ;;  %v14031_v32 = vld [vmem:[%s15298_s5 + $0xc94] ss:$8 sps:$4 sm:$0xff]  }
 0x643   : > { %6589 = vmatpush1.bf16.msra.mxu1 %v13946_v5  ;;  %v14026_v5 = vld [vmem:[%s15298_s5 + $0x490] ss:$8 sps:$4 sm:$0xff]  }
 0x644   : > { %6917 = vmatpush1.bf16.msra.mxu0 %v13949_v11  ;;  %6590 = vmatprep.subr.bf16.mxu1 %v13954_v25  ;;  %v14029_v11 = vld [vmem:[%s15298_s5 + $0xc90] ss:$8 sps:$4 sm:$0xff]   ;;  %v14034_v25 = vld [vmem:[%s15298_s5 + $0x4a4] ss:$8 sps:$4 sm:$0xff]  }
 0x645   : > { %6918 = vmatprep.subr.bf16.mxu0 %v13957_v56  ;;  %v14037_v56 = vld [vmem:[%s15298_s5 + $0xca4] ss:$8 sps:$4 sm:$0xff]  }
 0x647   : > { %6591 = vmatpush1.bf16.msra.mxu1 %v13952_v30  ;;  %v14032_v30 = vld [vmem:[%s15298_s5 + $0x4a0] ss:$8 sps:$4 sm:$0xff]  }
 0x648   : > { %6919 = vmatpush1.bf16.msra.mxu0 %v13955_v31  ;;  %6592 = vmatprep.subr.bf16.mxu1 %v13960_v47  ;;  %v14035_v31 = vld [vmem:[%s15298_s5 + $0xca0] ss:$8 sps:$4 sm:$0xff]   ;;  %v14040_v47 = vld [vmem:[%s15298_s5 + $0x4b4] ss:$8 sps:$4 sm:$0xff]  }
 0x649   : > { %6920 = vmatprep.subr.bf16.mxu0 %v13963_v23  ;;  %v14043_v23 = vld [vmem:[%s15298_s5 + $0xcb4] ss:$8 sps:$4 sm:$0xff]  }
 0x64b   : > { %6593 = vmatpush1.bf16.msra.mxu1 %v13958_v24  ;;  %v14038_v24 = vld [vmem:[%s15298_s5 + $0x4b0] ss:$8 sps:$4 sm:$0xff]  }
 0x64c   : > { %6921 = vmatpush1.bf16.msra.mxu0 %v13961_v16  ;;  %6594 = vmatprep.subr.bf16.mxu1 %v13966_v33  ;;  %v14041_v16 = vld [vmem:[%s15298_s5 + $0xcb0] ss:$8 sps:$4 sm:$0xff]   ;;  %v14046_v33 = vld [vmem:[%s15298_s5 + $0x4c4] ss:$8 sps:$4 sm:$0xff]  }
 0x64d   : > { %6922 = vmatprep.subr.bf16.mxu0 %v13969_v58  ;;  %v14049_v58 = vld [vmem:[%s15298_s5 + $0xcc4] ss:$8 sps:$4 sm:$0xff]  }
 0x64f   : > { %6595 = vmatpush1.bf16.msra.mxu1 %v13964_v1  ;;  %v14044_v1 = vld [vmem:[%s15298_s5 + $0x4c0] ss:$8 sps:$4 sm:$0xff]  }
 0x650   : > { %6923 = vmatpush1.bf16.msra.mxu0 %v13967_v28  ;;  %6605 = vmatprep.subr.bf16.mxu1 %v13973_v41  ;;  %v14047_v28 = vld [vmem:[%s15298_s5 + $0xcc0] ss:$8 sps:$4 sm:$0xff]   ;;  %v14052_v41 = vld [vmem:[%s15298_s5 + $0x4d4] ss:$8 sps:$4 sm:$0xff]  }
 0x651   : > { %6933 = vmatprep.subr.bf16.mxu0 %v13977_v53  ;;  %v14055_v53 = vld [vmem:[%s15298_s5 + $0xcd4] ss:$8 sps:$4 sm:$0xff]  }
 0x652   : > { %6597 = vmatmul.mubr.bf16.vlgmr.msra.gmra.mrb[0].mxu1 %v3343_v22  ;;  %v14058_v22 = vld [vmem:[%s15298_s5 + $0x4e4] ss:$8 sps:$4 sm:$0xff]  }
 0x653   : > { %6925 = vmatmul.mubr.bf16.vlgmr.msra.gmra.mrb[0].mxu0 %v3359_v60  ;;  %6606 = vmatpush1.bf16.msra.mxu1 %v13971_v17  ;;  %v14061_v60 = vld [vmem:[%s15298_s5 + $0xce4] ss:$8 sps:$4 sm:$0xff]   ;;  %v3203_v17 = vcombine.high %v15949_v12, %v15949_v12  ;;  %v14062_v12 = vld [vmem:[%s15298_s5 + $0x4f0] ss:$8 sps:$4 sm:$0xff]  }
 0x654   : > { %6934 = vmatpush1.bf16.msra.mxu0 %v13975_v2  ;;  %6607 = vmatprep.subr.bf16.mxu1 %v13980_v50  ;;  %v3271_v2 = vcombine.high %v15951_v63, %v15951_v63  ;;  %v14056_v50 = vld [vmem:[%s15298_s5 + $0x4e0] ss:$8 sps:$4 sm:$0xff]   ;;  %v14065_v63 = vld [vmem:[%s15298_s5 + $0xcf0] ss:$8 sps:$4 sm:$0xff]  }
 0x655   : > { %6935 = vmatprep.subr.bf16.mxu0 %v13983_v8  ;;  %6637 = vmatprep.mubr.bf16.mxu1 %v3346_v20  ;;  %v14059_v8 = vld [vmem:[%s15298_s5 + $0xce0] ss:$8 sps:$4 sm:$0xff]   ;;  %v14064_v20 = vld [vmem:[%s15298_s5 + $0x4f4] ss:$8 sps:$4 sm:$0xff]  }
 0x656   : > { %6965 = vmatprep.mubr.bf16.mxu0 %v3362_v36  ;;  %v14067_v36 = vld [vmem:[%s15298_s5 + $0xcf4] ss:$8 sps:$4 sm:$0xff]  }
 0x657   : > { %6608 = vmatpush1.bf16.msra.mxu1 %v13978_v59  ;;  %v16042_v59 = vrot.slane %v3203_v17, %v15685_v57  ;;  %v14134_v17 = vld [vmem:[%s15298_s5 + $0x5b0] ss:$8 sps:$4 sm:$0xff]  }
 0x658   : > { %6936 = vmatpush1.bf16.msra.mxu0 %v13981_v21  ;;  %6609 = vmatprep.subr.bf16.mxu1 %v13986_v43  ;;  %v16045_v21 = vrot.slane %v3271_v2, %v15685_v57  ;;  %v14070_v43 = vld [vmem:[%s15298_s5 + $0x504] ss:$8 sps:$4 sm:$0xff]   ;;  %v14137_v2 = vld [vmem:[%s15298_s5 + $0xdb0] ss:$8 sps:$4 sm:$0xff]  }
 0x659   : > { %6937 = vmatprep.subr.bf16.mxu0 %v13989_v46  ;;  %v14073_v46 = vld [vmem:[%s15298_s5 + $0xd04] ss:$8 sps:$4 sm:$0xff]  }
 0x65b   : > { %6610 = vmatpush1.bf16.msra.mxu1 %v13984_v51  ;;  %v3219_v51 = vcombine.high %v16042_v59, %v16042_v59 }
 0x65c   : > { %6938 = vmatpush1.bf16.msra.mxu0 %v13987_v55  ;;  %6611 = vmatprep.subr.bf16.mxu1 %v13992_v34  ;;  %v3287_v55 = vcombine.high %v16045_v21, %v16045_v21  ;;  %v3345_v34 = vpack.c.bf16 %v15959_v62, %v15959_v62  ;;  %v14074_v62 = vld [vmem:[%s15298_s5 + $0x510] ss:$8 sps:$4 sm:$0xff]  }
 0x65d   : > { %6939 = vmatprep.subr.bf16.mxu0 %v13995_v4  ;;  %v3361_v4 = vpack.c.bf16 %v15963_v0, %v15963_v0  ;;  %v14077_v0 = vld [vmem:[%s15298_s5 + $0xd10] ss:$8 sps:$4 sm:$0xff]  }
 0x65f   : > { %6612 = vmatpush1.bf16.msra.mxu1 %v13990_v48  ;;  %v14068_v48 = vld [vmem:[%s15298_s5 + $0x500] ss:$8 sps:$4 sm:$0xff]  }
 0x660   : > { %6940 = vmatpush1.bf16.msra.mxu0 %v13993_v39  ;;  %6613 = vmatprep.subr.bf16.mxu1 %v13998_v61  ;;  %v14071_v39 = vld [vmem:[%s15298_s5 + $0xd00] ss:$8 sps:$4 sm:$0xff]   ;;  %v14076_v61 = vld [vmem:[%s15298_s5 + $0x514] ss:$8 sps:$4 sm:$0xff]  }
 0x661   : > { %6941 = vmatprep.subr.bf16.mxu0 %v14001_v40  ;;  %v14079_v40 = vld [vmem:[%s15298_s5 + $0xd14] ss:$8 sps:$4 sm:$0xff]  }
 0x663   : > { %6614 = vmatpush1.bf16.msra.mxu1 %v13996_v42  ;;  %v3348_v42 = vpack.c.bf16 %v3219_v51, %v3219_v51  ;;  %v14154_v51 = vld [vmem:[%s15298_s5 + $0x5e4] ss:$8 sps:$4 sm:$0xff]  }
 0x664   : > { %6942 = vmatpush1.bf16.msra.mxu0 %v13999_v45  ;;  %6615 = vmatprep.subr.bf16.mxu1 %v14004_v29  ;;  %v3364_v45 = vpack.c.bf16 %v3287_v55, %v3287_v55  ;;  %v14082_v29 = vld [vmem:[%s15298_s5 + $0x524] ss:$8 sps:$4 sm:$0xff]  }
 0x665   : > { %6943 = vmatprep.subr.bf16.mxu0 %v14007_v26  ;;  %v14085_v26 = vld [vmem:[%s15298_s5 + $0xd24] ss:$8 sps:$4 sm:$0xff]  }
 0x666   : > { %v14157_v55 = vld [vmem:[%s15298_s5 + $0xde4] ss:$8 sps:$4 sm:$0xff]  }
 0x667   : > { %6616 = vmatpush1.bf16.msra.mxu1 %v14002_v49  ;;  %v14080_v49 = vld [vmem:[%s15298_s5 + $0x520] ss:$8 sps:$4 sm:$0xff]  }
 0x668   : > { %6944 = vmatpush1.bf16.msra.mxu0 %v14005_v52  ;;  %6617 = vmatprep.subr.bf16.mxu1 %v14010_v54  ;;  %v14083_v52 = vld [vmem:[%s15298_s5 + $0xd20] ss:$8 sps:$4 sm:$0xff]   ;;  %v14088_v54 = vld [vmem:[%s15298_s5 + $0x534] ss:$8 sps:$4 sm:$0xff]  }
 0x669   : > { %6945 = vmatprep.subr.bf16.mxu0 %v14013_v6  ;;  %v14091_v6 = vld [vmem:[%s15298_s5 + $0xd34] ss:$8 sps:$4 sm:$0xff]  }
 0x66b   : > { %6618 = vmatpush1.bf16.msra.mxu1 %v14008_v35  ;;  %v14086_v35 = vld [vmem:[%s15298_s5 + $0x530] ss:$8 sps:$4 sm:$0xff]  }
 0x66c   : > { %6946 = vmatpush1.bf16.msra.mxu0 %v14011_v13  ;;  %6619 = vmatprep.subr.bf16.mxu1 %v14016_v27  ;;  %v14089_v13 = vld [vmem:[%s15298_s5 + $0xd30] ss:$8 sps:$4 sm:$0xff]   ;;  %v14094_v27 = vld [vmem:[%s15298_s5 + $0x544] ss:$8 sps:$4 sm:$0xff]  }
 0x66d   : > { %6947 = vmatprep.subr.bf16.mxu0 %v14019_v15  ;;  %v14097_v15 = vld [vmem:[%s15298_s5 + $0xd44] ss:$8 sps:$4 sm:$0xff]  }
 0x66f   : > { %6620 = vmatpush1.bf16.msra.mxu1 %v14014_v14  ;;  %v14092_v14 = vld [vmem:[%s15298_s5 + $0x540] ss:$8 sps:$4 sm:$0xff]  }
 0x670   : > { %6948 = vmatpush1.bf16.msra.mxu0 %v14017_v18  ;;  %6621 = vmatprep.subr.bf16.mxu1 %v14022_v9  ;;  %v14095_v18 = vld [vmem:[%s15298_s5 + $0xd40] ss:$8 sps:$4 sm:$0xff]   ;;  %v14100_v9 = vld [vmem:[%s15298_s5 + $0x554] ss:$8 sps:$4 sm:$0xff]  }
 0x671   : > { %6949 = vmatprep.subr.bf16.mxu0 %v14025_v38  ;;  %v14103_v38 = vld [vmem:[%s15298_s5 + $0xd54] ss:$8 sps:$4 sm:$0xff]  }
 0x673   : > { %6622 = vmatpush1.bf16.msra.mxu1 %v14020_v19  ;;  %v14098_v19 = vld [vmem:[%s15298_s5 + $0x550] ss:$8 sps:$4 sm:$0xff]  }
 0x674   : > { %6950 = vmatpush1.bf16.msra.mxu0 %v14023_v7  ;;  %6623 = vmatprep.subr.bf16.mxu1 %v14028_v44  ;;  %v14101_v7 = vld [vmem:[%s15298_s5 + $0xd50] ss:$8 sps:$4 sm:$0xff]   ;;  %v14106_v44 = vld [vmem:[%s15298_s5 + $0x564] ss:$8 sps:$4 sm:$0xff]  }
 0x675   : > { %6951 = vmatprep.subr.bf16.mxu0 %v14031_v32  ;;  %v14109_v32 = vld [vmem:[%s15298_s5 + $0xd64] ss:$8 sps:$4 sm:$0xff]  }
 0x677   : > { %6624 = vmatpush1.bf16.msra.mxu1 %v14026_v5  ;;  %v14104_v5 = vld [vmem:[%s15298_s5 + $0x560] ss:$8 sps:$4 sm:$0xff]  }
 0x678   : > { %6952 = vmatpush1.bf16.msra.mxu0 %v14029_v11  ;;  %6625 = vmatprep.subr.bf16.mxu1 %v14034_v25  ;;  %v14107_v11 = vld [vmem:[%s15298_s5 + $0xd60] ss:$8 sps:$4 sm:$0xff]   ;;  %v14112_v25 = vld [vmem:[%s15298_s5 + $0x574] ss:$8 sps:$4 sm:$0xff]  }
 0x679   : > { %6953 = vmatprep.subr.bf16.mxu0 %v14037_v56  ;;  %v14115_v56 = vld [vmem:[%s15298_s5 + $0xd74] ss:$8 sps:$4 sm:$0xff]  }
 0x67b   : > { %6626 = vmatpush1.bf16.msra.mxu1 %v14032_v30  ;;  %v14110_v30 = vld [vmem:[%s15298_s5 + $0x570] ss:$8 sps:$4 sm:$0xff]  }
 0x67c   : > { %6954 = vmatpush1.bf16.msra.mxu0 %v14035_v31  ;;  %6627 = vmatprep.subr.bf16.mxu1 %v14040_v47  ;;  %v14113_v31 = vld [vmem:[%s15298_s5 + $0xd70] ss:$8 sps:$4 sm:$0xff]   ;;  %v14118_v47 = vld [vmem:[%s15298_s5 + $0x584] ss:$8 sps:$4 sm:$0xff]  }
 0x67d   : > { %6955 = vmatprep.subr.bf16.mxu0 %v14043_v23  ;;  %v14121_v23 = vld [vmem:[%s15298_s5 + $0xd84] ss:$8 sps:$4 sm:$0xff]  }
 0x67f   : > { %6628 = vmatpush1.bf16.msra.mxu1 %v14038_v24  ;;  %v14116_v24 = vld [vmem:[%s15298_s5 + $0x580] ss:$8 sps:$4 sm:$0xff]  }
 0x680   : > { %6956 = vmatpush1.bf16.msra.mxu0 %v14041_v16  ;;  %6629 = vmatprep.subr.bf16.mxu1 %v14046_v33  ;;  %v14119_v16 = vld [vmem:[%s15298_s5 + $0xd80] ss:$8 sps:$4 sm:$0xff]   ;;  %v14124_v33 = vld [vmem:[%s15298_s5 + $0x594] ss:$8 sps:$4 sm:$0xff]  }
 0x681   : > { %6957 = vmatprep.subr.bf16.mxu0 %v14049_v58  ;;  %v14127_v58 = vld [vmem:[%s15298_s5 + $0xd94] ss:$8 sps:$4 sm:$0xff]  }
 0x683   : > { %6630 = vmatpush1.bf16.msra.mxu1 %v14044_v1  ;;  %v14122_v1 = vld [vmem:[%s15298_s5 + $0x590] ss:$8 sps:$4 sm:$0xff]  }
 0x684   : > { %6958 = vmatpush1.bf16.msra.mxu0 %v14047_v28  ;;  %6631 = vmatprep.subr.bf16.mxu1 %v14052_v41  ;;  %v14125_v28 = vld [vmem:[%s15298_s5 + $0xd90] ss:$8 sps:$4 sm:$0xff]   ;;  %v14130_v41 = vld [vmem:[%s15298_s5 + $0x5a4] ss:$8 sps:$4 sm:$0xff]  }
 0x685   : > { %6959 = vmatprep.subr.bf16.mxu0 %v14055_v53  ;;  %v14133_v53 = vld [vmem:[%s15298_s5 + $0xda4] ss:$8 sps:$4 sm:$0xff]  }
 0x687   : > { %6632 = vmatpush1.bf16.msra.mxu1 %v14050_v3  ;;  %v14128_v3 = vld [vmem:[%s15298_s5 + $0x5a0] ss:$8 sps:$4 sm:$0xff]  }
 0x688   : > { %6960 = vmatpush1.bf16.msra.mxu0 %v14053_v37  ;;  %6633 = vmatprep.subr.bf16.mxu1 %v14058_v22  ;;  %v14131_v37 = vld [vmem:[%s15298_s5 + $0xda0] ss:$8 sps:$4 sm:$0xff]   ;;  %v14136_v22 = vld [vmem:[%s15298_s5 + $0x5b4] ss:$8 sps:$4 sm:$0xff]  }
 0x689   : > { %6961 = vmatprep.subr.bf16.mxu0 %v14061_v60  ;;  %v14139_v60 = vld [vmem:[%s15298_s5 + $0xdb4] ss:$8 sps:$4 sm:$0xff]  }
 0x68b   : > { %6634 = vmatpush1.bf16.msra.mxu1 %v14056_v50  ;;  %v14142_v50 = vld [vmem:[%s15298_s5 + $0x5c4] ss:$8 sps:$4 sm:$0xff]  }
 0x68c   : > { %6962 = vmatpush1.bf16.msra.mxu0 %v14059_v8  ;;  %6635 = vmatprep.subr.bf16.mxu1 %v14064_v20  ;;  %v14145_v8 = vld [vmem:[%s15298_s5 + $0xdc4] ss:$8 sps:$4 sm:$0xff]   ;;  %v14140_v20 = vld [vmem:[%s15298_s5 + $0x5c0] ss:$8 sps:$4 sm:$0xff]  }
 0x68d   : > { %6963 = vmatprep.subr.bf16.mxu0 %v14067_v36  ;;  %v14143_v36 = vld [vmem:[%s15298_s5 + $0xdc0] ss:$8 sps:$4 sm:$0xff]  }
 0x68f   : > { %6636 = vmatpush1.bf16.msra.mxu1 %v14062_v12  ;;  %v14148_v12 = vld [vmem:[%s15298_s5 + $0x5d4] ss:$8 sps:$4 sm:$0xff]  }
 0x690   : > { %6964 = vmatpush1.bf16.msra.mxu0 %v14065_v63  ;;  %6646 = vmatprep.subr.bf16.mxu1 %v14070_v43  ;;  %v14151_v63 = vld [vmem:[%s15298_s5 + $0xdd4] ss:$8 sps:$4 sm:$0xff]   ;;  %v14146_v43 = vld [vmem:[%s15298_s5 + $0x5d0] ss:$8 sps:$4 sm:$0xff]  }
 0x691   : > { %6974 = vmatprep.subr.bf16.mxu0 %v14073_v46  ;;  %v14149_v46 = vld [vmem:[%s15298_s5 + $0xdd0] ss:$8 sps:$4 sm:$0xff]  }
 0x692   : > { %6638 = vmatmul.mubr.bf16.vlgmr.msra.gmra.mrb[0].mxu1 %v3345_v34  ;;  %v16115_v34 = vld [vmem:[#allocation3 + $0x18] sm:$0xff] }
 0x693   : > { %6966 = vmatmul.mubr.bf16.vlgmr.msra.gmra.mrb[0].mxu0 %v3361_v4  ;;  %6647 = vmatpush1.bf16.msra.mxu1 %v14068_v48  ;;  %v16117_v4 = vld [vmem:[#allocation3 + $0x38] sm:$0xff] }
 0x694   : > { %6975 = vmatpush1.bf16.msra.mxu0 %v14071_v39  ;;  %6648 = vmatprep.subr.bf16.mxu1 %v14076_v61  ;;  %v14152_v48 = vld [vmem:[%s15298_s5 + $0x5e0] ss:$8 sps:$4 sm:$0xff]   ;;  %v14160_v61 = vld [vmem:[%s15298_s5 + $0x5f4] ss:$8 sps:$4 sm:$0xff]  }
 0x695   : > { %6976 = vmatprep.subr.bf16.mxu0 %v14079_v40  ;;  %6678 = vmatprep.mubr.bf16.mxu1 %v3348_v42  ;;  %v14155_v39 = vld [vmem:[%s15298_s5 + $0xde0] ss:$8 sps:$4 sm:$0xff]   ;;  %v14163_v40 = vld [vmem:[%s15298_s5 + $0xdf4] ss:$8 sps:$4 sm:$0xff]   ;;  %v16125_v42 = vrot.slane %v16115_v34, %v15685_v57 }
 0x696   : > { %7006 = vmatprep.mubr.bf16.mxu0 %v3364_v45  ;;  %v16129_v45 = vrot.slane %v16117_v4, %v15685_v57 }
 0x697   : > { %6649 = vmatpush1.bf16.msra.mxu1 %v14074_v62  ;;  %v14158_v62 = vld [vmem:[%s15298_s5 + $0x5f0] ss:$8 sps:$4 sm:$0xff]  }
 0x698   : > { %6977 = vmatpush1.bf16.msra.mxu0 %v14077_v0  ;;  %6650 = vmatprep.subr.bf16.mxu1 %v14082_v29  ;;  %v14161_v0 = vld [vmem:[%s15298_s5 + $0xdf0] ss:$8 sps:$4 sm:$0xff]   ;;  %v14167_v29 = vld [vmem:[%s15298_s5 + $0x604] ss:$8 sps:$4 sm:$0xff]  }
 0x699   : > { %6978 = vmatprep.subr.bf16.mxu0 %v14085_v26  ;;  %v14171_v26 = vld [vmem:[%s15298_s5 + $0xe04] ss:$8 sps:$4 sm:$0xff]  }
 0x69b   : > { %6651 = vmatpush1.bf16.msra.mxu1 %v14080_v49  ;;  %v3235_v49 = vcombine.high %v16125_v42, %v16125_v42 }
 0x69c   : > { %6979 = vmatpush1.bf16.msra.mxu0 %v14083_v52  ;;  %6652 = vmatprep.subr.bf16.mxu1 %v14088_v54  ;;  %v3303_v52 = vcombine.high %v16129_v45, %v16129_v45  ;;  %v3347_v54 = vpack.c.bf16 %v16042_v59, %v16042_v59  ;;  %v14172_v59 = vld [vmem:[%s15298_s5 + $0x610] ss:$8 sps:$4 sm:$0xff]  }
 0x69d   : > { %6980 = vmatprep.subr.bf16.mxu0 %v14091_v6  ;;  %v3363_v6 = vpack.c.bf16 %v16045_v21, %v16045_v21  ;;  %v14175_v21 = vld [vmem:[%s15298_s5 + $0xe10] ss:$8 sps:$4 sm:$0xff]  }
 0x69f   : > { %6653 = vmatpush1.bf16.msra.mxu1 %v14086_v35  ;;  %v14165_v35 = vld [vmem:[%s15298_s5 + $0x600] ss:$8 sps:$4 sm:$0xff]  }
 0x6a0   : > { %6981 = vmatpush1.bf16.msra.mxu0 %v14089_v13  ;;  %6654 = vmatprep.subr.bf16.mxu1 %v14094_v27  ;;  %v14169_v13 = vld [vmem:[%s15298_s5 + $0xe00] ss:$8 sps:$4 sm:$0xff]   ;;  %v14174_v27 = vld [vmem:[%s15298_s5 + $0x614] ss:$8 sps:$4 sm:$0xff]  }
 0x6a1   : > { %6982 = vmatprep.subr.bf16.mxu0 %v14097_v15  ;;  %v14177_v15 = vld [vmem:[%s15298_s5 + $0xe14] ss:$8 sps:$4 sm:$0xff]  }
 0x6a3   : > { %6655 = vmatpush1.bf16.msra.mxu1 %v14092_v14  ;;  %v3350_v14 = vpack.c.bf16 %v3235_v49, %v3235_v49  ;;  %v14244_v49 = vld [vmem:[%s15298_s5 + $0x6d0] ss:$8 sps:$4 sm:$0xff]  }
 0x6a4   : > { %6983 = vmatpush1.bf16.msra.mxu0 %v14095_v18  ;;  %6656 = vmatprep.subr.bf16.mxu1 %v14100_v9  ;;  %v3366_v18 = vpack.c.bf16 %v3303_v52, %v3303_v52  ;;  %v14180_v9 = vld [vmem:[%s15298_s5 + $0x624] ss:$8 sps:$4 sm:$0xff]   ;;  %v14247_v52 = vld [vmem:[%s15298_s5 + $0xed0] ss:$8 sps:$4 sm:$0xff]  }
 0x6a5   : > { %6984 = vmatprep.subr.bf16.mxu0 %v14103_v38  ;;  %v14183_v38 = vld [vmem:[%s15298_s5 + $0xe24] ss:$8 sps:$4 sm:$0xff]  }
 0x6a7   : > { %6657 = vmatpush1.bf16.msra.mxu1 %v14098_v19  ;;  %v14178_v19 = vld [vmem:[%s15298_s5 + $0x620] ss:$8 sps:$4 sm:$0xff]  }
 0x6a8   : > { %6985 = vmatpush1.bf16.msra.mxu0 %v14101_v7  ;;  %6658 = vmatprep.subr.bf16.mxu1 %v14106_v44  ;;  %v14181_v7 = vld [vmem:[%s15298_s5 + $0xe20] ss:$8 sps:$4 sm:$0xff]   ;;  %v14186_v44 = vld [vmem:[%s15298_s5 + $0x634] ss:$8 sps:$4 sm:$0xff]  }
 0x6a9   : > { %6986 = vmatprep.subr.bf16.mxu0 %v14109_v32  ;;  %v14189_v32 = vld [vmem:[%s15298_s5 + $0xe34] ss:$8 sps:$4 sm:$0xff]  }
 0x6ab   : > { %6659 = vmatpush1.bf16.msra.mxu1 %v14104_v5  ;;  %v14184_v5 = vld [vmem:[%s15298_s5 + $0x630] ss:$8 sps:$4 sm:$0xff]  }
 0x6ac   : > { %6987 = vmatpush1.bf16.msra.mxu0 %v14107_v11  ;;  %6660 = vmatprep.subr.bf16.mxu1 %v14112_v25  ;;  %v14187_v11 = vld [vmem:[%s15298_s5 + $0xe30] ss:$8 sps:$4 sm:$0xff]   ;;  %v14192_v25 = vld [vmem:[%s15298_s5 + $0x644] ss:$8 sps:$4 sm:$0xff]  }
 0x6ad   : > { %6988 = vmatprep.subr.bf16.mxu0 %v14115_v56  ;;  %v14195_v56 = vld [vmem:[%s15298_s5 + $0xe44] ss:$8 sps:$4 sm:$0xff]  }
 0x6af   : > { %6661 = vmatpush1.bf16.msra.mxu1 %v14110_v30  ;;  %v14190_v30 = vld [vmem:[%s15298_s5 + $0x640] ss:$8 sps:$4 sm:$0xff]  }
 0x6b0   : > { %6989 = vmatpush1.bf16.msra.mxu0 %v14113_v31  ;;  %6662 = vmatprep.subr.bf16.mxu1 %v14118_v47  ;;  %v14193_v31 = vld [vmem:[%s15298_s5 + $0xe40] ss:$8 sps:$4 sm:$0xff]   ;;  %v14198_v47 = vld [vmem:[%s15298_s5 + $0x654] ss:$8 sps:$4 sm:$0xff]  }
 0x6b1   : > { %6990 = vmatprep.subr.bf16.mxu0 %v14121_v23  ;;  %v14201_v23 = vld [vmem:[%s15298_s5 + $0xe54] ss:$8 sps:$4 sm:$0xff]  }
 0x6b3   : > { %6663 = vmatpush1.bf16.msra.mxu1 %v14116_v24  ;;  %v14196_v24 = vld [vmem:[%s15298_s5 + $0x650] ss:$8 sps:$4 sm:$0xff]  }
 0x6b4   : > { %6991 = vmatpush1.bf16.msra.mxu0 %v14119_v16  ;;  %6664 = vmatprep.subr.bf16.mxu1 %v14124_v33  ;;  %v14199_v16 = vld [vmem:[%s15298_s5 + $0xe50] ss:$8 sps:$4 sm:$0xff]   ;;  %v14204_v33 = vld [vmem:[%s15298_s5 + $0x664] ss:$8 sps:$4 sm:$0xff]  }
 0x6b5   : > { %6992 = vmatprep.subr.bf16.mxu0 %v14127_v58  ;;  %v14207_v58 = vld [vmem:[%s15298_s5 + $0xe64] ss:$8 sps:$4 sm:$0xff]  }
 0x6b7   : > { %6665 = vmatpush1.bf16.msra.mxu1 %v14122_v1  ;;  %v14202_v1 = vld [vmem:[%s15298_s5 + $0x660] ss:$8 sps:$4 sm:$0xff]  }
 0x6b8   : > { %6993 = vmatpush1.bf16.msra.mxu0 %v14125_v28  ;;  %6666 = vmatprep.subr.bf16.mxu1 %v14130_v41  ;;  %v14205_v28 = vld [vmem:[%s15298_s5 + $0xe60] ss:$8 sps:$4 sm:$0xff]   ;;  %v14210_v41 = vld [vmem:[%s15298_s5 + $0x674] ss:$8 sps:$4 sm:$0xff]  }
 0x6b9   : > { %6994 = vmatprep.subr.bf16.mxu0 %v14133_v53  ;;  %v14213_v53 = vld [vmem:[%s15298_s5 + $0xe74] ss:$8 sps:$4 sm:$0xff]  }
 0x6bb   : > { %6667 = vmatpush1.bf16.msra.mxu1 %v14128_v3  ;;  %v14208_v3 = vld [vmem:[%s15298_s5 + $0x670] ss:$8 sps:$4 sm:$0xff]  }
 0x6bc   : > { %6995 = vmatpush1.bf16.msra.mxu0 %v14131_v37  ;;  %6668 = vmatprep.subr.bf16.mxu1 %v14136_v22  ;;  %v14211_v37 = vld [vmem:[%s15298_s5 + $0xe70] ss:$8 sps:$4 sm:$0xff]   ;;  %v14216_v22 = vld [vmem:[%s15298_s5 + $0x684] ss:$8 sps:$4 sm:$0xff]  }
 0x6bd   : > { %6996 = vmatprep.subr.bf16.mxu0 %v14139_v60  ;;  %v14219_v60 = vld [vmem:[%s15298_s5 + $0xe84] ss:$8 sps:$4 sm:$0xff]  }
 0x6bf   : > { %6669 = vmatpush1.bf16.msra.mxu1 %v14134_v17  ;;  %v14214_v17 = vld [vmem:[%s15298_s5 + $0x680] ss:$8 sps:$4 sm:$0xff]  }
 0x6c0   : > { %6997 = vmatpush1.bf16.msra.mxu0 %v14137_v2  ;;  %6670 = vmatprep.subr.bf16.mxu1 %v14142_v50  ;;  %v14217_v2 = vld [vmem:[%s15298_s5 + $0xe80] ss:$8 sps:$4 sm:$0xff]   ;;  %v14222_v50 = vld [vmem:[%s15298_s5 + $0x694] ss:$8 sps:$4 sm:$0xff]  }
 0x6c1   : > { %6998 = vmatprep.subr.bf16.mxu0 %v14145_v8  ;;  %v14225_v8 = vld [vmem:[%s15298_s5 + $0xe94] ss:$8 sps:$4 sm:$0xff]  }
 0x6c3   : > { %6671 = vmatpush1.bf16.msra.mxu1 %v14140_v20  ;;  %v14220_v20 = vld [vmem:[%s15298_s5 + $0x690] ss:$8 sps:$4 sm:$0xff]  }
 0x6c4   : > { %6999 = vmatpush1.bf16.msra.mxu0 %v14143_v36  ;;  %6672 = vmatprep.subr.bf16.mxu1 %v14148_v12  ;;  %v14223_v36 = vld [vmem:[%s15298_s5 + $0xe90] ss:$8 sps:$4 sm:$0xff]   ;;  %v14228_v12 = vld [vmem:[%s15298_s5 + $0x6a4] ss:$8 sps:$4 sm:$0xff]  }
 0x6c5   : > { %7000 = vmatprep.subr.bf16.mxu0 %v14151_v63  ;;  %v14231_v63 = vld [vmem:[%s15298_s5 + $0xea4] ss:$8 sps:$4 sm:$0xff]  }
 0x6c7   : > { %6673 = vmatpush1.bf16.msra.mxu1 %v14146_v43  ;;  %v14226_v43 = vld [vmem:[%s15298_s5 + $0x6a0] ss:$8 sps:$4 sm:$0xff]  }
 0x6c8   : > { %7001 = vmatpush1.bf16.msra.mxu0 %v14149_v46  ;;  %6674 = vmatprep.subr.bf16.mxu1 %v14154_v51  ;;  %v14229_v46 = vld [vmem:[%s15298_s5 + $0xea0] ss:$8 sps:$4 sm:$0xff]   ;;  %v14234_v51 = vld [vmem:[%s15298_s5 + $0x6b4] ss:$8 sps:$4 sm:$0xff]  }
 0x6c9   : > { %7002 = vmatprep.subr.bf16.mxu0 %v14157_v55  ;;  %v14237_v55 = vld [vmem:[%s15298_s5 + $0xeb4] ss:$8 sps:$4 sm:$0xff]  }
 0x6cb   : > { %6675 = vmatpush1.bf16.msra.mxu1 %v14152_v48  ;;  %v14232_v48 = vld [vmem:[%s15298_s5 + $0x6b0] ss:$8 sps:$4 sm:$0xff]  }
 0x6cc   : > { %7003 = vmatpush1.bf16.msra.mxu0 %v14155_v39  ;;  %6676 = vmatprep.subr.bf16.mxu1 %v14160_v61  ;;  %v14235_v39 = vld [vmem:[%s15298_s5 + $0xeb0] ss:$8 sps:$4 sm:$0xff]   ;;  %v14240_v61 = vld [vmem:[%s15298_s5 + $0x6c4] ss:$8 sps:$4 sm:$0xff]  }
 0x6cd   : > { %7004 = vmatprep.subr.bf16.mxu0 %v14163_v40  ;;  %v14243_v40 = vld [vmem:[%s15298_s5 + $0xec4] ss:$8 sps:$4 sm:$0xff]  }
 0x6cf   : > { %6677 = vmatpush1.bf16.msra.mxu1 %v14158_v62  ;;  %v14238_v62 = vld [vmem:[%s15298_s5 + $0x6c0] ss:$8 sps:$4 sm:$0xff]  }
 0x6d0   : > { %7005 = vmatpush1.bf16.msra.mxu0 %v14161_v0  ;;  %6687 = vmatprep.subr.bf16.mxu1 %v14167_v29  ;;  %v14241_v0 = vld [vmem:[%s15298_s5 + $0xec0] ss:$8 sps:$4 sm:$0xff]   ;;  %v14246_v29 = vld [vmem:[%s15298_s5 + $0x6d4] ss:$8 sps:$4 sm:$0xff]  }
 0x6d1   : > { %7015 = vmatprep.subr.bf16.mxu0 %v14171_v26  ;;  %v14249_v26 = vld [vmem:[%s15298_s5 + $0xed4] ss:$8 sps:$4 sm:$0xff]  }
 0x6d2   : > { %6679 = vmatmul.mubr.bf16.vlgmr.msra.gmra.mrb[0].mxu1 %v3347_v54  ;;  %v14252_v54 = vld [vmem:[%s15298_s5 + $0x6e4] ss:$8 sps:$4 sm:$0xff]  }
 0x6d3   : > { %7007 = vmatmul.mubr.bf16.vlgmr.msra.gmra.mrb[0].mxu0 %v3363_v6  ;;  %6688 = vmatpush1.bf16.msra.mxu1 %v14165_v35  ;;  %v14255_v6 = vld [vmem:[%s15298_s5 + $0xee4] ss:$8 sps:$4 sm:$0xff]   ;;  %v3220_v35 = vcombine.high %v16115_v34, %v16115_v34  ;;  %v14256_v34 = vld [vmem:[%s15298_s5 + $0x6f0] ss:$8 sps:$4 sm:$0xff]  }
 0x6d4   : > { %7016 = vmatpush1.bf16.msra.mxu0 %v14169_v13  ;;  %6689 = vmatprep.subr.bf16.mxu1 %v14174_v27  ;;  %v3288_v13 = vcombine.high %v16117_v4, %v16117_v4  ;;  %v14250_v27 = vld [vmem:[%s15298_s5 + $0x6e0] ss:$8 sps:$4 sm:$0xff]   ;;  %v14259_v4 = vld [vmem:[%s15298_s5 + $0xef0] ss:$8 sps:$4 sm:$0xff]  }
 0x6d5   : > { %7017 = vmatprep.subr.bf16.mxu0 %v14177_v15  ;;  %6719 = vmatprep.mubr.bf16.mxu1 %v3350_v14  ;;  %v14253_v15 = vld [vmem:[%s15298_s5 + $0xee0] ss:$8 sps:$4 sm:$0xff]   ;;  %v14258_v14 = vld [vmem:[%s15298_s5 + $0x6f4] ss:$8 sps:$4 sm:$0xff]  }
 0x6d6   : > { %7047 = vmatprep.mubr.bf16.mxu0 %v3366_v18  ;;  %v14261_v18 = vld [vmem:[%s15298_s5 + $0xef4] ss:$8 sps:$4 sm:$0xff]  }
 0x6d7   : > { %6690 = vmatpush1.bf16.msra.mxu1 %v14172_v59  ;;  %v16208_v59 = vrot.slane %v3220_v35, %v15685_v57  ;;  %v14328_v35 = vld [vmem:[%s15298_s5 + $0x7b0] ss:$8 sps:$4 sm:$0xff]  }
 0x6d8   : > { %7018 = vmatpush1.bf16.msra.mxu0 %v14175_v21  ;;  %6691 = vmatprep.subr.bf16.mxu1 %v14180_v9  ;;  %v16211_v21 = vrot.slane %v3288_v13, %v15685_v57  ;;  %v14264_v9 = vld [vmem:[%s15298_s5 + $0x704] ss:$8 sps:$4 sm:$0xff]   ;;  %v14331_v13 = vld [vmem:[%s15298_s5 + $0xfb0] ss:$8 sps:$4 sm:$0xff]  }
 0x6d9   : > { %7019 = vmatprep.subr.bf16.mxu0 %v14183_v38  ;;  %v14267_v38 = vld [vmem:[%s15298_s5 + $0xf04] ss:$8 sps:$4 sm:$0xff]  }
 0x6db   : > { %6692 = vmatpush1.bf16.msra.mxu1 %v14178_v19  ;;  %v3236_v19 = vcombine.high %v16208_v59, %v16208_v59 }
 0x6dc   : > { %7020 = vmatpush1.bf16.msra.mxu0 %v14181_v7  ;;  %6693 = vmatprep.subr.bf16.mxu1 %v14186_v44  ;;  %v3304_v7 = vcombine.high %v16211_v21, %v16211_v21  ;;  %v3349_v44 = vpack.c.bf16 %v16125_v42, %v16125_v42  ;;  %v14268_v42 = vld [vmem:[%s15298_s5 + $0x710] ss:$8 sps:$4 sm:$0xff]  }
 0x6dd   : > { %7021 = vmatprep.subr.bf16.mxu0 %v14189_v32  ;;  %v3365_v32 = vpack.c.bf16 %v16129_v45, %v16129_v45  ;;  %v14271_v45 = vld [vmem:[%s15298_s5 + $0xf10] ss:$8 sps:$4 sm:$0xff]  }
 0x6df   : > { %6694 = vmatpush1.bf16.msra.mxu1 %v14184_v5  ;;  %v14262_v5 = vld [vmem:[%s15298_s5 + $0x700] ss:$8 sps:$4 sm:$0xff]  }
 0x6e0   : > { %7022 = vmatpush1.bf16.msra.mxu0 %v14187_v11  ;;  %6695 = vmatprep.subr.bf16.mxu1 %v14192_v25  ;;  %v14265_v11 = vld [vmem:[%s15298_s5 + $0xf00] ss:$8 sps:$4 sm:$0xff]   ;;  %v14270_v25 = vld [vmem:[%s15298_s5 + $0x714] ss:$8 sps:$4 sm:$0xff]  }
 0x6e1   : > { %7023 = vmatprep.subr.bf16.mxu0 %v14195_v56  ;;  %v14273_v56 = vld [vmem:[%s15298_s5 + $0xf14] ss:$8 sps:$4 sm:$0xff]  }
 0x6e3   : > { %6696 = vmatpush1.bf16.msra.mxu1 %v14190_v30  ;;  %v3352_v30 = vpack.c.bf16 %v3236_v19, %v3236_v19  ;;  %v14348_v19 = vld [vmem:[%s15298_s5 + $0x7e4] ss:$8 sps:$4 sm:$0xff]  }
 0x6e4   : > { %7024 = vmatpush1.bf16.msra.mxu0 %v14193_v31  ;;  %6697 = vmatprep.subr.bf16.mxu1 %v14198_v47  ;;  %v3368_v31 = vpack.c.bf16 %v3304_v7, %v3304_v7  ;;  %v14276_v47 = vld [vmem:[%s15298_s5 + $0x724] ss:$8 sps:$4 sm:$0xff]  }
 0x6e5   : > { %7025 = vmatprep.subr.bf16.mxu0 %v14201_v23  ;;  %v14279_v23 = vld [vmem:[%s15298_s5 + $0xf24] ss:$8 sps:$4 sm:$0xff]  }
 0x6e6   : > { %v14351_v7 = vld [vmem:[%s15298_s5 + $0xfe4] ss:$8 sps:$4 sm:$0xff]  }
 0x6e7   : > { %6698 = vmatpush1.bf16.msra.mxu1 %v14196_v24  ;;  %v14274_v24 = vld [vmem:[%s15298_s5 + $0x720] ss:$8 sps:$4 sm:$0xff]  }
 0x6e8   : > { %7026 = vmatpush1.bf16.msra.mxu0 %v14199_v16  ;;  %6699 = vmatprep.subr.bf16.mxu1 %v14204_v33  ;;  %v14277_v16 = vld [vmem:[%s15298_s5 + $0xf20] ss:$8 sps:$4 sm:$0xff]   ;;  %v14282_v33 = vld [vmem:[%s15298_s5 + $0x734] ss:$8 sps:$4 sm:$0xff]  }
 0x6e9   : > { %7027 = vmatprep.subr.bf16.mxu0 %v14207_v58  ;;  %v14285_v58 = vld [vmem:[%s15298_s5 + $0xf34] ss:$8 sps:$4 sm:$0xff]  }
 0x6eb   : > { %6700 = vmatpush1.bf16.msra.mxu1 %v14202_v1  ;;  %v14280_v1 = vld [vmem:[%s15298_s5 + $0x730] ss:$8 sps:$4 sm:$0xff]  }
 0x6ec   : > { %7028 = vmatpush1.bf16.msra.mxu0 %v14205_v28  ;;  %6701 = vmatprep.subr.bf16.mxu1 %v14210_v41  ;;  %v14283_v28 = vld [vmem:[%s15298_s5 + $0xf30] ss:$8 sps:$4 sm:$0xff]   ;;  %v14288_v41 = vld [vmem:[%s15298_s5 + $0x744] ss:$8 sps:$4 sm:$0xff]  }
 0x6ed   : > { %7029 = vmatprep.subr.bf16.mxu0 %v14213_v53  ;;  %v14291_v53 = vld [vmem:[%s15298_s5 + $0xf44] ss:$8 sps:$4 sm:$0xff]  }
 0x6ef   : > { %6702 = vmatpush1.bf16.msra.mxu1 %v14208_v3  ;;  %v14286_v3 = vld [vmem:[%s15298_s5 + $0x740] ss:$8 sps:$4 sm:$0xff]  }
 0x6f0   : > { %7030 = vmatpush1.bf16.msra.mxu0 %v14211_v37  ;;  %6703 = vmatprep.subr.bf16.mxu1 %v14216_v22  ;;  %v14289_v37 = vld [vmem:[%s15298_s5 + $0xf40] ss:$8 sps:$4 sm:$0xff]   ;;  %v14294_v22 = vld [vmem:[%s15298_s5 + $0x754] ss:$8 sps:$4 sm:$0xff]  }
 0x6f1   : > { %7031 = vmatprep.subr.bf16.mxu0 %v14219_v60  ;;  %v14297_v60 = vld [vmem:[%s15298_s5 + $0xf54] ss:$8 sps:$4 sm:$0xff]  }
 0x6f3   : > { %6704 = vmatpush1.bf16.msra.mxu1 %v14214_v17  ;;  %v14292_v17 = vld [vmem:[%s15298_s5 + $0x750] ss:$8 sps:$4 sm:$0xff]  }
 0x6f4   : > { %7032 = vmatpush1.bf16.msra.mxu0 %v14217_v2  ;;  %6705 = vmatprep.subr.bf16.mxu1 %v14222_v50  ;;  %v14295_v2 = vld [vmem:[%s15298_s5 + $0xf50] ss:$8 sps:$4 sm:$0xff]   ;;  %v14300_v50 = vld [vmem:[%s15298_s5 + $0x764] ss:$8 sps:$4 sm:$0xff]  }
 0x6f5   : > { %7033 = vmatprep.subr.bf16.mxu0 %v14225_v8  ;;  %v14303_v8 = vld [vmem:[%s15298_s5 + $0xf64] ss:$8 sps:$4 sm:$0xff]  }
 0x6f7   : > { %6706 = vmatpush1.bf16.msra.mxu1 %v14220_v20  ;;  %v14298_v20 = vld [vmem:[%s15298_s5 + $0x760] ss:$8 sps:$4 sm:$0xff]  }
 0x6f8   : > { %7034 = vmatpush1.bf16.msra.mxu0 %v14223_v36  ;;  %6707 = vmatprep.subr.bf16.mxu1 %v14228_v12  ;;  %v14301_v36 = vld [vmem:[%s15298_s5 + $0xf60] ss:$8 sps:$4 sm:$0xff]   ;;  %v14306_v12 = vld [vmem:[%s15298_s5 + $0x774] ss:$8 sps:$4 sm:$0xff]  }
 0x6f9   : > { %7035 = vmatprep.subr.bf16.mxu0 %v14231_v63  ;;  %v14309_v63 = vld [vmem:[%s15298_s5 + $0xf74] ss:$8 sps:$4 sm:$0xff]  }
 0x6fb   : > { %6708 = vmatpush1.bf16.msra.mxu1 %v14226_v43  ;;  %v14304_v43 = vld [vmem:[%s15298_s5 + $0x770] ss:$8 sps:$4 sm:$0xff]  }
 0x6fc   : > { %7036 = vmatpush1.bf16.msra.mxu0 %v14229_v46  ;;  %6709 = vmatprep.subr.bf16.mxu1 %v14234_v51  ;;  %v14307_v46 = vld [vmem:[%s15298_s5 + $0xf70] ss:$8 sps:$4 sm:$0xff]   ;;  %v14312_v51 = vld [vmem:[%s15298_s5 + $0x784] ss:$8 sps:$4 sm:$0xff]  }
 0x6fd   : > { %7037 = vmatprep.subr.bf16.mxu0 %v14237_v55  ;;  %v14315_v55 = vld [vmem:[%s15298_s5 + $0xf84] ss:$8 sps:$4 sm:$0xff]  }
 0x6ff   : > { %6710 = vmatpush1.bf16.msra.mxu1 %v14232_v48  ;;  %v14310_v48 = vld [vmem:[%s15298_s5 + $0x780] ss:$8 sps:$4 sm:$0xff]  }
 0x700   : > { %7038 = vmatpush1.bf16.msra.mxu0 %v14235_v39  ;;  %6711 = vmatprep.subr.bf16.mxu1 %v14240_v61  ;;  %v14313_v39 = vld [vmem:[%s15298_s5 + $0xf80] ss:$8 sps:$4 sm:$0xff]   ;;  %v14318_v61 = vld [vmem:[%s15298_s5 + $0x794] ss:$8 sps:$4 sm:$0xff]  }
 0x701   : > { %7039 = vmatprep.subr.bf16.mxu0 %v14243_v40  ;;  %v14321_v40 = vld [vmem:[%s15298_s5 + $0xf94] ss:$8 sps:$4 sm:$0xff]  }
 0x703   : > { %6712 = vmatpush1.bf16.msra.mxu1 %v14238_v62  ;;  %v14316_v62 = vld [vmem:[%s15298_s5 + $0x790] ss:$8 sps:$4 sm:$0xff]  }
 0x704   : > { %7040 = vmatpush1.bf16.msra.mxu0 %v14241_v0  ;;  %6713 = vmatprep.subr.bf16.mxu1 %v14246_v29  ;;  %v14319_v0 = vld [vmem:[%s15298_s5 + $0xf90] ss:$8 sps:$4 sm:$0xff]   ;;  %v14324_v29 = vld [vmem:[%s15298_s5 + $0x7a4] ss:$8 sps:$4 sm:$0xff]  }
 0x705   : > { %7041 = vmatprep.subr.bf16.mxu0 %v14249_v26  ;;  %v14327_v26 = vld [vmem:[%s15298_s5 + $0xfa4] ss:$8 sps:$4 sm:$0xff]  }
 0x707   : > { %6714 = vmatpush1.bf16.msra.mxu1 %v14244_v49  ;;  %v14322_v49 = vld [vmem:[%s15298_s5 + $0x7a0] ss:$8 sps:$4 sm:$0xff]  }
 0x708   : > { %7042 = vmatpush1.bf16.msra.mxu0 %v14247_v52  ;;  %6715 = vmatprep.subr.bf16.mxu1 %v14252_v54  ;;  %v14325_v52 = vld [vmem:[%s15298_s5 + $0xfa0] ss:$8 sps:$4 sm:$0xff]   ;;  %v14330_v54 = vld [vmem:[%s15298_s5 + $0x7b4] ss:$8 sps:$4 sm:$0xff]  }
 0x709   : > { %7043 = vmatprep.subr.bf16.mxu0 %v14255_v6  ;;  %v14333_v6 = vld [vmem:[%s15298_s5 + $0xfb4] ss:$8 sps:$4 sm:$0xff]  }
 0x70b   : > { %6716 = vmatpush1.bf16.msra.mxu1 %v14250_v27  ;;  %v14336_v27 = vld [vmem:[%s15298_s5 + $0x7c4] ss:$8 sps:$4 sm:$0xff]  }
 0x70c   : > { %7044 = vmatpush1.bf16.msra.mxu0 %v14253_v15  ;;  %6717 = vmatprep.subr.bf16.mxu1 %v14258_v14  ;;  %v14339_v15 = vld [vmem:[%s15298_s5 + $0xfc4] ss:$8 sps:$4 sm:$0xff]   ;;  %v14334_v14 = vld [vmem:[%s15298_s5 + $0x7c0] ss:$8 sps:$4 sm:$0xff]  }
 0x70d   : > { %7045 = vmatprep.subr.bf16.mxu0 %v14261_v18  ;;  %v14337_v18 = vld [vmem:[%s15298_s5 + $0xfc0] ss:$8 sps:$4 sm:$0xff]  }
 0x70f   : > { %6718 = vmatpush1.bf16.msra.mxu1 %v14256_v34  ;;  %v14342_v34 = vld [vmem:[%s15298_s5 + $0x7d4] ss:$8 sps:$4 sm:$0xff]  }
 0x710   : > { %7046 = vmatpush1.bf16.msra.mxu0 %v14259_v4  ;;  %6728 = vmatprep.subr.bf16.mxu1 %v14264_v9  ;;  %v14345_v4 = vld [vmem:[%s15298_s5 + $0xfd4] ss:$8 sps:$4 sm:$0xff]   ;;  %v14340_v9 = vld [vmem:[%s15298_s5 + $0x7d0] ss:$8 sps:$4 sm:$0xff]  }
 0x711   : > { %7056 = vmatprep.subr.bf16.mxu0 %v14267_v38  ;;  %v14343_v38 = vld [vmem:[%s15298_s5 + $0xfd0] ss:$8 sps:$4 sm:$0xff]  }
 0x712   : > { %6720 = vmatmul.mubr.bf16.vlgmr.msra.gmra.mrb[0].mxu1 %v3349_v44  ;;  %v14346_v44 = vld [vmem:[%s15298_s5 + $0x7e0] ss:$8 sps:$4 sm:$0xff]  }
 0x713   : > { %7048 = vmatmul.mubr.bf16.vlgmr.msra.gmra.mrb[0].mxu0 %v3365_v32  ;;  %6729 = vmatpush1.bf16.msra.mxu1 %v14262_v5  ;;  %v14349_v32 = vld [vmem:[%s15298_s5 + $0xfe0] ss:$8 sps:$4 sm:$0xff]   ;;  %v14354_v5 = vld [vmem:[%s15298_s5 + $0x7f4] ss:$8 sps:$4 sm:$0xff]  }
 0x714   : > { %7057 = vmatpush1.bf16.msra.mxu0 %v14265_v11  ;;  %6730 = vmatprep.subr.bf16.mxu1 %v14270_v25  ;;  %v14357_v11 = vld [vmem:[%s15298_s5 + $0xff4] ss:$8 sps:$4 sm:$0xff]   ;;  %v14352_v25 = vld [vmem:[%s15298_s5 + $0x7f0] ss:$8 sps:$4 sm:$0xff]  }
 0x715   : > { %7058 = vmatprep.subr.bf16.mxu0 %v14273_v56  ;;  %6760 = vmatprep.mubr.bf16.mxu1 %v3352_v30  ;;  %v14355_v56 = vld [vmem:[%s15298_s5 + $0xff0] ss:$8 sps:$4 sm:$0xff]   ;;  %v3351_v30 = vpack.c.bf16 %v16208_v59, %v16208_v59  ;;  %s12810_s5 = sshll.u32 %s14930_s14, 2 }
 0x716   : > { %7088 = vmatprep.mubr.bf16.mxu0 %v3368_v31  ;;  %v3367_v31 = vpack.c.bf16 %v16211_v21, %v16211_v21  ;;  %s7184_s15 = scalar_lea.vmem [#allocation4], %s12810_s5 }
 0x717   : > { %6731 = vmatpush1.bf16.msra.mxu1 %v14268_v42 }
 0x718   : > { %7059 = vmatpush1.bf16.msra.mxu0 %v14271_v45  ;;  %6732 = vmatprep.subr.bf16.mxu1 %v14276_v47 }
 0x719   : > { %7060 = vmatprep.subr.bf16.mxu0 %v14279_v23 }
 0x71b   : > { %6733 = vmatpush1.bf16.msra.mxu1 %v14274_v24 }
 0x71c   : > { %7061 = vmatpush1.bf16.msra.mxu0 %v14277_v16  ;;  %6734 = vmatprep.subr.bf16.mxu1 %v14282_v33 }
 0x71d   : > { %7062 = vmatprep.subr.bf16.mxu0 %v14285_v58 }
 0x71f   : > { %6735 = vmatpush1.bf16.msra.mxu1 %v14280_v1 }
 0x720   : > { %7063 = vmatpush1.bf16.msra.mxu0 %v14283_v28  ;;  %6736 = vmatprep.subr.bf16.mxu1 %v14288_v41 }
 0x721   : > { %7064 = vmatprep.subr.bf16.mxu0 %v14291_v53 }
 0x723   : > { %6737 = vmatpush1.bf16.msra.mxu1 %v14286_v3 }
 0x724   : > { %7065 = vmatpush1.bf16.msra.mxu0 %v14289_v37  ;;  %6738 = vmatprep.subr.bf16.mxu1 %v14294_v22 }
 0x725   : > { %7066 = vmatprep.subr.bf16.mxu0 %v14297_v60 }
 0x727   : > { %6739 = vmatpush1.bf16.msra.mxu1 %v14292_v17 }
 0x728   : > { %7067 = vmatpush1.bf16.msra.mxu0 %v14295_v2  ;;  %6740 = vmatprep.subr.bf16.mxu1 %v14300_v50 }
 0x729   : > { %7068 = vmatprep.subr.bf16.mxu0 %v14303_v8 }
 0x72b   : > { %6741 = vmatpush1.bf16.msra.mxu1 %v14298_v20 }
 0x72c   : > { %7069 = vmatpush1.bf16.msra.mxu0 %v14301_v36  ;;  %6742 = vmatprep.subr.bf16.mxu1 %v14306_v12 }
 0x72d   : > { %7070 = vmatprep.subr.bf16.mxu0 %v14309_v63 }
 0x72f   : > { %6743 = vmatpush1.bf16.msra.mxu1 %v14304_v43 }
 0x730   : > { %7071 = vmatpush1.bf16.msra.mxu0 %v14307_v46  ;;  %6744 = vmatprep.subr.bf16.mxu1 %v14312_v51 }
 0x731   : > { %7072 = vmatprep.subr.bf16.mxu0 %v14315_v55 }
 0x733   : > { %6745 = vmatpush1.bf16.msra.mxu1 %v14310_v48 }
 0x734   : > { %7073 = vmatpush1.bf16.msra.mxu0 %v14313_v39  ;;  %6746 = vmatprep.subr.bf16.mxu1 %v14318_v61 }
 0x735   : > { %7074 = vmatprep.subr.bf16.mxu0 %v14321_v40 }
 0x737   : > { %6747 = vmatpush1.bf16.msra.mxu1 %v14316_v62 }
 0x738   : > { %7075 = vmatpush1.bf16.msra.mxu0 %v14319_v0  ;;  %6748 = vmatprep.subr.bf16.mxu1 %v14324_v29 }
 0x739   : > { %7076 = vmatprep.subr.bf16.mxu0 %v14327_v26 }
 0x73b   : > { %6749 = vmatpush1.bf16.msra.mxu1 %v14322_v49 }
 0x73c   : > { %7077 = vmatpush1.bf16.msra.mxu0 %v14325_v52  ;;  %6750 = vmatprep.subr.bf16.mxu1 %v14330_v54 }
 0x73d   : > { %7078 = vmatprep.subr.bf16.mxu0 %v14333_v6 }
 0x73f   : > { %6751 = vmatpush1.bf16.msra.mxu1 %v14328_v35 }
 0x740   : > { %7079 = vmatpush1.bf16.msra.mxu0 %v14331_v13  ;;  %6752 = vmatprep.subr.bf16.mxu1 %v14336_v27 }
 0x741   : > { %7080 = vmatprep.subr.bf16.mxu0 %v14339_v15 }
 0x743   : > { %6753 = vmatpush1.bf16.msra.mxu1 %v14334_v14 }
 0x744   : > { %7081 = vmatpush1.bf16.msra.mxu0 %v14337_v18  ;;  %6754 = vmatprep.subr.bf16.mxu1 %v14342_v34 }
 0x745   : > { %7082 = vmatprep.subr.bf16.mxu0 %v14345_v4 }
 0x747   : > { %6755 = vmatpush1.bf16.msra.mxu1 %v14340_v9  ;;  %v16296_v9 = vsub.s32 0, %v15677_v10 }
 0x748   : > { %7083 = vmatpush1.bf16.msra.mxu0 %v14343_v38  ;;  %6756 = vmatprep.subr.bf16.mxu1 %v14348_v19  ;;  %v7097_v38 = vld [vmem:[%s563_s2] sm:$0x3]  ;;  %v16301_v19 = vsub.s32 1, %v15677_v10 }
 0x749   : > { %7084 = vmatprep.subr.bf16.mxu0 %v14351_v7  ;;  %v7098_v7 = vld [vmem:[%s572_s18] sm:$0x3] }
 0x74b   : > { %6757 = vmatpush1.bf16.msra.mxu1 %v14346_v44  ;;  %v7149_v44 = vrot.slane %v7097_v38, %v16296_v9 }
 0x74c   : > { %7085 = vmatpush1.bf16.msra.mxu0 %v14349_v32  ;;  %6758 = vmatprep.subr.bf16.mxu1 %v14354_v5  ;;  %v7153_v5 = vrot.slane %v7097_v38, %v16301_v19 }
 0x74d   : > { %7086 = vmatprep.subr.bf16.mxu0 %v14357_v11 }
 0x74f   : > { %6759 = vmatpush1.bf16.msra.mxu1 %v14352_v25 }
 0x750   : > { %7087 = vmatpush1.bf16.msra.mxu0 %v14355_v56  ;;  %v7162_v56 = vrot.slane %v7098_v7, %v16296_v9 }
 0x752   : > { %6761 = vmatmul.mubr.bf16.vlgmr.msra.gmra.mrb[0].mxu1 %v3351_v30 }
 0x753   : > { %7089 = vmatmul.mubr.bf16.vlgmr.msra.gmra.mrb[0].mxu0 %v3367_v31  ;;  %v7166_v31 = vrot.slane %v7098_v7, %v16301_v19  ;;  %v7395_v7 = vld [vmem:[#allocation19 + $0x580] sm:$0xff] (!%p12286_p11) }
 0x825   : > { %v6762_v42 = vpop.f32.mrb[0].mxu1 }
 0x826   : > { %v7090_v45 = vpop.f32.mrb[0].mxu0  ;;  %v6764_v23 = vpop.f32.mrb[1].mxu1 }
 0x827   : > { %v13007_v47 = vadd.f32 %v7090_v45, %v6762_v42  ;;  %v7092_v24 = vpop.f32.mrb[1].mxu0  ;;  %v6766_v33 = vpop.f32.mrb[2].mxu1 }
 0x828   : > { %v13008_v16 = vadd.f32 %v7092_v24, %v6764_v23  ;;  %v7094_v58 = vpop.f32.mrb[2].mxu0  ;;  %v6767_v28 = vpop.f32.mrb[3].mxu1  ;;  %v7351_v33 = vld [vmem:[#allocation19 + $0x420] sm:$0xff] (!%p12286_p11) }
 0x829   : > { %v7099_v1 = vmax.f32 %v13007_v47, 0.0  ;;  %v7095_v41 = vpop.f32.mrb[3].mxu0  ;;  %v7348_v58 = vld [vmem:[#allocation19 + $0x408] sm:$0xff] (!%p12286_p11) }
 0x82a   : > { %v7100_v59 = vmax.f32 %v13008_v16, 0.0  ;;  %v7347_v16 = vld [vmem:[#allocation19 + $0x400] sm:$0xff] (!%p12286_p11)  ;;  %v7352_v28 = vld [vmem:[#allocation19 + $0x428] sm:$0xff] (!%p12286_p11) }
 0x82b   : > { %v7102_v53 = vsel %vm7101_vm1, %v7099_v1, 0.0  ;;  %v12289_v41 = vcombine.low (!%p12286_p11), %v7347_v16, %v7351_v33 }
 0x82c   : > { %v7103_v21 = vrot.slane %v7102_v53, 4  ;;  %v7109_v3 = vsel %vm7101_vm1, %v7100_v59, 0.0 }
 0x82d   : > { %v7110_v37 = vrot.slane %v7109_v3, 4 }
 0x82e   : > { %v7104_v22 = vadd.f32 %v7103_v21, %v7102_v53  ;;  %v7359_v53 = vld [vmem:[#allocation19 + $0x460] sm:$0xff] (!%p12286_p11)  ;;  %v12292_v21 = vcombine.high (!%p12286_p11), %v7348_v58, %v7352_v28 }
 0x82f   : > { %v7111_v60 = vadd.f32 %v7110_v37, %v7109_v3  ;;  %v12291_v3 = vcombine.low (!%p12286_p11), %v7348_v58, %v7352_v28 }
 0x830   : > { %v7105_v17 = vrot.slane %v7104_v22, 2  ;;  %8156 = vmatprep.subr.bf16.mxu1 (!%p12286_p11), %v12292_v21  ;;  %v7416_v21 = vld [vmem:[#allocation19 + $0x628] sm:$0xff] (!%p12286_p11) }
 0x831   : > { %v7112_v2 = vrot.slane %v7111_v60, 2  ;;  %8157 = vmatpush1.bf16.msra.mxu1 (!%p12286_p11), %v12291_v3 }
 0x832   : > { %v7106_v50 = vadd.f32 %v7105_v17, %v7104_v22  ;;  %v7356_v22 = vld [vmem:[#allocation19 + $0x448] sm:$0xff] (!%p12286_p11)  ;;  %v7363_v17 = vld [vmem:[#allocation19 + $0x480] sm:$0xff] (!%p12286_p11) }
 0x833   : > { %v7113_v8 = vadd.f32 %v7112_v2, %v7111_v60  ;;  %v7360_v60 = vld [vmem:[#allocation19 + $0x468] sm:$0xff] (!%p12286_p11) }
 0x834   : > { %v7107_v20 = vrot.slane %v7106_v50, 1  ;;  %v12300_v2 = vcombine.high (!%p12286_p11), %v7356_v22, %v7360_v60 }
 0x835   : > { %v7114_v36 = vrot.slane %v7113_v8, 1 }
 0x836   : > { %v7108_v12 = vadd.f32 %v7107_v20, %v7106_v50  ;;  %v7367_v50 = vld [vmem:[#allocation19 + $0x4a0] sm:$0xff] (!%p12286_p11)  ;;  %v7368_v20 = vld [vmem:[#allocation19 + $0x4a8] sm:$0xff] (!%p12286_p11)  ;;  %8158 = vmatprep.subr.bf16.mxu1 (!%p12286_p11), %v12300_v2 }
 0x837   : > { %v7115_v63 = vadd.f32 %v7114_v36, %v7113_v8  ;;  %v7364_v8 = vld [vmem:[#allocation19 + $0x488] sm:$0xff] (!%p12286_p11)  ;;  %v7423_v2 = vld [vmem:[#allocation19 + $0x660] sm:$0xff] (!%p12286_p11) }
 0x838   : > { %v7117_v43 = vmul.f32 0.5, %v7108_v12  ;;  %v12299_v12 = vcombine.low (!%p12286_p11), %v7356_v22, %v7360_v60 }
 0x839   : > { %v7118_v46 = vmul.f32 0.5, %v7115_v63  ;;  %v12306_v63 = vcombine.high (!%p12286_p11), %v7363_v17, %v7367_v50 }
 0x83a   : > { %v7119_v51 = vsub.f32 %v7099_v1, %v7117_v43  ;;  %v12290_v1 = vcombine.high (!%p12286_p11), %v7347_v16, %v7351_v33  ;;  %v12308_v43 = vcombine.high (!%p12286_p11), %v7364_v8, %v7368_v20  ;;  %8159 = vmatpush1.bf16.msra.mxu1 (!%p12286_p11), %v12299_v12 }
 0x83b   : > { %v7120_v55 = vsub.f32 %v7100_v59, %v7118_v46  ;;  %v7355_v59 = vld [vmem:[#allocation19 + $0x440] sm:$0xff] (!%p12286_p11) }
 0x83c   : > { %v7121_v48 = vmul.f32 %v7119_v51, %v7119_v51  ;;  %v12298_v37 = vcombine.high (!%p12286_p11), %v7355_v59, %v7359_v53  ;;  %8115 = vmatprep.subr.bf16.mxu0 (!%p12286_p11), %v12290_v1  ;;  %v12297_v36 = vcombine.low (!%p12286_p11), %v7355_v59, %v7359_v53  ;;  %v7371_v46 = vld [vmem:[#allocation19 + $0x4c0] sm:$0xff] (!%p12286_p11)  ;;  %8160 = vmatprep.subr.bf16.mxu1 (!%p12286_p11), %v12308_v43  ;;  %v7412_v53 = vld [vmem:[#allocation19 + $0x608] sm:$0xff] (!%p12286_p11) }
 0x83d   : > { %v7122_v39 = vmul.f32 %v7120_v55, %v7120_v55  ;;  %8116 = vmatpush1.bf16.msra.mxu0 (!%p12286_p11), %v12289_v41  ;;  %v7411_v41 = vld [vmem:[#allocation19 + $0x600] sm:$0xff] (!%p12286_p11)  ;;  %v12356_v60 = vcombine.high (!%p12286_p11), %v7412_v53, %v7416_v21 }
 0x83e   : > { %v7123_v61 = vsel %vm7101_vm1, %v7121_v48, 0.0  ;;  %8117 = vmatprep.subr.bf16.mxu0 (!%p12286_p11), %v12298_v37  ;;  %v7376_v48 = vld [vmem:[#allocation19 + $0x4e8] sm:$0xff] (!%p12286_p11)  ;;  %v7415_v59 = vld [vmem:[#allocation19 + $0x620] sm:$0xff] (!%p12286_p11) }
 0x83f   : > { %v7124_v40 = vrot.slane %v7123_v61, 4  ;;  %v7130_v62 = vsel %vm7101_vm1, %v7122_v39, 0.0  ;;  %v12305_v39 = vcombine.low (!%p12286_p11), %v7363_v17, %v7367_v50  ;;  %v12354_v22 = vcombine.high (!%p12286_p11), %v7411_v41, %v7415_v59  ;;  %v7419_v17 = vld [vmem:[#allocation19 + $0x640] sm:$0xff] (!%p12286_p11)  ;;  %v7420_v50 = vld [vmem:[#allocation19 + $0x648] sm:$0xff] (!%p12286_p11) }
 0x840   : > { %v7131_v0 = vrot.slane %v7130_v62, 4  ;;  %v12362_v12 = vcombine.high (!%p12286_p11), %v7419_v17, %v7423_v2  ;;  %v7427_v43 = vld [vmem:[#allocation19 + $0x680] sm:$0xff] (!%p12286_p11) }
 0x841   : > { %v7125_v29 = vadd.f32 %v7124_v40, %v7123_v61  ;;  %8118 = vmatpush1.bf16.msra.mxu0 (!%p12286_p11), %v12297_v36  ;;  %v12307_v61 = vcombine.low (!%p12286_p11), %v7364_v8, %v7368_v20  ;;  %v7424_v8 = vld [vmem:[#allocation19 + $0x668] sm:$0xff] (!%p12286_p11)  ;;  %v12353_v20 = vcombine.low (!%p12286_p11), %v7411_v41, %v7415_v59  ;;  %v12355_v36 = vcombine.low (!%p12286_p11), %v7412_v53, %v7416_v21 }
 0x842   : > { %v7132_v26 = vadd.f32 %v7131_v0, %v7130_v62  ;;  %8119 = vmatprep.subr.bf16.mxu0 (!%p12286_p11), %v12306_v63  ;;  %v7379_v0 = vld [vmem:[#allocation19 + $0x500] sm:$0xff] (!%p12286_p11)  ;;  %v12364_v63 = vcombine.high (!%p12286_p11), %v7420_v50, %v7424_v8  ;;  %v7468_v41 = vld [vmem:[#allocation19 + $0x7c8] sm:$0xff] (!%p12286_p11) }
 0x843   : > { %v7126_v49 = vrot.slane %v7125_v29, 2  ;;  %8161 = vmatpush1.bf16.msra.mxu1 (!%p12286_p11), %v12307_v61  ;;  %v7472_v59 = vld [vmem:[#allocation19 + $0x7e8] sm:$0xff] (!%p12286_p11) }
 0x844   : > { %v7133_v52 = vrot.slane %v7132_v26, 2 }
 0x845   : > { %v7127_v54 = vadd.f32 %v7126_v49, %v7125_v29  ;;  %v7383_v29 = vld [vmem:[#allocation19 + $0x520] sm:$0xff] (!%p12286_p11)  ;;  %v7384_v49 = vld [vmem:[#allocation19 + $0x528] sm:$0xff] (!%p12286_p11)  ;;  %8120 = vmatpush1.bf16.msra.mxu0 (!%p12286_p11), %v12305_v39  ;;  %v12363_v39 = vcombine.low (!%p12286_p11), %v7420_v50, %v7424_v8  ;;  %v12411_v8 = vcombine.low (!%p12286_p11), %v7468_v41, %v7472_v59 }
 0x846   : > { %v7134_v6 = vadd.f32 %v7133_v52, %v7132_v26  ;;  %v7380_v26 = vld [vmem:[#allocation19 + $0x508] sm:$0xff] (!%p12286_p11) }
 0x847   : > { %v7128_v35 = vrot.slane %v7127_v54, 1 }
 0x848   : > { %v7135_v13 = vrot.slane %v7134_v6, 1 }
 0x849   : > { %v7129_v27 = vadd.f32 %v7128_v35, %v7127_v54  ;;  %v12324_v35 = vcombine.high (!%p12286_p11), %v7380_v26, %v7384_v49 }
 0x84a   : > { %v7136_v15 = vadd.f32 %v7135_v13, %v7134_v6  ;;  %v12322_v6 = vcombine.high (!%p12286_p11), %v7379_v0, %v7383_v29  ;;  %v7387_v13 = vld [vmem:[#allocation19 + $0x540] sm:$0xff] (!%p12286_p11) }
 0x84b   : > { %v7137_v14 = vmul.f32 0.5, %v7129_v27  ;;  %v7391_v27 = vld [vmem:[#allocation19 + $0x560] sm:$0xff] (!%p12286_p11) }
 0x84c   : > { %v7138_v18 = vmul.f32 0.5, %v7136_v15  ;;  %v7388_v15 = vld [vmem:[#allocation19 + $0x548] sm:$0xff] (!%p12286_p11) }
 0x84d   : > { %v7139_v34 = vadd.f32 1e-05, %v7137_v14  ;;  %v7392_v14 = vld [vmem:[#allocation19 + $0x568] sm:$0xff] (!%p12286_p11) }
 0x84e   : > { %v7140_v4 = vadd.f32 1e-05, %v7138_v18  ;;  %v12321_v18 = vcombine.low (!%p12286_p11), %v7379_v0, %v7383_v29  ;;  %v12332_v38 = vcombine.high (!%p12286_p11), %v7388_v15, %v7392_v14  ;;  %v7439_v0 = vld [vmem:[#allocation19 + $0x6e0] sm:$0xff] (!%p12286_p11)  ;;  %v7436_v29 = vld [vmem:[#allocation19 + $0x6c8] sm:$0xff] (!%p12286_p11) }
 0x84f   : > { %14360 = vrsqrt.f32 %v7139_v34  ;;  %v12323_v34 = vcombine.low (!%p12286_p11), %v7380_v26, %v7384_v49  ;;  %v7440_v26 = vld [vmem:[#allocation19 + $0x6e8] sm:$0xff] (!%p12286_p11) }
 0x850   : > { %14362 = vrsqrt.f32 %v7140_v4  ;;  %v12330_v4 = vcombine.high (!%p12286_p11), %v7387_v13, %v7391_v27 }
 0x859   : > { %v14361_v32 = vpop.eup %14360 }
 0x85a   : > { %v14363_v11 = vpop.eup %14362  ;;  %v7143_v25 = vmul.f32 %v14361_v32, %v7119_v51  ;;  %v7375_v51 = vld [vmem:[#allocation19 + $0x4e0] sm:$0xff] (!%p12286_p11)  ;;  %v7396_v32 = vld [vmem:[#allocation19 + $0x588] sm:$0xff] (!%p12286_p11) }
 0x85b   : > { %v7144_v30 = vmul.f32 %v14363_v11, %v7120_v55  ;;  %v7372_v55 = vld [vmem:[#allocation19 + $0x4c8] sm:$0xff] (!%p12286_p11)  ;;  %v12314_v40 = vcombine.high (!%p12286_p11), %v7371_v46, %v7375_v51  ;;  %v12313_v52 = vcombine.low (!%p12286_p11), %v7371_v46, %v7375_v51  ;;  %v12329_v11 = vcombine.low (!%p12286_p11), %v7387_v13, %v7391_v27  ;;  %v7431_v46 = vld [vmem:[#allocation19 + $0x6a0] sm:$0xff] (!%p12286_p11) }
 0x85c   : > { %v7156_v42 = vmul.f32 %v7149_v44, %v7143_v25  ;;  %v12316_v62 = vcombine.high (!%p12286_p11), %v7372_v55, %v7376_v48  ;;  %v12315_v54 = vcombine.low (!%p12286_p11), %v7372_v55, %v7376_v48  ;;  %v7399_v44 = vld [vmem:[#allocation19 + $0x5a0] sm:$0xff] (!%p12286_p11)  ;;  %v12331_v25 = vcombine.low (!%p12286_p11), %v7388_v15, %v7392_v14  ;;  %v7428_v51 = vld [vmem:[#allocation19 + $0x688] sm:$0xff] (!%p12286_p11) }
 0x85d   : > { %v7157_v45 = vmul.f32 %v7153_v5, %v7144_v30  ;;  %7189 = sbr.rel (%p12286_p11) target bundleno = 2919 (0xb67), region = 128  ;;  %8121 = vmatprep.subr.bf16.mxu0 (!%p12286_p11), %v12314_v40  ;;  %v7400_v5 = vld [vmem:[#allocation19 + $0x5a8] sm:$0xff] (!%p12286_p11)  ;;  %v12337_v16 = vcombine.low (!%p12286_p11), %v7395_v7, %v7399_v44  ;;  %v12361_v48 = vcombine.low (!%p12286_p11), %v7419_v17, %v7423_v2  ;;  %v12370_v61 = vcombine.high (!%p12286_p11), %v7427_v43, %v7431_v46  ;;  %v7447_v13 = vld [vmem:[#allocation19 + $0x720] sm:$0xff] (!%p12286_p11)  ;;  %v7350_v17 = vld [vmem:[#allocation19 + $0x418] sm:$0xff] (!%p12286_p11) }
 0x85e   : > { %v7169_v47 = vadd.f32 %v7162_v56, %v7156_v42  ;;  %8162 = vmatprep.subr.bf16.mxu1 (!%p12286_p11), %v12316_v62  ;;  %8122 = vmatpush1.bf16.msra.mxu0 (!%p12286_p11), %v12313_v52  ;;  %v12338_v56 = vcombine.high (!%p12286_p11), %v7395_v7, %v7399_v44  ;;  %v7403_v42 = vld [vmem:[#allocation19 + $0x5c0] sm:$0xff] (!%p12286_p11)  ;;  %v12339_v58 = vcombine.low (!%p12286_p11), %v7396_v32, %v7400_v5  ;;  %v7432_v55 = vld [vmem:[#allocation19 + $0x6a8] sm:$0xff] (!%p12286_p11)  ;;  %v7354_v2 = vld [vmem:[#allocation19 + $0x438] sm:$0xff] (!%p12286_p11) }
 0x85f   : > { %v7170_v23 = vadd.f32 %v7166_v31, %v7157_v45  ;;  %8163 = vmatpush1.bf16.msra.mxu1 (!%p12286_p11), %v12315_v54  ;;  %8123 = vmatprep.subr.bf16.mxu0 (!%p12286_p11), %v12322_v6  ;;  %v12340_v31 = vcombine.high (!%p12286_p11), %v7396_v32, %v7400_v5  ;;  %v7407_v45 = vld [vmem:[#allocation19 + $0x5e0] sm:$0xff] (!%p12286_p11)  ;;  %v12372_v40 = vcombine.high (!%p12286_p11), %v7428_v51, %v7432_v55  ;;  %v7444_v27 = vld [vmem:[#allocation19 + $0x708] sm:$0xff] (!%p12286_p11) }
 0x860   : > { %8164 = vmatprep.subr.bf16.mxu1 (!%p12286_p11), %v12324_v35  ;;  %v12346_v1 = vcombine.high (!%p12286_p11), %v7403_v42, %v7407_v45  ;;  %v12345_v3 = vcombine.low (!%p12286_p11), %v7403_v42, %v7407_v45  ;;  %v7435_v62 = vld [vmem:[#allocation19 + $0x6c0] sm:$0xff] (!%p12286_p11)  ;;  %v12369_v49 = vcombine.low (!%p12286_p11), %v7427_v43, %v7431_v46  ;;  %v12371_v52 = vcombine.low (!%p12286_p11), %v7428_v51, %v7432_v55  ;;  %v7448_v15 = vld [vmem:[#allocation19 + $0x728] sm:$0xff] (!%p12286_p11)  ;;  %v7358_v46 = vld [vmem:[#allocation19 + $0x458] sm:$0xff] (!%p12286_p11) }
 0x861   : > { %v7173_v24 = vcombine.low %v7169_v47, %v7170_v23  ;;  %v7404_v23 = vld [vmem:[#allocation19 + $0x5c8] sm:$0xff] (!%p12286_p11)  ;;  %v12378_v54 = vcombine.high (!%p12286_p11), %v7435_v62, %v7439_v0  ;;  %v12380_v6 = vcombine.high (!%p12286_p11), %v7436_v29, %v7440_v26  ;;  %v7443_v35 = vld [vmem:[#allocation19 + $0x700] sm:$0xff] (!%p12286_p11)  ;;  %v12377_v14 = vcombine.low (!%p12286_p11), %v7435_v62, %v7439_v0  ;;  %v7362_v51 = vld [vmem:[#allocation19 + $0x478] sm:$0xff] (!%p12286_p11) }
 0x862   : > { %8124 = vmatpush1.bf16.msra.mxu0 (!%p12286_p11), %v12321_v18  ;;  %v12379_v18 = vcombine.low (!%p12286_p11), %v7436_v29, %v7440_v26  ;;  %v7455_v7 = vld [vmem:[#allocation19 + $0x760] sm:$0xff] (!%p12286_p11)  ;;  %v7452_v44 = vld [vmem:[#allocation19 + $0x748] sm:$0xff] (!%p12286_p11)  ;;  %v12385_v5 = vcombine.low (!%p12286_p11), %v7443_v35, %v7447_v13  ;;  %v7369_v62 = vld [vmem:[#allocation19 + $0x4b0] sm:$0xff] (!%p12286_p11)  ;;  %v12303_v26 = vcombine.low (!%p12286_p11), %v7358_v46, %v7362_v51 }
 0x863   : > { %12285 = vst.sshfl [vmem:[%s7184_s15] sm:$0x33 pattern:$0x76325410] %v7173_v24  ;;  %8165 = vmatpush1.bf16.msra.mxu1 (!%p12286_p11), %v12323_v34  ;;  %8125 = vmatprep.subr.bf16.mxu0 (!%p12286_p11), %v12330_v4  ;;  %v7408_v24 = vld [vmem:[#allocation19 + $0x5e8] sm:$0xff] (!%p12286_p11)  ;;  %v12386_v34 = vcombine.high (!%p12286_p11), %v7443_v35, %v7447_v13  ;;  %v12388_v4 = vcombine.high (!%p12286_p11), %v7444_v27, %v7448_v15  ;;  %v7463_v42 = vld [vmem:[#allocation19 + $0x7a0] sm:$0xff] (!%p12286_p11)  ;;  %v7366_v0 = vld [vmem:[#allocation19 + $0x498] sm:$0xff] (!%p12286_p11) }
 0x864   : > { %8166 = vmatprep.subr.bf16.mxu1 %v12332_v38  ;;  %v12348_v28 = vcombine.high %v7404_v23, %v7408_v24  ;;  %v12347_v37 = vcombine.low %v7404_v23, %v7408_v24  ;;  %v7451_v38 = vld [vmem:[#allocation19 + $0x740] sm:$0xff]  ;;  %v7456_v32 = vld [vmem:[#allocation19 + $0x768] sm:$0xff]  ;;  %v7370_v29 = vld [vmem:[#allocation19 + $0x4b8] sm:$0xff] }
 0x865   : > { %v7460_v45 = vld [vmem:[#allocation19 + $0x788] sm:$0xff]  ;;  %v12393_v23 = vcombine.low %v7451_v38, %v7455_v7  ;;  %v12395_v24 = vcombine.low %v7452_v44, %v7456_v32  ;;  %v7374_v35 = vld [vmem:[#allocation19 + $0x4d8] sm:$0xff] }
 0x866   : > { %8126 = vmatpush1.bf16.msra.mxu0 %v12329_v11  ;;  %v12387_v11 = vcombine.low %v7444_v27, %v7448_v15  ;;  %v7378_v13 = vld [vmem:[#allocation19 + $0x4f8] sm:$0xff]  ;;  %v12311_v15 = vcombine.low %v7366_v0, %v7370_v29 }
 0x867   : > { %8167 = vmatpush1.bf16.msra.mxu1 %v12331_v25  ;;  %8127 = vmatprep.subr.bf16.mxu0 %v12338_v56  ;;  %v12394_v25 = vcombine.high %v7451_v38, %v7455_v7  ;;  %v12396_v56 = vcombine.high %v7452_v44, %v7456_v32  ;;  %v7382_v38 = vld [vmem:[#allocation19 + $0x518] sm:$0xff]  ;;  %v12319_v32 = vcombine.low %v7374_v35, %v7378_v13 }
 0x868   : > { %8168 = vmatprep.subr.bf16.mxu1 %v12340_v31  ;;  %v7459_v31 = vld [vmem:[#allocation19 + $0x780] sm:$0xff]  ;;  %v7386_v7 = vld [vmem:[#allocation19 + $0x538] sm:$0xff] }
 0x869   : > { %v12401_v53 = vcombine.low %v7459_v31, %v7463_v42 }
 0x86a   : > { %v16311_v30 = vld.sshfl [vmem:[#allocation4 + $0x4] sm:$0x33 pattern:$0x76325410]  ;;  %8128 = vmatpush1.bf16.msra.mxu0 %v12337_v16  ;;  %v12402_v16 = vcombine.high %v7459_v31, %v7463_v42  ;;  %v7394_v31 = vld [vmem:[#allocation19 + $0x578] sm:$0xff] }
 0x86b   : > { %v7342_v47 = vcombine.high %v16311_v30, %v16311_v30  ;;  %8169 = vmatpush1.bf16.msra.mxu1 %v12339_v58  ;;  %8129 = vmatprep.subr.bf16.mxu0 %v12346_v1  ;;  %v7467_v1 = vld [vmem:[#allocation19 + $0x7c0] sm:$0xff]  ;;  %v16321_v43 = vpack.c.bf16 %v16311_v30, %v16311_v30 }
 0x86c   : > { %8170 = vmatprep.subr.bf16.mxu1 %v12348_v28  ;;  %v7471_v28 = vld [vmem:[#allocation19 + $0x7e0] sm:$0xff] }
 0x86d   : > { %v16315_v33 = vpack.c.bf16 %v7342_v47, %v7342_v47  ;;  %v7464_v47 = vld [vmem:[#allocation19 + $0x7a8] sm:$0xff]  ;;  %v12409_v50 = vcombine.low %v7467_v1, %v7471_v28 }
 0x86e   : > { %8130 = vmatpush1.bf16.msra.mxu0 %v12345_v3  ;;  %v12404_v58 = vcombine.high %v7460_v45, %v7464_v47  ;;  %v12403_v21 = vcombine.low %v7460_v45, %v7464_v47  ;;  %v12410_v3 = vcombine.high %v7467_v1, %v7471_v28  ;;  %v12327_v45 = vcombine.low %v7382_v38, %v7386_v7  ;;  %v7402_v1 = vld [vmem:[#allocation19 + $0x5b8] sm:$0xff] }
 0x86f   : > { %8147 = vmatprep.mubr.bf16.mxu0 %v16315_v33  ;;  %8188 = vmatprep.mubr.bf16.mxu1 %v16315_v33 }
 0x870   : > { %8171 = vmatpush1.bf16.msra.mxu1 %v12347_v37  ;;  %8131 = vmatprep.subr.bf16.mxu0 %v12354_v22  ;;  %v12412_v37 = vcombine.high %v7468_v41, %v7472_v59  ;;  %v7349_v22 = vld [vmem:[#allocation19 + $0x410] sm:$0xff] }
 0x871   : > { %8172 = vmatprep.subr.bf16.mxu1 %v12356_v60  ;;  %v7353_v60 = vld [vmem:[#allocation19 + $0x430] sm:$0xff] }
 0x872   : > { %8132 = vmatpush1.bf16.msra.mxu0 %v12353_v20  ;;  %v12294_v20 = vcombine.high %v7349_v22, %v7353_v60  ;;  %v12293_v55 = vcombine.low %v7349_v22, %v7353_v60  ;;  %v7410_v22 = vld [vmem:[#allocation19 + $0x5f8] sm:$0xff] }
 0x873   : > { %8133 = vmatprep.subr.bf16.mxu0 %v12362_v12  ;;  %v7357_v12 = vld [vmem:[#allocation19 + $0x450] sm:$0xff] }
 0x874   : > { %8173 = vmatpush1.bf16.msra.mxu1 %v12355_v36  ;;  %v12296_v36 = vcombine.high %v7350_v17, %v7354_v2 }
 0x875   : > { %8174 = vmatprep.subr.bf16.mxu1 %v12364_v63  ;;  %v7361_v63 = vld [vmem:[#allocation19 + $0x470] sm:$0xff] }
 0x876   : > { %8134 = vmatpush1.bf16.msra.mxu0 %v12361_v48  ;;  %v12295_v48 = vcombine.low %v7350_v17, %v7354_v2  ;;  %v12301_v30 = vcombine.low %v7357_v12, %v7361_v63 }
 0x877   : > { %8135 = vmatprep.subr.bf16.mxu0 %v12370_v61  ;;  %v12304_v61 = vcombine.high %v7358_v46, %v7362_v51 }
 0x878   : > { %8175 = vmatpush1.bf16.msra.mxu1 %v12363_v39  ;;  %v12302_v39 = vcombine.high %v7357_v12, %v7361_v63  ;;  %v7418_v12 = vld [vmem:[#allocation19 + $0x638] sm:$0xff] }
 0x879   : > { %8176 = vmatprep.subr.bf16.mxu1 %v12372_v40  ;;  %v7365_v40 = vld [vmem:[#allocation19 + $0x490] sm:$0xff] }
 0x87a   : > { %8136 = vmatpush1.bf16.msra.mxu0 %v12369_v49  ;;  %v12310_v49 = vcombine.high %v7365_v40, %v7369_v62  ;;  %v12309_v27 = vcombine.low %v7365_v40, %v7369_v62  ;;  %v7426_v40 = vld [vmem:[#allocation19 + $0x678] sm:$0xff] }
 0x87b   : > { %8137 = vmatprep.subr.bf16.mxu0 %v12378_v54  ;;  %v7373_v54 = vld [vmem:[#allocation19 + $0x4d0] sm:$0xff] }
 0x87c   : > { %8177 = vmatpush1.bf16.msra.mxu1 %v12371_v52  ;;  %v12312_v52 = vcombine.high %v7366_v0, %v7370_v29 }
 0x87d   : > { %8178 = vmatprep.subr.bf16.mxu1 %v12380_v6  ;;  %v7377_v6 = vld [vmem:[#allocation19 + $0x4f0] sm:$0xff] }
 0x87e   : > { %8138 = vmatpush1.bf16.msra.mxu0 %v12377_v14  ;;  %v12318_v14 = vcombine.high %v7373_v54, %v7377_v6  ;;  %v12317_v44 = vcombine.low %v7373_v54, %v7377_v6  ;;  %v7434_v54 = vld [vmem:[#allocation19 + $0x6b8] sm:$0xff] }
 0x87f   : > { %8139 = vmatprep.subr.bf16.mxu0 %v12386_v34  ;;  %v7381_v34 = vld [vmem:[#allocation19 + $0x510] sm:$0xff] }
 0x880   : > { %8179 = vmatpush1.bf16.msra.mxu1 %v12379_v18  ;;  %v12320_v18 = vcombine.high %v7374_v35, %v7378_v13 }
 0x881   : > { %8180 = vmatprep.subr.bf16.mxu1 %v12388_v4  ;;  %v7385_v4 = vld [vmem:[#allocation19 + $0x530] sm:$0xff] }
 0x882   : > { %8140 = vmatpush1.bf16.msra.mxu0 %v12385_v5  ;;  %v12326_v5 = vcombine.high %v7381_v34, %v7385_v4  ;;  %v12325_v42 = vcombine.low %v7381_v34, %v7385_v4  ;;  %v7442_v34 = vld [vmem:[#allocation19 + $0x6f8] sm:$0xff] }
 0x883   : > { %8141 = vmatprep.subr.bf16.mxu0 %v12394_v25  ;;  %v7393_v25 = vld [vmem:[#allocation19 + $0x570] sm:$0xff] }
 0x884   : > { %8181 = vmatpush1.bf16.msra.mxu1 %v12387_v11  ;;  %v7389_v11 = vld [vmem:[#allocation19 + $0x550] sm:$0xff] }
 0x885   : > { %8182 = vmatprep.subr.bf16.mxu1 %v12396_v56  ;;  %v7390_v56 = vld [vmem:[#allocation19 + $0x558] sm:$0xff]  ;;  %v12334_v47 = vcombine.high %v7389_v11, %v7393_v25  ;;  %v12333_v28 = vcombine.low %v7389_v11, %v7393_v25 }
 0x886   : > { %8142 = vmatpush1.bf16.msra.mxu0 %v12393_v23  ;;  %v12336_v23 = vcombine.high %v7390_v56, %v7394_v31  ;;  %v12335_v41 = vcombine.low %v7390_v56, %v7394_v31  ;;  %v7450_v11 = vld [vmem:[#allocation19 + $0x738] sm:$0xff] }
 0x887   : > { %8143 = vmatprep.subr.bf16.mxu0 %v12402_v16  ;;  %v7401_v16 = vld [vmem:[#allocation19 + $0x5b0] sm:$0xff] }
 0x888   : > { %8183 = vmatpush1.bf16.msra.mxu1 %v12395_v24  ;;  %v7397_v24 = vld [vmem:[#allocation19 + $0x590] sm:$0xff] }
 0x889   : > { %8184 = vmatprep.subr.bf16.mxu1 %v12404_v58  ;;  %v7398_v58 = vld [vmem:[#allocation19 + $0x598] sm:$0xff]  ;;  %v12342_v59 = vcombine.high %v7397_v24, %v7401_v16  ;;  %v12341_v60 = vcombine.low %v7397_v24, %v7401_v16 }
 0x88a   : > { %8144 = vmatpush1.bf16.msra.mxu0 %v12401_v53  ;;  %v12344_v53 = vcombine.high %v7398_v58, %v7402_v1  ;;  %v12343_v17 = vcombine.low %v7398_v58, %v7402_v1  ;;  %v7458_v24 = vld [vmem:[#allocation19 + $0x778] sm:$0xff] }
 0x88b   : > { %8145 = vmatprep.subr.bf16.mxu0 %v12410_v3  ;;  %v7409_v3 = vld [vmem:[#allocation19 + $0x5f0] sm:$0xff] }
 0x88c   : > { %8185 = vmatpush1.bf16.msra.mxu1 %v12403_v21  ;;  %v7405_v21 = vld [vmem:[#allocation19 + $0x5d0] sm:$0xff] }
 0x88d   : > { %8186 = vmatprep.subr.bf16.mxu1 %v12412_v37  ;;  %v7406_v37 = vld [vmem:[#allocation19 + $0x5d8] sm:$0xff]  ;;  %v12350_v2 = vcombine.high %v7405_v21, %v7409_v3  ;;  %v12349_v63 = vcombine.low %v7405_v21, %v7409_v3 }
 0x88e   : > { %8146 = vmatpush1.bf16.msra.mxu0 %v12409_v50  ;;  %v12352_v50 = vcombine.high %v7406_v37, %v7410_v22  ;;  %v12351_v46 = vcombine.low %v7406_v37, %v7410_v22  ;;  %v7466_v21 = vld [vmem:[#allocation19 + $0x7b8] sm:$0xff] }
 0x88f   : > { %8197 = vmatprep.subr.bf16.mxu0 %v12294_v20  ;;  %v7417_v20 = vld [vmem:[#allocation19 + $0x630] sm:$0xff] }
 0x890   : > { %8187 = vmatpush1.bf16.msra.mxu1 %v12411_v8  ;;  %v7413_v8 = vld [vmem:[#allocation19 + $0x610] sm:$0xff] }
 0x891   : > { %8238 = vmatprep.subr.bf16.mxu1 %v12296_v36  ;;  %8148 = vmatmul.mubr.bf16.vlgmr.msra.gmra.mrb[0].mxu0 %v16321_v43  ;;  %v7414_v36 = vld [vmem:[#allocation19 + $0x618] sm:$0xff]  ;;  %v12358_v51 = vcombine.high %v7413_v8, %v7417_v20  ;;  %v12357_v62 = vcombine.low %v7413_v8, %v7417_v20 }
 0x892   : > { %8198 = vmatpush1.bf16.msra.mxu0 %v12293_v55  ;;  %8229 = vmatprep.mubr.bf16.mxu0 %v16315_v33  ;;  %v12360_v55 = vcombine.high %v7414_v36, %v7418_v12  ;;  %v12359_v0 = vcombine.low %v7414_v36, %v7418_v12  ;;  %v7474_v8 = vld [vmem:[#allocation19 + $0x7f8] sm:$0xff] }
 0x893   : > { %8189 = vmatmul.mubr.bf16.vlgmr.msra.gmra.mrb[0].mxu1 %v16321_v43  ;;  %8199 = vmatprep.subr.bf16.mxu0 %v12302_v39  ;;  %v7425_v39 = vld [vmem:[#allocation19 + $0x670] sm:$0xff] }
 0x894   : > { %8239 = vmatpush1.bf16.msra.mxu1 %v12295_v48  ;;  %8270 = vmatprep.mubr.bf16.mxu1 %v16315_v33  ;;  %v12328_v33 = vcombine.high %v7382_v38, %v7386_v7  ;;  %v7421_v48 = vld [vmem:[#allocation19 + $0x650] sm:$0xff] }
 0x895   : > { %8240 = vmatprep.subr.bf16.mxu1 %v12304_v61  ;;  %v7422_v61 = vld [vmem:[#allocation19 + $0x658] sm:$0xff]  ;;  %v12366_v29 = vcombine.high %v7421_v48, %v7425_v39  ;;  %v12365_v6 = vcombine.low %v7421_v48, %v7425_v39  ;;  %v7209_v48 = vld [vmem:[#allocation19 + $0x28] sm:$0xff]  ;;  %v16327_v39 = vld.sshfl [vmem:[#allocation4] sm:$0x33 pattern:$0x76325410] }
 0x896   : > { %8200 = vmatpush1.bf16.msra.mxu0 %v12301_v30  ;;  %v12368_v30 = vcombine.high %v7422_v61, %v7426_v40  ;;  %v12367_v35 = vcombine.low %v7422_v61, %v7426_v40 }
 0x897   : > { %8201 = vmatprep.subr.bf16.mxu0 %v12310_v49  ;;  %v7433_v49 = vld [vmem:[#allocation19 + $0x6b0] sm:$0xff] }
 0x898   : > { %8241 = vmatpush1.bf16.msra.mxu1 %v12303_v26  ;;  %v7429_v26 = vld [vmem:[#allocation19 + $0x690] sm:$0xff] }
 0x899   : > { %8242 = vmatprep.subr.bf16.mxu1 %v12312_v52  ;;  %v7430_v52 = vld [vmem:[#allocation19 + $0x698] sm:$0xff]  ;;  %v12374_v13 = vcombine.high %v7429_v26, %v7433_v49  ;;  %v12373_v4 = vcombine.low %v7429_v26, %v7433_v49  ;;  %v7199_v26 = vcombine.high %v16327_v39, %v16327_v39  ;;  %v7213_v49 = vld [vmem:[#allocation19 + $0x48] sm:$0xff] }
 0x89a   : > { %8202 = vmatpush1.bf16.msra.mxu0 %v12309_v27  ;;  %v12376_v27 = vcombine.high %v7430_v52, %v7434_v54  ;;  %v12375_v38 = vcombine.low %v7430_v52, %v7434_v54  ;;  %v7217_v52 = vld [vmem:[#allocation19 + $0x68] sm:$0xff] }
 0x89b   : > { %8203 = vmatprep.subr.bf16.mxu0 %v12318_v14  ;;  %v7441_v14 = vld [vmem:[#allocation19 + $0x6f0] sm:$0xff] }
 0x89c   : > { %8243 = vmatpush1.bf16.msra.mxu1 %v12311_v15  ;;  %v7437_v15 = vld [vmem:[#allocation19 + $0x6d0] sm:$0xff] }
 0x89d   : > { %8244 = vmatprep.subr.bf16.mxu1 %v12320_v18  ;;  %v7438_v18 = vld [vmem:[#allocation19 + $0x6d8] sm:$0xff]  ;;  %v12382_v7 = vcombine.high %v7437_v15, %v7441_v14  ;;  %v12381_v25 = vcombine.low %v7437_v15, %v7441_v14  ;;  %v7224_v15 = vld [vmem:[#allocation19 + $0xa0] sm:$0xff]  ;;  %v16331_v14 = vpack.c.bf16 %v7199_v26, %v7199_v26  ;;  %v7273_v26 = vld [vmem:[#allocation19 + $0x228] sm:$0xff] }
 0x89e   : > { %8204 = vmatpush1.bf16.msra.mxu0 %v12317_v44  ;;  %v12384_v44 = vcombine.high %v7438_v18, %v7442_v34  ;;  %v12383_v56 = vcombine.low %v7438_v18, %v7442_v34  ;;  %v7221_v18 = vld [vmem:[#allocation19 + $0x88] sm:$0xff] }
 0x89f   : > { %8205 = vmatprep.subr.bf16.mxu0 %v12326_v5  ;;  %v7449_v5 = vld [vmem:[#allocation19 + $0x730] sm:$0xff]  ;;  %v7225_v34 = vld [vmem:[#allocation19 + $0xa8] sm:$0xff] }
 0x8a0   : > { %8245 = vmatpush1.bf16.msra.mxu1 %v12319_v32  ;;  %v7445_v32 = vld [vmem:[#allocation19 + $0x710] sm:$0xff] }
 0x8a1   : > { %8246 = vmatprep.subr.bf16.mxu1 %v12328_v33  ;;  %v7446_v33 = vld [vmem:[#allocation19 + $0x718] sm:$0xff]  ;;  %v12390_v31 = vcombine.high %v7445_v32, %v7449_v5  ;;  %v12389_v16 = vcombine.low %v7445_v32, %v7449_v5  ;;  %v7228_v32 = vld [vmem:[#allocation19 + $0xc0] sm:$0xff] }
 0x8a2   : > { %8206 = vmatpush1.bf16.msra.mxu0 %v12325_v42  ;;  %v12392_v42 = vcombine.high %v7446_v33, %v7450_v11  ;;  %v12391_v58 = vcombine.low %v7446_v33, %v7450_v11  ;;  %v7232_v5 = vld [vmem:[#allocation19 + $0xe0] sm:$0xff]  ;;  %v7229_v33 = vld [vmem:[#allocation19 + $0xc8] sm:$0xff] }
 0x8a3   : > { %8207 = vmatprep.subr.bf16.mxu0 %v12334_v47  ;;  %v7457_v47 = vld [vmem:[#allocation19 + $0x770] sm:$0xff]  ;;  %v7233_v11 = vld [vmem:[#allocation19 + $0xe8] sm:$0xff] }
 0x8a4   : > { %8247 = vmatpush1.bf16.msra.mxu1 %v12327_v45  ;;  %v7453_v45 = vld [vmem:[#allocation19 + $0x750] sm:$0xff] }
 0x8a5   : > { %8248 = vmatprep.subr.bf16.mxu1 %v12336_v23  ;;  %v7454_v23 = vld [vmem:[#allocation19 + $0x758] sm:$0xff]  ;;  %v12398_v1 = vcombine.high %v7453_v45, %v7457_v47  ;;  %v12397_v3 = vcombine.low %v7453_v45, %v7457_v47  ;;  %v7240_v45 = vld [vmem:[#allocation19 + $0x120] sm:$0xff]  ;;  %v7237_v47 = vld [vmem:[#allocation19 + $0x108] sm:$0xff] }
 0x8a6   : > { %8208 = vmatpush1.bf16.msra.mxu0 %v12333_v28  ;;  %v12400_v28 = vcombine.high %v7454_v23, %v7458_v24  ;;  %v12399_v37 = vcombine.low %v7454_v23, %v7458_v24  ;;  %v7241_v23 = vld [vmem:[#allocation19 + $0x128] sm:$0xff]  ;;  %v12441_v24 = vcombine.low %v7228_v32, %v7232_v5 }
 0x8a7   : > { %8209 = vmatprep.subr.bf16.mxu0 %v12342_v59  ;;  %v7465_v59 = vld [vmem:[#allocation19 + $0x7b0] sm:$0xff] }
 0x8a8   : > { %8249 = vmatpush1.bf16.msra.mxu1 %v12335_v41  ;;  %v7461_v41 = vld [vmem:[#allocation19 + $0x790] sm:$0xff] }
 0x8a9   : > { %8250 = vmatprep.subr.bf16.mxu1 %v12344_v53  ;;  %v7462_v53 = vld [vmem:[#allocation19 + $0x798] sm:$0xff]  ;;  %v12406_v22 = vcombine.high %v7461_v41, %v7465_v59  ;;  %v12405_v20 = vcombine.low %v7461_v41, %v7465_v59  ;;  %v7248_v41 = vld [vmem:[#allocation19 + $0x160] sm:$0xff]  ;;  %v7245_v59 = vld [vmem:[#allocation19 + $0x148] sm:$0xff] }
 0x8aa   : > { %8210 = vmatpush1.bf16.msra.mxu0 %v12341_v60  ;;  %v12408_v60 = vcombine.high %v7462_v53, %v7466_v21  ;;  %v12407_v36 = vcombine.low %v7462_v53, %v7466_v21  ;;  %v7249_v53 = vld [vmem:[#allocation19 + $0x168] sm:$0xff] }
 0x8ab   : > { %8211 = vmatprep.subr.bf16.mxu0 %v12350_v2  ;;  %v7473_v2 = vld [vmem:[#allocation19 + $0x7f0] sm:$0xff] }
 0x8ac   : > { %8251 = vmatpush1.bf16.msra.mxu1 %v12343_v17  ;;  %v7469_v17 = vld [vmem:[#allocation19 + $0x7d0] sm:$0xff] }
 0x8ad   : > { %8252 = vmatprep.subr.bf16.mxu1 %v12352_v50  ;;  %v7470_v50 = vld [vmem:[#allocation19 + $0x7d8] sm:$0xff]  ;;  %v12414_v12 = vcombine.high %v7469_v17, %v7473_v2  ;;  %v12413_v61 = vcombine.low %v7469_v17, %v7473_v2  ;;  %v7256_v17 = vld [vmem:[#allocation19 + $0x1a0] sm:$0xff]  ;;  %v7253_v2 = vld [vmem:[#allocation19 + $0x188] sm:$0xff] }
 0x8ae   : > { %8212 = vmatpush1.bf16.msra.mxu0 %v12349_v63  ;;  %v12416_v63 = vcombine.high %v7470_v50, %v7474_v8  ;;  %v12415_v40 = vcombine.low %v7470_v50, %v7474_v8  ;;  %v7257_v50 = vld [vmem:[#allocation19 + $0x1a8] sm:$0xff] }
 0x8af   : > { %8213 = vmatprep.subr.bf16.mxu0 %v12358_v51  ;;  %v7208_v51 = vld [vmem:[#allocation19 + $0x20] sm:$0xff] }
 0x8b0   : > { %8253 = vmatpush1.bf16.msra.mxu1 %v12351_v46  ;;  %v7204_v46 = vld [vmem:[#allocation19] sm:$0xff] }
 0x8b1   : > { %8254 = vmatprep.subr.bf16.mxu1 %v12360_v55  ;;  %v7205_v55 = vld [vmem:[#allocation19 + $0x8] sm:$0xff]  ;;  %v12417_v54 = vcombine.low %v7204_v46, %v7208_v51 }
 0x8b2   : > { %8214 = vmatpush1.bf16.msra.mxu0 %v12357_v62  ;;  %v12418_v62 = vcombine.high %v7204_v46, %v7208_v51  ;;  %v7264_v46 = vld [vmem:[#allocation19 + $0x1e0] sm:$0xff]  ;;  %v7261_v51 = vld [vmem:[#allocation19 + $0x1c8] sm:$0xff] }
 0x8b3   : > { %8215 = vmatprep.subr.bf16.mxu0 %v12366_v29  ;;  %v7212_v29 = vld [vmem:[#allocation19 + $0x40] sm:$0xff] }
 0x8b4   : > { %8255 = vmatpush1.bf16.msra.mxu1 %v12359_v0  ;;  %v12420_v0 = vcombine.high %v7205_v55, %v7209_v48 }
 0x8b5   : > { %8256 = vmatprep.subr.bf16.mxu1 %v12368_v30  ;;  %v7216_v30 = vld [vmem:[#allocation19 + $0x60] sm:$0xff] }
 0x8b6   : > { %8216 = vmatpush1.bf16.msra.mxu0 %v12365_v6  ;;  %v12419_v6 = vcombine.low %v7205_v55, %v7209_v48  ;;  %v7265_v55 = vld [vmem:[#allocation19 + $0x1e8] sm:$0xff] }
 0x8b7   : > { %8217 = vmatprep.subr.bf16.mxu0 %v12374_v13  ;;  %v12428_v13 = vcombine.high %v7213_v49, %v7217_v52 }
 0x8b8   : > { %8257 = vmatpush1.bf16.msra.mxu1 %v12367_v35  ;;  %v12426_v35 = vcombine.high %v7212_v29, %v7216_v30 }
 0x8b9   : > { %8258 = vmatprep.subr.bf16.mxu1 %v12376_v27  ;;  %v7220_v27 = vld [vmem:[#allocation19 + $0x80] sm:$0xff] }
 0x8ba   : > { %8218 = vmatpush1.bf16.msra.mxu0 %v12373_v4  ;;  %v12425_v4 = vcombine.low %v7212_v29, %v7216_v30  ;;  %v7272_v29 = vld [vmem:[#allocation19 + $0x220] sm:$0xff]  ;;  %v7269_v30 = vld [vmem:[#allocation19 + $0x208] sm:$0xff] }
 0x8bb   : > { %8219 = vmatprep.subr.bf16.mxu0 %v12382_v7  ;;  %v12434_v7 = vcombine.high %v7220_v27, %v7224_v15 }
 0x8bc   : > { %8259 = vmatpush1.bf16.msra.mxu1 %v12375_v38  ;;  %v12427_v38 = vcombine.low %v7213_v49, %v7217_v52  ;;  %v12475_v52 = vcombine.low %v7261_v51, %v7265_v55 }
 0x8bd   : > { %8260 = vmatprep.subr.bf16.mxu1 %v12384_v44  ;;  %v12436_v44 = vcombine.high %v7221_v18, %v7225_v34 }
 0x8be   : > { %8220 = vmatpush1.bf16.msra.mxu0 %v12381_v25  ;;  %v12433_v25 = vcombine.low %v7220_v27, %v7224_v15  ;;  %v7277_v27 = vld [vmem:[#allocation19 + $0x248] sm:$0xff] }
 0x8bf   : > { %8221 = vmatprep.subr.bf16.mxu0 %v12390_v31  ;;  %v12444_v31 = vcombine.high %v7229_v33, %v7233_v11  ;;  %v7281_v15 = vld [vmem:[#allocation19 + $0x268] sm:$0xff] }
 0x8c0   : > { %8261 = vmatpush1.bf16.msra.mxu1 %v12383_v56  ;;  %v12442_v56 = vcombine.high %v7228_v32, %v7232_v5  ;;  %v7285_v32 = vld [vmem:[#allocation19 + $0x288] sm:$0xff] }
 0x8c1   : > { %8262 = vmatprep.subr.bf16.mxu1 %v12392_v42  ;;  %v7236_v42 = vld [vmem:[#allocation19 + $0x100] sm:$0xff]  ;;  %v7289_v5 = vld [vmem:[#allocation19 + $0x2a8] sm:$0xff] }
 0x8c2   : > { %8222 = vmatpush1.bf16.msra.mxu0 %v12389_v16  ;;  %v12443_v16 = vcombine.low %v7229_v33, %v7233_v11  ;;  %v12449_v21 = vcombine.low %v7236_v42, %v7240_v45  ;;  %v12491_v11 = vcombine.low %v7277_v27, %v7281_v15 }
 0x8c3   : > { %8223 = vmatprep.subr.bf16.mxu0 %v12398_v1  ;;  %v12452_v1 = vcombine.high %v7237_v47, %v7241_v23 }
 0x8c4   : > { %8263 = vmatpush1.bf16.msra.mxu1 %v12391_v58  ;;  %v12450_v58 = vcombine.high %v7236_v42, %v7240_v45  ;;  %v7293_v42 = vld [vmem:[#allocation19 + $0x2c8] sm:$0xff] }
 0x8c5   : > { %8264 = vmatprep.subr.bf16.mxu1 %v12400_v28  ;;  %v7244_v28 = vld [vmem:[#allocation19 + $0x140] sm:$0xff]  ;;  %v7297_v45 = vld [vmem:[#allocation19 + $0x2e8] sm:$0xff] }
 0x8c6   : > { %8224 = vmatpush1.bf16.msra.mxu0 %v12397_v3  ;;  %v12451_v3 = vcombine.low %v7237_v47, %v7241_v23  ;;  %v12457_v8 = vcombine.low %v7244_v28, %v7248_v41  ;;  %v12499_v23 = vcombine.low %v7285_v32, %v7289_v5 }
 0x8c7   : > { %8225 = vmatprep.subr.bf16.mxu0 %v12406_v22  ;;  %v12460_v22 = vcombine.high %v7245_v59, %v7249_v53 }
 0x8c8   : > { %8265 = vmatpush1.bf16.msra.mxu1 %v12399_v37  ;;  %v12458_v37 = vcombine.high %v7244_v28, %v7248_v41  ;;  %v7301_v28 = vld [vmem:[#allocation19 + $0x308] sm:$0xff] }
 0x8c9   : > { %8266 = vmatprep.subr.bf16.mxu1 %v12408_v60  ;;  %v7252_v60 = vld [vmem:[#allocation19 + $0x180] sm:$0xff]  ;;  %v7305_v41 = vld [vmem:[#allocation19 + $0x328] sm:$0xff] }
 0x8ca   : > { %8226 = vmatpush1.bf16.msra.mxu0 %v12405_v20  ;;  %v12459_v20 = vcombine.low %v7245_v59, %v7249_v53  ;;  %v12465_v48 = vcombine.low %v7252_v60, %v7256_v17  ;;  %v12507_v53 = vcombine.low %v7293_v42, %v7297_v45 }
 0x8cb   : > { %8227 = vmatprep.subr.bf16.mxu0 %v12414_v12  ;;  %v12468_v12 = vcombine.high %v7253_v2, %v7257_v50 }
 0x8cc   : > { %8267 = vmatpush1.bf16.msra.mxu1 %v12407_v36  ;;  %v12466_v36 = vcombine.high %v7252_v60, %v7256_v17  ;;  %v7309_v60 = vld [vmem:[#allocation19 + $0x348] sm:$0xff] }
 0x8cd   : > { %8268 = vmatprep.subr.bf16.mxu1 %v12416_v63  ;;  %v7260_v63 = vld [vmem:[#allocation19 + $0x1c0] sm:$0xff]  ;;  %v7313_v17 = vld [vmem:[#allocation19 + $0x368] sm:$0xff] }
 0x8ce   : > { %8228 = vmatpush1.bf16.msra.mxu0 %v12413_v61  ;;  %v12467_v61 = vcombine.low %v7253_v2, %v7257_v50  ;;  %v12473_v49 = vcombine.low %v7260_v63, %v7264_v46  ;;  %v12515_v50 = vcombine.low %v7301_v28, %v7305_v41 }
 0x8cf   : > { %8919 = vmatprep.subr.bf16.mxu0 %v12418_v62  ;;  %v12476_v62 = vcombine.high %v7261_v51, %v7265_v55  ;;  %v12523_v55 = vcombine.low %v7309_v60, %v7313_v17 }
 0x8d0   : > { %8269 = vmatpush1.bf16.msra.mxu1 %v12415_v40  ;;  %v12474_v40 = vcombine.high %v7260_v63, %v7264_v46  ;;  %v7317_v63 = vld [vmem:[#allocation19 + $0x388] sm:$0xff] }
 0x8d1   : > { %8960 = vmatprep.subr.bf16.mxu1 %v12420_v0  ;;  %8230 = vmatmul.mubr.bf16.vlgmr.msra.gmra.mrb[4].mxu0 %v16321_v43  ;;  %v7268_v0 = vld [vmem:[#allocation19 + $0x200] sm:$0xff]  ;;  %v7321_v46 = vld [vmem:[#allocation19 + $0x3a8] sm:$0xff] }
 0x8d2   : > { %8920 = vmatpush1.bf16.msra.mxu0 %v12417_v54  ;;  %8951 = vmatprep.mubr.bf16.mxu0 %v16331_v14  ;;  %v12482_v54 = vcombine.high %v7268_v0, %v7272_v29 }
 0x8d3   : > { %8271 = vmatmul.mubr.bf16.vlgmr.msra.gmra.mrb[4].mxu1 %v16321_v43  ;;  %8921 = vmatprep.subr.bf16.mxu0 %v12426_v35  ;;  %v12435_v43 = vcombine.low %v7221_v18, %v7225_v34  ;;  %v7276_v35 = vld [vmem:[#allocation19 + $0x240] sm:$0xff]  ;;  %v12481_v18 = vcombine.low %v7268_v0, %v7272_v29  ;;  %v12483_v34 = vcombine.low %v7269_v30, %v7273_v26  ;;  %v7325_v0 = vld [vmem:[#allocation19 + $0x3c8] sm:$0xff] }
 0x8d4   : > { %8961 = vmatpush1.bf16.msra.mxu1 %v12419_v6  ;;  %8992 = vmatprep.mubr.bf16.mxu1 %v16331_v14  ;;  %v12484_v6 = vcombine.high %v7269_v30, %v7273_v26  ;;  %v7329_v29 = vld [vmem:[#allocation19 + $0x3e8] sm:$0xff]  ;;  %v12531_v26 = vcombine.low %v7317_v63, %v7321_v46 }
 0x8d5   : > { %8962 = vmatprep.subr.bf16.mxu1 %v12428_v13  ;;  %v7280_v13 = vld [vmem:[#allocation19 + $0x260] sm:$0xff] }
 0x8d6   : > { %8922 = vmatpush1.bf16.msra.mxu0 %v12425_v4  ;;  %v12490_v4 = vcombine.high %v7276_v35, %v7280_v13  ;;  %v12489_v33 = vcombine.low %v7276_v35, %v7280_v13  ;;  %v7207_v35 = vld [vmem:[#allocation19 + $0x18] sm:$0xff] }
 0x8d7   : > { %8923 = vmatprep.subr.bf16.mxu0 %v12434_v7  ;;  %v7284_v7 = vld [vmem:[#allocation19 + $0x280] sm:$0xff]  ;;  %v7211_v13 = vld [vmem:[#allocation19 + $0x38] sm:$0xff] }
 0x8d8   : > { %8963 = vmatpush1.bf16.msra.mxu1 %v12427_v38  ;;  %v12492_v38 = vcombine.high %v7277_v27, %v7281_v15  ;;  %v12539_v15 = vcombine.low %v7325_v0, %v7329_v29 }
 0x8d9   : > { %8964 = vmatprep.subr.bf16.mxu1 %v12436_v44  ;;  %v7288_v44 = vld [vmem:[#allocation19 + $0x2a0] sm:$0xff] }
 0x8da   : > { %8924 = vmatpush1.bf16.msra.mxu0 %v12433_v25  ;;  %v12498_v25 = vcombine.high %v7284_v7, %v7288_v44  ;;  %v12497_v47 = vcombine.low %v7284_v7, %v7288_v44  ;;  %v16339_v7 = vpack.c.bf16 %v16327_v39, %v16327_v39  ;;  %v7215_v44 = vld [vmem:[#allocation19 + $0x58] sm:$0xff] }
 0x8db   : > { %8925 = vmatprep.subr.bf16.mxu0 %v12442_v56  ;;  %v7292_v56 = vld [vmem:[#allocation19 + $0x2c0] sm:$0xff] }
 0x8dc   : > { %8965 = vmatpush1.bf16.msra.mxu1 %v12435_v43  ;;  %v12500_v43 = vcombine.high %v7285_v32, %v7289_v5  ;;  %v7219_v32 = vld [vmem:[#allocation19 + $0x78] sm:$0xff] }
 0x8dd   : > { %8966 = vmatprep.subr.bf16.mxu1 %v12444_v31  ;;  %v7296_v31 = vld [vmem:[#allocation19 + $0x2e0] sm:$0xff] }
 0x8de   : > { %8926 = vmatpush1.bf16.msra.mxu0 %v12441_v24  ;;  %v12506_v24 = vcombine.high %v7292_v56, %v7296_v31  ;;  %v12505_v59 = vcombine.low %v7292_v56, %v7296_v31  ;;  %v7226_v56 = vld [vmem:[#allocation19 + $0xb0] sm:$0xff]  ;;  %v7223_v31 = vld [vmem:[#allocation19 + $0x98] sm:$0xff] }
 0x8df   : > { %8927 = vmatprep.subr.bf16.mxu0 %v12450_v58  ;;  %v7300_v58 = vld [vmem:[#allocation19 + $0x300] sm:$0xff] }
 0x8e0   : > { %8967 = vmatpush1.bf16.msra.mxu1 %v12443_v16  ;;  %v12508_v16 = vcombine.high %v7293_v42, %v7297_v45  ;;  %v7227_v42 = vld [vmem:[#allocation19 + $0xb8] sm:$0xff]  ;;  %v12431_v45 = vcombine.low %v7215_v44, %v7219_v32 }
 0x8e1   : > { %8968 = vmatprep.subr.bf16.mxu1 %v12452_v1  ;;  %v7304_v1 = vld [vmem:[#allocation19 + $0x320] sm:$0xff] }
 0x8e2   : > { %8928 = vmatpush1.bf16.msra.mxu0 %v12449_v21  ;;  %v12514_v21 = vcombine.high %v7300_v58, %v7304_v1  ;;  %v12513_v2 = vcombine.low %v7300_v58, %v7304_v1  ;;  %v7231_v58 = vld [vmem:[#allocation19 + $0xd8] sm:$0xff] }
 0x8e3   : > { %8929 = vmatprep.subr.bf16.mxu0 %v12458_v37  ;;  %v7308_v37 = vld [vmem:[#allocation19 + $0x340] sm:$0xff]  ;;  %v7235_v1 = vld [vmem:[#allocation19 + $0xf8] sm:$0xff] }
 0x8e4   : > { %8969 = vmatpush1.bf16.msra.mxu1 %v12451_v3  ;;  %v12516_v3 = vcombine.high %v7301_v28, %v7305_v41  ;;  %v12439_v41 = vcombine.low %v7223_v31, %v7227_v42 }
 0x8e5   : > { %8970 = vmatprep.subr.bf16.mxu1 %v12460_v22  ;;  %v7312_v22 = vld [vmem:[#allocation19 + $0x360] sm:$0xff] }
 0x8e6   : > { %8930 = vmatpush1.bf16.msra.mxu0 %v12457_v8  ;;  %v12522_v8 = vcombine.high %v7308_v37, %v7312_v22  ;;  %v12521_v51 = vcombine.low %v7308_v37, %v7312_v22  ;;  %v7239_v37 = vld [vmem:[#allocation19 + $0x118] sm:$0xff] }
 0x8e7   : > { %8931 = vmatprep.subr.bf16.mxu0 %v12466_v36  ;;  %v7316_v36 = vld [vmem:[#allocation19 + $0x380] sm:$0xff]  ;;  %v7243_v22 = vld [vmem:[#allocation19 + $0x138] sm:$0xff] }
 0x8e8   : > { %8971 = vmatpush1.bf16.msra.mxu1 %v12459_v20  ;;  %v12524_v20 = vcombine.high %v7309_v60, %v7313_v17  ;;  %v12447_v17 = vcombine.low %v7231_v58, %v7235_v1 }
 0x8e9   : > { %8972 = vmatprep.subr.bf16.mxu1 %v12468_v12  ;;  %v7320_v12 = vld [vmem:[#allocation19 + $0x3a0] sm:$0xff] }
 0x8ea   : > { %8932 = vmatpush1.bf16.msra.mxu0 %v12465_v48  ;;  %v12530_v48 = vcombine.high %v7316_v36, %v7320_v12  ;;  %v12529_v30 = vcombine.low %v7316_v36, %v7320_v12  ;;  %v7251_v36 = vld [vmem:[#allocation19 + $0x178] sm:$0xff] }
 0x8eb   : > { %8933 = vmatprep.subr.bf16.mxu0 %v12474_v40  ;;  %v7324_v40 = vld [vmem:[#allocation19 + $0x3c0] sm:$0xff] }
 0x8ec   : > { %8973 = vmatpush1.bf16.msra.mxu1 %v12467_v61  ;;  %v12532_v61 = vcombine.high %v7317_v63, %v7321_v46  ;;  %v12455_v63 = vcombine.low %v7239_v37, %v7243_v22 }
 0x8ed   : > { %8974 = vmatprep.subr.bf16.mxu1 %v12476_v62  ;;  %v7328_v62 = vld [vmem:[#allocation19 + $0x3e0] sm:$0xff] }
 0x8ee   : > { %8934 = vmatpush1.bf16.msra.mxu0 %v12473_v49  ;;  %v12538_v49 = vcombine.high %v7324_v40, %v7328_v62  ;;  %v12537_v27 = vcombine.low %v7324_v40, %v7328_v62  ;;  %v7259_v40 = vld [vmem:[#allocation19 + $0x1b8] sm:$0xff] }
 0x8ef   : > { %8935 = vmatprep.subr.bf16.mxu0 %v12482_v54  ;;  %v7206_v54 = vld [vmem:[#allocation19 + $0x10] sm:$0xff] }
 0x8f0   : > { %8975 = vmatpush1.bf16.msra.mxu1 %v12475_v52  ;;  %v12540_v52 = vcombine.high %v7325_v0, %v7329_v29 }
 0x8f1   : > { %8976 = vmatprep.subr.bf16.mxu1 %v12484_v6  ;;  %v7210_v6 = vld [vmem:[#allocation19 + $0x30] sm:$0xff] }
 0x8f2   : > { %8936 = vmatpush1.bf16.msra.mxu0 %v12481_v18  ;;  %v12422_v18 = vcombine.high %v7206_v54, %v7210_v6  ;;  %v12421_v5 = vcombine.low %v7206_v54, %v7210_v6  ;;  %v7267_v54 = vld [vmem:[#allocation19 + $0x1f8] sm:$0xff] }
 0x8f3   : > { %8937 = vmatprep.subr.bf16.mxu0 %v12490_v4  ;;  %v7214_v4 = vld [vmem:[#allocation19 + $0x50] sm:$0xff] }
 0x8f4   : > { %8977 = vmatpush1.bf16.msra.mxu1 %v12483_v34  ;;  %v12424_v34 = vcombine.high %v7207_v35, %v7211_v13 }
 0x8f5   : > { %8978 = vmatprep.subr.bf16.mxu1 %v12492_v38  ;;  %v7218_v38 = vld [vmem:[#allocation19 + $0x70] sm:$0xff] }
 0x8f6   : > { %8938 = vmatpush1.bf16.msra.mxu0 %v12489_v33  ;;  %v12423_v33 = vcombine.low %v7207_v35, %v7211_v13  ;;  %v12429_v39 = vcombine.low %v7214_v4, %v7218_v38 }
 0x8f7   : > { %8939 = vmatprep.subr.bf16.mxu0 %v12498_v25  ;;  %v12432_v25 = vcombine.high %v7215_v44, %v7219_v32 }
 0x8f8   : > { %8979 = vmatpush1.bf16.msra.mxu1 %v12491_v11  ;;  %v12430_v11 = vcombine.high %v7214_v4, %v7218_v38  ;;  %v7275_v4 = vld [vmem:[#allocation19 + $0x238] sm:$0xff] }
 0x8f9   : > { %8980 = vmatprep.subr.bf16.mxu1 %v12500_v43  ;;  %v7222_v43 = vld [vmem:[#allocation19 + $0x90] sm:$0xff] }
 0x8fa   : > { %8940 = vmatpush1.bf16.msra.mxu0 %v12497_v47  ;;  %v12438_v47 = vcombine.high %v7222_v43, %v7226_v56  ;;  %v12437_v28 = vcombine.low %v7222_v43, %v7226_v56  ;;  %v7283_v43 = vld [vmem:[#allocation19 + $0x278] sm:$0xff] }
 0x8fb   : > { %8941 = vmatprep.subr.bf16.mxu0 %v12506_v24  ;;  %v7230_v24 = vld [vmem:[#allocation19 + $0xd0] sm:$0xff] }
 0x8fc   : > { %8981 = vmatpush1.bf16.msra.mxu1 %v12499_v23  ;;  %v12440_v23 = vcombine.high %v7223_v31, %v7227_v42 }
 0x8fd   : > { %8982 = vmatprep.subr.bf16.mxu1 %v12508_v16  ;;  %v7234_v16 = vld [vmem:[#allocation19 + $0xf0] sm:$0xff] }
 0x8fe   : > { %8942 = vmatpush1.bf16.msra.mxu0 %v12505_v59  ;;  %v12446_v59 = vcombine.high %v7230_v24, %v7234_v16  ;;  %v12445_v60 = vcombine.low %v7230_v24, %v7234_v16  ;;  %v7291_v24 = vld [vmem:[#allocation19 + $0x2b8] sm:$0xff] }
 0x8ff   : > { %8943 = vmatprep.subr.bf16.mxu0 %v12514_v21  ;;  %v7238_v21 = vld [vmem:[#allocation19 + $0x110] sm:$0xff] }
 0x900   : > { %8983 = vmatpush1.bf16.msra.mxu1 %v12507_v53  ;;  %v12448_v53 = vcombine.high %v7231_v58, %v7235_v1 }
 0x901   : > { %8984 = vmatprep.subr.bf16.mxu1 %v12516_v3  ;;  %v7242_v3 = vld [vmem:[#allocation19 + $0x130] sm:$0xff] }
 0x902   : > { %8944 = vmatpush1.bf16.msra.mxu0 %v12513_v2  ;;  %v12454_v2 = vcombine.high %v7238_v21, %v7242_v3  ;;  %v12453_v12 = vcombine.low %v7238_v21, %v7242_v3  ;;  %v7299_v21 = vld [vmem:[#allocation19 + $0x2f8] sm:$0xff] }
 0x903   : > { %8945 = vmatprep.subr.bf16.mxu0 %v12522_v8  ;;  %v7250_v8 = vld [vmem:[#allocation19 + $0x170] sm:$0xff] }
 0x904   : > { %8985 = vmatpush1.bf16.msra.mxu1 %v12515_v50  ;;  %v7246_v50 = vld [vmem:[#allocation19 + $0x150] sm:$0xff] }
 0x905   : > { %8986 = vmatprep.subr.bf16.mxu1 %v12524_v20  ;;  %v7247_v20 = vld [vmem:[#allocation19 + $0x158] sm:$0xff]  ;;  %v12462_v46 = vcombine.high %v7246_v50, %v7250_v8  ;;  %v12461_v62 = vcombine.low %v7246_v50, %v7250_v8 }
 0x906   : > { %8946 = vmatpush1.bf16.msra.mxu0 %v12521_v51  ;;  %v12464_v51 = vcombine.high %v7247_v20, %v7251_v36  ;;  %v12463_v0 = vcombine.low %v7247_v20, %v7251_v36  ;;  %v7307_v50 = vld [vmem:[#allocation19 + $0x338] sm:$0xff] }
 0x907   : > { %8947 = vmatprep.subr.bf16.mxu0 %v12530_v48  ;;  %v7258_v48 = vld [vmem:[#allocation19 + $0x1b0] sm:$0xff] }
 0x908   : > { %8987 = vmatpush1.bf16.msra.mxu1 %v12523_v55  ;;  %v7254_v55 = vld [vmem:[#allocation19 + $0x190] sm:$0xff] }
 0x909   : > { %8988 = vmatprep.subr.bf16.mxu1 %v12532_v61  ;;  %v7255_v61 = vld [vmem:[#allocation19 + $0x198] sm:$0xff]  ;;  %v12470_v29 = vcombine.high %v7254_v55, %v7258_v48  ;;  %v12469_v6 = vcombine.low %v7254_v55, %v7258_v48 }
 0x90a   : > { %8948 = vmatpush1.bf16.msra.mxu0 %v12529_v30  ;;  %v12472_v30 = vcombine.high %v7255_v61, %v7259_v40  ;;  %v12471_v35 = vcombine.low %v7255_v61, %v7259_v40  ;;  %v7315_v55 = vld [vmem:[#allocation19 + $0x378] sm:$0xff] }
 0x90b   : > { %8949 = vmatprep.subr.bf16.mxu0 %v12538_v49  ;;  %v7266_v49 = vld [vmem:[#allocation19 + $0x1f0] sm:$0xff] }
 0x90c   : > { %8989 = vmatpush1.bf16.msra.mxu1 %v12531_v26  ;;  %v7262_v26 = vld [vmem:[#allocation19 + $0x1d0] sm:$0xff] }
 0x90d   : > { %8990 = vmatprep.subr.bf16.mxu1 %v12540_v52  ;;  %v7263_v52 = vld [vmem:[#allocation19 + $0x1d8] sm:$0xff]  ;;  %v12478_v13 = vcombine.high %v7262_v26, %v7266_v49  ;;  %v12477_v38 = vcombine.low %v7262_v26, %v7266_v49 }
 0x90e   : > { %8950 = vmatpush1.bf16.msra.mxu0 %v12537_v27  ;;  %v12480_v27 = vcombine.high %v7263_v52, %v7267_v54  ;;  %v12479_v44 = vcombine.low %v7263_v52, %v7267_v54  ;;  %v7323_v26 = vld [vmem:[#allocation19 + $0x3b8] sm:$0xff] }
 0x90f   : > { %9001 = vmatprep.subr.bf16.mxu0 %v12422_v18  ;;  %v7274_v18 = vld [vmem:[#allocation19 + $0x230] sm:$0xff] }
 0x910   : > { %8991 = vmatpush1.bf16.msra.mxu1 %v12539_v15  ;;  %v7270_v15 = vld [vmem:[#allocation19 + $0x210] sm:$0xff] }
 0x911   : > { %9042 = vmatprep.subr.bf16.mxu1 %v12424_v34  ;;  %8952 = vmatmul.mubr.bf16.vlgmr.msra.gmra.mrb[0].mxu0 %v16339_v7  ;;  %v7271_v34 = vld [vmem:[#allocation19 + $0x218] sm:$0xff]  ;;  %v12486_v32 = vcombine.high %v7270_v15, %v7274_v18  ;;  %v12485_v56 = vcombine.low %v7270_v15, %v7274_v18 }
 0x912   : > { %9002 = vmatpush1.bf16.msra.mxu0 %v12421_v5  ;;  %9033 = vmatprep.mubr.bf16.mxu0 %v16331_v14  ;;  %v12488_v5 = vcombine.high %v7271_v34, %v7275_v4  ;;  %v12487_v31 = vcombine.low %v7271_v34, %v7275_v4  ;;  %v7331_v15 = vld [vmem:[#allocation19 + $0x3f8] sm:$0xff] }
 0x913   : > { %8993 = vmatmul.mubr.bf16.vlgmr.msra.gmra.mrb[0].mxu1 %v16339_v7  ;;  %9003 = vmatprep.subr.bf16.mxu0 %v12430_v11  ;;  %v7282_v11 = vld [vmem:[#allocation19 + $0x270] sm:$0xff] }
 0x914   : > { %9043 = vmatpush1.bf16.msra.mxu1 %v12423_v33  ;;  %9074 = vmatprep.mubr.bf16.mxu1 %v16331_v14  ;;  %v12456_v14 = vcombine.high %v7239_v37, %v7243_v22  ;;  %v7278_v33 = vld [vmem:[#allocation19 + $0x250] sm:$0xff] }
 0x915   : > { %9044 = vmatprep.subr.bf16.mxu1 %v12432_v25  ;;  %v7279_v25 = vld [vmem:[#allocation19 + $0x258] sm:$0xff]  ;;  %v12494_v42 = vcombine.high %v7278_v33, %v7282_v11  ;;  %v12493_v16 = vcombine.low %v7278_v33, %v7282_v11  ;;  %v9103_v33 = vld [vmem:[#allocation19 + $0x828] sm:$0xff] }
 0x916   : > { %9004 = vmatpush1.bf16.msra.mxu0 %v12429_v39  ;;  %v12496_v39 = vcombine.high %v7279_v25, %v7283_v43  ;;  %v12495_v58 = vcombine.low %v7279_v25, %v7283_v43  ;;  %v16345_v11 = vld.sshfl [vmem:[#allocation4 + $0x8] sm:$0x33 pattern:$0x76325410] }
 0x917   : > { %9005 = vmatprep.subr.bf16.mxu0 %v12438_v47  ;;  %v7290_v47 = vld [vmem:[#allocation19 + $0x2b0] sm:$0xff] }
 0x918   : > { %9045 = vmatpush1.bf16.msra.mxu1 %v12431_v45  ;;  %v7286_v45 = vld [vmem:[#allocation19 + $0x290] sm:$0xff] }
 0x919   : > { %9046 = vmatprep.subr.bf16.mxu1 %v12440_v23  ;;  %v7287_v23 = vld [vmem:[#allocation19 + $0x298] sm:$0xff]  ;;  %v12502_v1 = vcombine.high %v7286_v45, %v7290_v47  ;;  %v12501_v3 = vcombine.low %v7286_v45, %v7290_v47  ;;  %v9093_v45 = vcombine.high %v16345_v11, %v16345_v11  ;;  %v9107_v47 = vld [vmem:[#allocation19 + $0x848] sm:$0xff] }
 0x91a   : > { %9006 = vmatpush1.bf16.msra.mxu0 %v12437_v28  ;;  %v12504_v28 = vcombine.high %v7287_v23, %v7291_v24  ;;  %v12503_v37 = vcombine.low %v7287_v23, %v7291_v24  ;;  %v9111_v23 = vld [vmem:[#allocation19 + $0x868] sm:$0xff] }
 0x91b   : > { %9007 = vmatprep.subr.bf16.mxu0 %v12446_v59  ;;  %v7298_v59 = vld [vmem:[#allocation19 + $0x2f0] sm:$0xff] }
 0x91c   : > { %9047 = vmatpush1.bf16.msra.mxu1 %v12439_v41  ;;  %v7294_v41 = vld [vmem:[#allocation19 + $0x2d0] sm:$0xff] }
 0x91d   : > { %9048 = vmatprep.subr.bf16.mxu1 %v12448_v53  ;;  %v7295_v53 = vld [vmem:[#allocation19 + $0x2d8] sm:$0xff]  ;;  %v12510_v22 = vcombine.high %v7294_v41, %v7298_v59  ;;  %v12509_v8 = vcombine.low %v7294_v41, %v7298_v59  ;;  %v9118_v41 = vld [vmem:[#allocation19 + $0x8a0] sm:$0xff]  ;;  %v16349_v59 = vpack.c.bf16 %v9093_v45, %v9093_v45  ;;  %v9167_v45 = vld [vmem:[#allocation19 + $0xa28] sm:$0xff] }
 0x91e   : > { %9008 = vmatpush1.bf16.msra.mxu0 %v12445_v60  ;;  %v12512_v60 = vcombine.high %v7295_v53, %v7299_v21  ;;  %v12511_v20 = vcombine.low %v7295_v53, %v7299_v21  ;;  %v9115_v53 = vld [vmem:[#allocation19 + $0x888] sm:$0xff] }
 0x91f   : > { %9009 = vmatprep.subr.bf16.mxu0 %v12454_v2  ;;  %v7306_v2 = vld [vmem:[#allocation19 + $0x330] sm:$0xff]  ;;  %v9119_v21 = vld [vmem:[#allocation19 + $0x8a8] sm:$0xff] }
 0x920   : > { %9049 = vmatpush1.bf16.msra.mxu1 %v12447_v17  ;;  %v7302_v17 = vld [vmem:[#allocation19 + $0x310] sm:$0xff] }
 0x921   : > { %9050 = vmatprep.subr.bf16.mxu1 %v12456_v14  ;;  %v7303_v14 = vld [vmem:[#allocation19 + $0x318] sm:$0xff]  ;;  %v12518_v36 = vcombine.high %v7302_v17, %v7306_v2  ;;  %v12517_v48 = vcombine.low %v7302_v17, %v7306_v2  ;;  %v9122_v17 = vld [vmem:[#allocation19 + $0x8c0] sm:$0xff] }
 0x922   : > { %9010 = vmatpush1.bf16.msra.mxu0 %v12453_v12  ;;  %v12520_v12 = vcombine.high %v7303_v14, %v7307_v50  ;;  %v12519_v61 = vcombine.low %v7303_v14, %v7307_v50  ;;  %v9126_v2 = vld [vmem:[#allocation19 + $0x8e0] sm:$0xff]  ;;  %v9123_v14 = vld [vmem:[#allocation19 + $0x8c8] sm:$0xff] }
 0x923   : > { %9011 = vmatprep.subr.bf16.mxu0 %v12462_v46  ;;  %v7314_v46 = vld [vmem:[#allocation19 + $0x370] sm:$0xff]  ;;  %v9127_v50 = vld [vmem:[#allocation19 + $0x8e8] sm:$0xff] }
 0x924   : > { %9051 = vmatpush1.bf16.msra.mxu1 %v12455_v63  ;;  %v7310_v63 = vld [vmem:[#allocation19 + $0x350] sm:$0xff] }
 0x925   : > { %9052 = vmatprep.subr.bf16.mxu1 %v12464_v51  ;;  %v7311_v51 = vld [vmem:[#allocation19 + $0x358] sm:$0xff]  ;;  %v12526_v40 = vcombine.high %v7310_v63, %v7314_v46  ;;  %v12525_v49 = vcombine.low %v7310_v63, %v7314_v46  ;;  %v9134_v63 = vld [vmem:[#allocation19 + $0x920] sm:$0xff]  ;;  %v9131_v46 = vld [vmem:[#allocation19 + $0x908] sm:$0xff] }
 0x926   : > { %9012 = vmatpush1.bf16.msra.mxu0 %v12461_v62  ;;  %v12528_v62 = vcombine.high %v7311_v51, %v7315_v55  ;;  %v12527_v52 = vcombine.low %v7311_v51, %v7315_v55  ;;  %v9135_v51 = vld [vmem:[#allocation19 + $0x928] sm:$0xff]  ;;  %v12570_v55 = vcombine.low %v9122_v17, %v9126_v2 }
 0x927   : > { %9013 = vmatprep.subr.bf16.mxu0 %v12470_v29  ;;  %v7322_v29 = vld [vmem:[#allocation19 + $0x3b0] sm:$0xff] }
 0x928   : > { %9053 = vmatpush1.bf16.msra.mxu1 %v12463_v0  ;;  %v7318_v0 = vld [vmem:[#allocation19 + $0x390] sm:$0xff] }
 0x929   : > { %9054 = vmatprep.subr.bf16.mxu1 %v12472_v30  ;;  %v7319_v30 = vld [vmem:[#allocation19 + $0x398] sm:$0xff]  ;;  %v12534_v54 = vcombine.high %v7318_v0, %v7322_v29  ;;  %v12533_v18 = vcombine.low %v7318_v0, %v7322_v29  ;;  %v9142_v0 = vld [vmem:[#allocation19 + $0x960] sm:$0xff]  ;;  %v9139_v29 = vld [vmem:[#allocation19 + $0x948] sm:$0xff] }
 0x92a   : > { %9014 = vmatpush1.bf16.msra.mxu0 %v12469_v6  ;;  %v12536_v6 = vcombine.high %v7319_v30, %v7323_v26  ;;  %v12535_v34 = vcombine.low %v7319_v30, %v7323_v26  ;;  %v9143_v30 = vld [vmem:[#allocation19 + $0x968] sm:$0xff] }
 0x92b   : > { %9015 = vmatprep.subr.bf16.mxu0 %v12478_v13  ;;  %v7330_v13 = vld [vmem:[#allocation19 + $0x3f0] sm:$0xff] }
 0x92c   : > { %9055 = vmatpush1.bf16.msra.mxu1 %v12471_v35  ;;  %v7326_v35 = vld [vmem:[#allocation19 + $0x3d0] sm:$0xff] }
 0x92d   : > { %9056 = vmatprep.subr.bf16.mxu1 %v12480_v27  ;;  %v7327_v27 = vld [vmem:[#allocation19 + $0x3d8] sm:$0xff]  ;;  %v12542_v4 = vcombine.high %v7326_v35, %v7330_v13  ;;  %v12541_v25 = vcombine.low %v7326_v35, %v7330_v13  ;;  %v9150_v35 = vld [vmem:[#allocation19 + $0x9a0] sm:$0xff]  ;;  %v9147_v13 = vld [vmem:[#allocation19 + $0x988] sm:$0xff] }
 0x92e   : > { %9016 = vmatpush1.bf16.msra.mxu0 %v12477_v38  ;;  %v12544_v38 = vcombine.high %v7327_v27, %v7331_v15  ;;  %v12543_v43 = vcombine.low %v7327_v27, %v7331_v15  ;;  %v9151_v27 = vld [vmem:[#allocation19 + $0x9a8] sm:$0xff] }
 0x92f   : > { %9017 = vmatprep.subr.bf16.mxu0 %v12486_v32  ;;  %v9102_v32 = vld [vmem:[#allocation19 + $0x820] sm:$0xff] }
 0x930   : > { %9057 = vmatpush1.bf16.msra.mxu1 %v12479_v44  ;;  %v9098_v44 = vld [vmem:[#allocation19 + $0x800] sm:$0xff] }
 0x931   : > { %9058 = vmatprep.subr.bf16.mxu1 %v12488_v5  ;;  %v9099_v5 = vld [vmem:[#allocation19 + $0x808] sm:$0xff]  ;;  %v12546_v24 = vcombine.low %v9098_v44, %v9102_v32 }
 0x932   : > { %9018 = vmatpush1.bf16.msra.mxu0 %v12485_v56  ;;  %v12547_v56 = vcombine.high %v9098_v44, %v9102_v32  ;;  %v9158_v44 = vld [vmem:[#allocation19 + $0x9e0] sm:$0xff]  ;;  %v9155_v32 = vld [vmem:[#allocation19 + $0x9c8] sm:$0xff] }
 0x933   : > { %9019 = vmatprep.subr.bf16.mxu0 %v12494_v42  ;;  %v9106_v42 = vld [vmem:[#allocation19 + $0x840] sm:$0xff] }
 0x934   : > { %9059 = vmatpush1.bf16.msra.mxu1 %v12487_v31  ;;  %v12549_v31 = vcombine.high %v9099_v5, %v9103_v33 }
 0x935   : > { %9060 = vmatprep.subr.bf16.mxu1 %v12496_v39  ;;  %v9110_v39 = vld [vmem:[#allocation19 + $0x860] sm:$0xff] }
 0x936   : > { %9020 = vmatpush1.bf16.msra.mxu0 %v12493_v16  ;;  %v12548_v16 = vcombine.low %v9099_v5, %v9103_v33  ;;  %v9159_v5 = vld [vmem:[#allocation19 + $0x9e8] sm:$0xff] }
 0x937   : > { %9021 = vmatprep.subr.bf16.mxu0 %v12502_v1  ;;  %v12557_v1 = vcombine.high %v9107_v47, %v9111_v23 }
 0x938   : > { %9061 = vmatpush1.bf16.msra.mxu1 %v12495_v58  ;;  %v12555_v58 = vcombine.high %v9106_v42, %v9110_v39 }
 0x939   : > { %9062 = vmatprep.subr.bf16.mxu1 %v12504_v28  ;;  %v9114_v28 = vld [vmem:[#allocation19 + $0x880] sm:$0xff] }
 0x93a   : > { %9022 = vmatpush1.bf16.msra.mxu0 %v12501_v3  ;;  %v12554_v3 = vcombine.low %v9106_v42, %v9110_v39  ;;  %v9166_v42 = vld [vmem:[#allocation19 + $0xa20] sm:$0xff]  ;;  %v9163_v39 = vld [vmem:[#allocation19 + $0xa08] sm:$0xff] }
 0x93b   : > { %9023 = vmatprep.subr.bf16.mxu0 %v12510_v22  ;;  %v12563_v22 = vcombine.high %v9114_v28, %v9118_v41 }
 0x93c   : > { %9063 = vmatpush1.bf16.msra.mxu1 %v12503_v37  ;;  %v12556_v37 = vcombine.low %v9107_v47, %v9111_v23  ;;  %v12604_v23 = vcombine.low %v9155_v32, %v9159_v5 }
 0x93d   : > { %9064 = vmatprep.subr.bf16.mxu1 %v12512_v60  ;;  %v12565_v60 = vcombine.high %v9115_v53, %v9119_v21 }
 0x93e   : > { %9024 = vmatpush1.bf16.msra.mxu0 %v12509_v8  ;;  %v12562_v8 = vcombine.low %v9114_v28, %v9118_v41  ;;  %v9171_v28 = vld [vmem:[#allocation19 + $0xa48] sm:$0xff] }
 0x93f   : > { %9025 = vmatprep.subr.bf16.mxu0 %v12518_v36  ;;  %v12573_v36 = vcombine.high %v9123_v14, %v9127_v50  ;;  %v9175_v41 = vld [vmem:[#allocation19 + $0xa68] sm:$0xff] }
 0x940   : > { %9065 = vmatpush1.bf16.msra.mxu1 %v12511_v20  ;;  %v12571_v20 = vcombine.high %v9122_v17, %v9126_v2  ;;  %v9179_v17 = vld [vmem:[#allocation19 + $0xa88] sm:$0xff] }
 0x941   : > { %9066 = vmatprep.subr.bf16.mxu1 %v12520_v12  ;;  %v9130_v12 = vld [vmem:[#allocation19 + $0x900] sm:$0xff]  ;;  %v9183_v2 = vld [vmem:[#allocation19 + $0xaa8] sm:$0xff] }
 0x942   : > { %9026 = vmatpush1.bf16.msra.mxu0 %v12517_v48  ;;  %v12572_v48 = vcombine.low %v9123_v14, %v9127_v50  ;;  %v12578_v26 = vcombine.low %v9130_v12, %v9134_v63  ;;  %v12620_v50 = vcombine.low %v9171_v28, %v9175_v41 }
 0x943   : > { %9027 = vmatprep.subr.bf16.mxu0 %v12526_v40  ;;  %v12581_v40 = vcombine.high %v9131_v46, %v9135_v51 }
 0x944   : > { %9067 = vmatpush1.bf16.msra.mxu1 %v12519_v61  ;;  %v12579_v61 = vcombine.high %v9130_v12, %v9134_v63  ;;  %v9187_v12 = vld [vmem:[#allocation19 + $0xac8] sm:$0xff] }
 0x945   : > { %9068 = vmatprep.subr.bf16.mxu1 %v12528_v62  ;;  %v9138_v62 = vld [vmem:[#allocation19 + $0x940] sm:$0xff]  ;;  %v9191_v63 = vld [vmem:[#allocation19 + $0xae8] sm:$0xff] }
 0x946   : > { %9028 = vmatpush1.bf16.msra.mxu0 %v12525_v49  ;;  %v12580_v49 = vcombine.low %v9131_v46, %v9135_v51  ;;  %v12586_v15 = vcombine.low %v9138_v62, %v9142_v0  ;;  %v12628_v51 = vcombine.low %v9179_v17, %v9183_v2 }
 0x947   : > { %9029 = vmatprep.subr.bf16.mxu0 %v12534_v54  ;;  %v12589_v54 = vcombine.high %v9139_v29, %v9143_v30 }
 0x948   : > { %9069 = vmatpush1.bf16.msra.mxu1 %v12527_v52  ;;  %v12587_v52 = vcombine.high %v9138_v62, %v9142_v0  ;;  %v9195_v62 = vld [vmem:[#allocation19 + $0xb08] sm:$0xff] }
 0x949   : > { %9070 = vmatprep.subr.bf16.mxu1 %v12536_v6  ;;  %v9146_v6 = vld [vmem:[#allocation19 + $0x980] sm:$0xff]  ;;  %v9199_v0 = vld [vmem:[#allocation19 + $0xb28] sm:$0xff] }
 0x94a   : > { %9030 = vmatpush1.bf16.msra.mxu0 %v12533_v18  ;;  %v12588_v18 = vcombine.low %v9139_v29, %v9143_v30  ;;  %v12594_v33 = vcombine.low %v9146_v6, %v9150_v35  ;;  %v12636_v30 = vcombine.low %v9187_v12, %v9191_v63 }
 0x94b   : > { %9031 = vmatprep.subr.bf16.mxu0 %v12542_v4  ;;  %v12597_v4 = vcombine.high %v9147_v13, %v9151_v27 }
 0x94c   : > { %9071 = vmatpush1.bf16.msra.mxu1 %v12535_v34  ;;  %v12595_v34 = vcombine.high %v9146_v6, %v9150_v35  ;;  %v9203_v6 = vld [vmem:[#allocation19 + $0xb48] sm:$0xff] }
 0x94d   : > { %9072 = vmatprep.subr.bf16.mxu1 %v12544_v38  ;;  %v9154_v38 = vld [vmem:[#allocation19 + $0x9c0] sm:$0xff]  ;;  %v9207_v35 = vld [vmem:[#allocation19 + $0xb68] sm:$0xff] }
 0x94e   : > { %9032 = vmatpush1.bf16.msra.mxu0 %v12541_v25  ;;  %v12596_v25 = vcombine.low %v9147_v13, %v9151_v27  ;;  %v12602_v47 = vcombine.low %v9154_v38, %v9158_v44  ;;  %v12644_v27 = vcombine.low %v9195_v62, %v9199_v0 }
 0x94f   : > { %9866 = vmatprep.subr.bf16.mxu0 %v12547_v56  ;;  %v12605_v56 = vcombine.high %v9155_v32, %v9159_v5  ;;  %v12652_v5 = vcombine.low %v9203_v6, %v9207_v35 }
 0x950   : > { %9073 = vmatpush1.bf16.msra.mxu1 %v12543_v43  ;;  %v12603_v43 = vcombine.high %v9154_v38, %v9158_v44  ;;  %v9211_v38 = vld [vmem:[#allocation19 + $0xb88] sm:$0xff] }
 0x951   : > { %9907 = vmatprep.subr.bf16.mxu1 %v12549_v31  ;;  %9034 = vmatmul.mubr.bf16.vlgmr.msra.gmra.mrb[4].mxu0 %v16339_v7  ;;  %v9162_v31 = vld [vmem:[#allocation19 + $0xa00] sm:$0xff]  ;;  %v9215_v44 = vld [vmem:[#allocation19 + $0xba8] sm:$0xff] }
 0x952   : > { %9867 = vmatpush1.bf16.msra.mxu0 %v12546_v24  ;;  %9898 = vmatprep.mubr.bf16.mxu0 %v16349_v59  ;;  %v12611_v24 = vcombine.high %v9162_v31, %v9166_v42 }
 0x953   : > { %9075 = vmatmul.mubr.bf16.vlgmr.msra.gmra.mrb[4].mxu1 %v16339_v7  ;;  %9868 = vmatprep.subr.bf16.mxu0 %v12555_v58  ;;  %v12564_v7 = vcombine.low %v9115_v53, %v9119_v21  ;;  %v9170_v58 = vld [vmem:[#allocation19 + $0xa40] sm:$0xff]  ;;  %v12610_v53 = vcombine.low %v9162_v31, %v9166_v42  ;;  %v12612_v21 = vcombine.low %v9163_v39, %v9167_v45  ;;  %v9219_v31 = vld [vmem:[#allocation19 + $0xbc8] sm:$0xff] }
 0x954   : > { %9908 = vmatpush1.bf16.msra.mxu1 %v12548_v16  ;;  %9939 = vmatprep.mubr.bf16.mxu1 %v16349_v59  ;;  %v12613_v16 = vcombine.high %v9163_v39, %v9167_v45  ;;  %v9223_v42 = vld [vmem:[#allocation19 + $0xbe8] sm:$0xff]  ;;  %v12660_v45 = vcombine.low %v9211_v38, %v9215_v44 }
 0x955   : > { %9909 = vmatprep.subr.bf16.mxu1 %v12557_v1  ;;  %v9174_v1 = vld [vmem:[#allocation19 + $0xa60] sm:$0xff] }
 0x956   : > { %9869 = vmatpush1.bf16.msra.mxu0 %v12554_v3  ;;  %v12619_v3 = vcombine.high %v9170_v58, %v9174_v1  ;;  %v12618_v14 = vcombine.low %v9170_v58, %v9174_v1  ;;  %v9101_v58 = vld [vmem:[#allocation19 + $0x818] sm:$0xff] }
 0x957   : > { %9870 = vmatprep.subr.bf16.mxu0 %v12563_v22  ;;  %v9178_v22 = vld [vmem:[#allocation19 + $0xa80] sm:$0xff]  ;;  %v9105_v1 = vld [vmem:[#allocation19 + $0x838] sm:$0xff] }
 0x958   : > { %9910 = vmatpush1.bf16.msra.mxu1 %v12556_v37  ;;  %v12621_v37 = vcombine.high %v9171_v28, %v9175_v41  ;;  %v12668_v41 = vcombine.low %v9219_v31, %v9223_v42 }
 0x959   : > { %9911 = vmatprep.subr.bf16.mxu1 %v12565_v60  ;;  %v9182_v60 = vld [vmem:[#allocation19 + $0xaa0] sm:$0xff] }
 0x95a   : > { %9871 = vmatpush1.bf16.msra.mxu0 %v12562_v8  ;;  %v12627_v8 = vcombine.high %v9178_v22, %v9182_v60  ;;  %v12626_v46 = vcombine.low %v9178_v22, %v9182_v60  ;;  %v16357_v22 = vpack.c.bf16 %v16345_v11, %v16345_v11  ;;  %v9109_v60 = vld [vmem:[#allocation19 + $0x858] sm:$0xff] }
 0x95b   : > { %9872 = vmatprep.subr.bf16.mxu0 %v12571_v20  ;;  %v9186_v20 = vld [vmem:[#allocation19 + $0xac0] sm:$0xff] }
 0x95c   : > { %9912 = vmatpush1.bf16.msra.mxu1 %v12564_v7  ;;  %v12629_v7 = vcombine.high %v9179_v17, %v9183_v2  ;;  %v9113_v17 = vld [vmem:[#allocation19 + $0x878] sm:$0xff] }
 0x95d   : > { %9913 = vmatprep.subr.bf16.mxu1 %v12573_v36  ;;  %v9190_v36 = vld [vmem:[#allocation19 + $0xae0] sm:$0xff] }
 0x95e   : > { %9873 = vmatpush1.bf16.msra.mxu0 %v12570_v55  ;;  %v12635_v55 = vcombine.high %v9186_v20, %v9190_v36  ;;  %v12634_v29 = vcombine.low %v9186_v20, %v9190_v36  ;;  %v9120_v20 = vld [vmem:[#allocation19 + $0x8b0] sm:$0xff]  ;;  %v9117_v36 = vld [vmem:[#allocation19 + $0x898] sm:$0xff] }
 0x95f   : > { %9874 = vmatprep.subr.bf16.mxu0 %v12579_v61  ;;  %v9194_v61 = vld [vmem:[#allocation19 + $0xb00] sm:$0xff] }
 0x960   : > { %9914 = vmatpush1.bf16.msra.mxu1 %v12572_v48  ;;  %v12637_v48 = vcombine.high %v9187_v12, %v9191_v63  ;;  %v9121_v12 = vld [vmem:[#allocation19 + $0x8b8] sm:$0xff]  ;;  %v12560_v63 = vcombine.low %v9109_v60, %v9113_v17 }
 0x961   : > { %9915 = vmatprep.subr.bf16.mxu1 %v12581_v40  ;;  %v9198_v40 = vld [vmem:[#allocation19 + $0xb20] sm:$0xff] }
 0x962   : > { %9875 = vmatpush1.bf16.msra.mxu0 %v12578_v26  ;;  %v12643_v26 = vcombine.high %v9194_v61, %v9198_v40  ;;  %v12642_v13 = vcombine.low %v9194_v61, %v9198_v40  ;;  %v9125_v61 = vld [vmem:[#allocation19 + $0x8d8] sm:$0xff] }
 0x963   : > { %9876 = vmatprep.subr.bf16.mxu0 %v12587_v52  ;;  %v9202_v52 = vld [vmem:[#allocation19 + $0xb40] sm:$0xff]  ;;  %v9129_v40 = vld [vmem:[#allocation19 + $0x8f8] sm:$0xff] }
 0x964   : > { %9916 = vmatpush1.bf16.msra.mxu1 %v12580_v49  ;;  %v12645_v49 = vcombine.high %v9195_v62, %v9199_v0  ;;  %v12568_v0 = vcombine.low %v9117_v36, %v9121_v12 }
 0x965   : > { %9917 = vmatprep.subr.bf16.mxu1 %v12589_v54  ;;  %v9206_v54 = vld [vmem:[#allocation19 + $0xb60] sm:$0xff] }
 0x966   : > { %9877 = vmatpush1.bf16.msra.mxu0 %v12586_v15  ;;  %v12651_v15 = vcombine.high %v9202_v52, %v9206_v54  ;;  %v12650_v32 = vcombine.low %v9202_v52, %v9206_v54  ;;  %v9133_v52 = vld [vmem:[#allocation19 + $0x918] sm:$0xff] }
 0x967   : > { %9878 = vmatprep.subr.bf16.mxu0 %v12595_v34  ;;  %v9210_v34 = vld [vmem:[#allocation19 + $0xb80] sm:$0xff]  ;;  %v9137_v54 = vld [vmem:[#allocation19 + $0x938] sm:$0xff] }
 0x968   : > { %9918 = vmatpush1.bf16.msra.mxu1 %v12588_v18  ;;  %v12653_v18 = vcombine.high %v9203_v6, %v9207_v35  ;;  %v12576_v35 = vcombine.low %v9125_v61, %v9129_v40 }
 0x969   : > { %9919 = vmatprep.subr.bf16.mxu1 %v12597_v4  ;;  %v9214_v4 = vld [vmem:[#allocation19 + $0xba0] sm:$0xff] }
 0x96a   : > { %9879 = vmatpush1.bf16.msra.mxu0 %v12594_v33  ;;  %v12659_v33 = vcombine.high %v9210_v34, %v9214_v4  ;;  %v12658_v39 = vcombine.low %v9210_v34, %v9214_v4  ;;  %v9145_v34 = vld [vmem:[#allocation19 + $0x978] sm:$0xff] }
 0x96b   : > { %9880 = vmatprep.subr.bf16.mxu0 %v12603_v43  ;;  %v9218_v43 = vld [vmem:[#allocation19 + $0xbc0] sm:$0xff] }
 0x96c   : > { %9920 = vmatpush1.bf16.msra.mxu1 %v12596_v25  ;;  %v12661_v25 = vcombine.high %v9211_v38, %v9215_v44  ;;  %v12584_v38 = vcombine.low %v9133_v52, %v9137_v54 }
 0x96d   : > { %9921 = vmatprep.subr.bf16.mxu1 %v12605_v56  ;;  %v9222_v56 = vld [vmem:[#allocation19 + $0xbe0] sm:$0xff] }
 0x96e   : > { %9881 = vmatpush1.bf16.msra.mxu0 %v12602_v47  ;;  %v12667_v47 = vcombine.high %v9218_v43, %v9222_v56  ;;  %v12666_v28 = vcombine.low %v9218_v43, %v9222_v56  ;;  %v9153_v43 = vld [vmem:[#allocation19 + $0x9b8] sm:$0xff] }
 0x96f   : > { %9882 = vmatprep.subr.bf16.mxu0 %v12611_v24  ;;  %v9100_v24 = vld [vmem:[#allocation19 + $0x810] sm:$0xff] }
 0x970   : > { %9922 = vmatpush1.bf16.msra.mxu1 %v12604_v23  ;;  %v12669_v23 = vcombine.high %v9219_v31, %v9223_v42 }
 0x971   : > { %9923 = vmatprep.subr.bf16.mxu1 %v12613_v16  ;;  %v9104_v16 = vld [vmem:[#allocation19 + $0x830] sm:$0xff] }
 0x972   : > { %9883 = vmatpush1.bf16.msra.mxu0 %v12610_v53  ;;  %v12551_v53 = vcombine.high %v9100_v24, %v9104_v16  ;;  %v12550_v2 = vcombine.low %v9100_v24, %v9104_v16  ;;  %v9161_v24 = vld [vmem:[#allocation19 + $0x9f8] sm:$0xff] }
 0x973   : > { %9884 = vmatprep.subr.bf16.mxu0 %v12619_v3  ;;  %v9108_v3 = vld [vmem:[#allocation19 + $0x850] sm:$0xff] }
 0x974   : > { %9924 = vmatpush1.bf16.msra.mxu1 %v12612_v21  ;;  %v12553_v21 = vcombine.high %v9101_v58, %v9105_v1 }
 0x975   : > { %9925 = vmatprep.subr.bf16.mxu1 %v12621_v37  ;;  %v9112_v37 = vld [vmem:[#allocation19 + $0x870] sm:$0xff] }
 0x976   : > { %9885 = vmatpush1.bf16.msra.mxu0 %v12618_v14  ;;  %v12552_v14 = vcombine.low %v9101_v58, %v9105_v1  ;;  %v12558_v11 = vcombine.low %v9108_v3, %v9112_v37 }
 0x977   : > { %9886 = vmatprep.subr.bf16.mxu0 %v12627_v8  ;;  %v12561_v8 = vcombine.high %v9109_v60, %v9113_v17 }
 0x978   : > { %9926 = vmatpush1.bf16.msra.mxu1 %v12620_v50  ;;  %v12559_v50 = vcombine.high %v9108_v3, %v9112_v37  ;;  %v9169_v3 = vld [vmem:[#allocation19 + $0xa38] sm:$0xff] }
 0x979   : > { %9927 = vmatprep.subr.bf16.mxu1 %v12629_v7  ;;  %v9116_v7 = vld [vmem:[#allocation19 + $0x890] sm:$0xff] }
 0x97a   : > { %9887 = vmatpush1.bf16.msra.mxu0 %v12626_v46  ;;  %v12567_v46 = vcombine.high %v9116_v7, %v9120_v20  ;;  %v12566_v62 = vcombine.low %v9116_v7, %v9120_v20  ;;  %v9177_v7 = vld [vmem:[#allocation19 + $0xa78] sm:$0xff] }
 0x97b   : > { %9888 = vmatprep.subr.bf16.mxu0 %v12635_v55  ;;  %v9124_v55 = vld [vmem:[#allocation19 + $0x8d0] sm:$0xff] }
 0x97c   : > { %9928 = vmatpush1.bf16.msra.mxu1 %v12628_v51  ;;  %v12569_v51 = vcombine.high %v9117_v36, %v9121_v12 }
 0x97d   : > { %9929 = vmatprep.subr.bf16.mxu1 %v12637_v48  ;;  %v9128_v48 = vld [vmem:[#allocation19 + $0x8f0] sm:$0xff] }
 0x97e   : > { %9889 = vmatpush1.bf16.msra.mxu0 %v12634_v29  ;;  %v12575_v29 = vcombine.high %v9124_v55, %v9128_v48  ;;  %v12574_v6 = vcombine.low %v9124_v55, %v9128_v48  ;;  %v9185_v55 = vld [vmem:[#allocation19 + $0xab8] sm:$0xff] }
 0x97f   : > { %9890 = vmatprep.subr.bf16.mxu0 %v12643_v26  ;;  %v9132_v26 = vld [vmem:[#allocation19 + $0x910] sm:$0xff] }
 0x980   : > { %9930 = vmatpush1.bf16.msra.mxu1 %v12636_v30  ;;  %v12577_v30 = vcombine.high %v9125_v61, %v9129_v40 }
 0x981   : > { %9931 = vmatprep.subr.bf16.mxu1 %v12645_v49  ;;  %v9136_v49 = vld [vmem:[#allocation19 + $0x930] sm:$0xff] }
 0x982   : > { %9891 = vmatpush1.bf16.msra.mxu0 %v12642_v13  ;;  %v12583_v13 = vcombine.high %v9132_v26, %v9136_v49  ;;  %v12582_v4 = vcombine.low %v9132_v26, %v9136_v49  ;;  %v9193_v26 = vld [vmem:[#allocation19 + $0xaf8] sm:$0xff] }
 0x983   : > { %9892 = vmatprep.subr.bf16.mxu0 %v12651_v15  ;;  %v9144_v15 = vld [vmem:[#allocation19 + $0x970] sm:$0xff] }
 0x984   : > { %9932 = vmatpush1.bf16.msra.mxu1 %v12644_v27  ;;  %v9140_v27 = vld [vmem:[#allocation19 + $0x950] sm:$0xff] }
 0x985   : > { %9933 = vmatprep.subr.bf16.mxu1 %v12653_v18  ;;  %v9141_v18 = vld [vmem:[#allocation19 + $0x958] sm:$0xff]  ;;  %v12591_v44 = vcombine.high %v9140_v27, %v9144_v15  ;;  %v12590_v56 = vcombine.low %v9140_v27, %v9144_v15 }
 0x986   : > { %9893 = vmatpush1.bf16.msra.mxu0 %v12650_v32  ;;  %v12593_v32 = vcombine.high %v9141_v18, %v9145_v34  ;;  %v12592_v31 = vcombine.low %v9141_v18, %v9145_v34  ;;  %v9201_v27 = vld [vmem:[#allocation19 + $0xb38] sm:$0xff] }
 0x987   : > { %9894 = vmatprep.subr.bf16.mxu0 %v12659_v33  ;;  %v9152_v33 = vld [vmem:[#allocation19 + $0x9b0] sm:$0xff] }
 0x988   : > { %9934 = vmatpush1.bf16.msra.mxu1 %v12652_v5  ;;  %v9148_v5 = vld [vmem:[#allocation19 + $0x990] sm:$0xff] }
 0x989   : > { %9935 = vmatprep.subr.bf16.mxu1 %v12661_v25  ;;  %v9149_v25 = vld [vmem:[#allocation19 + $0x998] sm:$0xff]  ;;  %v12599_v42 = vcombine.high %v9148_v5, %v9152_v33  ;;  %v12598_v16 = vcombine.low %v9148_v5, %v9152_v33 }
 0x98a   : > { %9895 = vmatpush1.bf16.msra.mxu0 %v12658_v39  ;;  %v12601_v39 = vcombine.high %v9149_v25, %v9153_v43  ;;  %v12600_v58 = vcombine.low %v9149_v25, %v9153_v43  ;;  %v9209_v5 = vld [vmem:[#allocation19 + $0xb78] sm:$0xff] }
 0x98b   : > { %9896 = vmatprep.subr.bf16.mxu0 %v12667_v47  ;;  %v9160_v47 = vld [vmem:[#allocation19 + $0x9f0] sm:$0xff] }
 0x98c   : > { %9936 = vmatpush1.bf16.msra.mxu1 %v12660_v45  ;;  %v9156_v45 = vld [vmem:[#allocation19 + $0x9d0] sm:$0xff] }
 0x98d   : > { %9937 = vmatprep.subr.bf16.mxu1 %v12669_v23  ;;  %v9157_v23 = vld [vmem:[#allocation19 + $0x9d8] sm:$0xff]  ;;  %v12607_v1 = vcombine.high %v9156_v45, %v9160_v47  ;;  %v12606_v37 = vcombine.low %v9156_v45, %v9160_v47 }
 0x98e   : > { %9897 = vmatpush1.bf16.msra.mxu0 %v12666_v28  ;;  %v12609_v28 = vcombine.high %v9157_v23, %v9161_v24  ;;  %v12608_v60 = vcombine.low %v9157_v23, %v9161_v24  ;;  %v9217_v45 = vld [vmem:[#allocation19 + $0xbb8] sm:$0xff] }
 0x98f   : > { %9948 = vmatprep.subr.bf16.mxu0 %v12551_v53  ;;  %v9168_v53 = vld [vmem:[#allocation19 + $0xa30] sm:$0xff] }
 0x990   : > { %9938 = vmatpush1.bf16.msra.mxu1 %v12668_v41  ;;  %v9164_v41 = vld [vmem:[#allocation19 + $0xa10] sm:$0xff] }
 0x991   : > { %9989 = vmatprep.subr.bf16.mxu1 %v12553_v21  ;;  %9899 = vmatmul.mubr.bf16.vlgmr.msra.gmra.mrb[0].mxu0 %v16357_v22  ;;  %v9165_v21 = vld [vmem:[#allocation19 + $0xa18] sm:$0xff]  ;;  %v12615_v17 = vcombine.high %v9164_v41, %v9168_v53  ;;  %v12614_v20 = vcombine.low %v9164_v41, %v9168_v53 }
 0x992   : > { %9949 = vmatpush1.bf16.msra.mxu0 %v12550_v2  ;;  %9980 = vmatprep.mubr.bf16.mxu0 %v16349_v59  ;;  %v12617_v2 = vcombine.high %v9165_v21, %v9169_v3  ;;  %v12616_v36 = vcombine.low %v9165_v21, %v9169_v3  ;;  %v9225_v41 = vld [vmem:[#allocation19 + $0xbf8] sm:$0xff] }
 0x993   : > { %9940 = vmatmul.mubr.bf16.vlgmr.msra.gmra.mrb[0].mxu1 %v16357_v22  ;;  %9950 = vmatprep.subr.bf16.mxu0 %v12559_v50  ;;  %v9176_v50 = vld [vmem:[#allocation19 + $0xa70] sm:$0xff] }
 0x994   : > { %9990 = vmatpush1.bf16.msra.mxu1 %v12552_v14  ;;  %10021 = vmatprep.mubr.bf16.mxu1 %v16349_v59  ;;  %v12585_v59 = vcombine.high %v9133_v52, %v9137_v54  ;;  %v9172_v14 = vld [vmem:[#allocation19 + $0xa50] sm:$0xff] }
 0x995   : > { %9991 = vmatprep.subr.bf16.mxu1 %v12561_v8  ;;  %v9173_v8 = vld [vmem:[#allocation19 + $0xa58] sm:$0xff]  ;;  %v12623_v12 = vcombine.high %v9172_v14, %v9176_v50  ;;  %v12622_v48 = vcombine.low %v9172_v14, %v9176_v50  ;;  %v10058_v14 = vld [vmem:[#allocation19 + $0xc28] sm:$0xff] }
 0x996   : > { %9951 = vmatpush1.bf16.msra.mxu0 %v12558_v11  ;;  %v12625_v11 = vcombine.high %v9173_v8, %v9177_v7  ;;  %v12624_v61 = vcombine.low %v9173_v8, %v9177_v7  ;;  %v16363_v50 = vld.sshfl [vmem:[#allocation4 + $0xc] sm:$0x33 pattern:$0x76325410] }
 0x997   : > { %9952 = vmatprep.subr.bf16.mxu0 %v12567_v46  ;;  %v9184_v46 = vld [vmem:[#allocation19 + $0xab0] sm:$0xff] }
 0x998   : > { %9992 = vmatpush1.bf16.msra.mxu1 %v12560_v63  ;;  %v9180_v63 = vld [vmem:[#allocation19 + $0xa90] sm:$0xff] }
 0x999   : > { %9993 = vmatprep.subr.bf16.mxu1 %v12569_v51  ;;  %v9181_v51 = vld [vmem:[#allocation19 + $0xa98] sm:$0xff]  ;;  %v12631_v40 = vcombine.high %v9180_v63, %v9184_v46  ;;  %v12630_v49 = vcombine.low %v9180_v63, %v9184_v46  ;;  %v10048_v63 = vcombine.high %v16363_v50, %v16363_v50  ;;  %v10062_v46 = vld [vmem:[#allocation19 + $0xc48] sm:$0xff] }
 0x99a   : > { %9953 = vmatpush1.bf16.msra.mxu0 %v12566_v62  ;;  %v12633_v62 = vcombine.high %v9181_v51, %v9185_v55  ;;  %v12632_v52 = vcombine.low %v9181_v51, %v9185_v55  ;;  %v10066_v51 = vld [vmem:[#allocation19 + $0xc68] sm:$0xff] }
 0x99b   : > { %9954 = vmatprep.subr.bf16.mxu0 %v12575_v29  ;;  %v9192_v29 = vld [vmem:[#allocation19 + $0xaf0] sm:$0xff] }
 0x99c   : > { %9994 = vmatpush1.bf16.msra.mxu1 %v12568_v0  ;;  %v9188_v0 = vld [vmem:[#allocation19 + $0xad0] sm:$0xff] }
 0x99d   : > { %9995 = vmatprep.subr.bf16.mxu1 %v12577_v30  ;;  %v9189_v30 = vld [vmem:[#allocation19 + $0xad8] sm:$0xff]  ;;  %v12639_v54 = vcombine.high %v9188_v0, %v9192_v29  ;;  %v12638_v15 = vcombine.low %v9188_v0, %v9192_v29  ;;  %v10073_v0 = vld [vmem:[#allocation19 + $0xca0] sm:$0xff]  ;;  %v16367_v29 = vpack.c.bf16 %v10048_v63, %v10048_v63  ;;  %v10122_v63 = vld [vmem:[#allocation19 + $0xe28] sm:$0xff] }
 0x99e   : > { %9955 = vmatpush1.bf16.msra.mxu0 %v12574_v6  ;;  %v12641_v6 = vcombine.high %v9189_v30, %v9193_v26  ;;  %v12640_v18 = vcombine.low %v9189_v30, %v9193_v26  ;;  %v10070_v30 = vld [vmem:[#allocation19 + $0xc88] sm:$0xff] }
 0x99f   : > { %9956 = vmatprep.subr.bf16.mxu0 %v12583_v13  ;;  %v9200_v13 = vld [vmem:[#allocation19 + $0xb30] sm:$0xff]  ;;  %v10074_v26 = vld [vmem:[#allocation19 + $0xca8] sm:$0xff] }
 0x9a0   : > { %9996 = vmatpush1.bf16.msra.mxu1 %v12576_v35  ;;  %v9196_v35 = vld [vmem:[#allocation19 + $0xb10] sm:$0xff] }
 0x9a1   : > { %9997 = vmatprep.subr.bf16.mxu1 %v12585_v59  ;;  %v9197_v59 = vld [vmem:[#allocation19 + $0xb18] sm:$0xff]  ;;  %v12647_v34 = vcombine.high %v9196_v35, %v9200_v13  ;;  %v12646_v33 = vcombine.low %v9196_v35, %v9200_v13  ;;  %v10077_v35 = vld [vmem:[#allocation19 + $0xcc0] sm:$0xff] }
 0x9a2   : > { %9957 = vmatpush1.bf16.msra.mxu0 %v12582_v4  ;;  %v12649_v4 = vcombine.high %v9197_v59, %v9201_v27  ;;  %v12648_v25 = vcombine.low %v9197_v59, %v9201_v27  ;;  %v10081_v13 = vld [vmem:[#allocation19 + $0xce0] sm:$0xff]  ;;  %v10078_v59 = vld [vmem:[#allocation19 + $0xcc8] sm:$0xff] }
 0x9a3   : > { %9958 = vmatprep.subr.bf16.mxu0 %v12591_v44  ;;  %v9208_v44 = vld [vmem:[#allocation19 + $0xb70] sm:$0xff]  ;;  %v10082_v27 = vld [vmem:[#allocation19 + $0xce8] sm:$0xff] }
 0x9a4   : > { %9998 = vmatpush1.bf16.msra.mxu1 %v12584_v38  ;;  %v9204_v38 = vld [vmem:[#allocation19 + $0xb50] sm:$0xff] }
 0x9a5   : > { %9999 = vmatprep.subr.bf16.mxu1 %v12593_v32  ;;  %v9205_v32 = vld [vmem:[#allocation19 + $0xb58] sm:$0xff]  ;;  %v12655_v43 = vcombine.high %v9204_v38, %v9208_v44  ;;  %v12654_v47 = vcombine.low %v9204_v38, %v9208_v44  ;;  %v10089_v38 = vld [vmem:[#allocation19 + $0xd20] sm:$0xff]  ;;  %v10086_v44 = vld [vmem:[#allocation19 + $0xd08] sm:$0xff] }
 0x9a6   : > { %9959 = vmatpush1.bf16.msra.mxu0 %v12590_v56  ;;  %v12657_v56 = vcombine.high %v9205_v32, %v9209_v5  ;;  %v12656_v23 = vcombine.low %v9205_v32, %v9209_v5  ;;  %v10090_v32 = vld [vmem:[#allocation19 + $0xd28] sm:$0xff]  ;;  %v12699_v5 = vcombine.low %v10077_v35, %v10081_v13 }
 0x9a7   : > { %9960 = vmatprep.subr.bf16.mxu0 %v12599_v42  ;;  %v9216_v42 = vld [vmem:[#allocation19 + $0xbb0] sm:$0xff] }
 0x9a8   : > { %10000 = vmatpush1.bf16.msra.mxu1 %v12592_v31  ;;  %v9212_v31 = vld [vmem:[#allocation19 + $0xb90] sm:$0xff] }
 0x9a9   : > { %10001 = vmatprep.subr.bf16.mxu1 %v12601_v39  ;;  %v9213_v39 = vld [vmem:[#allocation19 + $0xb98] sm:$0xff]  ;;  %v12663_v24 = vcombine.high %v9212_v31, %v9216_v42  ;;  %v12662_v53 = vcombine.low %v9212_v31, %v9216_v42  ;;  %v10097_v31 = vld [vmem:[#allocation19 + $0xd60] sm:$0xff]  ;;  %v10094_v42 = vld [vmem:[#allocation19 + $0xd48] sm:$0xff] }
 0x9aa   : > { %9961 = vmatpush1.bf16.msra.mxu0 %v12598_v16  ;;  %v12665_v16 = vcombine.high %v9213_v39, %v9217_v45  ;;  %v12664_v21 = vcombine.low %v9213_v39, %v9217_v45  ;;  %v10098_v39 = vld [vmem:[#allocation19 + $0xd68] sm:$0xff] }
 0x9ab   : > { %9962 = vmatprep.subr.bf16.mxu0 %v12607_v1  ;;  %v9224_v1 = vld [vmem:[#allocation19 + $0xbf0] sm:$0xff] }
 0x9ac   : > { %10002 = vmatpush1.bf16.msra.mxu1 %v12600_v58  ;;  %v9220_v58 = vld [vmem:[#allocation19 + $0xbd0] sm:$0xff] }
 0x9ad   : > { %10003 = vmatprep.subr.bf16.mxu1 %v12609_v28  ;;  %v9221_v28 = vld [vmem:[#allocation19 + $0xbd8] sm:$0xff]  ;;  %v12671_v3 = vcombine.high %v9220_v58, %v9224_v1  ;;  %v12670_v8 = vcombine.low %v9220_v58, %v9224_v1  ;;  %v10105_v58 = vld [vmem:[#allocation19 + $0xda0] sm:$0xff]  ;;  %v10102_v1 = vld [vmem:[#allocation19 + $0xd88] sm:$0xff] }
 0x9ae   : > { %9963 = vmatpush1.bf16.msra.mxu0 %v12606_v37  ;;  %v12673_v37 = vcombine.high %v9221_v28, %v9225_v41  ;;  %v12672_v7 = vcombine.low %v9221_v28, %v9225_v41  ;;  %v10106_v28 = vld [vmem:[#allocation19 + $0xda8] sm:$0xff] }
 0x9af   : > { %9964 = vmatprep.subr.bf16.mxu0 %v12615_v17  ;;  %v10057_v17 = vld [vmem:[#allocation19 + $0xc20] sm:$0xff] }
 0x9b0   : > { %10004 = vmatpush1.bf16.msra.mxu1 %v12608_v60  ;;  %v10053_v60 = vld [vmem:[#allocation19 + $0xc00] sm:$0xff] }
 0x9b1   : > { %10005 = vmatprep.subr.bf16.mxu1 %v12617_v2  ;;  %v10054_v2 = vld [vmem:[#allocation19 + $0xc08] sm:$0xff]  ;;  %v12675_v55 = vcombine.low %v10053_v60, %v10057_v17 }
 0x9b2   : > { %9965 = vmatpush1.bf16.msra.mxu0 %v12614_v20  ;;  %v12676_v20 = vcombine.high %v10053_v60, %v10057_v17  ;;  %v10113_v60 = vld [vmem:[#allocation19 + $0xde0] sm:$0xff]  ;;  %v10110_v17 = vld [vmem:[#allocation19 + $0xdc8] sm:$0xff] }
 0x9b3   : > { %9966 = vmatprep.subr.bf16.mxu0 %v12623_v12  ;;  %v10061_v12 = vld [vmem:[#allocation19 + $0xc40] sm:$0xff] }
 0x9b4   : > { %10006 = vmatpush1.bf16.msra.mxu1 %v12616_v36  ;;  %v12678_v36 = vcombine.high %v10054_v2, %v10058_v14 }
 0x9b5   : > { %10007 = vmatprep.subr.bf16.mxu1 %v12625_v11  ;;  %v10065_v11 = vld [vmem:[#allocation19 + $0xc60] sm:$0xff] }
 0x9b6   : > { %9967 = vmatpush1.bf16.msra.mxu0 %v12622_v48  ;;  %v12677_v48 = vcombine.low %v10054_v2, %v10058_v14  ;;  %v10114_v2 = vld [vmem:[#allocation19 + $0xde8] sm:$0xff] }
 0x9b7   : > { %9968 = vmatprep.subr.bf16.mxu0 %v12631_v40  ;;  %v12686_v40 = vcombine.high %v10062_v46, %v10066_v51 }
 0x9b8   : > { %10008 = vmatpush1.bf16.msra.mxu1 %v12624_v61  ;;  %v12684_v61 = vcombine.high %v10061_v12, %v10065_v11 }
 0x9b9   : > { %10009 = vmatprep.subr.bf16.mxu1 %v12633_v62  ;;  %v10069_v62 = vld [vmem:[#allocation19 + $0xc80] sm:$0xff] }
 0x9ba   : > { %9969 = vmatpush1.bf16.msra.mxu0 %v12630_v49  ;;  %v12683_v49 = vcombine.low %v10061_v12, %v10065_v11  ;;  %v10121_v12 = vld [vmem:[#allocation19 + $0xe20] sm:$0xff]  ;;  %v10118_v11 = vld [vmem:[#allocation19 + $0xe08] sm:$0xff] }
 0x9bb   : > { %9970 = vmatprep.subr.bf16.mxu0 %v12639_v54  ;;  %v12692_v54 = vcombine.high %v10069_v62, %v10073_v0 }
 0x9bc   : > { %10010 = vmatpush1.bf16.msra.mxu1 %v12632_v52  ;;  %v12685_v52 = vcombine.low %v10062_v46, %v10066_v51  ;;  %v12733_v51 = vcombine.low %v10110_v17, %v10114_v2 }
 0x9bd   : > { %10011 = vmatprep.subr.bf16.mxu1 %v12641_v6  ;;  %v12694_v6 = vcombine.high %v10070_v30, %v10074_v26 }
 0x9be   : > { %9971 = vmatpush1.bf16.msra.mxu0 %v12638_v15  ;;  %v12691_v15 = vcombine.low %v10069_v62, %v10073_v0  ;;  %v10126_v62 = vld [vmem:[#allocation19 + $0xe48] sm:$0xff] }
 0x9bf   : > { %9972 = vmatprep.subr.bf16.mxu0 %v12647_v34  ;;  %v12702_v34 = vcombine.high %v10078_v59, %v10082_v27  ;;  %v10130_v0 = vld [vmem:[#allocation19 + $0xe68] sm:$0xff] }
 0x9c0   : > { %10012 = vmatpush1.bf16.msra.mxu1 %v12640_v18  ;;  %v12700_v18 = vcombine.high %v10077_v35, %v10081_v13  ;;  %v10134_v35 = vld [vmem:[#allocation19 + $0xe88] sm:$0xff] }
 0x9c1   : > { %10013 = vmatprep.subr.bf16.mxu1 %v12649_v4  ;;  %v10085_v4 = vld [vmem:[#allocation19 + $0xd00] sm:$0xff]  ;;  %v10138_v13 = vld [vmem:[#allocation19 + $0xea8] sm:$0xff] }
 0x9c2   : > { %9973 = vmatpush1.bf16.msra.mxu0 %v12646_v33  ;;  %v12701_v33 = vcombine.low %v10078_v59, %v10082_v27  ;;  %v12707_v45 = vcombine.low %v10085_v4, %v10089_v38  ;;  %v12749_v27 = vcombine.low %v10126_v62, %v10130_v0 }
 0x9c3   : > { %9974 = vmatprep.subr.bf16.mxu0 %v12655_v43  ;;  %v12710_v43 = vcombine.high %v10086_v44, %v10090_v32 }
 0x9c4   : > { %10014 = vmatpush1.bf16.msra.mxu1 %v12648_v25  ;;  %v12708_v25 = vcombine.high %v10085_v4, %v10089_v38  ;;  %v10142_v4 = vld [vmem:[#allocation19 + $0xec8] sm:$0xff] }
 0x9c5   : > { %10015 = vmatprep.subr.bf16.mxu1 %v12657_v56  ;;  %v10093_v56 = vld [vmem:[#allocation19 + $0xd40] sm:$0xff]  ;;  %v10146_v38 = vld [vmem:[#allocation19 + $0xee8] sm:$0xff] }
 0x9c6   : > { %9975 = vmatpush1.bf16.msra.mxu0 %v12654_v47  ;;  %v12709_v47 = vcombine.low %v10086_v44, %v10090_v32  ;;  %v12715_v41 = vcombine.low %v10093_v56, %v10097_v31  ;;  %v12757_v32 = vcombine.low %v10134_v35, %v10138_v13 }
 0x9c7   : > { %9976 = vmatprep.subr.bf16.mxu0 %v12663_v24  ;;  %v12718_v24 = vcombine.high %v10094_v42, %v10098_v39 }
 0x9c8   : > { %10016 = vmatpush1.bf16.msra.mxu1 %v12656_v23  ;;  %v12716_v23 = vcombine.high %v10093_v56, %v10097_v31  ;;  %v10150_v56 = vld [vmem:[#allocation19 + $0xf08] sm:$0xff] }
 0x9c9   : > { %10017 = vmatprep.subr.bf16.mxu1 %v12665_v16  ;;  %v10101_v16 = vld [vmem:[#allocation19 + $0xd80] sm:$0xff]  ;;  %v10154_v31 = vld [vmem:[#allocation19 + $0xf28] sm:$0xff] }
 0x9ca   : > { %9977 = vmatpush1.bf16.msra.mxu0 %v12662_v53  ;;  %v12717_v53 = vcombine.low %v10094_v42, %v10098_v39  ;;  %v12723_v14 = vcombine.low %v10101_v16, %v10105_v58  ;;  %v12765_v39 = vcombine.low %v10142_v4, %v10146_v38 }
 0x9cb   : > { %9978 = vmatprep.subr.bf16.mxu0 %v12671_v3  ;;  %v12726_v3 = vcombine.high %v10102_v1, %v10106_v28 }
 0x9cc   : > { %10018 = vmatpush1.bf16.msra.mxu1 %v12664_v21  ;;  %v12724_v21 = vcombine.high %v10101_v16, %v10105_v58  ;;  %v10158_v16 = vld [vmem:[#allocation19 + $0xf48] sm:$0xff] }
 0x9cd   : > { %10019 = vmatprep.subr.bf16.mxu1 %v12673_v37  ;;  %v10109_v37 = vld [vmem:[#allocation19 + $0xdc0] sm:$0xff]  ;;  %v10162_v58 = vld [vmem:[#allocation19 + $0xf68] sm:$0xff] }
 0x9ce   : > { %9979 = vmatpush1.bf16.msra.mxu0 %v12670_v8  ;;  %v12725_v8 = vcombine.low %v10102_v1, %v10106_v28  ;;  %v12731_v46 = vcombine.low %v10109_v37, %v10113_v60  ;;  %v12773_v28 = vcombine.low %v10150_v56, %v10154_v31 }
 0x9cf   : > { %10821 = vmatprep.subr.bf16.mxu0 %v12676_v20  ;;  %v12734_v20 = vcombine.high %v10110_v17, %v10114_v2  ;;  %v12781_v2 = vcombine.low %v10158_v16, %v10162_v58 }
 0x9d0   : > { %10020 = vmatpush1.bf16.msra.mxu1 %v12672_v7  ;;  %v12732_v7 = vcombine.high %v10109_v37, %v10113_v60  ;;  %v10166_v37 = vld [vmem:[#allocation19 + $0xf88] sm:$0xff] }
 0x9d1   : > { %10862 = vmatprep.subr.bf16.mxu1 %v12678_v36  ;;  %9981 = vmatmul.mubr.bf16.vlgmr.msra.gmra.mrb[4].mxu0 %v16357_v22  ;;  %v10117_v36 = vld [vmem:[#allocation19 + $0xe00] sm:$0xff]  ;;  %v10170_v60 = vld [vmem:[#allocation19 + $0xfa8] sm:$0xff] }
 0x9d2   : > { %10822 = vmatpush1.bf16.msra.mxu0 %v12675_v55  ;;  %10853 = vmatprep.mubr.bf16.mxu0 %v16367_v29  ;;  %v12740_v55 = vcombine.high %v10117_v36, %v10121_v12 }
 0x9d3   : > { %10022 = vmatmul.mubr.bf16.vlgmr.msra.gmra.mrb[4].mxu1 %v16357_v22  ;;  %10823 = vmatprep.subr.bf16.mxu0 %v12684_v61  ;;  %v12693_v22 = vcombine.low %v10070_v30, %v10074_v26  ;;  %v10125_v61 = vld [vmem:[#allocation19 + $0xe40] sm:$0xff]  ;;  %v12739_v30 = vcombine.low %v10117_v36, %v10121_v12  ;;  %v12741_v26 = vcombine.low %v10118_v11, %v10122_v63  ;;  %v10174_v36 = vld [vmem:[#allocation19 + $0xfc8] sm:$0xff] }
 0x9d4   : > { %10863 = vmatpush1.bf16.msra.mxu1 %v12677_v48  ;;  %10894 = vmatprep.mubr.bf16.mxu1 %v16367_v29  ;;  %v12742_v48 = vcombine.high %v10118_v11, %v10122_v63  ;;  %v10178_v12 = vld [vmem:[#allocation19 + $0xfe8] sm:$0xff]  ;;  %v12789_v63 = vcombine.low %v10166_v37, %v10170_v60 }
 0x9d5   : > { %10864 = vmatprep.subr.bf16.mxu1 %v12686_v40  ;;  %v10129_v40 = vld [vmem:[#allocation19 + $0xe60] sm:$0xff] }
 0x9d6   : > { %10824 = vmatpush1.bf16.msra.mxu0 %v12683_v49  ;;  %v12748_v49 = vcombine.high %v10125_v61, %v10129_v40  ;;  %v12747_v59 = vcombine.low %v10125_v61, %v10129_v40  ;;  %v10056_v61 = vld [vmem:[#allocation19 + $0xc18] sm:$0xff] }
 0x9d7   : > { %10825 = vmatprep.subr.bf16.mxu0 %v12692_v54  ;;  %v10133_v54 = vld [vmem:[#allocation19 + $0xe80] sm:$0xff]  ;;  %v10060_v40 = vld [vmem:[#allocation19 + $0xc38] sm:$0xff] }
 0x9d8   : > { %10865 = vmatpush1.bf16.msra.mxu1 %v12685_v52  ;;  %v12750_v52 = vcombine.high %v10126_v62, %v10130_v0  ;;  %v12797_v0 = vcombine.low %v10174_v36, %v10178_v12 }
 0x9d9   : > { %10866 = vmatprep.subr.bf16.mxu1 %v12694_v6  ;;  %v10137_v6 = vld [vmem:[#allocation19 + $0xea0] sm:$0xff] }
 0x9da   : > { %10826 = vmatpush1.bf16.msra.mxu0 %v12691_v15  ;;  %v12756_v15 = vcombine.high %v10133_v54, %v10137_v6  ;;  %v12755_v44 = vcombine.low %v10133_v54, %v10137_v6  ;;  %v16375_v54 = vpack.c.bf16 %v16363_v50, %v16363_v50  ;;  %v10064_v6 = vld [vmem:[#allocation19 + $0xc58] sm:$0xff] }
 0x9db   : > { %10827 = vmatprep.subr.bf16.mxu0 %v12700_v18  ;;  %v10141_v18 = vld [vmem:[#allocation19 + $0xec0] sm:$0xff] }
 0x9dc   : > { %10867 = vmatpush1.bf16.msra.mxu1 %v12693_v22  ;;  %v12758_v22 = vcombine.high %v10134_v35, %v10138_v13  ;;  %v10068_v35 = vld [vmem:[#allocation19 + $0xc78] sm:$0xff] }
 0x9dd   : > { %10868 = vmatprep.subr.bf16.mxu1 %v12702_v34  ;;  %v10145_v34 = vld [vmem:[#allocation19 + $0xee0] sm:$0xff] }
 0x9de   : > { %10828 = vmatpush1.bf16.msra.mxu0 %v12699_v5  ;;  %v12764_v5 = vcombine.high %v10141_v18, %v10145_v34  ;;  %v12763_v42 = vcombine.low %v10141_v18, %v10145_v34  ;;  %v10075_v18 = vld [vmem:[#allocation19 + $0xcb0] sm:$0xff]  ;;  %v10072_v34 = vld [vmem:[#allocation19 + $0xc98] sm:$0xff] }
 0x9df   : > { %10829 = vmatprep.subr.bf16.mxu0 %v12708_v25  ;;  %v10149_v25 = vld [vmem:[#allocation19 + $0xf00] sm:$0xff] }
 0x9e0   : > { %10869 = vmatpush1.bf16.msra.mxu1 %v12701_v33  ;;  %v12766_v33 = vcombine.high %v10142_v4, %v10146_v38  ;;  %v10076_v4 = vld [vmem:[#allocation19 + $0xcb8] sm:$0xff]  ;;  %v12689_v38 = vcombine.low %v10064_v6, %v10068_v35 }
 0x9e1   : > { %10870 = vmatprep.subr.bf16.mxu1 %v12710_v43  ;;  %v10153_v43 = vld [vmem:[#allocation19 + $0xf20] sm:$0xff] }
 0x9e2   : > { %10830 = vmatpush1.bf16.msra.mxu0 %v12707_v45  ;;  %v12772_v45 = vcombine.high %v10149_v25, %v10153_v43  ;;  %v12771_v1 = vcombine.low %v10149_v25, %v10153_v43  ;;  %v10080_v25 = vld [vmem:[#allocation19 + $0xcd8] sm:$0xff] }
 0x9e3   : > { %10831 = vmatprep.subr.bf16.mxu0 %v12716_v23  ;;  %v10157_v23 = vld [vmem:[#allocation19 + $0xf40] sm:$0xff]  ;;  %v10084_v43 = vld [vmem:[#allocation19 + $0xcf8] sm:$0xff] }
 0x9e4   : > { %10871 = vmatpush1.bf16.msra.mxu1 %v12709_v47  ;;  %v12774_v47 = vcombine.high %v10150_v56, %v10154_v31  ;;  %v12697_v31 = vcombine.low %v10072_v34, %v10076_v4 }
 0x9e5   : > { %10872 = vmatprep.subr.bf16.mxu1 %v12718_v24  ;;  %v10161_v24 = vld [vmem:[#allocation19 + $0xf60] sm:$0xff] }
 0x9e6   : > { %10832 = vmatpush1.bf16.msra.mxu0 %v12715_v41  ;;  %v12780_v41 = vcombine.high %v10157_v23, %v10161_v24  ;;  %v12779_v17 = vcombine.low %v10157_v23, %v10161_v24  ;;  %v10088_v23 = vld [vmem:[#allocation19 + $0xd18] sm:$0xff] }
 0x9e7   : > { %10833 = vmatprep.subr.bf16.mxu0 %v12724_v21  ;;  %v10165_v21 = vld [vmem:[#allocation19 + $0xf80] sm:$0xff]  ;;  %v10092_v24 = vld [vmem:[#allocation19 + $0xd38] sm:$0xff] }
 0x9e8   : > { %10873 = vmatpush1.bf16.msra.mxu1 %v12717_v53  ;;  %v12782_v53 = vcombine.high %v10158_v16, %v10162_v58  ;;  %v12705_v58 = vcombine.low %v10080_v25, %v10084_v43 }
 0x9e9   : > { %10874 = vmatprep.subr.bf16.mxu1 %v12726_v3  ;;  %v10169_v3 = vld [vmem:[#allocation19 + $0xfa0] sm:$0xff] }
 0x9ea   : > { %10834 = vmatpush1.bf16.msra.mxu0 %v12723_v14  ;;  %v12788_v14 = vcombine.high %v10165_v21, %v10169_v3  ;;  %v12787_v11 = vcombine.low %v10165_v21, %v10169_v3  ;;  %v10100_v21 = vld [vmem:[#allocation19 + $0xd78] sm:$0xff] }
 0x9eb   : > { %10835 = vmatprep.subr.bf16.mxu0 %v12732_v7  ;;  %v10173_v7 = vld [vmem:[#allocation19 + $0xfc0] sm:$0xff] }
 0x9ec   : > { %10875 = vmatpush1.bf16.msra.mxu1 %v12725_v8  ;;  %v12790_v8 = vcombine.high %v10166_v37, %v10170_v60  ;;  %v12713_v37 = vcombine.low %v10088_v23, %v10092_v24 }
 0x9ed   : > { %10876 = vmatprep.subr.bf16.mxu1 %v12734_v20  ;;  %v10177_v20 = vld [vmem:[#allocation19 + $0xfe0] sm:$0xff] }
 0x9ee   : > { %10836 = vmatpush1.bf16.msra.mxu0 %v12731_v46  ;;  %v12796_v46 = vcombine.high %v10173_v7, %v10177_v20  ;;  %v12795_v62 = vcombine.low %v10173_v7, %v10177_v20  ;;  %v10108_v7 = vld [vmem:[#allocation19 + $0xdb8] sm:$0xff] }
 0x9ef   : > { %10837 = vmatprep.subr.bf16.mxu0 %v12740_v55  ;;  %v10055_v55 = vld [vmem:[#allocation19 + $0xc10] sm:$0xff] }
 0x9f0   : > { %10877 = vmatpush1.bf16.msra.mxu1 %v12733_v51  ;;  %v12798_v51 = vcombine.high %v10174_v36, %v10178_v12 }
 0x9f1   : > { %10878 = vmatprep.subr.bf16.mxu1 %v12742_v48  ;;  %v10059_v48 = vld [vmem:[#allocation19 + $0xc30] sm:$0xff] }
 0x9f2   : > { %10838 = vmatpush1.bf16.msra.mxu0 %v12739_v30  ;;  %v12680_v30 = vcombine.high %v10055_v55, %v10059_v48  ;;  %v12679_v13 = vcombine.low %v10055_v55, %v10059_v48  ;;  %v10116_v55 = vld [vmem:[#allocation19 + $0xdf8] sm:$0xff] }
 0x9f3   : > { %10839 = vmatprep.subr.bf16.mxu0 %v12748_v49  ;;  %v10063_v49 = vld [vmem:[#allocation19 + $0xc50] sm:$0xff] }
 0x9f4   : > { %10879 = vmatpush1.bf16.msra.mxu1 %v12741_v26  ;;  %v12682_v26 = vcombine.high %v10056_v61, %v10060_v40 }
 0x9f5   : > { %10880 = vmatprep.subr.bf16.mxu1 %v12750_v52  ;;  %v10067_v52 = vld [vmem:[#allocation19 + $0xc70] sm:$0xff] }
 0x9f6   : > { %10840 = vmatpush1.bf16.msra.mxu0 %v12747_v59  ;;  %v12681_v59 = vcombine.low %v10056_v61, %v10060_v40  ;;  %v12687_v50 = vcombine.low %v10063_v49, %v10067_v52 }
 0x9f7   : > { %10841 = vmatprep.subr.bf16.mxu0 %v12756_v15  ;;  %v12690_v15 = vcombine.high %v10064_v6, %v10068_v35 }
 0x9f8   : > { %10881 = vmatpush1.bf16.msra.mxu1 %v12749_v27  ;;  %v12688_v27 = vcombine.high %v10063_v49, %v10067_v52  ;;  %v10124_v49 = vld [vmem:[#allocation19 + $0xe38] sm:$0xff] }
 0x9f9   : > { %10882 = vmatprep.subr.bf16.mxu1 %v12758_v22  ;;  %v10071_v22 = vld [vmem:[#allocation19 + $0xc90] sm:$0xff] }
 0x9fa   : > { %10842 = vmatpush1.bf16.msra.mxu0 %v12755_v44  ;;  %v12696_v44 = vcombine.high %v10071_v22, %v10075_v18  ;;  %v12695_v56 = vcombine.low %v10071_v22, %v10075_v18  ;;  %v10132_v22 = vld [vmem:[#allocation19 + $0xe78] sm:$0xff] }
 0x9fb   : > { %10843 = vmatprep.subr.bf16.mxu0 %v12764_v5  ;;  %v10079_v5 = vld [vmem:[#allocation19 + $0xcd0] sm:$0xff] }
 0x9fc   : > { %10883 = vmatpush1.bf16.msra.mxu1 %v12757_v32  ;;  %v12698_v32 = vcombine.high %v10072_v34, %v10076_v4 }
 0x9fd   : > { %10884 = vmatprep.subr.bf16.mxu1 %v12766_v33  ;;  %v10083_v33 = vld [vmem:[#allocation19 + $0xcf0] sm:$0xff] }
 0x9fe   : > { %10844 = vmatpush1.bf16.msra.mxu0 %v12763_v42  ;;  %v12704_v42 = vcombine.high %v10079_v5, %v10083_v33  ;;  %v12703_v16 = vcombine.low %v10079_v5, %v10083_v33  ;;  %v10140_v5 = vld [vmem:[#allocation19 + $0xeb8] sm:$0xff] }
 0x9ff   : > { %10845 = vmatprep.subr.bf16.mxu0 %v12772_v45  ;;  %v10087_v45 = vld [vmem:[#allocation19 + $0xd10] sm:$0xff] }
 0xa00   : > { %10885 = vmatpush1.bf16.msra.mxu1 %v12765_v39  ;;  %v12706_v39 = vcombine.high %v10080_v25, %v10084_v43 }
 0xa01   : > { %10886 = vmatprep.subr.bf16.mxu1 %v12774_v47  ;;  %v10091_v47 = vld [vmem:[#allocation19 + $0xd30] sm:$0xff] }
 0xa02   : > { %10846 = vmatpush1.bf16.msra.mxu0 %v12771_v1  ;;  %v12712_v1 = vcombine.high %v10087_v45, %v10091_v47  ;;  %v12711_v3 = vcombine.low %v10087_v45, %v10091_v47  ;;  %v10148_v45 = vld [vmem:[#allocation19 + $0xef8] sm:$0xff] }
 0xa03   : > { %10847 = vmatprep.subr.bf16.mxu0 %v12780_v41  ;;  %v10099_v41 = vld [vmem:[#allocation19 + $0xd70] sm:$0xff] }
 0xa04   : > { %10887 = vmatpush1.bf16.msra.mxu1 %v12773_v28  ;;  %v10095_v28 = vld [vmem:[#allocation19 + $0xd50] sm:$0xff] }
 0xa05   : > { %10888 = vmatprep.subr.bf16.mxu1 %v12782_v53  ;;  %v10096_v53 = vld [vmem:[#allocation19 + $0xd58] sm:$0xff]  ;;  %v12720_v60 = vcombine.high %v10095_v28, %v10099_v41  ;;  %v12719_v20 = vcombine.low %v10095_v28, %v10099_v41 }
 0xa06   : > { %10848 = vmatpush1.bf16.msra.mxu0 %v12779_v17  ;;  %v12722_v17 = vcombine.high %v10096_v53, %v10100_v21  ;;  %v12721_v36 = vcombine.low %v10096_v53, %v10100_v21  ;;  %v10156_v28 = vld [vmem:[#allocation19 + $0xf38] sm:$0xff] }
 0xa07   : > { %10849 = vmatprep.subr.bf16.mxu0 %v12788_v14  ;;  %v10107_v14 = vld [vmem:[#allocation19 + $0xdb0] sm:$0xff] }
 0xa08   : > { %10889 = vmatpush1.bf16.msra.mxu1 %v12781_v2  ;;  %v10103_v2 = vld [vmem:[#allocation19 + $0xd90] sm:$0xff] }
 0xa09   : > { %10890 = vmatprep.subr.bf16.mxu1 %v12790_v8  ;;  %v10104_v8 = vld [vmem:[#allocation19 + $0xd98] sm:$0xff]  ;;  %v12728_v12 = vcombine.high %v10103_v2, %v10107_v14  ;;  %v12727_v48 = vcombine.low %v10103_v2, %v10107_v14 }
 0xa0a   : > { %10850 = vmatpush1.bf16.msra.mxu0 %v12787_v11  ;;  %v12730_v11 = vcombine.high %v10104_v8, %v10108_v7  ;;  %v12729_v61 = vcombine.low %v10104_v8, %v10108_v7  ;;  %v10164_v2 = vld [vmem:[#allocation19 + $0xf78] sm:$0xff] }
 0xa0b   : > { %10851 = vmatprep.subr.bf16.mxu0 %v12796_v46  ;;  %v10115_v46 = vld [vmem:[#allocation19 + $0xdf0] sm:$0xff] }
 0xa0c   : > { %10891 = vmatpush1.bf16.msra.mxu1 %v12789_v63  ;;  %v10111_v63 = vld [vmem:[#allocation19 + $0xdd0] sm:$0xff] }
 0xa0d   : > { %10892 = vmatprep.subr.bf16.mxu1 %v12798_v51  ;;  %v10112_v51 = vld [vmem:[#allocation19 + $0xdd8] sm:$0xff]  ;;  %v12736_v40 = vcombine.high %v10111_v63, %v10115_v46  ;;  %v12735_v52 = vcombine.low %v10111_v63, %v10115_v46 }
 0xa0e   : > { %10852 = vmatpush1.bf16.msra.mxu0 %v12795_v62  ;;  %v12738_v62 = vcombine.high %v10112_v51, %v10116_v55  ;;  %v12737_v6 = vcombine.low %v10112_v51, %v10116_v55  ;;  %v10172_v63 = vld [vmem:[#allocation19 + $0xfb8] sm:$0xff] }
 0xa0f   : > { %10903 = vmatprep.subr.bf16.mxu0 %v12680_v30  ;;  %v10123_v30 = vld [vmem:[#allocation19 + $0xe30] sm:$0xff] }
 0xa10   : > { %10893 = vmatpush1.bf16.msra.mxu1 %v12797_v0  ;;  %v10119_v0 = vld [vmem:[#allocation19 + $0xe10] sm:$0xff] }
 0xa11   : > { %10944 = vmatprep.subr.bf16.mxu1 %v12682_v26  ;;  %10854 = vmatmul.mubr.bf16.vlgmr.msra.gmra.mrb[0].mxu0 %v16375_v54  ;;  %v10120_v26 = vld [vmem:[#allocation19 + $0xe18] sm:$0xff]  ;;  %v12744_v35 = vcombine.high %v10119_v0, %v10123_v30  ;;  %v12743_v18 = vcombine.low %v10119_v0, %v10123_v30 }
 0xa12   : > { %10904 = vmatpush1.bf16.msra.mxu0 %v12679_v13  ;;  %10935 = vmatprep.mubr.bf16.mxu0 %v16367_v29  ;;  %v12746_v13 = vcombine.high %v10120_v26, %v10124_v49  ;;  %v12745_v34 = vcombine.low %v10120_v26, %v10124_v49  ;;  %v10180_v0 = vld [vmem:[#allocation19 + $0xff8] sm:$0xff] }
 0xa13   : > { %10895 = vmatmul.mubr.bf16.vlgmr.msra.gmra.mrb[0].mxu1 %v16375_v54  ;;  %10905 = vmatprep.subr.bf16.mxu0 %v12688_v27  ;;  %v10131_v27 = vld [vmem:[#allocation19 + $0xe70] sm:$0xff] }
 0xa14   : > { %10945 = vmatpush1.bf16.msra.mxu1 %v12681_v59  ;;  %10976 = vmatprep.mubr.bf16.mxu1 %v16367_v29  ;;  %v12714_v29 = vcombine.high %v10088_v23, %v10092_v24  ;;  %v10127_v59 = vld [vmem:[#allocation19 + $0xe50] sm:$0xff] }
 0xa15   : > { %10946 = vmatprep.subr.bf16.mxu1 %v12690_v15  ;;  %v10128_v15 = vld [vmem:[#allocation19 + $0xe58] sm:$0xff]  ;;  %v12752_v4 = vcombine.high %v10127_v59, %v10131_v27  ;;  %v12751_v33 = vcombine.low %v10127_v59, %v10131_v27 }
 0xa16   : > { %10906 = vmatpush1.bf16.msra.mxu0 %v12687_v50  ;;  %v12754_v50 = vcombine.high %v10128_v15, %v10132_v22  ;;  %v12753_v25 = vcombine.low %v10128_v15, %v10132_v22 }
 0xa17   : > { %10907 = vmatprep.subr.bf16.mxu0 %v12696_v44  ;;  %v10139_v44 = vld [vmem:[#allocation19 + $0xeb0] sm:$0xff] }
 0xa18   : > { %10947 = vmatpush1.bf16.msra.mxu1 %v12689_v38  ;;  %v10135_v38 = vld [vmem:[#allocation19 + $0xe90] sm:$0xff] }
 0xa19   : > { %10948 = vmatprep.subr.bf16.mxu1 %v12698_v32  ;;  %v10136_v32 = vld [vmem:[#allocation19 + $0xe98] sm:$0xff]  ;;  %v12760_v43 = vcombine.high %v10135_v38, %v10139_v44  ;;  %v12759_v47 = vcombine.low %v10135_v38, %v10139_v44 }
 0xa1a   : > { %10908 = vmatpush1.bf16.msra.mxu0 %v12695_v56  ;;  %v12762_v56 = vcombine.high %v10136_v32, %v10140_v5  ;;  %v12761_v23 = vcombine.low %v10136_v32, %v10140_v5 }
 0xa1b   : > { %10909 = vmatprep.subr.bf16.mxu0 %v12704_v42  ;;  %v10147_v42 = vld [vmem:[#allocation19 + $0xef0] sm:$0xff] }
 0xa1c   : > { %10949 = vmatpush1.bf16.msra.mxu1 %v12697_v31  ;;  %v10143_v31 = vld [vmem:[#allocation19 + $0xed0] sm:$0xff] }
 0xa1d   : > { %10950 = vmatprep.subr.bf16.mxu1 %v12706_v39  ;;  %v10144_v39 = vld [vmem:[#allocation19 + $0xed8] sm:$0xff]  ;;  %v12768_v24 = vcombine.high %v10143_v31, %v10147_v42  ;;  %v12767_v41 = vcombine.low %v10143_v31, %v10147_v42 }
 0xa1e   : > { %10910 = vmatpush1.bf16.msra.mxu0 %v12703_v16  ;;  %v12770_v16 = vcombine.high %v10144_v39, %v10148_v45  ;;  %v12769_v53 = vcombine.low %v10144_v39, %v10148_v45 }
 0xa1f   : > { %10911 = vmatprep.subr.bf16.mxu0 %v12712_v1  ;;  %v10155_v1 = vld [vmem:[#allocation19 + $0xf30] sm:$0xff] }
 0xa20   : > { %10951 = vmatpush1.bf16.msra.mxu1 %v12705_v58  ;;  %v10151_v58 = vld [vmem:[#allocation19 + $0xf10] sm:$0xff] }
 0xa21   : > { %10952 = vmatprep.subr.bf16.mxu1 %v12714_v29  ;;  %v10152_v29 = vld [vmem:[#allocation19 + $0xf18] sm:$0xff]  ;;  %v12776_v21 = vcombine.high %v10151_v58, %v10155_v1  ;;  %v12775_v14 = vcombine.low %v10151_v58, %v10155_v1 }
 0xa22   : > { %10912 = vmatpush1.bf16.msra.mxu0 %v12711_v3  ;;  %v12778_v3 = vcombine.high %v10152_v29, %v10156_v28  ;;  %v12777_v8 = vcombine.low %v10152_v29, %v10156_v28 }
 0xa23   : > { %10913 = vmatprep.subr.bf16.mxu0 %v12720_v60  ;;  %v10163_v60 = vld [vmem:[#allocation19 + $0xf70] sm:$0xff] }
 0xa24   : > { %10953 = vmatpush1.bf16.msra.mxu1 %v12713_v37  ;;  %v10159_v37 = vld [vmem:[#allocation19 + $0xf50] sm:$0xff] }
 0xa25   : > { %10954 = vmatprep.subr.bf16.mxu1 %v12722_v17  ;;  %v10160_v17 = vld [vmem:[#allocation19 + $0xf58] sm:$0xff]  ;;  %v12784_v7 = vcombine.high %v10159_v37, %v10163_v60  ;;  %v12783_v46 = vcombine.low %v10159_v37, %v10163_v60 }
 0xa26   : > { %10914 = vmatpush1.bf16.msra.mxu0 %v12719_v20  ;;  %v12786_v20 = vcombine.high %v10160_v17, %v10164_v2  ;;  %v12785_v51 = vcombine.low %v10160_v17, %v10164_v2 }
 0xa27   : > { %10915 = vmatprep.subr.bf16.mxu0 %v12728_v12  ;;  %v10171_v12 = vld [vmem:[#allocation19 + $0xfb0] sm:$0xff] }
 0xa28   : > { %10955 = vmatpush1.bf16.msra.mxu1 %v12721_v36  ;;  %v10167_v36 = vld [vmem:[#allocation19 + $0xf90] sm:$0xff] }
 0xa29   : > { %10956 = vmatprep.subr.bf16.mxu1 %v12730_v11  ;;  %v10168_v11 = vld [vmem:[#allocation19 + $0xf98] sm:$0xff]  ;;  %v12792_v55 = vcombine.high %v10167_v36, %v10171_v12  ;;  %v12791_v30 = vcombine.low %v10167_v36, %v10171_v12 }
 0xa2a   : > { %10916 = vmatpush1.bf16.msra.mxu0 %v12727_v48  ;;  %v12794_v48 = vcombine.high %v10168_v11, %v10172_v63  ;;  %v12793_v26 = vcombine.low %v10168_v11, %v10172_v63 }
 0xa2b   : > { %10917 = vmatprep.subr.bf16.mxu0 %v12736_v40  ;;  %v10179_v40 = vld [vmem:[#allocation19 + $0xff0] sm:$0xff] }
 0xa2c   : > { %10957 = vmatpush1.bf16.msra.mxu1 %v12729_v61  ;;  %v10175_v61 = vld [vmem:[#allocation19 + $0xfd0] sm:$0xff] }
 0xa2d   : > { %10958 = vmatprep.subr.bf16.mxu1 %v12738_v62  ;;  %v10176_v62 = vld [vmem:[#allocation19 + $0xfd8] sm:$0xff]  ;;  %v12800_v49 = vcombine.high %v10175_v61, %v10179_v40 }
 0xa2e   : > { %10918 = vmatpush1.bf16.msra.mxu0 %v12735_v52  ;;  %v12802_v52 = vcombine.high %v10176_v62, %v10180_v0 }
 0xa2f   : > { %10919 = vmatprep.subr.bf16.mxu0 %v12744_v35  ;;  %v12801_v35 = vcombine.low %v10176_v62, %v10180_v0 }
 0xa30   : > { %10959 = vmatpush1.bf16.msra.mxu1 %v12737_v6  ;;  %v12799_v6 = vcombine.low %v10175_v61, %v10179_v40 }
 0xa31   : > { %10960 = vmatprep.subr.bf16.mxu1 %v12746_v13 }
 0xa32   : > { %10920 = vmatpush1.bf16.msra.mxu0 %v12743_v18 }
 0xa33   : > { %10921 = vmatprep.subr.bf16.mxu0 %v12752_v4 }
 0xa34   : > { %10961 = vmatpush1.bf16.msra.mxu1 %v12745_v34 }
 0xa35   : > { %10962 = vmatprep.subr.bf16.mxu1 %v12754_v50 }
 0xa36   : > { %10922 = vmatpush1.bf16.msra.mxu0 %v12751_v33 }
 0xa37   : > { %10923 = vmatprep.subr.bf16.mxu0 %v12760_v43 }
 0xa38   : > { %10963 = vmatpush1.bf16.msra.mxu1 %v12753_v25 }
 0xa39   : > { %10964 = vmatprep.subr.bf16.mxu1 %v12762_v56 }
 0xa3a   : > { %10924 = vmatpush1.bf16.msra.mxu0 %v12759_v47 }
 0xa3b   : > { %10925 = vmatprep.subr.bf16.mxu0 %v12768_v24 }
 0xa3c   : > { %10965 = vmatpush1.bf16.msra.mxu1 %v12761_v23 }
 0xa3d   : > { %10966 = vmatprep.subr.bf16.mxu1 %v12770_v16 }
 0xa3e   : > { %10926 = vmatpush1.bf16.msra.mxu0 %v12767_v41 }
 0xa3f   : > { %10927 = vmatprep.subr.bf16.mxu0 %v12776_v21 }
 0xa40   : > { %10967 = vmatpush1.bf16.msra.mxu1 %v12769_v53 }
 0xa41   : > { %10968 = vmatprep.subr.bf16.mxu1 %v12778_v3 }
 0xa42   : > { %10928 = vmatpush1.bf16.msra.mxu0 %v12775_v14 }
 0xa43   : > { %10929 = vmatprep.subr.bf16.mxu0 %v12784_v7 }
 0xa44   : > { %10969 = vmatpush1.bf16.msra.mxu1 %v12777_v8 }
 0xa45   : > { %10970 = vmatprep.subr.bf16.mxu1 %v12786_v20 }
 0xa46   : > { %10930 = vmatpush1.bf16.msra.mxu0 %v12783_v46 }
 0xa47   : > { %10931 = vmatprep.subr.bf16.mxu0 %v12792_v55 }
 0xa48   : > { %10971 = vmatpush1.bf16.msra.mxu1 %v12785_v51 }
 0xa49   : > { %10972 = vmatprep.subr.bf16.mxu1 %v12794_v48 }
 0xa4a   : > { %10932 = vmatpush1.bf16.msra.mxu0 %v12791_v30 }
 0xa4b   : > { %10933 = vmatprep.subr.bf16.mxu0 %v12800_v49 }
 0xa4c   : > { %10973 = vmatpush1.bf16.msra.mxu1 %v12793_v26 }
 0xa4d   : > { %10974 = vmatprep.subr.bf16.mxu1 %v12802_v52 }
 0xa4e   : > { %10934 = vmatpush1.bf16.msra.mxu0 %v12799_v6 }
 0xa50   : > { %10975 = vmatpush1.bf16.msra.mxu1 %v12801_v35 }
 0xa51   : > { %10936 = vmatmul.mubr.bf16.vlgmr.msra.gmra.mrb[4].mxu0 %v16375_v54 }
 0xa53   : > { %10977 = vmatmul.mubr.bf16.vlgmr.msra.gmra.mrb[4].mxu1 %v16375_v54 }
 0xae4   : > { %v10855_v13 = vpop.f32.mrb[0].mxu0 }
 0xae5   : > { %v10995_v59 = vmax.f32 %v10855_v13, 0.0  ;;  %v10857_v15 = vpop.f32.mrb[1].mxu0 }
 0xae6   : > { %v10896_v27 = vpop.f32.mrb[0].mxu1  ;;  %v10996_v18 = vmax.f32 %v10857_v15, 0.0  ;;  %v10859_v4 = vpop.f32.mrb[2].mxu0 }
 0xae7   : > { %v10997_v22 = vmax.f32 %v10896_v27, 0.0  ;;  %v10898_v34 = vpop.f32.mrb[1].mxu1  ;;  %v11003_v50 = vsel %vm7101_vm1, %v10995_v59, 0.0  ;;  %v10860_v32 = vpop.f32.mrb[3].mxu0 }
 0xae8   : > { %v10998_v38 = vmax.f32 %v10898_v34, 0.0  ;;  %v10900_v44 = vpop.f32.mrb[2].mxu1  ;;  %v11004_v5 = vrot.slane %v11003_v50, 4  ;;  %v11010_v25 = vsel %vm7101_vm1, %v10996_v18, 0.0 }
 0xae9   : > { %v11017_v33 = vsel %vm7101_vm1, %v10997_v22, 0.0  ;;  %v10901_v43 = vpop.f32.mrb[3].mxu1  ;;  %v11011_v56 = vrot.slane %v11010_v25, 4 }
 0xaea   : > { %v11018_v54 = vrot.slane %v11017_v33, 4  ;;  %v11024_v31 = vsel %vm7101_vm1, %v10998_v38, 0.0  ;;  %v11005_v42 = vadd.f32 %v11004_v5, %v11003_v50 }
 0xaeb   : > { %v11025_v39 = vrot.slane %v11024_v31, 4  ;;  %v11012_v47 = vadd.f32 %v11011_v56, %v11010_v25 }
 0xaec   : > { %v11019_v45 = vadd.f32 %v11018_v54, %v11017_v33  ;;  %v11006_v23 = vrot.slane %v11005_v42, 2 }
 0xaed   : > { %v11026_v24 = vadd.f32 %v11025_v39, %v11024_v31  ;;  %v11013_v58 = vrot.slane %v11012_v47, 2 }
 0xaee   : > { %v11020_v16 = vrot.slane %v11019_v45, 2  ;;  %v11007_v1 = vadd.f32 %v11006_v23, %v11005_v42 }
 0xaef   : > { %v11027_v29 = vrot.slane %v11026_v24, 2  ;;  %v11014_v41 = vadd.f32 %v11013_v58, %v11012_v47 }
 0xaf0   : > { %v11021_v28 = vadd.f32 %v11020_v16, %v11019_v45  ;;  %v11008_v53 = vrot.slane %v11007_v1, 1 }
 0xaf1   : > { %v11028_v21 = vadd.f32 %v11027_v29, %v11026_v24  ;;  %v11015_v37 = vrot.slane %v11014_v41, 1  ;;  %v16399_v29 = vld [vmem:[#allocation20] sm:$0xff] }
 0xaf2   : > { %v11022_v3 = vrot.slane %v11021_v28, 1  ;;  %v11009_v60 = vadd.f32 %v11008_v53, %v11007_v1  ;;  %v11186_v53 = vsub.s32 3, %v15677_v10 }
 0xaf3   : > { %v11029_v17 = vrot.slane %v11028_v21, 1  ;;  %v11016_v14 = vadd.f32 %v11015_v37, %v11014_v41  ;;  %v16402_v41 = vld [vmem:[#allocation21] sm:$0xff] }
 0xaf4   : > { %v11023_v2 = vadd.f32 %v11022_v3, %v11021_v28  ;;  %v11059_v8 = vmul.f32 0.5, %v11009_v60  ;;  %v11182_v28 = vsub.s32 2, %v15677_v10 }
 0xaf5   : > { %v11030_v7 = vadd.f32 %v11029_v17, %v11028_v21  ;;  %v11060_v36 = vmul.f32 0.5, %v11016_v14  ;;  %v11175_v21 = vrot.slane %v16399_v29, %v16296_v9  ;;  %v11179_v14 = vrot.slane %v16399_v29, %v16301_v19 }
 0xaf6   : > { %v11061_v20 = vmul.f32 0.5, %v11023_v2  ;;  %v11067_v12 = vsub.f32 %v10995_v59, %v11059_v8  ;;  %v11183_v37 = vrot.slane %v16399_v29, %v11182_v28  ;;  %v11224_v2 = vrot.slane %v16402_v41, %v16296_v9 }
 0xaf7   : > { %v11062_v11 = vmul.f32 0.5, %v11030_v7  ;;  %v16387_v46 = vsub.f32 %v10996_v18, %v11060_v36  ;;  %v11187_v36 = vrot.slane %v16399_v29, %v11186_v53  ;;  %v11236_v9 = vrot.slane %v16402_v41, %v11186_v53 }
 0xaf8   : > { %v11069_v63 = vsub.f32 %v10997_v22, %v11061_v20  ;;  %v11075_v51 = vmul.f32 %v11067_v12, %v11067_v12  ;;  %v11232_v20 = vrot.slane %v16402_v41, %v11182_v28 }
 0xaf9   : > { %v16389_v55 = vsub.f32 %v10998_v38, %v11062_v11  ;;  %v11076_v61 = vmul.f32 %v16387_v46, %v16387_v46 }
 0xafa   : > { %v11077_v48 = vmul.f32 %v11069_v63, %v11069_v63  ;;  %v11083_v40 = vsel %vm7101_vm1, %v11075_v51, 0.0 }
 0xafb   : > { %v11078_v62 = vmul.f32 %v16389_v55, %v16389_v55  ;;  %v11084_v0 = vrot.slane %v11083_v40, 4  ;;  %v11090_v26 = vsel %vm7101_vm1, %v11076_v61, 0.0  ;;  %v11228_v61 = vrot.slane %v16402_v41, %v16301_v19 }
 0xafc   : > { %v11097_v30 = vsel %vm7101_vm1, %v11077_v48, 0.0  ;;  %v11091_v52 = vrot.slane %v11090_v26, 4 }
 0xafd   : > { %v11098_v49 = vrot.slane %v11097_v30, 4  ;;  %v11104_v6 = vsel %vm7101_vm1, %v11078_v62, 0.0  ;;  %v11085_v35 = vadd.f32 %v11084_v0, %v11083_v40 }
 0xafe   : > { %v11105_v13 = vrot.slane %v11104_v6, 4  ;;  %v11092_v27 = vadd.f32 %v11091_v52, %v11090_v26 }
 0xaff   : > { %v11099_v59 = vadd.f32 %v11098_v49, %v11097_v30  ;;  %v11086_v15 = vrot.slane %v11085_v35, 2 }
 0xb00   : > { %v11106_v22 = vadd.f32 %v11105_v13, %v11104_v6  ;;  %v11093_v34 = vrot.slane %v11092_v27, 2 }
 0xb01   : > { %v11100_v18 = vrot.slane %v11099_v59, 2  ;;  %v11087_v4 = vadd.f32 %v11086_v15, %v11085_v35 }
 0xb02   : > { %v11107_v50 = vrot.slane %v11106_v22, 2  ;;  %v11094_v44 = vadd.f32 %v11093_v34, %v11092_v27 }
 0xb03   : > { %v11101_v38 = vadd.f32 %v11100_v18, %v11099_v59  ;;  %v11088_v32 = vrot.slane %v11087_v4, 1 }
 0xb04   : > { %v11108_v5 = vadd.f32 %v11107_v50, %v11106_v22  ;;  %v11095_v25 = vrot.slane %v11094_v44, 1 }
 0xb05   : > { %v11102_v33 = vrot.slane %v11101_v38, 1  ;;  %v11089_v43 = vadd.f32 %v11088_v32, %v11087_v4 }
 0xb06   : > { %v11109_v54 = vrot.slane %v11108_v5, 1  ;;  %v11096_v31 = vadd.f32 %v11095_v25, %v11094_v44 }
 0xb07   : > { %v11103_v56 = vadd.f32 %v11102_v33, %v11101_v38  ;;  %v11139_v42 = vmul.f32 0.5, %v11089_v43 }
 0xb08   : > { %v11110_v39 = vadd.f32 %v11109_v54, %v11108_v5  ;;  %v11140_v47 = vmul.f32 0.5, %v11096_v31 }
 0xb09   : > { %v11141_v45 = vmul.f32 0.5, %v11103_v56  ;;  %v11147_v23 = vadd.f32 1e-05, %v11139_v42 }
 0xb0a   : > { %v11142_v24 = vmul.f32 0.5, %v11110_v39  ;;  %v11148_v58 = vadd.f32 1e-05, %v11140_v47 }
 0xb0b   : > { %v11149_v16 = vadd.f32 1e-05, %v11141_v45  ;;  %14364 = vrsqrt.f32 %v11147_v23 }
 0xb0c   : > { %v11150_v1 = vadd.f32 1e-05, %v11142_v24 }
 0xb0d   : > { %14366 = vrsqrt.f32 %v11149_v16 }
 0xb0e   : > { %14368 = vrsqrt.f32 %v11148_v58 }
 0xb0f   : > { %14370 = vrsqrt.f32 %v11150_v1 }
 0xb15   : > { %v14365_v3 = vpop.eup %14364 }
 0xb16   : > { %v11163_v17 = vmul.f32 %v14365_v3, %v11067_v12 }
 0xb17   : > { %v14367_v60 = vpop.eup %14366 }
 0xb18   : > { %v14369_v8 = vpop.eup %14368  ;;  %v11165_v7 = vmul.f32 %v14367_v60, %v11069_v63  ;;  %v11212_v51 = vmul.f32 %v11175_v21, %v11163_v17 }
 0xb19   : > { %v14371_v11 = vpop.eup %14370  ;;  %v11164_v48 = vmul.f32 %v14369_v8, %v16387_v46 }
 0xb1a   : > { %v11214_v12 = vmul.f32 %v11183_v37, %v11165_v7  ;;  %v11166_v40 = vmul.f32 %v14371_v11, %v16389_v55  ;;  %v11261_v62 = vadd.f32 %v11224_v2, %v11212_v51 }
 0xb1b   : > { %v11213_v0 = vmul.f32 %v11179_v14, %v11164_v48 }
 0xb1c   : > { %v11263_v30 = vadd.f32 %v11232_v20, %v11214_v12  ;;  %v11215_v63 = vmul.f32 %v11187_v36, %v11166_v40 }
 0xb1d   : > { %v11262_v26 = vadd.f32 %v11228_v61, %v11213_v0 }
 0xb1e   : > { %v11264_v49 = vadd.f32 %v11236_v9, %v11215_v63 }
 0xb1f   : > { %v11277_v52 = vcombine.low %v11261_v62, %v11262_v26 }
 0xb20   : > { %v11278_v6 = vcombine.low %v11263_v30, %v11264_v49 }
 0xb21   : > { %v11285_v35 = vrot.slane %v11277_v52, %v15685_v57 }
 0xb22   : > { %v11292_v46 = vrot.slane %v11278_v6, %v15685_v57 }
 0xb24   : > { %v11293_v13 = vcombine.low %v11285_v35, %v11292_v46  ;;  %v10937_v59 = vpop.f32.mrb[4].mxu0 }
 0xb25   : > { %v10999_v19 = vmax.f32 %v10937_v59, 0.0  ;;  %v10939_v55 = vpop.f32.mrb[5].mxu0 }
 0xb26   : > { %11313 = vst [vmem:[#allocation22] sm:$0xff] %v11293_v13  ;;  %v10978_v27 = vpop.f32.mrb[4].mxu1  ;;  %v11000_v22 = vmax.f32 %v10939_v55, 0.0  ;;  %v10941_v34 = vpop.f32.mrb[6].mxu0 }
 0xb27   : > { %v11001_v15 = vmax.f32 %v10978_v27, 0.0  ;;  %v10980_v18 = vpop.f32.mrb[5].mxu1  ;;  %v11031_v4 = vsel %vm7101_vm1, %v10999_v19, 0.0  ;;  %v10942_v44 = vpop.f32.mrb[7].mxu0 }
 0xb28   : > { %v11002_v50 = vmax.f32 %v10980_v18, 0.0  ;;  %v10982_v38 = vpop.f32.mrb[6].mxu1  ;;  %v11032_v32 = vrot.slane %v11031_v4, 4  ;;  %v11038_v33 = vsel %vm7101_vm1, %v11000_v22, 0.0 }
 0xb29   : > { %v11045_v5 = vsel %vm7101_vm1, %v11001_v15, 0.0  ;;  %v10983_v25 = vpop.f32.mrb[7].mxu1  ;;  %v11039_v54 = vrot.slane %v11038_v33, 4 }
 0xb2a   : > { %v11046_v43 = vrot.slane %v11045_v5, 4  ;;  %v11052_v56 = vsel %vm7101_vm1, %v11002_v50, 0.0  ;;  %v11033_v31 = vadd.f32 %v11032_v32, %v11031_v4 }
 0xb2b   : > { %v11053_v42 = vrot.slane %v11052_v56, 4  ;;  %v11040_v45 = vadd.f32 %v11039_v54, %v11038_v33 }
 0xb2c   : > { %v11047_v39 = vadd.f32 %v11046_v43, %v11045_v5  ;;  %v11034_v47 = vrot.slane %v11033_v31, 2 }
 0xb2d   : > { %v11054_v23 = vadd.f32 %v11053_v42, %v11052_v56  ;;  %v11041_v16 = vrot.slane %v11040_v45, 2 }
 0xb2e   : > { %v11048_v24 = vrot.slane %v11047_v39, 2  ;;  %v11035_v58 = vadd.f32 %v11034_v47, %v11033_v31 }
 0xb2f   : > { %v11055_v1 = vrot.slane %v11054_v23, 2  ;;  %v11042_v53 = vadd.f32 %v11041_v16, %v11040_v45 }
 0xb30   : > { %v11049_v28 = vadd.f32 %v11048_v24, %v11047_v39  ;;  %v11036_v21 = vrot.slane %v11035_v58, 1 }
 0xb31   : > { %v11056_v3 = vadd.f32 %v11055_v1, %v11054_v23  ;;  %v11043_v60 = vrot.slane %v11042_v53, 1  ;;  %v11190_v1 = vsub.s32 4, %v15677_v10 }
 0xb32   : > { %v11050_v37 = vrot.slane %v11049_v28, 1  ;;  %v11037_v17 = vadd.f32 %v11036_v21, %v11035_v58  ;;  %v11202_v21 = vsub.s32 7, %v15677_v10 }
 0xb33   : > { %v11057_v2 = vrot.slane %v11056_v3, 1  ;;  %v11044_v8 = vadd.f32 %v11043_v60, %v11042_v53  ;;  %v11194_v53 = vsub.s32 5, %v15677_v10 }
 0xb34   : > { %v11051_v14 = vadd.f32 %v11050_v37, %v11049_v28  ;;  %v11063_v7 = vmul.f32 0.5, %v11037_v17  ;;  %v11198_v28 = vsub.s32 6, %v15677_v10 }
 0xb35   : > { %v11058_v20 = vadd.f32 %v11057_v2, %v11056_v3  ;;  %v11064_v11 = vmul.f32 0.5, %v11044_v8  ;;  %v11191_v3 = vrot.slane %v16399_v29, %v11190_v1  ;;  %v11195_v8 = vrot.slane %v16399_v29, %v11194_v53 }
 0xb36   : > { %v11065_v36 = vmul.f32 0.5, %v11051_v14  ;;  %v11071_v51 = vsub.f32 %v10999_v19, %v11063_v7  ;;  %v11199_v60 = vrot.slane %v16399_v29, %v11198_v28  ;;  %v11240_v14 = vrot.slane %v16402_v41, %v11190_v1 }
 0xb37   : > { %v11066_v48 = vmul.f32 0.5, %v11058_v20  ;;  %v16425_v12 = vsub.f32 %v11000_v22, %v11064_v11  ;;  %v11203_v11 = vrot.slane %v16399_v29, %v11202_v21 }
 0xb38   : > { %v11073_v61 = vsub.f32 %v11001_v15, %v11065_v36  ;;  %v11079_v40 = vmul.f32 %v11071_v51, %v11071_v51  ;;  %v11248_v36 = vrot.slane %v16402_v41, %v11198_v28 }
 0xb39   : > { %v16427_v9 = vsub.f32 %v11002_v50, %v11066_v48  ;;  %v11080_v0 = vmul.f32 %v16425_v12, %v16425_v12 }
 0xb3a   : > { %v11081_v62 = vmul.f32 %v11073_v61, %v11073_v61  ;;  %v11111_v30 = vsel %vm7101_vm1, %v11079_v40, 0.0 }
 0xb3b   : > { %v11082_v63 = vmul.f32 %v16427_v9, %v16427_v9  ;;  %v11112_v26 = vrot.slane %v11111_v30, 4  ;;  %v11118_v52 = vsel %vm7101_vm1, %v11080_v0, 0.0 }
 0xb3c   : > { %v11125_v49 = vsel %vm7101_vm1, %v11081_v62, 0.0  ;;  %v11119_v35 = vrot.slane %v11118_v52, 4  ;;  %v11244_v62 = vrot.slane %v16402_v41, %v11194_v53 }
 0xb3d   : > { %v11126_v6 = vrot.slane %v11125_v49, 4  ;;  %v11132_v46 = vsel %vm7101_vm1, %v11082_v63, 0.0  ;;  %v11113_v13 = vadd.f32 %v11112_v26, %v11111_v30 }
 0xb3e   : > { %v11133_v59 = vrot.slane %v11132_v46, 4  ;;  %v11120_v27 = vadd.f32 %v11119_v35, %v11118_v52 }
 0xb3f   : > { %v11127_v19 = vadd.f32 %v11126_v6, %v11125_v49  ;;  %v11114_v55 = vrot.slane %v11113_v13, 2 }
 0xb40   : > { %v11134_v15 = vadd.f32 %v11133_v59, %v11132_v46  ;;  %v11121_v18 = vrot.slane %v11120_v27, 2 }
 0xb41   : > { %v11128_v22 = vrot.slane %v11127_v19, 2  ;;  %v11115_v34 = vadd.f32 %v11114_v55, %v11113_v13 }
 0xb42   : > { %v11135_v4 = vrot.slane %v11134_v15, 2  ;;  %v11122_v38 = vadd.f32 %v11121_v18, %v11120_v27 }
 0xb43   : > { %v11129_v50 = vadd.f32 %v11128_v22, %v11127_v19  ;;  %v11116_v44 = vrot.slane %v11115_v34, 1 }
 0xb44   : > { %v11136_v32 = vadd.f32 %v11135_v4, %v11134_v15  ;;  %v11123_v33 = vrot.slane %v11122_v38, 1 }
 0xb45   : > { %v11130_v5 = vrot.slane %v11129_v50, 1  ;;  %v11117_v25 = vadd.f32 %v11116_v44, %v11115_v34 }
 0xb46   : > { %v11137_v43 = vrot.slane %v11136_v32, 1  ;;  %v11124_v56 = vadd.f32 %v11123_v33, %v11122_v38 }
 0xb47   : > { %v11131_v54 = vadd.f32 %v11130_v5, %v11129_v50  ;;  %v11143_v31 = vmul.f32 0.5, %v11117_v25 }
 0xb48   : > { %v11138_v42 = vadd.f32 %v11137_v43, %v11136_v32  ;;  %v11144_v45 = vmul.f32 0.5, %v11124_v56 }
 0xb49   : > { %v11145_v39 = vmul.f32 0.5, %v11131_v54  ;;  %v11151_v47 = vadd.f32 1e-05, %v11143_v31 }
 0xb4a   : > { %v11146_v23 = vmul.f32 0.5, %v11138_v42  ;;  %v11152_v16 = vadd.f32 1e-05, %v11144_v45 }
 0xb4b   : > { %v11153_v24 = vadd.f32 1e-05, %v11145_v39  ;;  %14372 = vrsqrt.f32 %v11151_v47 }
 0xb4c   : > { %v11154_v58 = vadd.f32 1e-05, %v11146_v23 }
 0xb4d   : > { %14374 = vrsqrt.f32 %v11153_v24 }
 0xb4e   : > { %14376 = vrsqrt.f32 %v11152_v16 }
 0xb4f   : > { %14378 = vrsqrt.f32 %v11154_v58 }
 0xb55   : > { %v14373_v37 = vpop.eup %14372 }
 0xb56   : > { %v11167_v2 = vmul.f32 %v14373_v37, %v11071_v51  ;;  %v11252_v51 = vrot.slane %v16402_v41, %v11202_v21 }
 0xb57   : > { %v14375_v17 = vpop.eup %14374 }
 0xb58   : > { %v14377_v7 = vpop.eup %14376  ;;  %v11169_v20 = vmul.f32 %v14375_v17, %v11073_v61  ;;  %v11216_v40 = vmul.f32 %v11191_v3, %v11167_v2 }
 0xb59   : > { %v14379_v48 = vpop.eup %14378  ;;  %v11168_v10 = vmul.f32 %v14377_v7, %v16425_v12 }
 0xb5a   : > { %v11218_v0 = vmul.f32 %v11199_v60, %v11169_v20  ;;  %v11170_v30 = vmul.f32 %v14379_v48, %v16427_v9  ;;  %v11265_v63 = vadd.f32 %v11240_v14, %v11216_v40 }
 0xb5b   : > { %v11217_v26 = vmul.f32 %v11195_v8, %v11168_v10 }
 0xb5c   : > { %v11267_v49 = vadd.f32 %v11248_v36, %v11218_v0  ;;  %v11219_v52 = vmul.f32 %v11203_v11, %v11170_v30 }
 0xb5d   : > { %v11266_v61 = vadd.f32 %v11244_v62, %v11217_v26 }
 0xb5e   : > { %v11268_v6 = vadd.f32 %v11252_v51, %v11219_v52 }
 0xb5f   : > { %v11294_v35 = vcombine.low %v11265_v63, %v11266_v61 }
 0xb60   : > { %v11295_v46 = vcombine.low %v11267_v49, %v11268_v6 }
 0xb61   : > { %v11302_v29 = vrot.slane %v11294_v35, %v15685_v57 }
 0xb62   : > { %v11309_v13 = vrot.slane %v11295_v46, %v15685_v57 }
 0xb64   : > { %v11310_v12 = vcombine.low %v11302_v29, %v11309_v13 }
 0xb66   : > { %11314 = vst [vmem:[#allocation22 + $0x8] sm:$0xff] %v11310_v12 }
 0xb67 PF: > { %p13216_p13 = scmp.eq.s32.totalorder %s14930_s14, 3  ;;  %s14838_s2 = smov [#allocation22]  }
 0xb68   : > { %s11322_s18 = sshll.u32 %s14838_s2, 4  ;;  %s11323_s18 = int_to_ptr.vmem [resolvable:$true] %s11322_s18 }
 0xb69   : > { %s14722_s20 = scalar_lea.vmem %s11323_s18, 256  ;;  %p14729_p6 = scmp.lt.s32.totalorder %s11323_s18, %s11323_s18 }
 0xb6a   : > { %p14723_p2 = scmp.ne.s32.totalorder %s11323_s18, %s14722_s20  ;;  %p14730_p0 = scmp.lt.s32.totalorder %s14722_s20, %s14722_s20 }
 0xb6c   : > { %p14724_p5 = pnand %p14723_p2, %p13216_p13  ;;  %p14731_p1 = por %p14730_p0, %p14729_p6 }
 0xb6e   : > { %p14725_p12 = pneg %p14724_p5 }
 0xb70   : > { %p14732_p4 = pnand %p14731_p1, %p14725_p12 }
 0xb72   : > { %14735 = shalt.err (!%p14732_p4)
}
 0xb73   : > { %s16582_s21 = sld [smem:[#allocation42_spill]] }
 0xb79   : > { %s14736_s25 = scalar_lea.hbm %s16582_s21, 256 }
 0xb7a   : > { %p14737_p8 = scmp.ne.s32.totalorder %s16582_s21, %s14736_s25  ;;  %p14742_p9 = scmp.lt.u32.totalorder %s14736_s25, %s16582_s21 }
 0xb7c   : > { %p14738_p10 = pnand %p14737_p8, %p13216_p13 }
 0xb7e   : > { %p14739_p7 = pneg %p14738_p10 }
 0xb80   : > { %p14744_p3 = pnand %p14742_p9, %p14739_p7 }
 0xb82   : > { %14747 = shalt.err (!%p14744_p3)
}
 0xb83   : > { %13156 = dma.vmem_to_hbm [thread:$0]  (%p13216_p13), %s11323_s18, 256, %s16582_s21, [#allocation7]  }
 0xb84   : > { %14797 = dma.done.wait (%p13216_p13), [#allocation7], 256  }
 0xb85   : > { %14799 = vsyncadd (%p13216_p13), [#allocation7], 4294967040 }
 0xb86 PF: > { %p25_p11 = scmp.ge.s32.totalorder %s15034_s12, 6   ;;  %s16583_s25 = smov %s14806_s26 }
 0xb87   : > { %s16584_s26 = smov %s14810_s27  ;;  %s16585_s27 = smov %s15045_s13 }
 0xb88   : > { %s16586_s28 = smov %s15034_s12  ;;  %27 = sbr.rel (!%p25_p11) target bundleno = 17 (0x11), region = 178 }
 0xb8f   :  { %11335 = vsyncpa [#allocation6], 1 }
 0xb90   :  { %11337 = vsyncpa [#allocation6 + $0x1], 1 }
 0xb91   :  { %11338 = vsyncpa [#allocation9], 1 }
 0xb92   :  { %11339 = vsyncpa [#allocation12], 1 }
 0xb93   :  { %11340 = vsyncpa [#allocation15], 1 }
 0xb94   :  { %11341 = vsyncpa [#allocation7], 1 }
 0xb95   :  { %11343 = vsyncpa [#allocation7 + $0x1], 1 }

</bundles_post_ra>
